<compile_context>
chip_gen: v5e
topology: v5e:2x2
jax: 0.10.0
libtpu: 0.0.40
codegen_flags: <defaults>
</compile_context>

<pallas_src>
import functools
import math

import jax
import jax.numpy as jnp
from jax.experimental import pallas as pl
from jax.experimental.pallas import tpu as pltpu


# ----------------------------------------------------------------------------
# Fused Pallas kernel: all TransformerConv layers + ReLU + final Linear
# ----------------------------------------------------------------------------
def fused_transgnn_kernel(*refs, num_layers, heads, out_ch, edge_dim, cat, lin):
    # refs layout: x[N,Fin] f32, ea[edge_dim,N,N] bf16, mask[N,N] f32,
    #              per layer: w_fused (bf16), b_fused (f32), we (f32),
    #              (wf_final bf16, bf_final f32) if lin, then out_ref.
    x_ref, ea_ref, mask_ref = refs[0], refs[1], refs[2]
    idx = 3
    layer_refs = []
    for _ in range(num_layers):
        layer_refs.append(refs[idx:idx + 3])
        idx += 3
    if lin:
        wfin_ref, bfin_ref = refs[idx], refs[idx + 1]
        idx += 2
    out_ref = refs[idx]

    H, C, D = heads, out_ch, edge_dim
    per_head = 3 * C + D
    neg_big = jnp.float32(-1e30)

    x = x_ref[...]                                    # [N, Fin]        f32
    mask = mask_ref[...]                              # [N, N]          f32
    ea = ea_ref[...].astype(jnp.float32)              # [edge_dim,N,N]  bf16 -> f32 once
    # Hoisted, layer-invariant mask quantities.
    edge_present = mask > 0.0                         # [N, N] bool
    row_has_edge = jnp.sum(mask, axis=-1, keepdims=True) > 0.0   # [N, 1]

    xs = [x]
    h_in = x
    for l in range(num_layers):
        wl_ref, bl_ref, we_ref = layer_refs[l]
        concat_l = (l != num_layers - 1)
        fskip = H * C if concat_l else C

        # ONE fused MXU matmul per layer (bf16 operands, f32 accumulation).
        # Columns: [q_0|k_0|v_0|qWe_0 | q_1|k_1|v_1|qWe_1 | ... | skip];
        # the 1/sqrt(C) scale is pre-folded into the q / qWe columns.
        proj = (jnp.dot(h_in.astype(jnp.bfloat16), wl_ref[...],
                        preferred_element_type=jnp.float32) + bl_ref[...])
        skip = proj[:, H * per_head:H * per_head + fskip]           # [N, fskip]
        we = we_ref[...]                                            # [D, H*C] f32 (tiny)

        head_out = []
        for h in range(H):
            base = h * per_head
            q_h = proj[:, base:base + C]                            # [N, C] (scaled)
            k_h = proj[:, base + C:base + 2 * C]                    # [N, C]
            v_h = proj[:, base + 2 * C:base + 3 * C]                # [N, C]
            qwe_h = proj[:, base + 3 * C:base + 3 * C + D]          # [N, D] (scaled)

            # scores[i,j] = <q_i, k_j + We @ ea_ij> / sqrt(C)
            s = jnp.einsum('ic,jc->ij',
                           q_h.astype(jnp.bfloat16), k_h.astype(jnp.bfloat16),
                           preferred_element_type=jnp.float32)      # [N, N]
            for d in range(D):
                s = s + qwe_h[:, d:d + 1] * ea[d]
            s = jnp.where(edge_present, s, neg_big)                 # single mask select

            # Masked softmax over source nodes j (f32 statistics).
            m = jnp.max(s, axis=-1, keepdims=True)
            p = jnp.exp(s - m)             # masked entries underflow to exactly 0
            denom = jnp.sum(p, axis=-1, keepdims=True)
            inv = jnp.where(row_has_edge,
                            pl.reciprocal(denom, approx=True), 0.0)  # [N,1] guard
            alpha = p * inv                                          # [N, N]

            # out_i = sum_j alpha_ij * (v_j + We @ ea_ij)
            o_h = jnp.dot(alpha.astype(jnp.bfloat16), v_h.astype(jnp.bfloat16),
                          preferred_element_type=jnp.float32)        # [N, C]
            for d in range(D):
                ae_d = jnp.sum(alpha * ea[d], axis=-1, keepdims=True)   # [N, 1]
                o_h = o_h + ae_d * we[d:d + 1, h * C:(h + 1) * C]       # rank-1 update
            head_out.append(o_h)

        if concat_l:
            agg = jnp.concatenate(head_out, axis=-1)                 # [N, H*C]
        else:
            acc = head_out[0]
            for hh in range(1, H):
                acc = acc + head_out[hh]
            agg = acc * jnp.float32(1.0 / H)                         # [N, C]

        h_out = jnp.maximum(agg + skip, 0.0)    # skip connection + ReLU
        xs.append(h_out)
        h_in = h_out

    feat = jnp.concatenate(xs, axis=-1) if cat else xs[-1]
    # dropout p=0.0 / eval mode -> identity
    if lin:
        out = (jnp.dot(feat.astype(jnp.bfloat16), wfin_ref[...],
                       preferred_element_type=jnp.float32) + bfin_ref[...])
    else:
        out = feat
    out_ref[...] = out.astype(out_ref.dtype)


# ----------------------------------------------------------------------------
# Wrapper
# ----------------------------------------------------------------------------
def _vmem():
    return pl.BlockSpec(memory_space=pltpu.MemorySpace.VMEM)


def _build_fused_layer(p, H, C, D, concat_l):
    """Pack wq/wk/wv/(wq@We^T)/ws into one [Fin, Wtot] weight + [1, Wtot] bias.
    The 1/sqrt(C) score scale is folded into the q / qWe columns."""
    scale = jnp.float32(1.0 / math.sqrt(C))
    fin = p["wq"].shape[0]
    fskip = H * C if concat_l else C
    per_head = 3 * C + D
    wtot = H * per_head + fskip
    wl = jnp.zeros((fin, wtot), jnp.float32)
    bl = jnp.zeros((1, wtot), jnp.float32)
    for h in range(H):
        base = h * per_head
        sl = slice(h * C, (h + 1) * C)
        wq_h = p["wq"][:, sl] * scale
        bq_h = p["bq"][:, sl] * scale
        we_h = p["we"][:, sl]                                   # [D, C]
        wl = wl.at[:, base:base + C].set(wq_h)
        bl = bl.at[:, base:base + C].set(bq_h)
        wl = wl.at[:, base + C:base + 2 * C].set(p["wk"][:, sl])
        bl = bl.at[:, base + C:base + 2 * C].set(p["bk"][:, sl])
        wl = wl.at[:, base + 2 * C:base + 3 * C].set(p["wv"][:, sl])
        bl = bl.at[:, base + 2 * C:base + 3 * C].set(p["bv"][:, sl])
        # q-side edge projection folded: (x Wq + bq) We^T = x (Wq We^T) + bq We^T
        wl = wl.at[:, base + 3 * C:base + 3 * C + D].set(wq_h @ we_h.T)
        bl = bl.at[:, base + 3 * C:base + 3 * C + D].set(bq_h @ we_h.T)
    wl = wl.at[:, H * per_head:].set(p["ws"])
    bl = bl.at[:, H * per_head:].set(p["bs"])
    return wl.astype(jnp.bfloat16), bl, p["we"].astype(jnp.float32)


def trans_gnn_forward(x, ea_t, mask, conv_params, wf, bf, *,
                      heads, out_channels, edge_dim, cat, lin):
    num_layers = len(conv_params)
    n = x.shape[0]
    H, C, D = heads, out_channels, edge_dim

    # ea is the only O(edge_dim*N^2) input -> store it bf16 (halves HBM bytes).
    args = [x, ea_t.astype(jnp.bfloat16), mask]
    for l, p in enumerate(conv_params):
        concat_l = (l != num_layers - 1)
        wl, bl, we = _build_fused_layer(p, H, C, D, concat_l)
        args += [wl, bl, we]

    if lin:
        # Zero-pad final projection to a 128-wide lane-dense output slab
        # (unmasked full-lane store in the kernel); slice real channels afterwards.
        out_pad = ((out_channels + 127) // 128) * 128
        wf_p = jnp.zeros((wf.shape[0], out_pad), jnp.float32).at[:, :out_channels].set(wf)
        bf_p = jnp.zeros((1, out_pad), jnp.float32).at[:, :out_channels].set(bf)
        args += [wf_p.astype(jnp.bfloat16), bf_p]
        out_width = out_pad
    else:
        widths = [x.shape[1]]
        for l in range(num_layers):
            concat_l = (l != num_layers - 1)
            widths.append(out_channels * heads if concat_l else out_channels)
        out_width = sum(widths) if cat else widths[-1]

    kernel = functools.partial(fused_transgnn_kernel, num_layers=num_layers,
                               heads=H, out_ch=C, edge_dim=D, cat=cat, lin=lin)
    out = pl.pallas_call(
        kernel,
        out_shape=jax.ShapeDtypeStruct((n, out_width), jnp.float32),
        in_specs=[_vmem() for _ in args],
        out_specs=_vmem(),
        compiler_params=pltpu.CompilerParams(vmem_limit_bytes=32 * 1024 * 1024),
    )(*args)
    if lin:
        out = out[:, :out_channels]
    return out


# ----------------------------------------------------------------------------
# Pure-JAX reference (fp32, unfused) for tolerance checking
# ----------------------------------------------------------------------------
def trans_gnn_ref(x, ea_t, mask, conv_params, wf, bf, *,
                  heads, out_channels, edge_dim, cat, lin):
    H, C = heads, out_channels
    scale = 1.0 / math.sqrt(out_channels)
    edge = mask > 0.0
    num_layers = len(conv_params)
    xs = [x]
    h = x
    for l, p in enumerate(conv_params):
        concat_l = (l != num_layers - 1)
        q = h @ p["wq"] + p["bq"]
        k = h @ p["wk"] + p["bk"]
        v = h @ p["wv"] + p["bv"]
        skip = h @ p["ws"] + p["bs"]
        eh = jnp.einsum('dij,dc->ijc', ea_t, p["we"])        # [N,N,H*C]
        outs = []
        for hh in range(H):
            sl = slice(hh * C, (hh + 1) * C)
            qh, kh, vh, ehh = q[:, sl], k[:, sl], v[:, sl], eh[:, :, sl]
            s = (jnp.einsum('ic,jc->ij', qh, kh)
                 + jnp.einsum('ic,ijc->ij', qh, ehh)) * scale
            s = jnp.where(edge, s, -1e30)
            m = jnp.max(s, axis=-1, keepdims=True)
            pexp = jnp.where(edge, jnp.exp(s - m), 0.0)
            den = jnp.sum(pexp, axis=-1, keepdims=True)
            alpha = jnp.where(den > 0, pexp / jnp.maximum(den, 1e-30), 0.0)
            outs.append(alpha @ vh + jnp.einsum('ij,ijc->ic', alpha, ehh))
        agg = jnp.concatenate(outs, -1) if concat_l else sum(outs) / H
        h = jax.nn.relu(agg + skip)
        xs.append(h)
    feat = jnp.concatenate(xs, -1) if cat else xs[-1]
    return feat @ wf + bf if lin else feat


# ----------------------------------------------------------------------------
# Glue: parameter init and edge-list densification (plain JAX)
# ----------------------------------------------------------------------------
def init_conv_params(key, fin, out_ch, heads, edge_dim, concat):
    hc = heads * out_ch
    fskip = hc if concat else out_ch
    ks = jax.random.split(key, 10)

    def w(k, shape):
        return jax.random.normal(k, shape, jnp.float32) * 0.1

    return dict(
        wq=w(ks[0], (fin, hc)), bq=w(ks[1], (1, hc)),
        wk=w(ks[2], (fin, hc)), bk=w(ks[3], (1, hc)),
        wv=w(ks[4], (fin, hc)), bv=w(ks[5], (1, hc)),
        we=w(ks[6], (edge_dim, hc)),                          # lin_edge, no bias
        ws=w(ks[7], (fin, fskip)), bs=w(ks[8], (1, fskip)),   # lin_skip
    )


def densify_edges(edge_index, edge_attr, num_nodes):
    """edge_index[0]=src(j), edge_index[1]=dst(i); message j -> i.
    Returns mask [N,N] (f32) and lane-dense ea [edge_dim, N, N] (f32)."""
    src, dst = edge_index[0], edge_index[1]
    mask = jnp.zeros((num_nodes, num_nodes), jnp.float32).at[dst, src].set(1.0)
    ea_t = jnp.zeros((edge_attr.shape[-1], num_nodes, num_nodes),
                     jnp.float32).at[:, dst, src].set(edge_attr.T)
    return mask, ea_t


# ----------------------------------------------------------------------------
if __name__ == "__main__":
    # TransGNN(in_channels=8, out_channels=8, dim=4, num_layers=2, num_head=2,
    #          cat=False, lin=True, dropout=0.0), eval mode.
    N = 128                                # multiple of 128 -> lane-dense [N,N] tiles
    in_channels, out_channels, edge_dim = 8, 8, 4
    num_layers, heads = 2, 2
    cat, lin_flag = False, True

    key = jax.random.PRNGKey(0)
    kx, ke, kp = jax.random.split(key, 3)

    x = jax.random.normal(kx, (N, in_channels), jnp.float32)

    # Bidirectional ring graph: every node has exactly 2 incoming edges.
    idx = jnp.arange(N)
    src = jnp.concatenate([idx, (idx + 1) % N])
    dst = jnp.concatenate([(idx + 1) % N, idx])
    edge_index = jnp.stack([src, dst]).astype(jnp.int32)       # [2, E]
    E = edge_index.shape[1]
    edge_attr = jax.random.normal(ke, (E, edge_dim), jnp.float32)

    mask, ea_t = densify_edges(edge_index, edge_attr, N)

    # Deterministic synthetic parameters.
    pkeys = jax.random.split(kp, num_layers + 1)
    conv_params = []
    fin = in_channels
    for l in range(num_layers):
        concat_l = (l != num_layers - 1)
        conv_params.append(init_conv_params(pkeys[l], fin, out_channels,
                                            heads, edge_dim, concat_l))
        fin = out_channels * heads if concat_l else out_channels
    final_in = (in_channels + num_layers * out_channels) if cat else out_channels
    wf = jax.random.normal(pkeys[-1], (final_in, out_channels), jnp.float32) * 0.1
    bf = jnp.zeros((1, out_channels), jnp.float32)

    out = trans_gnn_forward(x, ea_t, mask, conv_params, wf, bf,
                            heads=heads, out_channels=out_channels,
                            edge_dim=edge_dim, cat=cat, lin=lin_flag)
    jax.block_until_ready(out)
    assert out.shape == (N, out_channels)

    # Tolerance-asserted fp32 reference (bf16 MXU operands + approx reciprocal
    # introduce small deviations).
    ref = trans_gnn_ref(x, ea_t, mask, conv_params, wf, bf,
                        heads=heads, out_channels=out_channels,
                        edge_dim=edge_dim, cat=cat, lin=lin_flag)
    err = float(jnp.max(jnp.abs(out - ref)))
    assert err < 5e-2, f"max abs err {err}"
    print("KERNEL_OK")
</pallas_src>

<mosaic_0001>
module attributes {stable_mosaic.version = 11 : i64} {
  func.func @fused_transgnn_kernel(%arg0: memref<128x8xf32, #tpu.memory_space<vmem>>, %arg1: memref<4x128x128xbf16, #tpu.memory_space<vmem>>, %arg2: memref<128x128xf32, #tpu.memory_space<vmem>>, %arg3: memref<8x72xbf16, #tpu.memory_space<vmem>>, %arg4: memref<1x72xf32, #tpu.memory_space<vmem>>, %arg5: memref<4x16xf32, #tpu.memory_space<vmem>>, %arg6: memref<16x64xbf16, #tpu.memory_space<vmem>>, %arg7: memref<1x64xf32, #tpu.memory_space<vmem>>, %arg8: memref<4x16xf32, #tpu.memory_space<vmem>>, %arg9: memref<8x128xbf16, #tpu.memory_space<vmem>>, %arg10: memref<1x128xf32, #tpu.memory_space<vmem>>, %arg11: memref<128x128xf32, #tpu.memory_space<vmem>>) attributes {dimension_semantics = [], scalar_prefetch = 0 : i64, scratch_operands = 0 : i64, tpu.core_type = #tpu.core_type<tc>} {
    %c0 = arith.constant 0 : index
    %c0_0 = arith.constant 0 : index
    %0 = vector.load %arg0[%c0, %c0_0] : memref<128x8xf32, #tpu.memory_space<vmem>>, vector<128x8xf32>
    %c0_1 = arith.constant 0 : index
    %c0_2 = arith.constant 0 : index
    %1 = vector.load %arg2[%c0_1, %c0_2] : memref<128x128xf32, #tpu.memory_space<vmem>>, vector<128x128xf32>
    %c0_3 = arith.constant 0 : index
    %c0_4 = arith.constant 0 : index
    %c0_5 = arith.constant 0 : index
    %2 = vector.load %arg1[%c0_3, %c0_4, %c0_5] : memref<4x128x128xbf16, #tpu.memory_space<vmem>>, vector<4x128x128xbf16>
    %3 = arith.extf %2 : vector<4x128x128xbf16> to vector<4x128x128xf32>
    %cst = arith.constant 0.000000e+00 : f32
    %4 = vector.broadcast %cst : f32 to vector<128x128xf32>
    %5 = arith.cmpf ogt, %1, %4 : vector<128x128xf32>
    %cst_6 = arith.constant dense<0.000000e+00> : vector<128xf32>
    %6 = vector.multi_reduction <add>, %1, %cst_6 [1] : vector<128x128xf32> to vector<128xf32>
    %7 = vector.shape_cast %6 : vector<128xf32> to vector<128x1xf32>
    %cst_7 = arith.constant 0.000000e+00 : f32
    %8 = vector.broadcast %cst_7 : f32 to vector<128x1xf32>
    %9 = arith.cmpf ogt, %7, %8 : vector<128x1xf32>
    %10 = arith.truncf %0 : vector<128x8xf32> to vector<128x8xbf16>
    %c0_8 = arith.constant 0 : index
    %c0_9 = arith.constant 0 : index
    %11 = vector.load %arg3[%c0_8, %c0_9] : memref<8x72xbf16, #tpu.memory_space<vmem>>, vector<8x72xbf16>
    %cst_10 = arith.constant dense<0.000000e+00> : vector<128x72xf32>
    %12 = tpu.matmul %10, %11, %cst_10 {dimension_numbers = #tpu.dot_dimension_numbers<[1], [0], [0], [1], [0, 0, 1, 1], [], []>} : vector<128x8xbf16>, vector<8x72xbf16>, vector<128x72xf32> -> vector<128x72xf32>
    %c0_11 = arith.constant 0 : index
    %c0_12 = arith.constant 0 : index
    %13 = vector.load %arg4[%c0_11, %c0_12] : memref<1x72xf32, #tpu.memory_space<vmem>>, vector<1x72xf32>
    %14 = vector.broadcast %13 : vector<1x72xf32> to vector<128x72xf32>
    %15 = arith.addf %12, %14 : vector<128x72xf32>
    %16 = vector.extract_strided_slice %15 {offsets = [0, 56], sizes = [128, 16], strides = [1, 1]} : vector<128x72xf32> to vector<128x16xf32>
    %c0_13 = arith.constant 0 : index
    %c0_14 = arith.constant 0 : index
    %17 = vector.load %arg5[%c0_13, %c0_14] : memref<4x16xf32, #tpu.memory_space<vmem>>, vector<4x16xf32>
    %18 = vector.extract_strided_slice %15 {offsets = [0, 0], sizes = [128, 8], strides = [1, 1]} : vector<128x72xf32> to vector<128x8xf32>
    %19 = vector.extract_strided_slice %15 {offsets = [0, 8], sizes = [128, 8], strides = [1, 1]} : vector<128x72xf32> to vector<128x8xf32>
    %20 = vector.extract_strided_slice %15 {offsets = [0, 16], sizes = [128, 8], strides = [1, 1]} : vector<128x72xf32> to vector<128x8xf32>
    %21 = vector.extract_strided_slice %15 {offsets = [0, 24], sizes = [128, 4], strides = [1, 1]} : vector<128x72xf32> to vector<128x4xf32>
    %22 = arith.truncf %18 : vector<128x8xf32> to vector<128x8xbf16>
    %23 = arith.truncf %19 : vector<128x8xf32> to vector<128x8xbf16>
    "tpu.trace_start"() <{level = 10 : i32, message = "ic,jc->ij"}> : () -> ()
    %cst_15 = arith.constant dense<0.000000e+00> : vector<128x128xf32>
    %24 = tpu.matmul %22, %23, %cst_15 {dimension_numbers = #tpu.dot_dimension_numbers<[1], [1], [0], [0], [0, 0, 1, 0], [], []>} : vector<128x8xbf16>, vector<128x8xbf16>, vector<128x128xf32> -> vector<128x128xf32>
    "tpu.trace_stop"() : () -> ()
    %25 = vector.extract_strided_slice %21 {offsets = [0, 0], sizes = [128, 1], strides = [1, 1]} : vector<128x4xf32> to vector<128x1xf32>
    %26 = vector.extract_strided_slice %3 {offsets = [0, 0, 0], sizes = [1, 128, 128], strides = [1, 1, 1]} : vector<4x128x128xf32> to vector<1x128x128xf32>
    %27 = vector.shape_cast %26 : vector<1x128x128xf32> to vector<128x128xf32>
    %28 = vector.broadcast %25 : vector<128x1xf32> to vector<128x128xf32>
    %29 = arith.mulf %28, %27 : vector<128x128xf32>
    %30 = arith.addf %24, %29 : vector<128x128xf32>
    %31 = vector.extract_strided_slice %21 {offsets = [0, 1], sizes = [128, 1], strides = [1, 1]} : vector<128x4xf32> to vector<128x1xf32>
    %32 = vector.extract_strided_slice %3 {offsets = [1, 0, 0], sizes = [1, 128, 128], strides = [1, 1, 1]} : vector<4x128x128xf32> to vector<1x128x128xf32>
    %33 = vector.shape_cast %32 : vector<1x128x128xf32> to vector<128x128xf32>
    %34 = vector.broadcast %31 : vector<128x1xf32> to vector<128x128xf32>
    %35 = arith.mulf %34, %33 : vector<128x128xf32>
    %36 = arith.addf %30, %35 : vector<128x128xf32>
    %37 = vector.extract_strided_slice %21 {offsets = [0, 2], sizes = [128, 1], strides = [1, 1]} : vector<128x4xf32> to vector<128x1xf32>
    %38 = vector.extract_strided_slice %3 {offsets = [2, 0, 0], sizes = [1, 128, 128], strides = [1, 1, 1]} : vector<4x128x128xf32> to vector<1x128x128xf32>
    %39 = vector.shape_cast %38 : vector<1x128x128xf32> to vector<128x128xf32>
    %40 = vector.broadcast %37 : vector<128x1xf32> to vector<128x128xf32>
    %41 = arith.mulf %40, %39 : vector<128x128xf32>
    %42 = arith.addf %36, %41 : vector<128x128xf32>
    %43 = vector.extract_strided_slice %21 {offsets = [0, 3], sizes = [128, 1], strides = [1, 1]} : vector<128x4xf32> to vector<128x1xf32>
    %44 = vector.extract_strided_slice %3 {offsets = [3, 0, 0], sizes = [1, 128, 128], strides = [1, 1, 1]} : vector<4x128x128xf32> to vector<1x128x128xf32>
    %45 = vector.shape_cast %44 : vector<1x128x128xf32> to vector<128x128xf32>
    %46 = vector.broadcast %43 : vector<128x1xf32> to vector<128x128xf32>
    %47 = arith.mulf %46, %45 : vector<128x128xf32>
    %48 = arith.addf %42, %47 : vector<128x128xf32>
    %cst_16 = arith.constant -1.000000e+30 : f32
    %49 = vector.broadcast %cst_16 : f32 to vector<128x128xf32>
    %50 = arith.select %5, %48, %49 : vector<128x128xi1>, vector<128x128xf32>
    %cst_17 = arith.constant dense<0xFF800000> : vector<128xf32>
    %51 = vector.multi_reduction <maximumf>, %50, %cst_17 [1] : vector<128x128xf32> to vector<128xf32>
    %52 = vector.shape_cast %51 : vector<128xf32> to vector<128x1xf32>
    %53 = vector.broadcast %52 : vector<128x1xf32> to vector<128x128xf32>
    %54 = arith.subf %50, %53 : vector<128x128xf32>
    %55 = math.exp %54 : vector<128x128xf32>
    %cst_18 = arith.constant dense<0.000000e+00> : vector<128xf32>
    %56 = vector.multi_reduction <add>, %55, %cst_18 [1] : vector<128x128xf32> to vector<128xf32>
    %57 = vector.shape_cast %56 : vector<128xf32> to vector<128x1xf32>
    %58 = tpu.reciprocal %57 {approx = true} : vector<128x1xf32> -> vector<128x1xf32>
    %cst_19 = arith.constant 0.000000e+00 : f32
    %59 = vector.broadcast %cst_19 : f32 to vector<128x1xf32>
    %60 = arith.select %9, %58, %59 : vector<128x1xi1>, vector<128x1xf32>
    %61 = vector.broadcast %60 : vector<128x1xf32> to vector<128x128xf32>
    %62 = arith.mulf %55, %61 : vector<128x128xf32>
    %63 = arith.truncf %62 : vector<128x128xf32> to vector<128x128xbf16>
    %64 = arith.truncf %20 : vector<128x8xf32> to vector<128x8xbf16>
    %cst_20 = arith.constant dense<0.000000e+00> : vector<128x8xf32>
    %65 = tpu.matmul %63, %64, %cst_20 {dimension_numbers = #tpu.dot_dimension_numbers<[1], [0], [0], [1], [0, 0, 1, 1], [], []>} : vector<128x128xbf16>, vector<128x8xbf16>, vector<128x8xf32> -> vector<128x8xf32>
    %66 = vector.extract_strided_slice %3 {offsets = [0, 0, 0], sizes = [1, 128, 128], strides = [1, 1, 1]} : vector<4x128x128xf32> to vector<1x128x128xf32>
    %67 = vector.shape_cast %66 : vector<1x128x128xf32> to vector<128x128xf32>
    %68 = arith.mulf %62, %67 : vector<128x128xf32>
    %cst_21 = arith.constant dense<0.000000e+00> : vector<128xf32>
    %69 = vector.multi_reduction <add>, %68, %cst_21 [1] : vector<128x128xf32> to vector<128xf32>
    %70 = vector.shape_cast %69 : vector<128xf32> to vector<128x1xf32>
    %71 = vector.extract_strided_slice %17 {offsets = [0, 0], sizes = [1, 8], strides = [1, 1]} : vector<4x16xf32> to vector<1x8xf32>
    %72 = vector.broadcast %70 : vector<128x1xf32> to vector<128x8xf32>
    %73 = vector.broadcast %71 : vector<1x8xf32> to vector<128x8xf32>
    %74 = arith.mulf %72, %73 : vector<128x8xf32>
    %75 = arith.addf %65, %74 : vector<128x8xf32>
    %76 = vector.extract_strided_slice %3 {offsets = [1, 0, 0], sizes = [1, 128, 128], strides = [1, 1, 1]} : vector<4x128x128xf32> to vector<1x128x128xf32>
    %77 = vector.shape_cast %76 : vector<1x128x128xf32> to vector<128x128xf32>
    %78 = arith.mulf %62, %77 : vector<128x128xf32>
    %cst_22 = arith.constant dense<0.000000e+00> : vector<128xf32>
    %79 = vector.multi_reduction <add>, %78, %cst_22 [1] : vector<128x128xf32> to vector<128xf32>
    %80 = vector.shape_cast %79 : vector<128xf32> to vector<128x1xf32>
    %81 = vector.extract_strided_slice %17 {offsets = [1, 0], sizes = [1, 8], strides = [1, 1]} : vector<4x16xf32> to vector<1x8xf32>
    %82 = vector.broadcast %80 : vector<128x1xf32> to vector<128x8xf32>
    %83 = vector.broadcast %81 : vector<1x8xf32> to vector<128x8xf32>
    %84 = arith.mulf %82, %83 : vector<128x8xf32>
    %85 = arith.addf %75, %84 : vector<128x8xf32>
    %86 = vector.extract_strided_slice %3 {offsets = [2, 0, 0], sizes = [1, 128, 128], strides = [1, 1, 1]} : vector<4x128x128xf32> to vector<1x128x128xf32>
    %87 = vector.shape_cast %86 : vector<1x128x128xf32> to vector<128x128xf32>
    %88 = arith.mulf %62, %87 : vector<128x128xf32>
    %cst_23 = arith.constant dense<0.000000e+00> : vector<128xf32>
    %89 = vector.multi_reduction <add>, %88, %cst_23 [1] : vector<128x128xf32> to vector<128xf32>
    %90 = vector.shape_cast %89 : vector<128xf32> to vector<128x1xf32>
    %91 = vector.extract_strided_slice %17 {offsets = [2, 0], sizes = [1, 8], strides = [1, 1]} : vector<4x16xf32> to vector<1x8xf32>
    %92 = vector.broadcast %90 : vector<128x1xf32> to vector<128x8xf32>
    %93 = vector.broadcast %91 : vector<1x8xf32> to vector<128x8xf32>
    %94 = arith.mulf %92, %93 : vector<128x8xf32>
    %95 = arith.addf %85, %94 : vector<128x8xf32>
    %96 = vector.extract_strided_slice %3 {offsets = [3, 0, 0], sizes = [1, 128, 128], strides = [1, 1, 1]} : vector<4x128x128xf32> to vector<1x128x128xf32>
    %97 = vector.shape_cast %96 : vector<1x128x128xf32> to vector<128x128xf32>
    %98 = arith.mulf %62, %97 : vector<128x128xf32>
    %cst_24 = arith.constant dense<0.000000e+00> : vector<128xf32>
    %99 = vector.multi_reduction <add>, %98, %cst_24 [1] : vector<128x128xf32> to vector<128xf32>
    %100 = vector.shape_cast %99 : vector<128xf32> to vector<128x1xf32>
    %101 = vector.extract_strided_slice %17 {offsets = [3, 0], sizes = [1, 8], strides = [1, 1]} : vector<4x16xf32> to vector<1x8xf32>
    %102 = vector.broadcast %100 : vector<128x1xf32> to vector<128x8xf32>
    %103 = vector.broadcast %101 : vector<1x8xf32> to vector<128x8xf32>
    %104 = arith.mulf %102, %103 : vector<128x8xf32>
    %105 = arith.addf %95, %104 : vector<128x8xf32>
    %106 = vector.extract_strided_slice %15 {offsets = [0, 28], sizes = [128, 8], strides = [1, 1]} : vector<128x72xf32> to vector<128x8xf32>
    %107 = vector.extract_strided_slice %15 {offsets = [0, 36], sizes = [128, 8], strides = [1, 1]} : vector<128x72xf32> to vector<128x8xf32>
    %108 = vector.extract_strided_slice %15 {offsets = [0, 44], sizes = [128, 8], strides = [1, 1]} : vector<128x72xf32> to vector<128x8xf32>
    %109 = vector.extract_strided_slice %15 {offsets = [0, 52], sizes = [128, 4], strides = [1, 1]} : vector<128x72xf32> to vector<128x4xf32>
    %110 = arith.truncf %106 : vector<128x8xf32> to vector<128x8xbf16>
    %111 = arith.truncf %107 : vector<128x8xf32> to vector<128x8xbf16>
    "tpu.trace_start"() <{level = 10 : i32, message = "ic,jc->ij"}> : () -> ()
    %cst_25 = arith.constant dense<0.000000e+00> : vector<128x128xf32>
    %112 = tpu.matmul %110, %111, %cst_25 {dimension_numbers = #tpu.dot_dimension_numbers<[1], [1], [0], [0], [0, 0, 1, 0], [], []>} : vector<128x8xbf16>, vector<128x8xbf16>, vector<128x128xf32> -> vector<128x128xf32>
    "tpu.trace_stop"() : () -> ()
    %113 = vector.extract_strided_slice %109 {offsets = [0, 0], sizes = [128, 1], strides = [1, 1]} : vector<128x4xf32> to vector<128x1xf32>
    %114 = vector.extract_strided_slice %3 {offsets = [0, 0, 0], sizes = [1, 128, 128], strides = [1, 1, 1]} : vector<4x128x128xf32> to vector<1x128x128xf32>
    %115 = vector.shape_cast %114 : vector<1x128x128xf32> to vector<128x128xf32>
    %116 = vector.broadcast %113 : vector<128x1xf32> to vector<128x128xf32>
    %117 = arith.mulf %116, %115 : vector<128x128xf32>
    %118 = arith.addf %112, %117 : vector<128x128xf32>
    %119 = vector.extract_strided_slice %109 {offsets = [0, 1], sizes = [128, 1], strides = [1, 1]} : vector<128x4xf32> to vector<128x1xf32>
    %120 = vector.extract_strided_slice %3 {offsets = [1, 0, 0], sizes = [1, 128, 128], strides = [1, 1, 1]} : vector<4x128x128xf32> to vector<1x128x128xf32>
    %121 = vector.shape_cast %120 : vector<1x128x128xf32> to vector<128x128xf32>
    %122 = vector.broadcast %119 : vector<128x1xf32> to vector<128x128xf32>
    %123 = arith.mulf %122, %121 : vector<128x128xf32>
    %124 = arith.addf %118, %123 : vector<128x128xf32>
    %125 = vector.extract_strided_slice %109 {offsets = [0, 2], sizes = [128, 1], strides = [1, 1]} : vector<128x4xf32> to vector<128x1xf32>
    %126 = vector.extract_strided_slice %3 {offsets = [2, 0, 0], sizes = [1, 128, 128], strides = [1, 1, 1]} : vector<4x128x128xf32> to vector<1x128x128xf32>
    %127 = vector.shape_cast %126 : vector<1x128x128xf32> to vector<128x128xf32>
    %128 = vector.broadcast %125 : vector<128x1xf32> to vector<128x128xf32>
    %129 = arith.mulf %128, %127 : vector<128x128xf32>
    %130 = arith.addf %124, %129 : vector<128x128xf32>
    %131 = vector.extract_strided_slice %109 {offsets = [0, 3], sizes = [128, 1], strides = [1, 1]} : vector<128x4xf32> to vector<128x1xf32>
    %132 = vector.extract_strided_slice %3 {offsets = [3, 0, 0], sizes = [1, 128, 128], strides = [1, 1, 1]} : vector<4x128x128xf32> to vector<1x128x128xf32>
    %133 = vector.shape_cast %132 : vector<1x128x128xf32> to vector<128x128xf32>
    %134 = vector.broadcast %131 : vector<128x1xf32> to vector<128x128xf32>
    %135 = arith.mulf %134, %133 : vector<128x128xf32>
    %136 = arith.addf %130, %135 : vector<128x128xf32>
    %cst_26 = arith.constant -1.000000e+30 : f32
    %137 = vector.broadcast %cst_26 : f32 to vector<128x128xf32>
    %138 = arith.select %5, %136, %137 : vector<128x128xi1>, vector<128x128xf32>
    %cst_27 = arith.constant dense<0xFF800000> : vector<128xf32>
    %139 = vector.multi_reduction <maximumf>, %138, %cst_27 [1] : vector<128x128xf32> to vector<128xf32>
    %140 = vector.shape_cast %139 : vector<128xf32> to vector<128x1xf32>
    %141 = vector.broadcast %140 : vector<128x1xf32> to vector<128x128xf32>
    %142 = arith.subf %138, %141 : vector<128x128xf32>
    %143 = math.exp %142 : vector<128x128xf32>
    %cst_28 = arith.constant dense<0.000000e+00> : vector<128xf32>
    %144 = vector.multi_reduction <add>, %143, %cst_28 [1] : vector<128x128xf32> to vector<128xf32>
    %145 = vector.shape_cast %144 : vector<128xf32> to vector<128x1xf32>
    %146 = tpu.reciprocal %145 {approx = true} : vector<128x1xf32> -> vector<128x1xf32>
    %cst_29 = arith.constant 0.000000e+00 : f32
    %147 = vector.broadcast %cst_29 : f32 to vector<128x1xf32>
    %148 = arith.select %9, %146, %147 : vector<128x1xi1>, vector<128x1xf32>
    %149 = vector.broadcast %148 : vector<128x1xf32> to vector<128x128xf32>
    %150 = arith.mulf %143, %149 : vector<128x128xf32>
    %151 = arith.truncf %150 : vector<128x128xf32> to vector<128x128xbf16>
    %152 = arith.truncf %108 : vector<128x8xf32> to vector<128x8xbf16>
    %cst_30 = arith.constant dense<0.000000e+00> : vector<128x8xf32>
    %153 = tpu.matmul %151, %152, %cst_30 {dimension_numbers = #tpu.dot_dimension_numbers<[1], [0], [0], [1], [0, 0, 1, 1], [], []>} : vector<128x128xbf16>, vector<128x8xbf16>, vector<128x8xf32> -> vector<128x8xf32>
    %154 = vector.extract_strided_slice %3 {offsets = [0, 0, 0], sizes = [1, 128, 128], strides = [1, 1, 1]} : vector<4x128x128xf32> to vector<1x128x128xf32>
    %155 = vector.shape_cast %154 : vector<1x128x128xf32> to vector<128x128xf32>
    %156 = arith.mulf %150, %155 : vector<128x128xf32>
    %cst_31 = arith.constant dense<0.000000e+00> : vector<128xf32>
    %157 = vector.multi_reduction <add>, %156, %cst_31 [1] : vector<128x128xf32> to vector<128xf32>
    %158 = vector.shape_cast %157 : vector<128xf32> to vector<128x1xf32>
    %159 = vector.extract_strided_slice %17 {offsets = [0, 8], sizes = [1, 8], strides = [1, 1]} : vector<4x16xf32> to vector<1x8xf32>
    %160 = vector.broadcast %158 : vector<128x1xf32> to vector<128x8xf32>
    %161 = vector.broadcast %159 : vector<1x8xf32> to vector<128x8xf32>
    %162 = arith.mulf %160, %161 : vector<128x8xf32>
    %163 = arith.addf %153, %162 : vector<128x8xf32>
    %164 = vector.extract_strided_slice %3 {offsets = [1, 0, 0], sizes = [1, 128, 128], strides = [1, 1, 1]} : vector<4x128x128xf32> to vector<1x128x128xf32>
    %165 = vector.shape_cast %164 : vector<1x128x128xf32> to vector<128x128xf32>
    %166 = arith.mulf %150, %165 : vector<128x128xf32>
    %cst_32 = arith.constant dense<0.000000e+00> : vector<128xf32>
    %167 = vector.multi_reduction <add>, %166, %cst_32 [1] : vector<128x128xf32> to vector<128xf32>
    %168 = vector.shape_cast %167 : vector<128xf32> to vector<128x1xf32>
    %169 = vector.extract_strided_slice %17 {offsets = [1, 8], sizes = [1, 8], strides = [1, 1]} : vector<4x16xf32> to vector<1x8xf32>
    %170 = vector.broadcast %168 : vector<128x1xf32> to vector<128x8xf32>
    %171 = vector.broadcast %169 : vector<1x8xf32> to vector<128x8xf32>
    %172 = arith.mulf %170, %171 : vector<128x8xf32>
    %173 = arith.addf %163, %172 : vector<128x8xf32>
    %174 = vector.extract_strided_slice %3 {offsets = [2, 0, 0], sizes = [1, 128, 128], strides = [1, 1, 1]} : vector<4x128x128xf32> to vector<1x128x128xf32>
    %175 = vector.shape_cast %174 : vector<1x128x128xf32> to vector<128x128xf32>
    %176 = arith.mulf %150, %175 : vector<128x128xf32>
    %cst_33 = arith.constant dense<0.000000e+00> : vector<128xf32>
    %177 = vector.multi_reduction <add>, %176, %cst_33 [1] : vector<128x128xf32> to vector<128xf32>
    %178 = vector.shape_cast %177 : vector<128xf32> to vector<128x1xf32>
    %179 = vector.extract_strided_slice %17 {offsets = [2, 8], sizes = [1, 8], strides = [1, 1]} : vector<4x16xf32> to vector<1x8xf32>
    %180 = vector.broadcast %178 : vector<128x1xf32> to vector<128x8xf32>
    %181 = vector.broadcast %179 : vector<1x8xf32> to vector<128x8xf32>
    %182 = arith.mulf %180, %181 : vector<128x8xf32>
    %183 = arith.addf %173, %182 : vector<128x8xf32>
    %184 = vector.extract_strided_slice %3 {offsets = [3, 0, 0], sizes = [1, 128, 128], strides = [1, 1, 1]} : vector<4x128x128xf32> to vector<1x128x128xf32>
    %185 = vector.shape_cast %184 : vector<1x128x128xf32> to vector<128x128xf32>
    %186 = arith.mulf %150, %185 : vector<128x128xf32>
    %cst_34 = arith.constant dense<0.000000e+00> : vector<128xf32>
    %187 = vector.multi_reduction <add>, %186, %cst_34 [1] : vector<128x128xf32> to vector<128xf32>
    %188 = vector.shape_cast %187 : vector<128xf32> to vector<128x1xf32>
    %189 = vector.extract_strided_slice %17 {offsets = [3, 8], sizes = [1, 8], strides = [1, 1]} : vector<4x16xf32> to vector<1x8xf32>
    %190 = vector.broadcast %188 : vector<128x1xf32> to vector<128x8xf32>
    %191 = vector.broadcast %189 : vector<1x8xf32> to vector<128x8xf32>
    %192 = arith.mulf %190, %191 : vector<128x8xf32>
    %193 = arith.addf %183, %192 : vector<128x8xf32>
    %194 = tpu.concatenate %105, %193 in 1 : vector<128x8xf32>, vector<128x8xf32> -> vector<128x16xf32>
    %195 = arith.addf %194, %16 : vector<128x16xf32>
    %cst_35 = arith.constant 0.000000e+00 : f32
    %196 = vector.broadcast %cst_35 : f32 to vector<128x16xf32>
    %197 = arith.maximumf %195, %196 : vector<128x16xf32>
    %198 = arith.truncf %197 : vector<128x16xf32> to vector<128x16xbf16>
    %c0_36 = arith.constant 0 : index
    %c0_37 = arith.constant 0 : index
    %199 = vector.load %arg6[%c0_36, %c0_37] : memref<16x64xbf16, #tpu.memory_space<vmem>>, vector<16x64xbf16>
    %cst_38 = arith.constant dense<0.000000e+00> : vector<128x64xf32>
    %200 = tpu.matmul %198, %199, %cst_38 {dimension_numbers = #tpu.dot_dimension_numbers<[1], [0], [0], [1], [0, 0, 1, 1], [], []>} : vector<128x16xbf16>, vector<16x64xbf16>, vector<128x64xf32> -> vector<128x64xf32>
    %c0_39 = arith.constant 0 : index
    %c0_40 = arith.constant 0 : index
    %201 = vector.load %arg7[%c0_39, %c0_40] : memref<1x64xf32, #tpu.memory_space<vmem>>, vector<1x64xf32>
    %202 = vector.broadcast %201 : vector<1x64xf32> to vector<128x64xf32>
    %203 = arith.addf %200, %202 : vector<128x64xf32>
    %204 = vector.extract_strided_slice %203 {offsets = [0, 56], sizes = [128, 8], strides = [1, 1]} : vector<128x64xf32> to vector<128x8xf32>
    %c0_41 = arith.constant 0 : index
    %c0_42 = arith.constant 0 : index
    %205 = vector.load %arg8[%c0_41, %c0_42] : memref<4x16xf32, #tpu.memory_space<vmem>>, vector<4x16xf32>
    %206 = vector.extract_strided_slice %203 {offsets = [0, 0], sizes = [128, 8], strides = [1, 1]} : vector<128x64xf32> to vector<128x8xf32>
    %207 = vector.extract_strided_slice %203 {offsets = [0, 8], sizes = [128, 8], strides = [1, 1]} : vector<128x64xf32> to vector<128x8xf32>
    %208 = vector.extract_strided_slice %203 {offsets = [0, 16], sizes = [128, 8], strides = [1, 1]} : vector<128x64xf32> to vector<128x8xf32>
    %209 = vector.extract_strided_slice %203 {offsets = [0, 24], sizes = [128, 4], strides = [1, 1]} : vector<128x64xf32> to vector<128x4xf32>
    %210 = arith.truncf %206 : vector<128x8xf32> to vector<128x8xbf16>
    %211 = arith.truncf %207 : vector<128x8xf32> to vector<128x8xbf16>
    "tpu.trace_start"() <{level = 10 : i32, message = "ic,jc->ij"}> : () -> ()
    %cst_43 = arith.constant dense<0.000000e+00> : vector<128x128xf32>
    %212 = tpu.matmul %210, %211, %cst_43 {dimension_numbers = #tpu.dot_dimension_numbers<[1], [1], [0], [0], [0, 0, 1, 0], [], []>} : vector<128x8xbf16>, vector<128x8xbf16>, vector<128x128xf32> -> vector<128x128xf32>
    "tpu.trace_stop"() : () -> ()
    %213 = vector.extract_strided_slice %209 {offsets = [0, 0], sizes = [128, 1], strides = [1, 1]} : vector<128x4xf32> to vector<128x1xf32>
    %214 = vector.extract_strided_slice %3 {offsets = [0, 0, 0], sizes = [1, 128, 128], strides = [1, 1, 1]} : vector<4x128x128xf32> to vector<1x128x128xf32>
    %215 = vector.shape_cast %214 : vector<1x128x128xf32> to vector<128x128xf32>
    %216 = vector.broadcast %213 : vector<128x1xf32> to vector<128x128xf32>
    %217 = arith.mulf %216, %215 : vector<128x128xf32>
    %218 = arith.addf %212, %217 : vector<128x128xf32>
    %219 = vector.extract_strided_slice %209 {offsets = [0, 1], sizes = [128, 1], strides = [1, 1]} : vector<128x4xf32> to vector<128x1xf32>
    %220 = vector.extract_strided_slice %3 {offsets = [1, 0, 0], sizes = [1, 128, 128], strides = [1, 1, 1]} : vector<4x128x128xf32> to vector<1x128x128xf32>
    %221 = vector.shape_cast %220 : vector<1x128x128xf32> to vector<128x128xf32>
    %222 = vector.broadcast %219 : vector<128x1xf32> to vector<128x128xf32>
    %223 = arith.mulf %222, %221 : vector<128x128xf32>
    %224 = arith.addf %218, %223 : vector<128x128xf32>
    %225 = vector.extract_strided_slice %209 {offsets = [0, 2], sizes = [128, 1], strides = [1, 1]} : vector<128x4xf32> to vector<128x1xf32>
    %226 = vector.extract_strided_slice %3 {offsets = [2, 0, 0], sizes = [1, 128, 128], strides = [1, 1, 1]} : vector<4x128x128xf32> to vector<1x128x128xf32>
    %227 = vector.shape_cast %226 : vector<1x128x128xf32> to vector<128x128xf32>
    %228 = vector.broadcast %225 : vector<128x1xf32> to vector<128x128xf32>
    %229 = arith.mulf %228, %227 : vector<128x128xf32>
    %230 = arith.addf %224, %229 : vector<128x128xf32>
    %231 = vector.extract_strided_slice %209 {offsets = [0, 3], sizes = [128, 1], strides = [1, 1]} : vector<128x4xf32> to vector<128x1xf32>
    %232 = vector.extract_strided_slice %3 {offsets = [3, 0, 0], sizes = [1, 128, 128], strides = [1, 1, 1]} : vector<4x128x128xf32> to vector<1x128x128xf32>
    %233 = vector.shape_cast %232 : vector<1x128x128xf32> to vector<128x128xf32>
    %234 = vector.broadcast %231 : vector<128x1xf32> to vector<128x128xf32>
    %235 = arith.mulf %234, %233 : vector<128x128xf32>
    %236 = arith.addf %230, %235 : vector<128x128xf32>
    %cst_44 = arith.constant -1.000000e+30 : f32
    %237 = vector.broadcast %cst_44 : f32 to vector<128x128xf32>
    %238 = arith.select %5, %236, %237 : vector<128x128xi1>, vector<128x128xf32>
    %cst_45 = arith.constant dense<0xFF800000> : vector<128xf32>
    %239 = vector.multi_reduction <maximumf>, %238, %cst_45 [1] : vector<128x128xf32> to vector<128xf32>
    %240 = vector.shape_cast %239 : vector<128xf32> to vector<128x1xf32>
    %241 = vector.broadcast %240 : vector<128x1xf32> to vector<128x128xf32>
    %242 = arith.subf %238, %241 : vector<128x128xf32>
    %243 = math.exp %242 : vector<128x128xf32>
    %cst_46 = arith.constant dense<0.000000e+00> : vector<128xf32>
    %244 = vector.multi_reduction <add>, %243, %cst_46 [1] : vector<128x128xf32> to vector<128xf32>
    %245 = vector.shape_cast %244 : vector<128xf32> to vector<128x1xf32>
    %246 = tpu.reciprocal %245 {approx = true} : vector<128x1xf32> -> vector<128x1xf32>
    %cst_47 = arith.constant 0.000000e+00 : f32
    %247 = vector.broadcast %cst_47 : f32 to vector<128x1xf32>
    %248 = arith.select %9, %246, %247 : vector<128x1xi1>, vector<128x1xf32>
    %249 = vector.broadcast %248 : vector<128x1xf32> to vector<128x128xf32>
    %250 = arith.mulf %243, %249 : vector<128x128xf32>
    %251 = arith.truncf %250 : vector<128x128xf32> to vector<128x128xbf16>
    %252 = arith.truncf %208 : vector<128x8xf32> to vector<128x8xbf16>
    %cst_48 = arith.constant dense<0.000000e+00> : vector<128x8xf32>
    %253 = tpu.matmul %251, %252, %cst_48 {dimension_numbers = #tpu.dot_dimension_numbers<[1], [0], [0], [1], [0, 0, 1, 1], [], []>} : vector<128x128xbf16>, vector<128x8xbf16>, vector<128x8xf32> -> vector<128x8xf32>
    %254 = vector.extract_strided_slice %3 {offsets = [0, 0, 0], sizes = [1, 128, 128], strides = [1, 1, 1]} : vector<4x128x128xf32> to vector<1x128x128xf32>
    %255 = vector.shape_cast %254 : vector<1x128x128xf32> to vector<128x128xf32>
    %256 = arith.mulf %250, %255 : vector<128x128xf32>
    %cst_49 = arith.constant dense<0.000000e+00> : vector<128xf32>
    %257 = vector.multi_reduction <add>, %256, %cst_49 [1] : vector<128x128xf32> to vector<128xf32>
    %258 = vector.shape_cast %257 : vector<128xf32> to vector<128x1xf32>
    %259 = vector.extract_strided_slice %205 {offsets = [0, 0], sizes = [1, 8], strides = [1, 1]} : vector<4x16xf32> to vector<1x8xf32>
    %260 = vector.broadcast %258 : vector<128x1xf32> to vector<128x8xf32>
    %261 = vector.broadcast %259 : vector<1x8xf32> to vector<128x8xf32>
    %262 = arith.mulf %260, %261 : vector<128x8xf32>
    %263 = arith.addf %253, %262 : vector<128x8xf32>
    %264 = vector.extract_strided_slice %3 {offsets = [1, 0, 0], sizes = [1, 128, 128], strides = [1, 1, 1]} : vector<4x128x128xf32> to vector<1x128x128xf32>
    %265 = vector.shape_cast %264 : vector<1x128x128xf32> to vector<128x128xf32>
    %266 = arith.mulf %250, %265 : vector<128x128xf32>
    %cst_50 = arith.constant dense<0.000000e+00> : vector<128xf32>
    %267 = vector.multi_reduction <add>, %266, %cst_50 [1] : vector<128x128xf32> to vector<128xf32>
    %268 = vector.shape_cast %267 : vector<128xf32> to vector<128x1xf32>
    %269 = vector.extract_strided_slice %205 {offsets = [1, 0], sizes = [1, 8], strides = [1, 1]} : vector<4x16xf32> to vector<1x8xf32>
    %270 = vector.broadcast %268 : vector<128x1xf32> to vector<128x8xf32>
    %271 = vector.broadcast %269 : vector<1x8xf32> to vector<128x8xf32>
    %272 = arith.mulf %270, %271 : vector<128x8xf32>
    %273 = arith.addf %263, %272 : vector<128x8xf32>
    %274 = vector.extract_strided_slice %3 {offsets = [2, 0, 0], sizes = [1, 128, 128], strides = [1, 1, 1]} : vector<4x128x128xf32> to vector<1x128x128xf32>
    %275 = vector.shape_cast %274 : vector<1x128x128xf32> to vector<128x128xf32>
    %276 = arith.mulf %250, %275 : vector<128x128xf32>
    %cst_51 = arith.constant dense<0.000000e+00> : vector<128xf32>
    %277 = vector.multi_reduction <add>, %276, %cst_51 [1] : vector<128x128xf32> to vector<128xf32>
    %278 = vector.shape_cast %277 : vector<128xf32> to vector<128x1xf32>
    %279 = vector.extract_strided_slice %205 {offsets = [2, 0], sizes = [1, 8], strides = [1, 1]} : vector<4x16xf32> to vector<1x8xf32>
    %280 = vector.broadcast %278 : vector<128x1xf32> to vector<128x8xf32>
    %281 = vector.broadcast %279 : vector<1x8xf32> to vector<128x8xf32>
    %282 = arith.mulf %280, %281 : vector<128x8xf32>
    %283 = arith.addf %273, %282 : vector<128x8xf32>
    %284 = vector.extract_strided_slice %3 {offsets = [3, 0, 0], sizes = [1, 128, 128], strides = [1, 1, 1]} : vector<4x128x128xf32> to vector<1x128x128xf32>
    %285 = vector.shape_cast %284 : vector<1x128x128xf32> to vector<128x128xf32>
    %286 = arith.mulf %250, %285 : vector<128x128xf32>
    %cst_52 = arith.constant dense<0.000000e+00> : vector<128xf32>
    %287 = vector.multi_reduction <add>, %286, %cst_52 [1] : vector<128x128xf32> to vector<128xf32>
    %288 = vector.shape_cast %287 : vector<128xf32> to vector<128x1xf32>
    %289 = vector.extract_strided_slice %205 {offsets = [3, 0], sizes = [1, 8], strides = [1, 1]} : vector<4x16xf32> to vector<1x8xf32>
    %290 = vector.broadcast %288 : vector<128x1xf32> to vector<128x8xf32>
    %291 = vector.broadcast %289 : vector<1x8xf32> to vector<128x8xf32>
    %292 = arith.mulf %290, %291 : vector<128x8xf32>
    %293 = arith.addf %283, %292 : vector<128x8xf32>
    %294 = vector.extract_strided_slice %203 {offsets = [0, 28], sizes = [128, 8], strides = [1, 1]} : vector<128x64xf32> to vector<128x8xf32>
    %295 = vector.extract_strided_slice %203 {offsets = [0, 36], sizes = [128, 8], strides = [1, 1]} : vector<128x64xf32> to vector<128x8xf32>
    %296 = vector.extract_strided_slice %203 {offsets = [0, 44], sizes = [128, 8], strides = [1, 1]} : vector<128x64xf32> to vector<128x8xf32>
    %297 = vector.extract_strided_slice %203 {offsets = [0, 52], sizes = [128, 4], strides = [1, 1]} : vector<128x64xf32> to vector<128x4xf32>
    %298 = arith.truncf %294 : vector<128x8xf32> to vector<128x8xbf16>
    %299 = arith.truncf %295 : vector<128x8xf32> to vector<128x8xbf16>
    "tpu.trace_start"() <{level = 10 : i32, message = "ic,jc->ij"}> : () -> ()
    %cst_53 = arith.constant dense<0.000000e+00> : vector<128x128xf32>
    %300 = tpu.matmul %298, %299, %cst_53 {dimension_numbers = #tpu.dot_dimension_numbers<[1], [1], [0], [0], [0, 0, 1, 0], [], []>} : vector<128x8xbf16>, vector<128x8xbf16>, vector<128x128xf32> -> vector<128x128xf32>
    "tpu.trace_stop"() : () -> ()
    %301 = vector.extract_strided_slice %297 {offsets = [0, 0], sizes = [128, 1], strides = [1, 1]} : vector<128x4xf32> to vector<128x1xf32>
    %302 = vector.extract_strided_slice %3 {offsets = [0, 0, 0], sizes = [1, 128, 128], strides = [1, 1, 1]} : vector<4x128x128xf32> to vector<1x128x128xf32>
    %303 = vector.shape_cast %302 : vector<1x128x128xf32> to vector<128x128xf32>
    %304 = vector.broadcast %301 : vector<128x1xf32> to vector<128x128xf32>
    %305 = arith.mulf %304, %303 : vector<128x128xf32>
    %306 = arith.addf %300, %305 : vector<128x128xf32>
    %307 = vector.extract_strided_slice %297 {offsets = [0, 1], sizes = [128, 1], strides = [1, 1]} : vector<128x4xf32> to vector<128x1xf32>
    %308 = vector.extract_strided_slice %3 {offsets = [1, 0, 0], sizes = [1, 128, 128], strides = [1, 1, 1]} : vector<4x128x128xf32> to vector<1x128x128xf32>
    %309 = vector.shape_cast %308 : vector<1x128x128xf32> to vector<128x128xf32>
    %310 = vector.broadcast %307 : vector<128x1xf32> to vector<128x128xf32>
    %311 = arith.mulf %310, %309 : vector<128x128xf32>
    %312 = arith.addf %306, %311 : vector<128x128xf32>
    %313 = vector.extract_strided_slice %297 {offsets = [0, 2], sizes = [128, 1], strides = [1, 1]} : vector<128x4xf32> to vector<128x1xf32>
    %314 = vector.extract_strided_slice %3 {offsets = [2, 0, 0], sizes = [1, 128, 128], strides = [1, 1, 1]} : vector<4x128x128xf32> to vector<1x128x128xf32>
    %315 = vector.shape_cast %314 : vector<1x128x128xf32> to vector<128x128xf32>
    %316 = vector.broadcast %313 : vector<128x1xf32> to vector<128x128xf32>
    %317 = arith.mulf %316, %315 : vector<128x128xf32>
    %318 = arith.addf %312, %317 : vector<128x128xf32>
    %319 = vector.extract_strided_slice %297 {offsets = [0, 3], sizes = [128, 1], strides = [1, 1]} : vector<128x4xf32> to vector<128x1xf32>
    %320 = vector.extract_strided_slice %3 {offsets = [3, 0, 0], sizes = [1, 128, 128], strides = [1, 1, 1]} : vector<4x128x128xf32> to vector<1x128x128xf32>
    %321 = vector.shape_cast %320 : vector<1x128x128xf32> to vector<128x128xf32>
    %322 = vector.broadcast %319 : vector<128x1xf32> to vector<128x128xf32>
    %323 = arith.mulf %322, %321 : vector<128x128xf32>
    %324 = arith.addf %318, %323 : vector<128x128xf32>
    %cst_54 = arith.constant -1.000000e+30 : f32
    %325 = vector.broadcast %cst_54 : f32 to vector<128x128xf32>
    %326 = arith.select %5, %324, %325 : vector<128x128xi1>, vector<128x128xf32>
    %cst_55 = arith.constant dense<0xFF800000> : vector<128xf32>
    %327 = vector.multi_reduction <maximumf>, %326, %cst_55 [1] : vector<128x128xf32> to vector<128xf32>
    %328 = vector.shape_cast %327 : vector<128xf32> to vector<128x1xf32>
    %329 = vector.broadcast %328 : vector<128x1xf32> to vector<128x128xf32>
    %330 = arith.subf %326, %329 : vector<128x128xf32>
    %331 = math.exp %330 : vector<128x128xf32>
    %cst_56 = arith.constant dense<0.000000e+00> : vector<128xf32>
    %332 = vector.multi_reduction <add>, %331, %cst_56 [1] : vector<128x128xf32> to vector<128xf32>
    %333 = vector.shape_cast %332 : vector<128xf32> to vector<128x1xf32>
    %334 = tpu.reciprocal %333 {approx = true} : vector<128x1xf32> -> vector<128x1xf32>
    %cst_57 = arith.constant 0.000000e+00 : f32
    %335 = vector.broadcast %cst_57 : f32 to vector<128x1xf32>
    %336 = arith.select %9, %334, %335 : vector<128x1xi1>, vector<128x1xf32>
    %337 = vector.broadcast %336 : vector<128x1xf32> to vector<128x128xf32>
    %338 = arith.mulf %331, %337 : vector<128x128xf32>
    %339 = arith.truncf %338 : vector<128x128xf32> to vector<128x128xbf16>
    %340 = arith.truncf %296 : vector<128x8xf32> to vector<128x8xbf16>
    %cst_58 = arith.constant dense<0.000000e+00> : vector<128x8xf32>
    %341 = tpu.matmul %339, %340, %cst_58 {dimension_numbers = #tpu.dot_dimension_numbers<[1], [0], [0], [1], [0, 0, 1, 1], [], []>} : vector<128x128xbf16>, vector<128x8xbf16>, vector<128x8xf32> -> vector<128x8xf32>
    %342 = vector.extract_strided_slice %3 {offsets = [0, 0, 0], sizes = [1, 128, 128], strides = [1, 1, 1]} : vector<4x128x128xf32> to vector<1x128x128xf32>
    %343 = vector.shape_cast %342 : vector<1x128x128xf32> to vector<128x128xf32>
    %344 = arith.mulf %338, %343 : vector<128x128xf32>
    %cst_59 = arith.constant dense<0.000000e+00> : vector<128xf32>
    %345 = vector.multi_reduction <add>, %344, %cst_59 [1] : vector<128x128xf32> to vector<128xf32>
    %346 = vector.shape_cast %345 : vector<128xf32> to vector<128x1xf32>
    %347 = vector.extract_strided_slice %205 {offsets = [0, 8], sizes = [1, 8], strides = [1, 1]} : vector<4x16xf32> to vector<1x8xf32>
    %348 = vector.broadcast %346 : vector<128x1xf32> to vector<128x8xf32>
    %349 = vector.broadcast %347 : vector<1x8xf32> to vector<128x8xf32>
    %350 = arith.mulf %348, %349 : vector<128x8xf32>
    %351 = arith.addf %341, %350 : vector<128x8xf32>
    %352 = vector.extract_strided_slice %3 {offsets = [1, 0, 0], sizes = [1, 128, 128], strides = [1, 1, 1]} : vector<4x128x128xf32> to vector<1x128x128xf32>
    %353 = vector.shape_cast %352 : vector<1x128x128xf32> to vector<128x128xf32>
    %354 = arith.mulf %338, %353 : vector<128x128xf32>
    %cst_60 = arith.constant dense<0.000000e+00> : vector<128xf32>
    %355 = vector.multi_reduction <add>, %354, %cst_60 [1] : vector<128x128xf32> to vector<128xf32>
    %356 = vector.shape_cast %355 : vector<128xf32> to vector<128x1xf32>
    %357 = vector.extract_strided_slice %205 {offsets = [1, 8], sizes = [1, 8], strides = [1, 1]} : vector<4x16xf32> to vector<1x8xf32>
    %358 = vector.broadcast %356 : vector<128x1xf32> to vector<128x8xf32>
    %359 = vector.broadcast %357 : vector<1x8xf32> to vector<128x8xf32>
    %360 = arith.mulf %358, %359 : vector<128x8xf32>
    %361 = arith.addf %351, %360 : vector<128x8xf32>
    %362 = vector.extract_strided_slice %3 {offsets = [2, 0, 0], sizes = [1, 128, 128], strides = [1, 1, 1]} : vector<4x128x128xf32> to vector<1x128x128xf32>
    %363 = vector.shape_cast %362 : vector<1x128x128xf32> to vector<128x128xf32>
    %364 = arith.mulf %338, %363 : vector<128x128xf32>
    %cst_61 = arith.constant dense<0.000000e+00> : vector<128xf32>
    %365 = vector.multi_reduction <add>, %364, %cst_61 [1] : vector<128x128xf32> to vector<128xf32>
    %366 = vector.shape_cast %365 : vector<128xf32> to vector<128x1xf32>
    %367 = vector.extract_strided_slice %205 {offsets = [2, 8], sizes = [1, 8], strides = [1, 1]} : vector<4x16xf32> to vector<1x8xf32>
    %368 = vector.broadcast %366 : vector<128x1xf32> to vector<128x8xf32>
    %369 = vector.broadcast %367 : vector<1x8xf32> to vector<128x8xf32>
    %370 = arith.mulf %368, %369 : vector<128x8xf32>
    %371 = arith.addf %361, %370 : vector<128x8xf32>
    %372 = vector.extract_strided_slice %3 {offsets = [3, 0, 0], sizes = [1, 128, 128], strides = [1, 1, 1]} : vector<4x128x128xf32> to vector<1x128x128xf32>
    %373 = vector.shape_cast %372 : vector<1x128x128xf32> to vector<128x128xf32>
    %374 = arith.mulf %338, %373 : vector<128x128xf32>
    %cst_62 = arith.constant dense<0.000000e+00> : vector<128xf32>
    %375 = vector.multi_reduction <add>, %374, %cst_62 [1] : vector<128x128xf32> to vector<128xf32>
    %376 = vector.shape_cast %375 : vector<128xf32> to vector<128x1xf32>
    %377 = vector.extract_strided_slice %205 {offsets = [3, 8], sizes = [1, 8], strides = [1, 1]} : vector<4x16xf32> to vector<1x8xf32>
    %378 = vector.broadcast %376 : vector<128x1xf32> to vector<128x8xf32>
    %379 = vector.broadcast %377 : vector<1x8xf32> to vector<128x8xf32>
    %380 = arith.mulf %378, %379 : vector<128x8xf32>
    %381 = arith.addf %371, %380 : vector<128x8xf32>
    %382 = arith.addf %293, %381 : vector<128x8xf32>
    %cst_63 = arith.constant 5.000000e-01 : f32
    %383 = vector.broadcast %cst_63 : f32 to vector<128x8xf32>
    %384 = arith.mulf %382, %383 : vector<128x8xf32>
    %385 = arith.addf %384, %204 : vector<128x8xf32>
    %cst_64 = arith.constant 0.000000e+00 : f32
    %386 = vector.broadcast %cst_64 : f32 to vector<128x8xf32>
    %387 = arith.maximumf %385, %386 : vector<128x8xf32>
    %388 = arith.truncf %387 : vector<128x8xf32> to vector<128x8xbf16>
    %c0_65 = arith.constant 0 : index
    %c0_66 = arith.constant 0 : index
    %389 = vector.load %arg9[%c0_65, %c0_66] : memref<8x128xbf16, #tpu.memory_space<vmem>>, vector<8x128xbf16>
    %cst_67 = arith.constant dense<0.000000e+00> : vector<128x128xf32>
    %390 = tpu.matmul %388, %389, %cst_67 {dimension_numbers = #tpu.dot_dimension_numbers<[1], [0], [0], [1], [0, 0, 1, 1], [], []>} : vector<128x8xbf16>, vector<8x128xbf16>, vector<128x128xf32> -> vector<128x128xf32>
    %c0_68 = arith.constant 0 : index
    %c0_69 = arith.constant 0 : index
    %391 = vector.load %arg10[%c0_68, %c0_69] : memref<1x128xf32, #tpu.memory_space<vmem>>, vector<1x128xf32>
    %392 = vector.broadcast %391 : vector<1x128xf32> to vector<128x128xf32>
    %393 = arith.addf %390, %392 : vector<128x128xf32>
    %c0_70 = arith.constant 0 : index
    %c0_71 = arith.constant 0 : index
    %394 = vector.load %arg11[%c0_70, %c0_71] : memref<128x128xf32, #tpu.memory_space<vmem>>, vector<128x128xf32>
    tpu.vector_store %arg11[%c0_70, %c0_71], %393 {strides = array<i32>} : memref<128x128xf32, #tpu.memory_space<vmem>>, vector<128x128xf32>,
    return
  }
}

</mosaic_0001>

<bundles_post_ra>
// kernel: tpu_custom_call.1
= control target key start
LH: loop header
LB: loop body
LE: loop exit
PB: predicated region body
PF: predicated region fallthrough
CT: control target
= control target key end

     0   :  { %16 = vsyncpa [#allocation3], 0  ;;  %s11306_s0 = inlined_call_operand.vmem [shape: f32[128,8], index: 0, kind: input, shape index: {}]   ;;  %s11307_s1 = inlined_call_operand.hbm [shape: bf16[4,128,128], index: 1, kind: input, shape index: {}]   ;;  %s11308_s2 = inlined_call_operand.vmem [shape: f32[128,128], index: 2, kind: input, shape index: {}]   ;;  %s11309_s3 = inlined_call_operand.hbm [shape: bf16[8,72], index: 3, kind: input, shape index: {}]   ;;  %s11310_s4 = inlined_call_operand.vmem [shape: f32[1,72], index: 4, kind: input, shape index: {}]   ;;  %s11311_s5 = inlined_call_operand.hbm [shape: f32[4,16], index: 5, kind: input, shape index: {}]   ;;  %s11312_s6 = inlined_call_operand.vmem [shape: bf16[16,64], index: 6, kind: input, shape index: {}]   ;;  %s11313_s7 = inlined_call_operand.hbm [shape: f32[1,64], index: 7, kind: input, shape index: {}]   ;;  %s11314_s8 = inlined_call_operand.vmem [shape: f32[4,16], index: 8, kind: input, shape index: {}]   ;;  %s11315_s9 = inlined_call_operand.hbm [shape: bf16[8,128], index: 9, kind: input, shape index: {}]   ;;  %s11316_s10 = inlined_call_operand.vmem [shape: f32[1,128], index: 10, kind: input, shape index: {}]   ;;  %s11317_s11 = inlined_call_operand.hbm [shape: f32[128,128], index: 11, kind: output, shape index: {}]  }
   0x1   :  { %17 = vsyncpa [#allocation6], 0 }
   0x2   :  { %18 = vsyncpa [#allocation9], 0  ;;  %s42_s19 = sshll.u32 %s11309_s3, 4  ;;  %s43_s19 = int_to_ptr.hbm [resolvable:$true] %s42_s19 }
   0x3   :  { %19 = vsyncpa [#allocation4], 0  ;;  %s6486_s20 = smov [#allocation5]   ;;  %s68_s24 = sshll.u32 %s11313_s7, 4  ;;  %s69_s24 = int_to_ptr.hbm [resolvable:$true] %s68_s24 }
   0x4   :  { %s44_s21 = sshll.u32 %s6486_s20, 4  ;;  %s6487_s25 = smov [#allocation8]   ;;  %s45_s21 = int_to_ptr.vmem [resolvable:$true] %s44_s21 }
   0x5   :  { %47 = dma.hbm_to_vmem [thread:$0]  %s43_s19, 64, %s45_s21, [#allocation6]  }
   0x6   :  { %s70_s26 = sshll.u32 %s6487_s25, 4  ;;  %s26_s29 = sshll.u32 %s11307_s1, 4  ;;  %s71_s26 = int_to_ptr.vmem [resolvable:$true] %s70_s26  ;;  %s27_s29 = int_to_ptr.hbm [resolvable:$true] %s26_s29 }
   0x7   :  { %73 = dma.hbm_to_vmem [thread:$0]  %s69_s24, 16, %s71_s26, [#allocation9]  }
   0x8   :  { %s6488_s3 = smov [#allocation2]   ;;  %s55_s14 = sshll.u32 %s11311_s5, 4  ;;  %s56_s14 = int_to_ptr.hbm [resolvable:$true] %s55_s14 }
   0x9   :  { %s28_s30 = sshll.u32 %s6488_s3, 4  ;;  %s6489_s15 = smov 64   ;;  %s29_s30 = int_to_ptr.vmem [resolvable:$true] %s28_s30 }
   0xa   :  { %s6490_s7 = smov 4   ;;  %s6491_s16 = smov [#allocation7]  }
   0xb   :  { %34 = dma.hbm_to_vmem [thread:$0]  %s27_s29, 4096, %s29_s30, [#allocation3], %s6489_s15, %s6489_s15, %s6490_s7  }
   0xc   :  { %s57_s17 = sshll.u32 %s6491_s16, 4  ;;  %s81_s1 = sshll.u32 %s11315_s9, 4  ;;  %s58_s17 = int_to_ptr.vmem [resolvable:$true] %s57_s17  ;;  %s82_s1 = int_to_ptr.hbm [resolvable:$true] %s81_s1 }
   0xd   :  { %60 = dma.hbm_to_vmem [thread:$0]  %s56_s14, 64, %s58_s17, [#allocation6]  }
   0xe   :  { %s6492_s20 = smov [#allocation10]  }
   0xf   :  { %s83_s21 = sshll.u32 %s6492_s20, 4  ;;  %s84_s21 = int_to_ptr.vmem [resolvable:$true] %s83_s21 }
  0x10   :  { %86 = dma.hbm_to_vmem [thread:$0]  %s82_s1, 64, %s84_s21, [#allocation9]  }
  0x11   :  { %6478 = dma.done.wait [#allocation3], 4096  }
  0x12   :  { %6479 = vsyncadd [#allocation3], 4294963200 }
  0x13   :  { %6480 = dma.done.wait [#allocation6], 128  }
  0x14   :  { %6481 = vsyncadd [#allocation6], 4294967168 }
  0x15   :  { %6482 = dma.done.wait [#allocation9], 80  }
  0x16   :  { %6483 = vsyncadd [#allocation9], 4294967216  ;;  %vm11475_vm0 = vcmask 1043456   ;;  %v342_v0 = vld [vmem:[#allocation5] sm:$0xf]  ;;  %v111_v3 = vld [vmem:[%s11306_s0 + $0x8] sm:$0xff] }
  0x17   :  { %v110_v1 = vld [vmem:[%s11306_s0] sm:$0xff]  ;;  %v374_v2 = vsel %vm11475_vm0, %v342_v0, 0  ;;  %vm11485_vm1 = vcmask 64512   ;;  %v112_v5 = vld [vmem:[%s11306_s0 + $0x10] sm:$0xff]  ;;  %v113_v6 = vld [vmem:[%s11306_s0 + $0x18] sm:$0xff]  ;;  %v11331_v39 = vmov 27  }
  0x18   :  { %383 = vmatpush.bf16.msra.mxu0 %v374_v2  ;;  %v334_v4 = vpack.c.bf16 %v111_v3, %v110_v1  ;;  %v335_v7 = vpack.c.bf16 %v113_v6, %v112_v5  ;;  %v130_v8 = vld [vmem:[%s11308_s2 + $0x20] sm:$0xff]  ;;  %v128_v10 = vld [vmem:[%s11308_s2 + $0x10] sm:$0xff]  ;;  %v131_v11 = vld [vmem:[%s11308_s2 + $0x28] sm:$0xff]  ;;  %5966 = vset.pattern.permute.xlu2 %v11331_v39  ;;  %v11322_v40 = vmov 25   ;;  %v11318_v41 = vmov 24   ;;  %s6500_s17 = smov 100  }
  0x19   :  { %v126_v9 = vld [vmem:[%s11308_s2] sm:$0xff]  ;;  %294 = vadd.xlane.f32.xlu2 %v130_v8  ;;  %290 = vadd.xlane.f32.xlu1 %v128_v10  ;;  %v115_v13 = vld [vmem:[%s11306_s0 + $0x28] sm:$0xff]  ;;  %v129_v17 = vld [vmem:[%s11308_s2 + $0x18] sm:$0xff]  ;;  %v11325_v50 = vmov 26   ;;  %s6502_s18 = smov 92   ;;  %s6506_s26 = smov 8  }
  0x1a   :  { %286 = vadd.xlane.f32.xlu0 %v126_v9  ;;  %v114_v12 = vld [vmem:[%s11306_s0 + $0x20] sm:$0xff]  ;;  %v127_v15 = vld [vmem:[%s11308_s2 + $0x8] sm:$0xff]  ;;  %v132_v18 = vld [vmem:[%s11308_s2 + $0x30] sm:$0xff]  ;;  %5963 = vset.pattern.permute.xlu1 %v11318_v41  ;;  %s6507_s27 = smov 72   ;;  %s5688_s30 = sshll.u32 %s11317_s11, 4  ;;  %s5689_s30 = int_to_ptr.hbm [resolvable:$true] %s5688_s30 }
  0x1b   :  { %5703 = vmatmul.msk.bf16.vlgmr.msra.gmra.mxu0 %vm11485_vm1, %v334_v4  ;;  %v336_v14 = vpack.c.bf16 %v115_v13, %v114_v12  ;;  %v134_v16 = vld [vmem:[%s11308_s2 + $0x40] sm:$0xff]  ;;  %v137_v19 = vld [vmem:[%s11308_s2 + $0x58] sm:$0xff]  ;;  %v116_v21 = vld [vmem:[%s11306_s0 + $0x30] sm:$0xff]  ;;  %5964 = vset.pattern.permute.xlu0 %v11322_v40  ;;  %s6509_s12 = smov 128  }
  0x1c   :  { %v133_v20 = vld [vmem:[%s11308_s2 + $0x38] sm:$0xff]  ;;  %v135_v24 = vld [vmem:[%s11308_s2 + $0x48] sm:$0xff]  ;;  %v140_v25 = vld [vmem:[%s11308_s2 + $0x70] sm:$0xff] }
  0x1d   :  { %v117_v22 = vld [vmem:[%s11306_s0 + $0x38] sm:$0xff]  ;;  %v136_v26 = vld [vmem:[%s11308_s2 + $0x50] sm:$0xff]  ;;  %v138_v27 = vld [vmem:[%s11308_s2 + $0x60] sm:$0xff] }
  0x1e   :  { %v337_v23 = vpack.c.bf16 %v117_v22, %v116_v21  ;;  %v139_v28 = vld [vmem:[%s11308_s2 + $0x68] sm:$0xff]  ;;  %v118_v29 = vld [vmem:[%s11306_s0 + $0x40] sm:$0xff]  ;;  %v141_v32 = vld [vmem:[%s11308_s2 + $0x78] sm:$0xff] }
  0x1f   :  { %v119_v30 = vld [vmem:[%s11306_s0 + $0x48] sm:$0xff]  ;;  %v120_v33 = vld [vmem:[%s11306_s0 + $0x50] sm:$0xff]  ;;  %v121_v34 = vld [vmem:[%s11306_s0 + $0x58] sm:$0xff] }
  0x20   :  { %v338_v31 = vpack.c.bf16 %v119_v30, %v118_v29  ;;  %v339_v35 = vpack.c.bf16 %v121_v34, %v120_v33  ;;  %v122_v36 = vld [vmem:[%s11306_s0 + $0x60] sm:$0xff]  ;;  %v123_v37 = vld [vmem:[%s11306_s0 + $0x68] sm:$0xff]  ;;  %v124_v42 = vld [vmem:[%s11306_s0 + $0x70] sm:$0xff] }
  0x21   :  { %296 = vadd.xlane.f32.xlu2 %v131_v11  ;;  %292 = vadd.xlane.f32.xlu1 %v129_v17  ;;  %v340_v38 = vpack.c.bf16 %v123_v37, %v122_v36  ;;  %v125_v43 = vld [vmem:[%s11306_s0 + $0x78] sm:$0xff]  ;;  %v6696_v45 = vld [vmem:[%s11310_s4] ss:$0 sm:$0xff]  ;;  %s6497_s0 = smov 120   ;;  %s6498_s4 = smov 112  }
  0x22   :  { %288 = vadd.xlane.f32.xlu0 %v127_v15  ;;  %v341_v44 = vpack.c.bf16 %v125_v43, %v124_v42 }
  0x29   :  { %302 = vadd.xlane.f32.xlu2 %v134_v16  ;;  %300 = vadd.xlane.f32.xlu1 %v133_v20 }
  0x2a   :  { %298 = vadd.xlane.f32.xlu0 %v132_v18 }
  0x2b   :  { %5704 = vmatmul.msk.bf16.gmra.mxu0 %vm11485_vm1, %v335_v7 }
  0x31   :  { %308 = vadd.xlane.f32.xlu2 %v137_v19  ;;  %306 = vadd.xlane.f32.xlu1 %v136_v26 }
  0x32   :  { %304 = vadd.xlane.f32.xlu0 %v135_v24 }
  0x39   :  { %314 = vadd.xlane.f32.xlu2 %v140_v25  ;;  %312 = vadd.xlane.f32.xlu1 %v139_v28 }
  0x3a   :  { %310 = vadd.xlane.f32.xlu0 %v138_v27 }
  0x3b   :  { %5705 = vmatmul.msk.bf16.gmra.mxu0 %vm11485_vm1, %v336_v14 }
  0x42   :  { %316 = vadd.xlane.f32.xlu0 %v141_v32 }
  0x4b   :  { %5706 = vmatmul.msk.bf16.gmra.mxu0 %vm11485_vm1, %v337_v23 }
  0x5b   :  { %5707 = vmatmul.msk.bf16.gmra.mxu0 %vm11485_vm1, %v338_v31 }
  0x6b   :  { %5708 = vmatmul.msk.bf16.gmra.mxu0 %vm11485_vm1, %v339_v35 }
  0x7b   :  { %5709 = vmatmul.msk.bf16.gmra.mxu0 %vm11485_vm1, %v340_v38 }
  0x8b   :  { %5710 = vmatmul.msk.bf16.gmra.mxu0 %vm11485_vm1, %v341_v44 }
  0x8c   :  { %v6745_v60 = vpop.xlane.xlu2 %294  ;;  %v6783_v6 = vpop.xlane.xlu1 %290 }
  0x8d   :  { %11719 = vst [vmem:[#allocation23_spill] sm:$0xff] %v6745_v60  ;;  %v6785_v7 = vpop.xlane.xlu0 %286 }
  0x8e   :  { %11726 = vst [vmem:[#allocation30_spill] sm:$0xff] %v6783_v6 }
  0x8f   :  { %11727 = vst [vmem:[#allocation31_spill] sm:$0xff] %v6785_v7  ;;  %v11346_v7 = vmov 53  }
  0x94   :  { %v6763_v0 = vpop.xlane.xlu2 %296  ;;  %v6798_v11 = vpop.xlane.xlu1 %292 }
  0x95   :  { %11722 = vst [vmem:[#allocation26_spill] sm:$0xff] %v6763_v0  ;;  %v6800_v12 = vpop.xlane.xlu0 %288 }
  0x96   :  { %11730 = vst [vmem:[#allocation34_spill] sm:$0xff] %v6798_v11  ;;  %v11770_v11 = vmov 27  }
  0x97   :  { %11731 = vst [vmem:[#allocation35_spill] sm:$0xff] %v6800_v12 }
  0x98   :  { %v385_v46 = vpop.f32.mrf.mxu0 }
  0x99   :  { %v6699_v47 = vadd.f32 %v6696_v45, %v385_v46 }
  0x9b   :  { %11712 = vst [vmem:[#allocation16_spill] sm:$0xff] %v6699_v47  ;;  %844 = vperm.xlu2 %5966, %v6699_v47   ;;  %652 = vperm.xlu0 %5964, %v6699_v47  }
  0x9c   :  { %436 = vperm.xlu1 %5963, %v6699_v47   ;;  %v6773_v3 = vpop.xlane.xlu2 %302  ;;  %v6813_v16 = vpop.xlane.xlu1 %300 }
  0x9d   :  { %11724 = vst [vmem:[#allocation28_spill] sm:$0xff] %v6773_v3  ;;  %v6815_v17 = vpop.xlane.xlu0 %298 }
  0x9e   :  { %11734 = vst [vmem:[#allocation38_spill] sm:$0xff] %v6813_v16 }
  0x9f   :  { %11735 = vst [vmem:[#allocation39_spill] sm:$0xff] %v6815_v17 }
  0xa0   :  { %v387_v48 = vpop.f32.mrf.mxu0 }
  0xa1   :  { %v6705_v49 = vadd.f32 %v6696_v45, %v387_v48 }
  0xa3   :  { %11713 = vst [vmem:[#allocation17_spill] sm:$0xff] %v6705_v49  ;;  %5967 = vset.pattern.permute.xlu2 %v11318_v41  ;;  %5969 = vset.pattern.permute.xlu0 %v11325_v50  ;;  %v6724_v54 = vpack.c.bf16 %v6705_v49, %v6699_v47 }
  0xa4   :  { %5965 = vset.pattern.permute.xlu1 %v11325_v50  ;;  %441 = vperm.xlu2 %5967, %v6705_v49   ;;  %v6793_v9 = vpop.xlane.xlu2 %308  ;;  %v6829_v21 = vpop.xlane.xlu1 %306 }
  0xa5   :  { %752 = vperm.xlu0 %5969, %v6705_v49   ;;  %748 = vperm.xlu1 %5965, %v6699_v47   ;;  %11715 = vst [vmem:[#allocation19_spill] sm:$0xff] %v6724_v54  ;;  %v6831_v22 = vpop.xlane.xlu0 %304 }
  0xa6   :  { %11729 = vst [vmem:[#allocation33_spill] sm:$0xff] %v6793_v9  ;;  %v11764_v9 = vmov 24  }
  0xa7   :  { %11737 = vst [vmem:[#allocation41_spill] sm:$0xff] %v6829_v21  ;;  %v11767_v21 = vmov 26  }
  0xa8   :  { %v390_v51 = vpop.f32.mrf.mxu0  ;;  %11738 = vst [vmem:[#allocation42_spill] sm:$0xff] %v6831_v22 }
  0xa9   :  { %v6714_v52 = vadd.f32 %v6696_v45, %v390_v51 }
  0xab   :  { %11714 = vst [vmem:[#allocation18_spill] sm:$0xff] %v6714_v52 }
  0xac   :  { %5968 = vset.pattern.permute.xlu2 %v11322_v40  ;;  %v6809_v14 = vpop.xlane.xlu2 %314  ;;  %v6850_v26 = vpop.xlane.xlu1 %312 }
  0xad   :  { %5970 = vset.pattern.permute.xlu1 %v11331_v39  ;;  %656 = vperm.xlu2 %5968, %v6705_v49   ;;  %11733 = vst [vmem:[#allocation37_spill] sm:$0xff] %v6809_v14  ;;  %v6852_v27 = vpop.xlane.xlu0 %310 }
  0xae   :  { %848 = vperm.xlu1 %5970, %v6705_v49   ;;  %5973 = vset.pattern.permute.xlu0 %v11331_v39  ;;  %11741 = vst [vmem:[#allocation45_spill] sm:$0xff] %v6850_v26 }
  0xaf   :  { %852 = vperm.xlu0 %5973, %v6714_v52   ;;  %11742 = vst [vmem:[#allocation46_spill] sm:$0xff] %v6852_v27 }
  0xb0   :  { %v392_v53 = vpop.f32.mrf.mxu0 }
  0xb1   :  { %v6734_v56 = vadd.f32 %v6696_v45, %v392_v53 }
  0xb3   :  { %11716 = vst [vmem:[#allocation20_spill] sm:$0xff] %v6734_v56  ;;  %v6751_v61 = vpack.c.bf16 %v6734_v56, %v6714_v52 }
  0xb5   :  { %538 = vrot.lane.b32.xlu2 %v6724_v54, %s6497_s0  ;;  %11720 = vst [vmem:[#allocation24_spill] sm:$0xff] %v6751_v61  ;;  %v6872_v33 = vpop.xlane.xlu0 %316 }
  0xb6   :  { %5971 = vset.pattern.permute.xlu1 %v11322_v40  ;;  %5972 = vset.pattern.permute.xlu2 %v11325_v50  ;;  %11744 = vst [vmem:[#allocation48_spill] sm:$0xff] %v6872_v33 }
  0xb7   :  { %660 = vperm.xlu1 %5971, %v6714_v52   ;;  %5983 = vset.pattern.permute.xlu0 %v11322_v40 }
  0xb8   :  { %v395_v55 = vpop.f32.mrf.mxu0 }
  0xb9   :  { %v6742_v59 = vadd.f32 %v6696_v45, %v395_v55 }
  0xbb   :  { %11718 = vst [vmem:[#allocation22_spill] sm:$0xff] %v6742_v59 }
  0xbd   :  { %756 = vperm.xlu2 %5972, %v6714_v52  }
  0xbf   :  { %5976 = vset.pattern.permute.xlu1 %v11325_v50 }
  0xc0   :  { %760 = vperm.xlu1 %5976, %v6734_v56   ;;  %v397_v57 = vpop.f32.mrf.mxu0 }
  0xc1   :  { %v6739_v58 = vadd.f32 %v6696_v45, %v397_v57 }
  0xc3   :  { %11717 = vst [vmem:[#allocation21_spill] sm:$0xff] %v6739_v58  ;;  %672 = vperm.xlu0 %5983, %v6739_v58   ;;  %v6755_v62 = vpack.c.bf16 %v6739_v58, %v6742_v59 }
  0xc5   :  { %5974 = vset.pattern.permute.xlu2 %v11318_v41  ;;  %11721 = vst [vmem:[#allocation25_spill] sm:$0xff] %v6755_v62 }
  0xc6   :  { %451 = vperm.xlu2 %5974, %v6734_v56  }
  0xc8   :  { %540 = vrot.lane.b32.xlu1 %v6751_v61, %s6497_s0  ;;  %v400_v63 = vpop.f32.mrf.mxu0 }
  0xc9   :  { %5978 = vset.pattern.permute.xlu1 %v11318_v41  ;;  %v6768_v1 = vadd.f32 %v6696_v45, %v400_v63 }
  0xcb   :  { %542 = vrot.lane.b32.xlu0 %v6755_v62, %s6497_s0  ;;  %11723 = vst [vmem:[#allocation27_spill] sm:$0xff] %v6768_v1 }
  0xcc   :  { %5988 = vset.pattern.permute.xlu0 %v11325_v50 }
  0xce   :  { %5975 = vset.pattern.permute.xlu2 %v11322_v40 }
  0xcf   :  { %664 = vperm.xlu2 %5975, %v6734_v56  }
  0xd0   :  { %456 = vperm.xlu1 %5978, %v6742_v59   ;;  %v402_v2 = vpop.f32.mrf.mxu0 }
  0xd1   :  { %v6778_v4 = vadd.f32 %v6696_v45, %v402_v2 }
  0xd3   :  { %772 = vperm.xlu0 %5988, %v6768_v1   ;;  %11725 = vst [vmem:[#allocation29_spill] sm:$0xff] %v6778_v4  ;;  %v6876_v35 = vpack.c.bf16 %v6778_v4, %v6768_v1 }
  0xd5   :  { %11745 = vst [vmem:[#allocation49_spill] sm:$0xff] %v6876_v35 }
  0xd7   :  { %5977 = vset.pattern.permute.xlu2 %v11331_v39 }
  0xd8   :  { %5979 = vset.pattern.permute.xlu1 %v11322_v40  ;;  %856 = vperm.xlu2 %5977, %v6734_v56   ;;  %v405_v5 = vpop.f32.mrf.mxu0 }
  0xd9   :  { %668 = vperm.xlu1 %5979, %v6742_v59   ;;  %v6791_v8 = vadd.f32 %v6696_v45, %v405_v5 }
  0xdb   :  { %5993 = vset.pattern.permute.xlu0 %v11331_v39  ;;  %11728 = vst [vmem:[#allocation32_spill] sm:$0xff] %v6791_v8 }
  0xdc   :  { %872 = vperm.xlu0 %5993, %v6778_v4  }
  0xe0   :  { %5980 = vset.pattern.permute.xlu2 %v11325_v50  ;;  %v407_v10 = vpop.f32.mrf.mxu0 }
  0xe1   :  { %5981 = vset.pattern.permute.xlu1 %v11331_v39  ;;  %764 = vperm.xlu2 %5980, %v6742_v59   ;;  %v6806_v13 = vadd.f32 %v6696_v45, %v407_v10 }
  0xe2   :  { %860 = vperm.xlu1 %5981, %v6742_v59  }
  0xe3   :  { %11732 = vst [vmem:[#allocation36_spill] sm:$0xff] %v6806_v13  ;;  %v6912_v53 = vpack.c.bf16 %v6806_v13, %v6791_v8 }
  0xe4   :  { %5995 = vset.pattern.permute.xlu0 %v11322_v40 }
  0xe5   :  { %684 = vperm.xlu0 %5995, %v6791_v8   ;;  %11748 = vst [vmem:[#allocation52_spill] sm:$0xff] %v6912_v53 }
  0xe8   :  { %v410_v15 = vpop.f32.mrf.mxu0 }
  0xe9   :  { %5982 = vset.pattern.permute.xlu2 %v11318_v41  ;;  %v6821_v18 = vadd.f32 %v6696_v45, %v410_v15 }
  0xea   :  { %5984 = vset.pattern.permute.xlu1 %v11325_v50  ;;  %461 = vperm.xlu2 %5982, %v6739_v58  }
  0xeb   :  { %768 = vperm.xlu1 %5984, %v6739_v58   ;;  %11736 = vst [vmem:[#allocation40_spill] sm:$0xff] %v6821_v18 }
  0xed   :  { %5999 = vset.pattern.permute.xlu0 %v11325_v50 }
  0xee   :  { %784 = vperm.xlu0 %5999, %v6806_v13  }
  0xf0   :  { %v412_v20 = vpop.f32.mrf.mxu0 }
  0xf1   :  { %v6836_v23 = vadd.f32 %v6696_v45, %v412_v20 }
  0xf2   :  { %5985 = vset.pattern.permute.xlu2 %v11331_v39 }
  0xf3   :  { %5986 = vset.pattern.permute.xlu1 %v11318_v41  ;;  %864 = vperm.xlu2 %5985, %v6739_v58   ;;  %11739 = vst [vmem:[#allocation43_spill] sm:$0xff] %v6836_v23  ;;  %v6846_v25 = vpack.c.bf16 %v6836_v23, %v6821_v18 }
  0xf4   :  { %466 = vperm.xlu1 %5986, %v6768_v1  }
  0xf5   :  { %v6824_v19 = vpop.permute.xlu2 %844  ;;  %11740 = vst [vmem:[#allocation44_spill] sm:$0xff] %v6846_v25 }
  0xf6   :  { %6004 = vset.pattern.permute.xlu0 %v11331_v39 }
  0xf7   :  { %884 = vperm.xlu0 %6004, %v6821_v18  }
  0xf8   :  { %v415_v29 = vpop.f32.mrf.mxu0 }
  0xf9   :  { %v6861_v30 = vadd.f32 %v6696_v45, %v415_v29 }
  0xfb   :  { %5987 = vset.pattern.permute.xlu2 %v11322_v40  ;;  %11743 = vst [vmem:[#allocation47_spill] sm:$0xff] %v6861_v30 }
  0xfc   :  { %5989 = vset.pattern.permute.xlu1 %v11331_v39  ;;  %676 = vperm.xlu2 %5987, %v6768_v1  }
  0xfd   :  { %868 = vperm.xlu1 %5989, %v6768_v1  }
  0xfe   :  { %v6839_v24 = vpop.permute.xlu2 %441 }
  0xff   :  { %6006 = vset.pattern.permute.xlu0 %v11322_v40 }
 0x100   :  { %696 = vperm.xlu0 %6006, %v6836_v23   ;;  %v417_v34 = vpop.f32.mrf.mxu0 }
 0x101   :  { %v6879_v36 = vadd.f32 %v6696_v45, %v417_v34  ;;  %v11320_v34 = vmov 52  }
 0x103   :  { %11746 = vst [vmem:[#allocation50_spill] sm:$0xff] %v6879_v36 }
 0x104   :  { %5990 = vset.pattern.permute.xlu2 %v11318_v41 }
 0x105   :  { %5991 = vset.pattern.permute.xlu1 %v11322_v40  ;;  %471 = vperm.xlu2 %5990, %v6778_v4  }
 0x106   :  { %680 = vperm.xlu1 %5991, %v6778_v4  }
 0x107   :  { %v6855_v28 = vpop.permute.xlu2 %656 }
 0x108   :  { %548 = vrot.lane.b32.xlu0 %v6846_v25, %s6497_s0  ;;  %v420_v43 = vpop.f32.mrf.mxu0 }
 0x109   :  { %6010 = vset.pattern.permute.xlu0 %v11325_v50  ;;  %v6896_v44 = vadd.f32 %v6696_v45, %v420_v43 }
 0x10b   :  { %11747 = vst [vmem:[#allocation51_spill] sm:$0xff] %v6896_v44 }
 0x10d   :  { %5992 = vset.pattern.permute.xlu2 %v11325_v50  ;;  %v6892_v42 = vpop.permute.xlu0 %652 }
 0x10e   :  { %5994 = vset.pattern.permute.xlu1 %v11318_v41  ;;  %v6865_v31 = vpop.permute.xlu1 %436  ;;  %776 = vperm.xlu2 %5992, %v6778_v4  }
 0x10f   :  { %476 = vperm.xlu1 %5994, %v6791_v8   ;;  %v6869_v32 = vpop.permute.xlu2 %538 }
 0x110   :  { %796 = vperm.xlu0 %6010, %v6861_v30   ;;  %v422_v63 = vpop.f32.mrf.mxu0 }
 0x111   :  { %v6927_v5 = vadd.f32 %v6696_v45, %v422_v63  ;;  %v6954_v63 = vpack.c.bf16 %v6879_v36, %v6861_v30 }
 0x113   :  { %11750 = vst [vmem:[#allocation54_spill] sm:$0xff] %v6927_v5 }
 0x114   :  { %11755 = vst [vmem:[#allocation59_spill] sm:$0xff] %v6954_v63 }
 0x116   :  { %544 = vrot.lane.b32.xlu2 %v6876_v35, %s6497_s0 }
 0x117   :  { %5996 = vset.pattern.permute.xlu1 %v11325_v50  ;;  %v6884_v37 = vpop.permute.xlu1 %748  ;;  %5997 = vset.pattern.permute.xlu2 %v11331_v39  ;;  %v6888_v38 = vpop.permute.xlu2 %756 }
 0x118   :  { %780 = vperm.xlu1 %5996, %v6791_v8   ;;  %6015 = vset.pattern.permute.xlu0 %v11331_v39  ;;  %v6906_v51 = vpop.permute.xlu0 %752 }
 0x119   :  { %896 = vperm.xlu0 %6015, %v6879_v36  }
 0x11e   :  { %876 = vperm.xlu2 %5997, %v6791_v8  }
 0x120   :  { %6000 = vset.pattern.permute.xlu1 %v11331_v39  ;;  %v6899_v46 = vpop.permute.xlu1 %848  ;;  %v6901_v48 = vpop.permute.xlu2 %451 }
 0x121   :  { %880 = vperm.xlu1 %6000, %v6806_v13   ;;  %6017 = vset.pattern.permute.xlu0 %v11322_v40  ;;  %v6924_v2 = vpop.permute.xlu0 %852 }
 0x122   :  { %708 = vperm.xlu0 %6017, %v6896_v44  }
 0x126   :  { %5998 = vset.pattern.permute.xlu2 %v11322_v40 }
 0x127   :  { %688 = vperm.xlu2 %5998, %v6806_v13  }
 0x129   :  { %546 = vrot.lane.b32.xlu1 %v6912_v53, %s6497_s0  ;;  %v6916_v55 = vpop.permute.xlu1 %660  ;;  %v6918_v57 = vpop.permute.xlu2 %664 }
 0x12a   :  { %11749 = vst [vmem:[#allocation53_spill] sm:$0xff] %v6918_v57  ;;  %1190 = vrot.lane.b32.xlu0 %v6751_v61, %s6498_s4  ;;  %6002 = vset.pattern.permute.xlu1 %v11322_v40 }
 0x12b   :  { %6021 = vset.pattern.permute.xlu0 %v11325_v50 }
 0x12f   :  { %6001 = vset.pattern.permute.xlu2 %v11318_v41 }
 0x130   :  { %486 = vperm.xlu2 %6001, %v6821_v18  }
 0x131   :  { %692 = vperm.xlu1 %6002, %v6821_v18  }
 0x132   :  { %v6932_v10 = vpop.permute.xlu1 %760  ;;  %808 = vperm.xlu0 %6021, %v6927_v5   ;;  %v6935_v15 = vpop.permute.xlu2 %856 }
 0x133   :  { %11751 = vst [vmem:[#allocation55_spill] sm:$0xff] %v6932_v10 }
 0x134   :  { %11752 = vst [vmem:[#allocation56_spill] sm:$0xff] %v6935_v15 }
 0x135   :  { %v6937_v20 = vpop.permute.xlu0 %672 }
 0x136   :  { %11753 = vst [vmem:[#allocation57_spill] sm:$0xff] %v6937_v20 }
 0x138   :  { %6003 = vset.pattern.permute.xlu2 %v11325_v50 }
 0x139   :  { %6005 = vset.pattern.permute.xlu1 %v11318_v41  ;;  %788 = vperm.xlu2 %6003, %v6821_v18  }
 0x13a   :  { %491 = vperm.xlu1 %6005, %v6836_v23   ;;  %v6943_v45 = vpop.permute.xlu1 %540  ;;  %1194 = vrot.lane.b32.xlu0 %v6876_v35, %s6498_s4 }
 0x13b   :  { %v6947_v29 = vpop.permute.xlu2 %764  ;;  %6024 = vset.pattern.permute.xlu0 %v11320_v34 }
 0x13c   :  { %11754 = vst [vmem:[#allocation58_spill] sm:$0xff] %v6947_v29 }
 0x13d   :  { %v6950_v43 = vpop.permute.xlu0 %542 }
 0x141   :  { %6008 = vset.pattern.permute.xlu2 %v11331_v39 }
 0x142   :  { %6007 = vset.pattern.permute.xlu1 %v11325_v50  ;;  %v6958_v41 = vpop.permute.xlu1 %456  ;;  %1200 = vrot.lane.b32.xlu0 %v6954_v63, %s6498_s4  ;;  %v11760_v50 = vmov 25  }
 0x143   :  { %11756 = vst [vmem:[#allocation60_spill] sm:$0xff] %v6958_v41  ;;  %792 = vperm.xlu1 %6007, %v6836_v23   ;;  %888 = vperm.xlu2 %6008, %v6836_v23  }
 0x144   :  { %v6964_v34 = vpop.permute.xlu2 %461 }
 0x145   :  { %11757 = vst [vmem:[#allocation61_spill] sm:$0xff] %v6964_v34  ;;  %v6966_v40 = vpop.permute.xlu0 %772 }
 0x146   :  { %11758 = vst [vmem:[#allocation62_spill] sm:$0xff] %v6966_v40 }
 0x14a   :  { %1509 = vperm.xlu0 %6024, %v6705_v49  }
 0x14b   :  { %6011 = vset.pattern.permute.xlu1 %v11331_v39  ;;  %v6970_v14 = vpop.permute.xlu1 %668  ;;  %6009 = vset.pattern.permute.xlu2 %v11760_v50 }
 0x14c   :  { %11759 = vst [vmem:[#allocation63_spill] sm:$0xff] %v6970_v14  ;;  %892 = vperm.xlu1 %6011, %v6861_v30   ;;  %700 = vperm.xlu2 %6009, %v6861_v30  }
 0x14d   :  { %v6975_v33 = vpop.permute.xlu2 %864 }
 0x14e   :  { %11761 = vst [vmem:[#allocation64_spill] sm:$0xff] %v6975_v33  ;;  %v6977_v26 = vpop.permute.xlu0 %872 }
 0x14f   :  { %11762 = vst [vmem:[#allocation65_spill] sm:$0xff] %v6977_v26 }
 0x152   :  { %1537 = vperm.xlu0 %6024, %v6791_v8  }
 0x154   :  { %6013 = vset.pattern.permute.xlu1 %v11760_v50  ;;  %v6981_v27 = vpop.permute.xlu1 %860  ;;  %6012 = vset.pattern.permute.xlu2 %v11764_v9 }
 0x155   :  { %11763 = vst [vmem:[#allocation66_spill] sm:$0xff] %v6981_v27  ;;  %704 = vperm.xlu1 %6013, %v6879_v36   ;;  %501 = vperm.xlu2 %6012, %v6879_v36  }
 0x156   :  { %v6986_v39 = vpop.permute.xlu2 %676 }
 0x157   :  { %11765 = vst [vmem:[#allocation67_spill] sm:$0xff] %v6986_v39  ;;  %v6988_v16 = vpop.permute.xlu0 %684 }
 0x15a   :  { %1549 = vperm.xlu0 %6024, %v6836_v23  }
 0x15d   :  { %6016 = vset.pattern.permute.xlu1 %v11764_v9  ;;  %v6992_v17 = vpop.permute.xlu1 %768  ;;  %6014 = vset.pattern.permute.xlu2 %v11767_v21 }
 0x15e   :  { %11766 = vst [vmem:[#allocation68_spill] sm:$0xff] %v6992_v17  ;;  %506 = vperm.xlu1 %6016, %v6896_v44   ;;  %800 = vperm.xlu2 %6014, %v6879_v36  }
 0x15f   :  { %v6997_v0 = vpop.permute.xlu2 %471 }
 0x160   :  { %11768 = vst [vmem:[#allocation69_spill] sm:$0xff] %v6997_v0  ;;  %v6999_v60 = vpop.permute.xlu0 %784 }
 0x162   :  { %1561 = vperm.xlu0 %6024, %v6896_v44  }
 0x166   :  { %6018 = vset.pattern.permute.xlu1 %v11767_v21  ;;  %v7003_v22 = vpop.permute.xlu1 %466  ;;  %550 = vrot.lane.b32.xlu2 %v6954_v63, %s6497_s0 }
 0x167   :  { %11769 = vst [vmem:[#allocation70_spill] sm:$0xff] %v7003_v22  ;;  %804 = vperm.xlu1 %6018, %v6896_v44   ;;  %6019 = vset.pattern.permute.xlu2 %v11770_v11 }
 0x168   :  { %v7009_v6 = vpop.permute.xlu2 %776 }
 0x169   :  { %11771 = vst [vmem:[#allocation71_spill] sm:$0xff] %v7009_v6  ;;  %v7011_v12 = vpop.permute.xlu0 %884  ;;  %v7030_v6 = vpack.c.bf16 %v6927_v5, %v6896_v44 }
 0x16a   :  { %11772 = vst [vmem:[#allocation72_spill] sm:$0xff] %v7011_v12  ;;  %1586 = vrot.lane.b32.xlu0 %v6751_v61, %s6500_s17 }
 0x16b   :  { %6026 = vset.pattern.permute.xlu0 %v11346_v7  ;;  %11775 = vst [vmem:[#allocation75_spill] sm:$0xff] %v7030_v6  ;;  %v11777_v7 = vmov 52  }
 0x16e   :  { %900 = vperm.xlu2 %6019, %v6896_v44  }
 0x16f   :  { %6022 = vset.pattern.permute.xlu1 %v11770_v11  ;;  %v7017_v21 = vpop.permute.xlu1 %868 }
 0x170   :  { %11773 = vst [vmem:[#allocation73_spill] sm:$0xff] %v7017_v21  ;;  %904 = vperm.xlu1 %6022, %v6927_v5   ;;  %v7020_v3 = vpop.permute.xlu2 %544 }
 0x172   :  { %1592 = vrot.lane.b32.xlu0 %v6912_v53, %s6500_s17  ;;  %v7025_v26 = vpop.permute.xlu0 %696 }
 0x173   :  { %11774 = vst [vmem:[#allocation74_spill] sm:$0xff] %v7025_v26 }
 0x176   :  { %6020 = vset.pattern.permute.xlu2 %v11760_v50 }
 0x177   :  { %712 = vperm.xlu2 %6020, %v6927_v5  }
 0x178   :  { %552 = vrot.lane.b32.xlu1 %v7030_v6, %s6497_s0  ;;  %v7035_v11 = vpop.permute.xlu1 %680  ;;  %v7037_v0 = vpop.permute.xlu2 %876 }
 0x179   :  { %11776 = vst [vmem:[#allocation76_spill] sm:$0xff] %v7035_v11  ;;  %6023 = vset.pattern.permute.xlu1 %v11777_v7 }
 0x17a   :  { %1598 = vrot.lane.b32.xlu0 %v7030_v6, %s6500_s17  ;;  %v7042_v21 = vpop.permute.xlu0 %548 }
 0x17f   :  { %1188 = vrot.lane.b32.xlu2 %v6724_v54, %s6498_s4 }
 0x180   :  { %1192 = vrot.lane.b32.xlu1 %v6755_v62, %s6498_s4  ;;  %6025 = vset.pattern.permute.xlu2 %v11777_v7 }
 0x181   :  { %v7049_v50 = vpop.permute.xlu1 %476  ;;  %v7051_v11 = vpop.permute.xlu2 %688 }
 0x182   :  { %1604 = vrot.lane.b32.xlu0 %v6755_v62, %s6502_s18  ;;  %v7055_v40 = vpop.permute.xlu0 %796 }
 0x183   :  { %11778 = vst [vmem:[#allocation77_spill] sm:$0xff] %v7055_v40 }
 0x187   :  { %1196 = vrot.lane.b32.xlu2 %v6912_v53, %s6498_s4 }
 0x188   :  { %1198 = vrot.lane.b32.xlu1 %v6846_v25, %s6498_s4 }
 0x18a   :  { %v7061_v39 = vpop.permute.xlu1 %780  ;;  %1610 = vrot.lane.b32.xlu0 %v6846_v25, %s6502_s18  ;;  %v7065_v7 = vpop.permute.xlu2 %486 }
 0x18b   :  { %v7067_v22 = vpop.permute.xlu0 %896 }
 0x18c   :  { %11779 = vst [vmem:[#allocation78_spill] sm:$0xff] %v7067_v22 }
 0x18f   :  { %1202 = vrot.lane.b32.xlu2 %v7030_v6, %s6498_s4 }
 0x190   :  { %1505 = vperm.xlu1 %6023, %v6699_v47  }
 0x192   :  { %1714 = vperm.xlu0 %6026, %v6699_v47  }
 0x193   :  { %v7073_v33 = vpop.permute.xlu1 %880  ;;  %v7075_v17 = vpop.permute.xlu2 %788 }
 0x194   :  { %11780 = vst [vmem:[#allocation79_spill] sm:$0xff] %v7075_v17  ;;  %v7077_v40 = vpop.permute.xlu0 %708 }
 0x195   :  { %11781 = vst [vmem:[#allocation80_spill] sm:$0xff] %v7077_v40 }
 0x197   :  { %1513 = vperm.xlu2 %6025, %v6714_v52  }
 0x198   :  { %1517 = vperm.xlu1 %6023, %v6734_v56  }
 0x19a   :  { %1734 = vperm.xlu0 %6026, %v6739_v58  }
 0x19b   :  { %v7082_v22 = vpop.permute.xlu1 %546 }
 0x19c   :  { %v7084_v20 = vpop.permute.xlu0 %1190 }
 0x19d   :  { %v7086_v34 = vpop.permute.xlu2 %888 }
 0x19e   :  { %11782 = vst [vmem:[#allocation81_spill] sm:$0xff] %v7086_v34 }
 0x19f   :  { %1521 = vperm.xlu2 %6025, %v6742_v59  }
 0x1a0   :  { %1525 = vperm.xlu1 %6023, %v6739_v58  }
 0x1a2   :  { %1746 = vperm.xlu0 %6026, %v6791_v8  }
 0x1a3   :  { %v7091_v27 = vpop.permute.xlu1 %692 }
 0x1a4   :  { %11783 = vst [vmem:[#allocation82_spill] sm:$0xff] %v7091_v27  ;;  %v7093_v40 = vpop.permute.xlu0 %808 }
 0x1a5   :  { %11784 = vst [vmem:[#allocation83_spill] sm:$0xff] %v7093_v40 }
 0x1a6   :  { %v7095_v29 = vpop.permute.xlu2 %700 }
 0x1a7   :  { %11785 = vst [vmem:[#allocation84_spill] sm:$0xff] %v7095_v29  ;;  %1529 = vperm.xlu2 %6025, %v6768_v1  }
 0x1a8   :  { %1533 = vperm.xlu1 %6023, %v6778_v4  }
 0x1aa   :  { %1758 = vperm.xlu0 %6026, %v6836_v23  }
 0x1ac   :  { %v7100_v14 = vpop.permute.xlu1 %491  ;;  %v7102_v34 = vpop.permute.xlu0 %1194 }
 0x1ad   :  { %11786 = vst [vmem:[#allocation85_spill] sm:$0xff] %v7100_v14  ;;  %v11350_v14 = vmov 54  }
 0x1af   :  { %1541 = vperm.xlu2 %6025, %v6806_v13   ;;  %v7105_v26 = vpop.permute.xlu2 %501 }
 0x1b0   :  { %11787 = vst [vmem:[#allocation86_spill] sm:$0xff] %v7105_v26  ;;  %1545 = vperm.xlu1 %6023, %v6821_v18  }
 0x1b2   :  { %1770 = vperm.xlu0 %6026, %v6896_v44  }
 0x1b4   :  { %v1201_v29 = vpop.permute.xlu0 %1200 }
 0x1b5   :  { %v7109_v40 = vpop.permute.xlu1 %792 }
 0x1b6   :  { %11788 = vst [vmem:[#allocation87_spill] sm:$0xff] %v7109_v40  ;;  %v11791_v40 = vmov 53  }
 0x1b7   :  { %1553 = vperm.xlu2 %6025, %v6861_v30  }
 0x1b8   :  { %1557 = vperm.xlu1 %6023, %v6879_v36   ;;  %v7113_v41 = vpop.permute.xlu2 %800 }
 0x1b9   :  { %11789 = vst [vmem:[#allocation88_spill] sm:$0xff] %v7113_v41 }
 0x1ba   :  { %6030 = vset.pattern.permute.xlu0 %v11350_v14 }
 0x1bb   :  { %1814 = vperm.xlu0 %6030, %v6705_v49  }
 0x1bc   :  { %v7123_v12 = vpop.permute.xlu0 %1509 }
 0x1bd   :  { %11792 = vst [vmem:[#allocation90_spill] sm:$0xff] %v7123_v12 }
 0x1be   :  { %v7117_v15 = vpop.permute.xlu1 %892 }
 0x1bf   :  { %11790 = vst [vmem:[#allocation89_spill] sm:$0xff] %v7117_v15  ;;  %1565 = vperm.xlu2 %6025, %v6927_v5  }
 0x1c0   :  { %1584 = vrot.lane.b32.xlu1 %v6724_v54, %s6500_s17  ;;  %v551_v26 = vpop.permute.xlu2 %550 }
 0x1c1   :  { %6028 = vset.pattern.permute.xlu1 %v11791_v40 }
 0x1c3   :  { %1834 = vperm.xlu0 %6030, %v6768_v1  }
 0x1c4   :  { %v7136_v15 = vpop.permute.xlu0 %1537 }
 0x1c5   :  { %11795 = vst [vmem:[#allocation93_spill] sm:$0xff] %v7136_v15 }
 0x1c7   :  { %v7126_v41 = vpop.permute.xlu1 %704  ;;  %1588 = vrot.lane.b32.xlu2 %v6755_v62, %s6500_s17 }
 0x1c8   :  { %11793 = vst [vmem:[#allocation91_spill] sm:$0xff] %v7126_v41  ;;  %1590 = vrot.lane.b32.xlu1 %v6876_v35, %s6500_s17  ;;  %v7132_v14 = vpop.permute.xlu2 %900  ;;  %6027 = vset.pattern.permute.xlu2 %v11791_v40 }
 0x1c9   :  { %11794 = vst [vmem:[#allocation92_spill] sm:$0xff] %v7132_v14 }
 0x1cb   :  { %1846 = vperm.xlu0 %6030, %v6806_v13  }
 0x1cc   :  { %v7147_v10 = vpop.permute.xlu0 %1549 }
 0x1cd   :  { %11798 = vst [vmem:[#allocation96_spill] sm:$0xff] %v7147_v10 }
 0x1cf   :  { %1594 = vrot.lane.b32.xlu2 %v6846_v25, %s6500_s17 }
 0x1d0   :  { %v7140_v12 = vpop.permute.xlu1 %506  ;;  %1596 = vrot.lane.b32.xlu1 %v6954_v63, %s6500_s17 }
 0x1d1   :  { %11796 = vst [vmem:[#allocation94_spill] sm:$0xff] %v7140_v12  ;;  %v7144_v41 = vpop.permute.xlu2 %712  ;;  %v11353_v12 = vmov 55  }
 0x1d2   :  { %11797 = vst [vmem:[#allocation95_spill] sm:$0xff] %v7144_v41 }
 0x1d3   :  { %1858 = vperm.xlu0 %6030, %v6861_v30  }
 0x1d4   :  { %v7158_v14 = vpop.permute.xlu0 %1561 }
 0x1d5   :  { %11800 = vst [vmem:[#allocation98_spill] sm:$0xff] %v7158_v14 }
 0x1d7   :  { %1600 = vrot.lane.b32.xlu2 %v6724_v54, %s6502_s18 }
 0x1d8   :  { %1602 = vrot.lane.b32.xlu1 %v6751_v61, %s6502_s18 }
 0x1d9   :  { %v7153_v40 = vpop.permute.xlu1 %804  ;;  %v1189_v15 = vpop.permute.xlu2 %1188 }
 0x1da   :  { %11799 = vst [vmem:[#allocation97_spill] sm:$0xff] %v7153_v40 }
 0x1db   :  { %1870 = vperm.xlu0 %6030, %v6927_v5  }
 0x1dc   :  { %v7170_v17 = vpop.permute.xlu0 %1586 }
 0x1df   :  { %1606 = vrot.lane.b32.xlu2 %v6876_v35, %s6502_s18 }
 0x1e0   :  { %1608 = vrot.lane.b32.xlu1 %v6912_v53, %s6502_s18 }
 0x1e1   :  { %v1197_v10 = vpop.permute.xlu2 %1196 }
 0x1e2   :  { %v7162_v41 = vpop.permute.xlu1 %904 }
 0x1e3   :  { %11801 = vst [vmem:[#allocation99_spill] sm:$0xff] %v7162_v41  ;;  %6034 = vset.pattern.permute.xlu0 %v11353_v12  ;;  %v597_v41 = vsel %vm11485_vm1, %v551_v26, 0 }
 0x1e4   :  { %1914 = vperm.xlu0 %6034, %v6714_v52   ;;  %v7177_v27 = vpop.permute.xlu0 %1592 }
 0x1e7   :  { %1612 = vrot.lane.b32.xlu2 %v6954_v63, %s6502_s18 }
 0x1e8   :  { %1614 = vrot.lane.b32.xlu1 %v7030_v6, %s6502_s18 }
 0x1e9   :  { %v1203_v40 = vpop.permute.xlu2 %1202 }
 0x1ea   :  { %v553_v14 = vpop.permute.xlu1 %552  ;;  %1212 = vmatpush.bf16.msra.mxu2 %v1203_v40 }
 0x1eb   :  { %v600_v57 = vsel %vm11485_vm1, %v553_v14, 0  ;;  %v594_v14 = vsel %vm11485_vm1, %v7042_v21, 0  ;;  %v591_v21 = vsel %vm11485_vm1, %v7082_v22, 0  ;;  %v588_v22 = vsel %vm11485_vm1, %v7020_v3, 0 }
 0x1ec   :  { %602 = vmatpush.bf16.xpose.msra.mxu1 %v600_v57  ;;  %5923 = vmatpush.bf16.xpose.msra.mxu3 %v600_v57  ;;  %v7187_v26 = vpop.permute.xlu0 %1598  ;;  %v11808_v3 = vmov 54  }
 0x1ed   :  { %1934 = vperm.xlu0 %6034, %v6778_v4  }
 0x1ee   :  { %1213 = vmatpush.bf16.msra.mxu2 %v1201_v29 }
 0x1ef   :  { %1718 = vperm.xlu2 %6027, %v6705_v49  }
 0x1f0   :  { %1722 = vperm.xlu1 %6028, %v6714_v52  }
 0x1f1   :  { %v7184_v57 = vpop.permute.xlu2 %1513 }
 0x1f2   :  { %v1193_v12 = vpop.permute.xlu1 %1192  ;;  %11802 = vst [vmem:[#allocation100_spill] sm:$0xff] %v7184_v57 }
 0x1f4   :  { %603 = vmatpush.bf16.xpose.msra.mxu1 %v597_v41  ;;  %5924 = vmatpush.bf16.xpose.msra.mxu3 %v597_v41 }
 0x1f5   :  { %1946 = vperm.xlu0 %6034, %v6821_v18  }
 0x1f7   :  { %1726 = vperm.xlu2 %6027, %v6734_v56  }
 0x1f8   :  { %1730 = vperm.xlu1 %6028, %v6742_v59  }
 0x1f9   :  { %v7197_v29 = vpop.permute.xlu2 %1521 }
 0x1fa   :  { %v1199_v40 = vpop.permute.xlu1 %1198  ;;  %11804 = vst [vmem:[#allocation102_spill] sm:$0xff] %v7197_v29 }
 0x1fb   :  { %1214 = vmatpush.bf16.msra.mxu2 %v1199_v40 }
 0x1fc   :  { %604 = vmatpush.bf16.xpose.msra.mxu1 %v594_v14  ;;  %5925 = vmatpush.bf16.xpose.msra.mxu3 %v594_v14 }
 0x1fd   :  { %1958 = vperm.xlu0 %6034, %v6879_v36  }
 0x1ff   :  { %1738 = vperm.xlu2 %6027, %v6768_v1   ;;  %1215 = vmatpush.bf16.msra.mxu2 %v1197_v10  ;;  %v7201_v10 = vpop.permute.xlu0 %1604 }
 0x200   :  { %1742 = vperm.xlu1 %6028, %v6778_v4  }
 0x202   :  { %v7191_v41 = vpop.permute.xlu1 %1505 }
 0x203   :  { %11803 = vst [vmem:[#allocation101_spill] sm:$0xff] %v7191_v41  ;;  %1216 = vmatpush.bf16.msra.mxu2 %v7102_v34  ;;  %v7211_v34 = vpop.permute.xlu2 %1529 }
 0x204   :  { %605 = vmatpush.bf16.xpose.msra.mxu1 %v591_v21  ;;  %5926 = vmatpush.bf16.xpose.msra.mxu3 %v591_v21  ;;  %11806 = vst [vmem:[#allocation104_spill] sm:$0xff] %v7211_v34 }
 0x205   :  { %6035 = vset.pattern.permute.xlu0 %v11764_v9 }
 0x206   :  { %446 = vperm.xlu0 %6035, %v6714_v52  }
 0x207   :  { %1750 = vperm.xlu2 %6027, %v6806_v13   ;;  %1217 = vmatpush.bf16.msra.mxu2 %v1193_v12  ;;  %v7214_v12 = vpop.permute.xlu0 %1610 }
 0x208   :  { %1754 = vperm.xlu1 %6028, %v6821_v18  }
 0x20a   :  { %v7204_v40 = vpop.permute.xlu1 %1517 }
 0x20b   :  { %11805 = vst [vmem:[#allocation103_spill] sm:$0xff] %v7204_v40  ;;  %1218 = vmatpush.bf16.msra.mxu2 %v7084_v20  ;;  %v585_v20 = vsel %vm11485_vm1, %v6950_v43, 0 }
 0x20c   :  { %606 = vmatpush.bf16.xpose.msra.mxu1 %v588_v22  ;;  %5927 = vmatpush.bf16.xpose.msra.mxu3 %v588_v22  ;;  %v582_v22 = vsel %vm11485_vm1, %v6943_v45, 0 }
 0x20e   :  { %481 = vperm.xlu0 %6035, %v6806_v13  }
 0x20f   :  { %1762 = vperm.xlu2 %6027, %v6861_v30   ;;  %1219 = vmatpush.bf16.msra.mxu2 %v1189_v15  ;;  %v7224_v15 = vpop.permute.xlu2 %1541  ;;  %v7230_v34 = vpop.permute.xlu0 %1714 }
 0x210   :  { %1766 = vperm.xlu1 %6028, %v6879_v36   ;;  %11809 = vst [vmem:[#allocation106_spill] sm:$0xff] %v7224_v15 }
 0x211   :  { %11811 = vst [vmem:[#allocation108_spill] sm:$0xff] %v7230_v34 }
 0x212   :  { %v7216_v14 = vpop.permute.xlu1 %1525 }
 0x213   :  { %11807 = vst [vmem:[#allocation105_spill] sm:$0xff] %v7216_v14 }
 0x214   :  { %607 = vmatpush.bf16.xpose.msra.mxu1 %v585_v20  ;;  %5928 = vmatpush.bf16.xpose.msra.mxu3 %v585_v20  ;;  %v579_v20 = vsel %vm11485_vm1, %v6869_v32, 0 }
 0x216   :  { %496 = vperm.xlu0 %6035, %v6861_v30  }
 0x217   :  { %1774 = vperm.xlu2 %6027, %v6927_v5   ;;  %v7240_v15 = vpop.permute.xlu2 %1553  ;;  %v7242_v45 = vpop.permute.xlu0 %1734 }
 0x218   :  { %6029 = vset.pattern.permute.xlu1 %v11808_v3  ;;  %11813 = vst [vmem:[#allocation110_spill] sm:$0xff] %v7240_v15 }
 0x219   :  { %1810 = vperm.xlu1 %6029, %v6699_v47   ;;  %11814 = vst [vmem:[#allocation111_spill] sm:$0xff] %v7242_v45  ;;  %v5900_v45 = vld [vmem:[#allocation2 + $0x48] sm:$0xff]  }
 0x21a   :  { %v7226_v21 = vpop.permute.xlu1 %1533 }
 0x21b   :  { %11810 = vst [vmem:[#allocation107_spill] sm:$0xff] %v7226_v21 }
 0x21c   :  { %608 = vmatpush.bf16.xpose.msra.mxu1 %v582_v22  ;;  %5929 = vmatpush.bf16.xpose.msra.mxu3 %v582_v22 }
 0x21e   :  { %511 = vperm.xlu0 %6035, %v6927_v5  }
 0x21f   :  { %6031 = vset.pattern.permute.xlu2 %v11808_v3  ;;  %v7252_v3 = vpop.permute.xlu2 %1565  ;;  %v7254_v32 = vpop.permute.xlu0 %1746 }
 0x220   :  { %1818 = vperm.xlu2 %6031, %v6714_v52   ;;  %11816 = vst [vmem:[#allocation113_spill] sm:$0xff] %v7252_v3  ;;  %v11820_v3 = vmov 55  }
 0x221   :  { %1822 = vperm.xlu1 %6029, %v6734_v56   ;;  %11817 = vst [vmem:[#allocation114_spill] sm:$0xff] %v7254_v32 }
 0x222   :  { %v7236_v43 = vpop.permute.xlu1 %1545 }
 0x223   :  { %11812 = vst [vmem:[#allocation109_spill] sm:$0xff] %v7236_v43 }
 0x224   :  { %609 = vmatpush.bf16.xpose.msra.mxu1 %v579_v20  ;;  %5930 = vmatpush.bf16.xpose.msra.mxu3 %v579_v20 }
 0x227   :  { %v7260_v52 = vpop.permute.xlu2 %1588 }
 0x228   :  { %1826 = vperm.xlu2 %6031, %v6742_v59  }
 0x229   :  { %1830 = vperm.xlu1 %6029, %v6739_v58  }
 0x22a   :  { %v7246_v22 = vpop.permute.xlu1 %1557 }
 0x22b   :  { %11815 = vst [vmem:[#allocation112_spill] sm:$0xff] %v7246_v22  ;;  %5711 = vmatmul.msk.bf16.vlgmr.msra.gmra.mxu1 %vm11485_vm1, %v6724_v54  ;;  %5715 = vmatmul.msk.bf16.vlgmr.msra.gmra.mxu3 %vm11485_vm1, %v6912_v53  ;;  %v7264_v54 = vpop.permute.xlu0 %1758 }
 0x22c   :  { %11818 = vst [vmem:[#allocation115_spill] sm:$0xff] %v7264_v54 }
 0x230   :  { %1838 = vperm.xlu2 %6031, %v6778_v4   ;;  %v7274_v4 = vpop.permute.xlu2 %1594 }
 0x231   :  { %1842 = vperm.xlu1 %6029, %v6791_v8  }
 0x232   :  { %v7258_v20 = vpop.permute.xlu1 %1584 }
 0x238   :  { %1850 = vperm.xlu2 %6031, %v6821_v18   ;;  %v7278_v18 = vpop.permute.xlu0 %1770 }
 0x239   :  { %1854 = vperm.xlu1 %6029, %v6836_v23   ;;  %11819 = vst [vmem:[#allocation116_spill] sm:$0xff] %v7278_v18 }
 0x23a   :  { %v7266_v22 = vpop.permute.xlu1 %1590 }
 0x23b   :  { %5712 = vmatmul.msk.bf16.gmra.mxu1 %vm11485_vm1, %v6751_v61  ;;  %5716 = vmatmul.msk.bf16.gmra.mxu3 %vm11485_vm1, %v6846_v25 }
 0x240   :  { %1862 = vperm.xlu2 %6031, %v6879_v36   ;;  %v1601_v36 = vpop.permute.xlu2 %1600  ;;  %v7288_v25 = vpop.permute.xlu0 %1814 }
 0x241   :  { %1866 = vperm.xlu1 %6029, %v6896_v44   ;;  %11821 = vst [vmem:[#allocation117_spill] sm:$0xff] %v7288_v25 }
 0x242   :  { %v7276_v53 = vpop.permute.xlu1 %1596 }
 0x248   :  { %6032 = vset.pattern.permute.xlu2 %v11820_v3  ;;  %v7292_v54 = vpop.permute.xlu0 %1834 }
 0x249   :  { %6033 = vset.pattern.permute.xlu1 %v11820_v3  ;;  %1906 = vperm.xlu2 %6032, %v6699_v47   ;;  %v1607_v3 = vpop.permute.xlu2 %1606  ;;  %11822 = vst [vmem:[#allocation118_spill] sm:$0xff] %v7292_v54 }
 0x24a   :  { %1910 = vperm.xlu1 %6033, %v6705_v49   ;;  %v1603_v61 = vpop.permute.xlu1 %1602 }
 0x24b   :  { %5713 = vmatmul.msk.bf16.gmra.mxu1 %vm11485_vm1, %v6755_v62  ;;  %5717 = vmatmul.msk.bf16.gmra.mxu3 %vm11485_vm1, %v6954_v63  ;;  %v5895_v62 = vld [vmem:[#allocation2 + $0x20] sm:$0xff]  }
 0x251   :  { %1918 = vperm.xlu2 %6032, %v6734_v56   ;;  %v1613_v56 = vpop.permute.xlu2 %1612 }
 0x252   :  { %1922 = vperm.xlu1 %6033, %v6742_v59   ;;  %v1609_v18 = vpop.permute.xlu1 %1608  ;;  %v7302_v59 = vpop.permute.xlu0 %1846 }
 0x253   :  { %11823 = vst [vmem:[#allocation119_spill] sm:$0xff] %v7302_v59  ;;  %v7364_v59 = vunpack.c.l.bf16 %v5895_v62 }
 0x255   :  { %11842 = vst [vmem:[#allocation138_spill] sm:$0xff] %v7364_v59 }
 0x259   :  { %1926 = vperm.xlu2 %6032, %v6739_v58   ;;  %v1659_v58 = vsel %vm11485_vm1, %v1613_v56, 0  ;;  %v1650_v56 = vsel %vm11485_vm1, %v1607_v3, 0  ;;  %v1641_v3 = vsel %vm11485_vm1, %v1601_v36, 0  ;;  %v5899_v36 = vld [vmem:[#allocation2 + $0x40] sm:$0xff]  }
 0x25a   :  { %1930 = vperm.xlu1 %6033, %v6768_v1   ;;  %v1615_v47 = vpop.permute.xlu1 %1614  ;;  %v1656_v1 = vsel %vm11485_vm1, %v7214_v12, 0  ;;  %v7352_v63 = vunpack.c.l.bf16 %v5899_v36  ;;  %v7376_v54 = vunpack.c.h.bf16 %v5899_v36 }
 0x25b   :  { %5714 = vmatmul.msk.bf16.gmra.mxu1 %vm11485_vm1, %v6876_v35  ;;  %5718 = vmatmul.msk.bf16.gmra.mxu3 %vm11485_vm1, %v7030_v6  ;;  %v1662_v49 = vsel %vm11485_vm1, %v1615_v47, 0  ;;  %v7310_v6 = vpop.permute.xlu0 %1858  ;;  %v1653_v47 = vsel %vm11485_vm1, %v1609_v18, 0 }
 0x25c   :  { %1664 = vmatpush.bf16.xpose.msrb.mxu3 %v1662_v49  ;;  %11824 = vst [vmem:[#allocation120_spill] sm:$0xff] %v7310_v6  ;;  %v715_v15 = vmul.f32 %v7352_v63, %v6892_v42  ;;  %v5919_v42 = vld [vmem:[#allocation2 + $0xe0] sm:$0xff]  }
 0x25d   :  { %11839 = vst [vmem:[#allocation135_spill] sm:$0xff] %v7352_v63  ;;  %v7398_v36 = vunpack.c.l.bf16 %v5919_v42 }
 0x25e   :  { %11846 = vst [vmem:[#allocation142_spill] sm:$0xff] %v7376_v54 }
 0x25f   :  { %11851 = vst [vmem:[#allocation147_spill] sm:$0xff] %v7398_v36 }
 0x261   :  { %1938 = vperm.xlu2 %6032, %v6791_v8  }
 0x262   :  { %1942 = vperm.xlu1 %6033, %v6806_v13   ;;  %v7322_v12 = vpop.permute.xlu1 %1722  ;;  %v5907_v13 = vld [vmem:[#allocation2 + $0x80] sm:$0xff]  }
 0x263   :  { %v7315_v49 = vpop.permute.xlu0 %1870  ;;  %11827 = vst [vmem:[#allocation123_spill] sm:$0xff] %v7322_v12  ;;  %v5904_v12 = vld [vmem:[#allocation2 + $0x68] sm:$0xff]  }
 0x264   :  { %1665 = vmatpush.bf16.xpose.msrb.mxu3 %v1659_v58  ;;  %11825 = vst [vmem:[#allocation121_spill] sm:$0xff] %v7315_v49  ;;  %v7356_v49 = vunpack.c.l.bf16 %v5907_v13 }
 0x266   :  { %11840 = vst [vmem:[#allocation136_spill] sm:$0xff] %v7356_v49 }
 0x269   :  { %1950 = vperm.xlu2 %6032, %v6836_v23  }
 0x26a   :  { %1954 = vperm.xlu1 %6033, %v6861_v30  }
 0x26b   :  { %v7320_v58 = vpop.permute.xlu0 %1914 }
 0x26c   :  { %1666 = vmatpush.bf16.xpose.msrb.mxu3 %v1656_v1  ;;  %11826 = vst [vmem:[#allocation122_spill] sm:$0xff] %v7320_v58  ;;  %v1647_v1 = vsel %vm11485_vm1, %v7201_v10, 0 }
 0x271   :  { %1962 = vperm.xlu2 %6032, %v6896_v44   ;;  %v7326_v44 = vpop.permute.xlu2 %1718 }
 0x272   :  { %1966 = vperm.xlu1 %6033, %v6927_v5   ;;  %11828 = vst [vmem:[#allocation124_spill] sm:$0xff] %v7326_v44  ;;  %v7331_v5 = vpop.permute.xlu1 %1730 }
 0x273   :  { %v7328_v18 = vpop.permute.xlu0 %1934  ;;  %11830 = vst [vmem:[#allocation126_spill] sm:$0xff] %v7331_v5 }
 0x274   :  { %1667 = vmatpush.bf16.xpose.msrb.mxu3 %v1653_v47  ;;  %11829 = vst [vmem:[#allocation125_spill] sm:$0xff] %v7328_v18  ;;  %v1644_v47 = vsel %vm11485_vm1, %v1603_v61, 0 }
 0x279   :  { %6037 = vset.pattern.permute.xlu2 %v11764_v9 }
 0x27a   :  { %6036 = vset.pattern.permute.xlu1 %v11764_v9  ;;  %v7333_v9 = vpop.permute.xlu2 %1726  ;;  %v7338_v23 = vpop.permute.xlu1 %1742 }
 0x27b   :  { %11831 = vst [vmem:[#allocation127_spill] sm:$0xff] %v7333_v9 }
 0x27c   :  { %1668 = vmatpush.bf16.xpose.msrb.mxu3 %v1650_v56  ;;  %v7336_v56 = vpop.permute.xlu0 %1946  ;;  %11833 = vst [vmem:[#allocation129_spill] sm:$0xff] %v7338_v23  ;;  %v5911_v23 = vld [vmem:[#allocation2 + $0xa0] sm:$0xff]  }
 0x27d   :  { %11832 = vst [vmem:[#allocation128_spill] sm:$0xff] %v7336_v56 }
 0x282   :  { %v7340_v10 = vpop.permute.xlu2 %1738  ;;  %v7346_v61 = vpop.permute.xlu1 %1754 }
 0x283   :  { %11834 = vst [vmem:[#allocation130_spill] sm:$0xff] %v7340_v10 }
 0x284   :  { %1669 = vmatpush.bf16.xpose.msrb.mxu3 %v1647_v1  ;;  %v7344_v1 = vpop.permute.xlu0 %1958  ;;  %11836 = vst [vmem:[#allocation132_spill] sm:$0xff] %v7346_v61 }
 0x285   :  { %11835 = vst [vmem:[#allocation131_spill] sm:$0xff] %v7344_v1 }
 0x28a   :  { %v7350_v8 = vpop.permute.xlu2 %1750  ;;  %v7372_v32 = vpop.permute.xlu1 %1766 }
 0x28b   :  { %11838 = vst [vmem:[#allocation134_spill] sm:$0xff] %v7350_v8  ;;  %v811_v8 = vmul.f32 %v7356_v49, %v6884_v37 }
 0x28c   :  { %1670 = vmatpush.bf16.xpose.msrb.mxu3 %v1644_v47  ;;  %v5765_v47 = vld [vmem:[#allocation2] sm:$0xff]   ;;  %v7358_v1 = vpop.permute.xlu0 %446  ;;  %11845 = vst [vmem:[#allocation141_spill] sm:$0xff] %v7372_v32 }
 0x28d   :  { %v7348_v30 = vunpack.c.l.bf16 %v5765_v47  ;;  %v7366_v18 = vunpack.c.h.bf16 %v5765_v47  ;;  %v7382_v47 = vunpack.c.l.bf16 %v5911_v23 }
 0x28f   :  { %11837 = vst [vmem:[#allocation133_spill] sm:$0xff] %v7348_v30  ;;  %v514_v35 = vmul.f32 %v7348_v30, %v6865_v31 }
 0x290   :  { %11843 = vst [vmem:[#allocation139_spill] sm:$0xff] %v7366_v18 }
 0x291   :  { %11847 = vst [vmem:[#allocation143_spill] sm:$0xff] %v7382_v47 }
 0x292   :  { %v7384_v37 = vpop.permute.xlu2 %1762 }
 0x293   :  { %11848 = vst [vmem:[#allocation144_spill] sm:$0xff] %v7384_v37 }
 0x294   :  { %1671 = vmatpush.bf16.xpose.msrb.mxu3 %v1641_v3  ;;  %v5915_v3 = vld [vmem:[#allocation2 + $0xc0] sm:$0xff]  }
 0x295   :  { %v7360_v56 = vunpack.c.l.bf16 %v5915_v3  ;;  %v7402_v37 = vunpack.c.h.bf16 %v5915_v3  ;;  %v915_v3 = vmul.f32 %v7398_v36, %v7037_v0  ;;  %v5916_v0 = vld [vmem:[#allocation2 + $0xc8] sm:$0xff]  }
 0x296   :  { %v7456_v9 = vunpack.c.l.bf16 %v5916_v0  ;;  %v7512_v29 = vunpack.c.h.bf16 %v5916_v0 }
 0x297   :  { %11841 = vst [vmem:[#allocation137_spill] sm:$0xff] %v7360_v56 }
 0x298   :  { %11852 = vst [vmem:[#allocation148_spill] sm:$0xff] %v7402_v37 }
 0x299   :  { %11864 = vst [vmem:[#allocation160_spill] sm:$0xff] %v7456_v9 }
 0x29a   :  { %v7448_v5 = vpop.permute.xlu2 %1774 }
 0x29b   :  { %5719 = vmatmul.msk.bf16.vlgmr.msrb.gmra.mxu3 %vm11485_vm1, %v7258_v20  ;;  %v5903_v20 = vld [vmem:[#allocation2 + $0x60] sm:$0xff]   ;;  %11863 = vst [vmem:[#allocation159_spill] sm:$0xff] %v7448_v5 }
 0x29c   :  { %v7370_v31 = vunpack.c.l.bf16 %v5903_v20 }
 0x29e   :  { %11844 = vst [vmem:[#allocation140_spill] sm:$0xff] %v7370_v31 }
 0x2a2   :  { %v7518_v44 = vpop.permute.xlu2 %1818 }
 0x2a3   :  { %11880 = vst [vmem:[#allocation170_spill] sm:$0xff] %v7518_v44 }
 0x2a8   :  { %v611_v6 = vpop.f32.mrf.mxu1 }
 0x2a9   :  { %v612_v61 = vadd.f32 %v611_v6, %v514_v35  ;;  %v907_v6 = vmul.f32 %v7360_v56, %v6824_v19  ;;  %v522_v35 = vmul.f32 %v7364_v59, %v7049_v50  ;;  %v723_v50 = vmul.f32 %v7370_v31, %v6988_v16 }
 0x2ab   :  { %v731_v43 = vadd.f32 %v715_v15, %v612_v61  ;;  %5720 = vmatmul.msk.bf16.gmra.mxu3 %vm11485_vm1, %v7170_v17  ;;  %v7389_v15 = vld [vmem:[%s11308_s2] sm:$0xff]  ;;  %v515_v17 = vmul.f32 %v7366_v18, %v6839_v24  ;;  %v7394_v61 = vunpack.c.h.bf16 %v5907_v13  ;;  %v819_v24 = vmul.f32 %v7382_v47, %v7061_v39 }
 0x2ac   :  { %11849 = vst [vmem:[#allocation145_spill] sm:$0xff] %v7389_v15  ;;  %vm270_vm2 = vcmp.gt.f32.partialorder %v7389_v15, 0.0  ;;  %v7446_v15 = vunpack.c.h.bf16 %v5919_v42 }
 0x2ad   :  { %v827_v10 = vadd.f32 %v811_v8, %v731_v43  ;;  %11850 = vst [vmem:[#allocation146_spill] sm:$0xff] %v7394_v61  ;;  %v716_v43 = vmul.f32 %v7376_v54, %v6855_v28  ;;  %v812_v16 = vmul.f32 %v7394_v61, %v6906_v51  ;;  %v5908_v28 = vld [vmem:[#allocation2 + $0x88] sm:$0xff]   ;;  %v908_v51 = vmul.f32 %v7402_v37, %v6899_v46 }
 0x2ae   :  { %v631_v19 = vpop.f32.mrf.mxu3  ;;  %v7442_v46 = vunpack.c.l.bf16 %v5908_v28  ;;  %11862 = vst [vmem:[#allocation158_spill] sm:$0xff] %v7446_v15 }
 0x2af   :  { %v632_v32 = vadd.f32 %v631_v19, %v522_v35  ;;  %v923_v8 = vadd.f32 %v907_v6, %v827_v10  ;;  %v7412_v10 = vunpack.c.h.bf16 %v5903_v20  ;;  %v482_v6 = vpop.permute.xlu0 %481  ;;  %v7417_v35 = vunpack.c.h.bf16 %v5895_v62  ;;  %v5892_v20 = vld [vmem:[#allocation2 + $0x8] sm:$0xff]  }
 0x2b0   :  { %v613_v58 = vpop.f32.mrf.mxu1  ;;  %v7429_v19 = vunpack.c.h.bf16 %v5911_v23  ;;  %v7431_v62 = vunpack.c.l.bf16 %v5892_v20  ;;  %11861 = vst [vmem:[#allocation157_spill] sm:$0xff] %v7442_v46 }
 0x2b1   :  { %v739_v13 = vadd.f32 %v723_v50, %v632_v32  ;;  %v614_v21 = vadd.f32 %v613_v58, %v515_v17  ;;  %v7408_v14 = vsel %vm270_vm2, %v923_v8, -1e+30  ;;  %11853 = vst [vmem:[#allocation149_spill] sm:$0xff] %v7412_v10  ;;  %v7422_v58 = vld [vmem:[%s11308_s2 + $0x40] sm:$0xff]  ;;  %v7427_v17 = vunpack.c.l.bf16 %v5900_v45  ;;  %v7434_v50 = vpop.permute.xlu1 %1810 }
 0x2b2   :  { %955 = vmax.xlane.f32.xlu0 %v7408_v14  ;;  %11854 = vst [vmem:[#allocation150_spill] sm:$0xff] %v7417_v35  ;;  %vm278_vm3 = vcmp.gt.f32.partialorder %v7422_v58, 0.0  ;;  %v724_v23 = vmul.f32 %v7412_v10, %v7051_v11  ;;  %v820_v42 = vmul.f32 %v7429_v19, %v6999_v60  ;;  %v916_v60 = vmul.f32 %v7446_v15, %v7073_v33  ;;  %v7491_v33 = vld [vmem:[%s11308_s2 + $0x10] sm:$0xff] }
 0x2b3   :  { %v835_v39 = vadd.f32 %v819_v24, %v739_v13  ;;  %v732_v32 = vadd.f32 %v716_v43, %v614_v21  ;;  %11855 = vst [vmem:[#allocation151_spill] sm:$0xff] %v7422_v58  ;;  %v523_v21 = vmul.f32 %v7417_v35, %v482_v6  ;;  %v7439_v24 = vld [vmem:[%s11308_s2 + $0x8] sm:$0xff]  ;;  %v717_v11 = vmul.f32 %v7427_v17, %v6916_v55 }
 0x2b4   :  { %11856 = vst [vmem:[#allocation152_spill] sm:$0xff] %v7427_v17  ;;  %vm271_vm4 = vcmp.gt.f32.partialorder %v7439_v24, 0.0  ;;  %v5896_v13 = vld [vmem:[#allocation2 + $0x28] sm:$0xff]   ;;  %v7471_v55 = vunpack.c.h.bf16 %v5892_v20  ;;  %vm272_vm5 = vcmp.gt.f32.partialorder %v7491_v33, 0.0 }
 0x2b5   :  { %11857 = vst [vmem:[#allocation153_spill] sm:$0xff] %v7429_v19  ;;  %v931_v8 = vadd.f32 %v915_v3, %v835_v39  ;;  %v828_v43 = vadd.f32 %v812_v16, %v732_v32  ;;  %v516_v16 = vmul.f32 %v7431_v62, %v7358_v1  ;;  %v7463_v25 = vunpack.c.l.bf16 %v5896_v13  ;;  %v5912_v1 = vld [vmem:[#allocation2 + $0xa8] sm:$0xff]  }
 0x2b6   :  { %11858 = vst [vmem:[#allocation154_spill] sm:$0xff] %v7431_v62  ;;  %v633_v6 = vpop.f32.mrf.mxu3 }
 0x2b7   :  { %11859 = vst [vmem:[#allocation155_spill] sm:$0xff] %v7434_v50  ;;  %v634_v3 = vadd.f32 %v633_v6, %v523_v21  ;;  %v7454_v39 = vsel %vm278_vm3, %v931_v8, -1e+30  ;;  %v924_v32 = vadd.f32 %v908_v51, %v828_v43  ;;  %v813_v8 = vmul.f32 %v7442_v46, %v6888_v38 }
 0x2b8   :  { %11860 = vst [vmem:[#allocation156_spill] sm:$0xff] %v7439_v24  ;;  %971 = vmax.xlane.f32.xlu1 %v7454_v39  ;;  %v616_v5 = vpop.f32.mrf.mxu1  ;;  %v7476_v43 = vunpack.c.l.bf16 %v5904_v12  ;;  %v909_v38 = vmul.f32 %v7456_v9, %v6924_v2  ;;  %v524_v20 = vmul.f32 %v7463_v25, %v7065_v7  ;;  %v517_v2 = vmul.f32 %v7471_v55, %v6901_v48  ;;  %v11876_v24 = vld [vmem:[#allocation53_spill] sm:$0xff]  ;;  %v11878_v48 = vld [vmem:[#allocation79_spill] sm:$0xff] }
 0x2b9   :  { %11865 = vst [vmem:[#allocation161_spill] sm:$0xff] %v7463_v25  ;;  %v740_v21 = vadd.f32 %v724_v23, %v634_v3  ;;  %v617_v6 = vadd.f32 %v616_v5, %v516_v16  ;;  %v7467_v51 = vsel %vm271_vm4, %v924_v32, -1e+30  ;;  %v7480_v23 = vunpack.c.h.bf16 %v5900_v45  ;;  %v5920_v45 = vld [vmem:[#allocation2 + $0xe8] sm:$0xff]  }
 0x2ba   :  { %11866 = vst [vmem:[#allocation162_spill] sm:$0xff] %v7471_v55  ;;  %957 = vmax.xlane.f32.xlu2 %v7467_v51  ;;  %v7482_v16 = vunpack.c.l.bf16 %v5912_v1  ;;  %v7502_v7 = vunpack.c.h.bf16 %v5908_v28  ;;  %v7516_v50 = vunpack.c.h.bf16 %v5896_v13  ;;  %v11883_v13 = vld [vmem:[#allocation55_spill] sm:$0xff] }
 0x2bb   :  { %11867 = vst [vmem:[#allocation163_spill] sm:$0xff] %v7476_v43  ;;  %v733_v58 = vadd.f32 %v717_v11, %v617_v6  ;;  %5721 = vmatmul.msk.bf16.gmra.mxu3 %vm11485_vm1, %v7260_v52  ;;  %v836_v5 = vadd.f32 %v820_v42, %v740_v21  ;;  %v7497_v52 = vld [vmem:[%s11308_s2 + $0x48] sm:$0xff]  ;;  %v5893_v11 = vld [vmem:[#allocation2 + $0x10] sm:$0xff]   ;;  %v7504_v42 = vunpack.c.l.bf16 %v5920_v45  ;;  %v11874_v21 = vld [vmem:[#allocation82_spill] sm:$0xff]  ;;  %v718_v40 = vmul.f32 %v7480_v23, %v11876_v24 }
 0x2bc   :  { %11868 = vst [vmem:[#allocation164_spill] sm:$0xff] %v7480_v23  ;;  %vm11616_vm6 = vcmp.gt.f32.partialorder %v7497_v52, 0.0  ;;  %v725_v6 = vmul.f32 %v7476_v43, %v11874_v21  ;;  %v821_v28 = vmul.f32 %v7482_v16, %v11878_v48  ;;  %v7528_v0 = vunpack.c.l.bf16 %v5893_v11  ;;  %v11895_v23 = vld [vmem:[#allocation63_spill] sm:$0xff]  ;;  %v5902_v43 = vld [vmem:[#allocation2 + $0x58] sm:$0xff]  }
 0x2bd   :  { %11869 = vst [vmem:[#allocation165_spill] sm:$0xff] %v7482_v16  ;;  %v829_v3 = vadd.f32 %v813_v8, %v733_v58  ;;  %v932_v32 = vadd.f32 %v916_v60, %v836_v5  ;;  %v7508_v8 = vpop.permute.xlu1 %1822  ;;  %v7530_v24 = vunpack.c.h.bf16 %v5904_v12  ;;  %v11886_v12 = vld [vmem:[#allocation56_spill] sm:$0xff]  ;;  %v5894_v16 = vld [vmem:[#allocation2 + $0x18] sm:$0xff]  }
 0x2be   :  { %11870 = vst [vmem:[#allocation166_spill] sm:$0xff] %v7491_v33  ;;  %v636_v58 = vpop.f32.mrf.mxu3  ;;  %v7550_v33 = vunpack.c.h.bf16 %v5912_v1  ;;  %v5917_v1 = vld [vmem:[#allocation2 + $0xd0] sm:$0xff]  }
 0x2bf   :  { %11871 = vst [vmem:[#allocation167_spill] sm:$0xff] %v7497_v52  ;;  %v637_v60 = vadd.f32 %v636_v58, %v524_v20  ;;  %v925_v5 = vadd.f32 %v909_v38, %v829_v3  ;;  %v7526_v38 = vsel %vm11616_vm6, %v932_v32, -1e+30  ;;  %v814_v20 = vmul.f32 %v7502_v7, %v11883_v13  ;;  %v5909_v3 = vld [vmem:[#allocation2 + $0x90] sm:$0xff]  }
 0x2c0   :  { %11872 = vst [vmem:[#allocation168_spill] sm:$0xff] %v7502_v7  ;;  %v618_v57 = vpop.f32.mrf.mxu1  ;;  %v7541_v32 = vld [vmem:[%s11308_s2 + $0x50] sm:$0xff] }
 0x2c1   :  { %11873 = vst [vmem:[#allocation169_spill] sm:$0xff] %v7504_v42  ;;  %v741_v34 = vadd.f32 %v725_v6, %v637_v60  ;;  %v619_v41 = vadd.f32 %v618_v57, %v517_v2  ;;  %v7522_v21 = vsel %vm272_vm5, %v925_v5, -1e+30  ;;  %v5901_v57 = vld [vmem:[#allocation2 + $0x50] sm:$0xff]   ;;  %vm11566_vm7 = vcmp.gt.f32.partialorder %v7541_v32, 0.0 }
 0x2c2   :  { %11875 = vst [vmem:[#allocation82_spill] sm:$0xff] %v7508_v8  ;;  %959 = vmax.xlane.f32.xlu1 %v7522_v21  ;;  %973 = vmax.xlane.f32.xlu2 %v7526_v38  ;;  %v11884_v2 = vld [vmem:[#allocation72_spill] sm:$0xff]  ;;  %v910_v5 = vmul.f32 %v7512_v29, %v11886_v12  ;;  %v7546_v48 = vunpack.c.l.bf16 %v5901_v57  ;;  %v11888_v13 = vld [vmem:[#allocation85_spill] sm:$0xff]  ;;  %v11893_v8 = vld [vmem:[#allocation74_spill] sm:$0xff] }
 0x2c3   :  { %11877 = vst [vmem:[#allocation53_spill] sm:$0xff] %v7512_v29  ;;  %v917_v58 = vmul.f32 %v7504_v42, %v11884_v2  ;;  %v837_v6 = vadd.f32 %v821_v28, %v741_v34  ;;  %v734_v60 = vadd.f32 %v718_v40, %v619_v41  ;;  %v525_v52 = vmul.f32 %v7516_v50, %v11888_v13  ;;  %v7555_v41 = vld [vmem:[%s11308_s2 + $0x18] sm:$0xff]  ;;  %v11892_v28 = vld [vmem:[#allocation60_spill] sm:$0xff] }
 0x2c4   :  { %11879 = vst [vmem:[#allocation79_spill] sm:$0xff] %v7516_v50  ;;  %vm273_vm8 = vcmp.gt.f32.partialorder %v7555_v41, 0.0  ;;  %v7558_v40 = vunpack.c.l.bf16 %v5909_v3  ;;  %v518_v12 = vmul.f32 %v7528_v0, %v11892_v28  ;;  %v726_v44 = vmul.f32 %v7530_v24, %v11893_v8  ;;  %v11897_v8 = vld [vmem:[#allocation87_spill] sm:$0xff] }
 0x2c5   :  { %11881 = vst [vmem:[#allocation171_spill] sm:$0xff] %v7528_v0  ;;  %v933_v2 = vadd.f32 %v917_v58, %v837_v6  ;;  %v830_v34 = vadd.f32 %v814_v20, %v734_v60  ;;  %v7564_v50 = vunpack.c.h.bf16 %v5920_v45  ;;  %v5905_v20 = vld [vmem:[#allocation2 + $0x70] sm:$0xff]   ;;  %v719_v7 = vmul.f32 %v7546_v48, %v11895_v23  ;;  %v7577_v45 = vpop.permute.xlu1 %1830 }
 0x2c6   :  { %11882 = vst [vmem:[#allocation172_spill] sm:$0xff] %v7530_v24  ;;  %v638_v13 = vpop.f32.mrf.mxu3  ;;  %v7572_v29 = vunpack.c.l.bf16 %v5917_v1  ;;  %v822_v0 = vmul.f32 %v7550_v33, %v11897_v8  ;;  %v7585_v23 = vunpack.c.h.bf16 %v5893_v11  ;;  %v5913_v8 = vld [vmem:[#allocation2 + $0xb0] sm:$0xff]  }
 0x2c7   :  { %11885 = vst [vmem:[#allocation55_spill] sm:$0xff] %v7541_v32  ;;  %v639_v58 = vadd.f32 %v638_v13, %v525_v52  ;;  %v7568_v6 = vsel %vm11566_vm7, %v933_v2, -1e+30  ;;  %v926_v60 = vadd.f32 %v910_v5, %v830_v34  ;;  %v11899_v5 = vld [vmem:[#allocation58_spill] sm:$0xff]  ;;  %v7587_v13 = vunpack.c.l.bf16 %v5905_v20  ;;  %v5897_v32 = vld [vmem:[#allocation2 + $0x30] sm:$0xff]  }
 0x2c8   :  { %11887 = vst [vmem:[#allocation72_spill] sm:$0xff] %v7546_v48  ;;  %v621_v28 = vpop.f32.mrf.mxu1  ;;  %975 = vmax.xlane.f32.xlu0 %v7568_v6  ;;  %v815_v34 = vmul.f32 %v7558_v40, %v11899_v5  ;;  %v497_v48 = vpop.permute.xlu0 %496  ;;  %v7604_v5 = vunpack.c.h.bf16 %v5901_v57  ;;  %v7619_v57 = vunpack.c.h.bf16 %v5909_v3 }
 0x2c9   :  { %11889 = vst [vmem:[#allocation56_spill] sm:$0xff] %v7550_v33  ;;  %v742_v24 = vadd.f32 %v726_v44, %v639_v58  ;;  %v622_v52 = vadd.f32 %v621_v28, %v518_v12  ;;  %v7581_v2 = vsel %vm273_vm8, %v926_v60, -1e+30  ;;  %v5921_v33 = vld [vmem:[#allocation2 + $0xf0] sm:$0xff]   ;;  %v7592_v12 = vunpack.c.l.bf16 %v5897_v32  ;;  %v7594_v58 = vpop.permute.xlu2 %1826  ;;  %v7601_v28 = vld [vmem:[%s11308_s2 + $0x58] sm:$0xff] }
 0x2ca   :  { %11890 = vst [vmem:[#allocation85_spill] sm:$0xff] %v7555_v41  ;;  %961 = vmax.xlane.f32.xlu2 %v7581_v2  ;;  %vm11690_vm9 = vcmp.gt.f32.partialorder %v7601_v28, 0.0  ;;  %v7606_v41 = vunpack.c.l.bf16 %v5913_v8 }
 0x2cb   :  { %11891 = vst [vmem:[#allocation173_spill] sm:$0xff] %v7558_v40  ;;  %v735_v60 = vadd.f32 %v719_v7, %v622_v52  ;;  %5722 = vmatmul.msk.bf16.gmra.mxu3 %vm11485_vm1, %v7266_v22  ;;  %v838_v11 = vadd.f32 %v822_v0, %v742_v24  ;;  %v526_v7 = vmul.f32 %v7592_v12, %v497_v48  ;;  %v7614_v22 = vld [vmem:[%s11308_s2 + $0x20] sm:$0xff]  ;;  %v11910_v0 = vld [vmem:[#allocation61_spill] sm:$0xff] }
 0x2cc   :  { %11894 = vst [vmem:[#allocation60_spill] sm:$0xff] %v7564_v50  ;;  %vm274_vm10 = vcmp.gt.f32.partialorder %v7614_v22, 0.0  ;;  %v519_v24 = vmul.f32 %v7585_v23, %v11910_v0  ;;  %v11916_v0 = vld [vmem:[#allocation77_spill] sm:$0xff] }
 0x2cd   :  { %11896 = vst [vmem:[#allocation74_spill] sm:$0xff] %v7572_v29  ;;  %v831_v52 = vadd.f32 %v815_v34, %v735_v60  ;;  %v823_v3 = vmul.f32 %v7606_v41, %v11916_v0  ;;  %v11920_v0 = vld [vmem:[#allocation89_spill] sm:$0xff] }
 0x2ce   :  { %11898 = vst [vmem:[#allocation63_spill] sm:$0xff] %v7577_v45  ;;  %v11902_v45 = vld [vmem:[#allocation81_spill] sm:$0xff]  ;;  %v641_v55 = vpop.f32.mrf.mxu3 }
 0x2cf   :  { %11900 = vst [vmem:[#allocation87_spill] sm:$0xff] %v7585_v23  ;;  %v918_v44 = vmul.f32 %v7564_v50, %v11902_v45  ;;  %v11908_v45 = vld [vmem:[#allocation66_spill] sm:$0xff]  ;;  %v7621_v50 = vunpack.c.l.bf16 %v5921_v33  ;;  %v642_v34 = vadd.f32 %v641_v55, %v526_v7 }
 0x2d0   :  { %11901 = vst [vmem:[#allocation58_spill] sm:$0xff] %v7587_v13  ;;  %v911_v40 = vmul.f32 %v7572_v29, %v11908_v45  ;;  %v11913_v45 = vld [vmem:[#allocation84_spill] sm:$0xff]  ;;  %v7631_v29 = vunpack.c.h.bf16 %v5917_v1  ;;  %v623_v23 = vpop.f32.mrf.mxu1 }
 0x2d1   :  { %11903 = vst [vmem:[#allocation81_spill] sm:$0xff] %v7592_v12  ;;  %v727_v48 = vmul.f32 %v7587_v13, %v11913_v45  ;;  %v7636_v45 = vunpack.c.h.bf16 %v5897_v32  ;;  %v624_v7 = vadd.f32 %v623_v23, %v519_v24  ;;  %v7651_v32 = vpop.permute.xlu1 %1842  ;;  %v5906_v13 = vld [vmem:[#allocation2 + $0x78] sm:$0xff]  }
 0x2d2   :  { %11904 = vst [vmem:[#allocation174_spill] sm:$0xff] %v7594_v58  ;;  %v934_v58 = vadd.f32 %v918_v44, %v838_v11  ;;  %v927_v60 = vadd.f32 %v911_v40, %v831_v52  ;;  %v11914_v11 = vld [vmem:[#allocation57_spill] sm:$0xff]  ;;  %v7644_v52 = vunpack.c.l.bf16 %v5894_v16 }
 0x2d3   :  { %11905 = vst [vmem:[#allocation175_spill] sm:$0xff] %v7601_v28  ;;  %v720_v12 = vmul.f32 %v7604_v5, %v11914_v11  ;;  %v743_v55 = vadd.f32 %v727_v48, %v642_v34  ;;  %v5910_v11 = vld [vmem:[#allocation2 + $0x98] sm:$0xff]   ;;  %v919_v28 = vmul.f32 %v7621_v50, %v11920_v0  ;;  %v7656_v48 = vld [vmem:[%s11308_s2 + $0x60] sm:$0xff]  ;;  %v11924_v34 = vld [vmem:[#allocation64_spill] sm:$0xff]  ;;  %v7665_v0 = vunpack.c.h.bf16 %v5913_v8 }
 0x2d4   :  { %11906 = vst [vmem:[#allocation176_spill] sm:$0xff] %v7604_v5  ;;  %v7627_v44 = vsel %vm11690_vm9, %v934_v58, -1e+30  ;;  %v7640_v40 = vsel %vm274_vm10, %v927_v60, -1e+30  ;;  %v11918_v58 = vld [vmem:[#allocation68_spill] sm:$0xff]  ;;  %v7649_v5 = vunpack.c.h.bf16 %v5905_v20  ;;  %v912_v60 = vmul.f32 %v7631_v29, %v11924_v34 }
 0x2d5   :  { %11907 = vst [vmem:[#allocation177_spill] sm:$0xff] %v7606_v41  ;;  %977 = vmax.xlane.f32.xlu1 %v7627_v44  ;;  %v816_v1 = vmul.f32 %v7619_v57, %v11918_v58  ;;  %963 = vmax.xlane.f32.xlu0 %v7640_v40  ;;  %v839_v23 = vadd.f32 %v823_v3, %v743_v55  ;;  %vm11493_vm11 = vcmp.gt.f32.partialorder %v7656_v48, 0.0  ;;  %v7661_v58 = vunpack.c.l.bf16 %v5902_v43  ;;  %v11934_v41 = vld [vmem:[#allocation67_spill] sm:$0xff] }
 0x2d6   :  { %11909 = vst [vmem:[#allocation66_spill] sm:$0xff] %v7614_v22  ;;  %v736_v24 = vadd.f32 %v720_v12, %v624_v7  ;;  %v11926_v22 = vld [vmem:[#allocation86_spill] sm:$0xff]  ;;  %v7669_v12 = vpop.permute.xlu2 %1838  ;;  %v7674_v7 = vld [vmem:[%s11308_s2 + $0x28] sm:$0xff]  ;;  %v7677_v34 = vunpack.c.l.bf16 %v5910_v11  ;;  %v7681_v8 = vunpack.c.h.bf16 %v5921_v33 }
 0x2d7   :  { %11911 = vst [vmem:[#allocation61_spill] sm:$0xff] %v7619_v57  ;;  %v527_v20 = vmul.f32 %v7636_v45, %v11926_v22  ;;  %v935_v3 = vadd.f32 %v919_v28, %v839_v23  ;;  %vm275_vm12 = vcmp.gt.f32.partialorder %v7674_v7, 0.0  ;;  %v5918_v57 = vld [vmem:[#allocation2 + $0xd8] sm:$0xff]  }
 0x2d8   :  { %11912 = vst [vmem:[#allocation178_spill] sm:$0xff] %v7621_v50  ;;  %v832_v55 = vadd.f32 %v816_v1, %v736_v24  ;;  %v721_v50 = vmul.f32 %v7661_v58, %v11934_v41  ;;  %v7691_v42 = vunpack.c.l.bf16 %v5918_v57  ;;  %v626_v33 = vpop.f32.mrf.mxu1  ;;  %v7705_v41 = vunpack.c.l.bf16 %v5906_v13 }
 0x2d9   :  { %11915 = vst [vmem:[#allocation84_spill] sm:$0xff] %v7631_v29  ;;  %v11931_v29 = vld [vmem:[#allocation70_spill] sm:$0xff]  ;;  %v7687_v23 = vsel %vm11493_vm11, %v935_v3, -1e+30 }
 0x2da   :  { %11917 = vst [vmem:[#allocation57_spill] sm:$0xff] %v7636_v45  ;;  %v520_v22 = vmul.f32 %v7644_v52, %v11931_v29  ;;  %v643_v45 = vpop.f32.mrf.mxu3  ;;  %v928_v24 = vadd.f32 %v912_v60, %v832_v55  ;;  %979 = vmax.xlane.f32.xlu2 %v7687_v23  ;;  %v7703_v60 = vunpack.c.h.bf16 %v5894_v16  ;;  %v11940_v55 = vld [vmem:[#allocation62_spill] sm:$0xff]  ;;  %v7717_v16 = vld [vmem:[%s11308_s2 + $0x68] sm:$0xff] }
 0x2db   :  { %11919 = vst [vmem:[#allocation77_spill] sm:$0xff] %v7644_v52  ;;  %v644_v1 = vadd.f32 %v643_v45, %v527_v20  ;;  %v11937_v52 = vld [vmem:[#allocation88_spill] sm:$0xff]  ;;  %5723 = vmatmul.msk.bf16.gmra.mxu3 %vm11485_vm1, %v7177_v27  ;;  %vm11567_vm13 = vcmp.gt.f32.partialorder %v7717_v16, 0.0  ;;  %v7728_v27 = vpop.permute.xlu1 %1854 }
 0x2dc   :  { %11921 = vst [vmem:[#allocation68_spill] sm:$0xff] %v7649_v5  ;;  %v627_v20 = vadd.f32 %v626_v33, %v520_v22  ;;  %v7701_v3 = vsel %vm275_vm12, %v928_v24, -1e+30  ;;  %v11943_v22 = vld [vmem:[#allocation73_spill] sm:$0xff] }
 0x2dd   :  { %11922 = vst [vmem:[#allocation89_spill] sm:$0xff] %v7651_v32  ;;  %v7667_v32 = vld [vmem:[#allocation2 + $0x38] sm:$0xff]   ;;  %965 = vmax.xlane.f32.xlu1 %v7701_v3 }
 0x2de   :  { %11923 = vst [vmem:[#allocation179_spill] sm:$0xff] %v7656_v48  ;;  %v7694_v29 = vunpack.c.l.bf16 %v7667_v32  ;;  %v817_v48 = vmul.f32 %v7677_v34, %v11940_v55  ;;  %v737_v9 = vadd.f32 %v721_v50, %v627_v20  ;;  %v5914_v24 = vld [vmem:[#allocation2 + $0xb8] sm:$0xff]   ;;  %v7733_v55 = vld [vmem:[%s11308_s2 + $0x30] sm:$0xff] }
 0x2df   :  { %11925 = vst [vmem:[#allocation64_spill] sm:$0xff] %v7661_v58  ;;  %v11941_v58 = vld [vmem:[#allocation78_spill] sm:$0xff]  ;;  %v7726_v20 = vunpack.c.l.bf16 %v5914_v24  ;;  %vm276_vm14 = vcmp.gt.f32.partialorder %v7733_v55, 0.0 }
 0x2e0   :  { %11927 = vst [vmem:[#allocation86_spill] sm:$0xff] %v7665_v0  ;;  %v5922_v33 = vld [vmem:[#allocation2 + $0xf8] sm:$0xff]  }
 0x2e1   :  { %11928 = vst [vmem:[#allocation180_spill] sm:$0xff] %v7669_v12  ;;  %v11933_v12 = vld [vmem:[#allocation91_spill] sm:$0xff] }
 0x2e2   :  { %11929 = vst [vmem:[#allocation181_spill] sm:$0xff] %v7674_v7  ;;  %v728_v28 = vmul.f32 %v7649_v5, %v11933_v12  ;;  %v824_v12 = vmul.f32 %v7665_v0, %v11937_v52  ;;  %v920_v5 = vmul.f32 %v7681_v8, %v11941_v58  ;;  %v11945_v58 = vld [vmem:[#allocation94_spill] sm:$0xff]  ;;  %v7738_v7 = vunpack.c.h.bf16 %v5910_v11  ;;  %v11955_v0 = vld [vmem:[#allocation76_spill] sm:$0xff] }
 0x2e3   :  { %11930 = vst [vmem:[#allocation182_spill] sm:$0xff] %v7677_v34  ;;  %v528_v50 = vmul.f32 %v7694_v29, %v11945_v58  ;;  %v11951_v34 = vld [vmem:[#allocation80_spill] sm:$0xff] }
 0x2e4   :  { %11932 = vst [vmem:[#allocation70_spill] sm:$0xff] %v7681_v8  ;;  %v744_v45 = vadd.f32 %v728_v28, %v644_v1  ;;  %v913_v28 = vmul.f32 %v7691_v42, %v11943_v22  ;;  %v7722_v1 = vunpack.c.h.bf16 %v5902_v43  ;;  %v11949_v43 = vld [vmem:[#allocation69_spill] sm:$0xff]  ;;  %v729_v58 = vmul.f32 %v7705_v41, %v11951_v34 }
 0x2e5   :  { %11935 = vst [vmem:[#allocation91_spill] sm:$0xff] %v7691_v42  ;;  %v521_v22 = vmul.f32 %v7703_v60, %v11949_v43  ;;  %v7742_v42 = vunpack.c.l.bf16 %v5922_v33  ;;  %v628_v43 = vpop.f32.mrf.mxu1  ;;  %v11956_v34 = vld [vmem:[#allocation97_spill] sm:$0xff] }
 0x2e6   :  { %11936 = vst [vmem:[#allocation67_spill] sm:$0xff] %v7694_v29  ;;  %v840_v52 = vadd.f32 %v824_v12, %v744_v45  ;;  %v833_v12 = vadd.f32 %v817_v48, %v737_v9  ;;  %v646_v29 = vpop.f32.mrf.mxu3  ;;  %v7744_v9 = vpop.permute.xlu2 %1850  ;;  %v722_v11 = vmul.f32 %v7722_v1, %v11955_v0  ;;  %v11959_v0 = vld [vmem:[#allocation92_spill] sm:$0xff] }
 0x2e7   :  { %11938 = vst [vmem:[#allocation88_spill] sm:$0xff] %v7703_v60  ;;  %v825_v60 = vmul.f32 %v7726_v20, %v11956_v34  ;;  %v629_v8 = vadd.f32 %v628_v43, %v521_v22  ;;  %v7779_v43 = vunpack.c.h.bf16 %v5914_v24 }
 0x2e8   :  { %11939 = vst [vmem:[#allocation183_spill] sm:$0xff] %v7705_v41  ;;  %v936_v45 = vadd.f32 %v920_v5, %v840_v52  ;;  %v647_v5 = vadd.f32 %v646_v29, %v528_v50  ;;  %v929_v52 = vadd.f32 %v913_v28, %v833_v12  ;;  %v11957_v50 = vld [vmem:[#allocation71_spill] sm:$0xff]  ;;  %v512_v12 = vpop.permute.xlu0 %511 }
 0x2e9   :  { %11942 = vst [vmem:[#allocation62_spill] sm:$0xff] %v7717_v16  ;;  %v818_v28 = vmul.f32 %v7738_v7, %v11957_v50  ;;  %v7769_v16 = vunpack.c.h.bf16 %v7667_v32  ;;  %v738_v22 = vadd.f32 %v722_v11, %v629_v8  ;;  %v7785_v32 = vld [vmem:[%s11308_s2 + $0x38] sm:$0xff]  ;;  %v7788_v8 = vunpack.c.h.bf16 %v5922_v33 }
 0x2ea   :  { %11944 = vst [vmem:[#allocation78_spill] sm:$0xff] %v7722_v1  ;;  %v7748_v48 = vsel %vm11567_vm13, %v936_v45, -1e+30  ;;  %v745_v41 = vadd.f32 %v729_v58, %v647_v5  ;;  %v7759_v29 = vsel %vm276_vm14, %v929_v52, -1e+30  ;;  %v921_v45 = vmul.f32 %v7742_v42, %v11959_v0  ;;  %v7774_v5 = vld [vmem:[%s11308_s2 + $0x70] sm:$0xff] }
 0x2eb   :  { %11946 = vst [vmem:[#allocation73_spill] sm:$0xff] %v7726_v20  ;;  %981 = vmax.xlane.f32.xlu0 %v7748_v48  ;;  %967 = vmax.xlane.f32.xlu2 %v7759_v29  ;;  %vm11478_vm15 = vcmp.gt.f32.partialorder %v7774_v5, 0.0  ;;  %v529_v34 = vmul.f32 %v7769_v16, %v512_v12  ;;  %v834_v0 = vadd.f32 %v818_v28, %v738_v22  ;;  %vm277_vm0 = vcmp.gt.f32.partialorder %v7785_v32, 0.0 }
 0x2ec   :  { %11947 = vst [vmem:[#allocation94_spill] sm:$0xff] %v7728_v27  ;;  %v7750_v27 = vunpack.c.h.bf16 %v5918_v57  ;;  %v7763_v57 = vunpack.c.h.bf16 %v5906_v13  ;;  %v841_v58 = vadd.f32 %v825_v60, %v745_v41  ;;  %v11962_v13 = vld [vmem:[#allocation65_spill] sm:$0xff]  ;;  %v11966_v41 = vld [vmem:[#allocation95_spill] sm:$0xff]  ;;  %5724 = vmatmul.msk.bf16.gmra.mxu3 %vm11485_vm1, %v7274_v4 }
 0x2ed   :  { %11948 = vst [vmem:[#allocation184_spill] sm:$0xff] %v7733_v55 }
 0x2ee   :  { %11950 = vst [vmem:[#allocation69_spill] sm:$0xff] %v7738_v7  ;;  %v914_v52 = vmul.f32 %v7750_v27, %v11962_v13  ;;  %v937_v50 = vadd.f32 %v921_v45, %v841_v58  ;;  %v648_v60 = vpop.f32.mrf.mxu3  ;;  %v730_v11 = vmul.f32 %v7763_v57, %v11966_v41  ;;  %v7792_v13 = vpop.permute.xlu1 %1866  ;;  %v11968_v45 = vld [vmem:[#allocation83_spill] sm:$0xff] }
 0x2ef   :  { %11952 = vst [vmem:[#allocation80_spill] sm:$0xff] %v7742_v42  ;;  %v649_v24 = vadd.f32 %v648_v60, %v529_v34  ;;  %v826_v58 = vmul.f32 %v7779_v43, %v11968_v45  ;;  %v7801_v22 = vpop.permute.xlu2 %1862  ;;  %v11970_v34 = vld [vmem:[#allocation99_spill] sm:$0xff] }
 0x2f0   :  { %11953 = vst [vmem:[#allocation185_spill] sm:$0xff] %v7744_v9  ;;  %v7796_v12 = vsel %vm11478_vm15, %v937_v50, -1e+30  ;;  %v930_v28 = vadd.f32 %v914_v52, %v834_v0  ;;  %v922_v60 = vmul.f32 %v7788_v8, %v11970_v34  ;;  %v7815_v50 = vld [vmem:[%s11308_s2 + $0x78] sm:$0xff]  ;;  %s6505_s2 = smov 84  }
 0x2f1   :  { %11954 = vst [vmem:[#allocation186_spill] sm:$0xff] %v7750_v27  ;;  %983 = vmax.xlane.f32.xlu1 %v7796_v12  ;;  %v746_v33 = vadd.f32 %v730_v11, %v649_v24  ;;  %vm11486_vm15 = vcmp.gt.f32.partialorder %v7815_v50, 0.0 }
 0x2f2   :  { %11958 = vst [vmem:[#allocation76_spill] sm:$0xff] %v7763_v57  ;;  %v7805_v55 = vsel %vm277_vm0, %v930_v28, -1e+30 }
 0x2f3   :  { %11960 = vst [vmem:[#allocation97_spill] sm:$0xff] %v7769_v16  ;;  %969 = vmax.xlane.f32.xlu0 %v7805_v55  ;;  %v842_v52 = vadd.f32 %v826_v58, %v746_v33 }
 0x2f4   :  { %11961 = vst [vmem:[#allocation71_spill] sm:$0xff] %v7774_v5 }
 0x2f5   :  { %11963 = vst [vmem:[#allocation92_spill] sm:$0xff] %v7779_v43  ;;  %v938_v0 = vadd.f32 %v922_v60, %v842_v52 }
 0x2f6   :  { %11964 = vst [vmem:[#allocation65_spill] sm:$0xff] %v7785_v32  ;;  %v7823_v11 = vpop.permute.xlu1 %1910 }
 0x2f7   :  { %11965 = vst [vmem:[#allocation187_spill] sm:$0xff] %v7788_v8  ;;  %v7820_v41 = vsel %vm11486_vm15, %v938_v0, -1e+30  ;;  %v7825_v24 = vpop.permute.xlu2 %1906 }
 0x2f8   :  { %11967 = vst [vmem:[#allocation95_spill] sm:$0xff] %v7792_v13  ;;  %985 = vmax.xlane.f32.xlu2 %v7820_v41 }
 0x2f9   :  { %11969 = vst [vmem:[#allocation83_spill] sm:$0xff] %v7801_v22 }
 0x2fa   :  { %11971 = vst [vmem:[#allocation99_spill] sm:$0xff] %v7815_v50 }
 0x2fc   :  { %5725 = vmatmul.msk.bf16.gmra.mxu3 %vm11485_vm1, %v7276_v53 }
 0x2fe   :  { %v7827_v4 = vpop.permute.xlu1 %1922 }
 0x2ff   :  { %v7831_v28 = vpop.permute.xlu2 %1918 }
 0x306   :  { %v7833_v45 = vpop.permute.xlu1 %1930 }
 0x307   :  { %11972 = vst [vmem:[#allocation188_spill] sm:$0xff] %v7833_v45  ;;  %v7835_v58 = vpop.permute.xlu2 %1926 }
 0x308   :  { %11973 = vst [vmem:[#allocation189_spill] sm:$0xff] %v7835_v58 }
 0x30c   :  { %5726 = vmatmul.msk.bf16.gmra.mxu3 %vm11485_vm1, %v7187_v26 }
 0x30e   :  { %v7839_v33 = vpop.permute.xlu1 %1942 }
 0x30f   :  { %11974 = vst [vmem:[#allocation190_spill] sm:$0xff] %v7839_v33  ;;  %v7841_v34 = vpop.permute.xlu2 %1938 }
 0x310   :  { %11975 = vst [vmem:[#allocation191_spill] sm:$0xff] %v7841_v34 }
 0x316   :  { %v7843_v60 = vpop.permute.xlu1 %1954 }
 0x317   :  { %11976 = vst [vmem:[#allocation192_spill] sm:$0xff] %v7843_v60  ;;  %v7845_v52 = vpop.permute.xlu2 %1950 }
 0x318   :  { %11977 = vst [vmem:[#allocation193_spill] sm:$0xff] %v7845_v52 }
 0x31e   :  { %v7847_v0 = vpop.permute.xlu1 %1966 }
 0x31f   :  { %11978 = vst [vmem:[#allocation194_spill] sm:$0xff] %v7847_v0  ;;  %v7849_v53 = vpop.permute.xlu2 %1962 }
 0x320   :  { %11979 = vst [vmem:[#allocation195_spill] sm:$0xff] %v7849_v53 }
 0x325   :  { %v956_v50 = vpop.xlane.xlu0 %955 }
 0x326   :  { %v987_v5 = vsub.f32 %v7408_v14, %v956_v50 }
 0x328   :  { %v1003_v13 = vmul.f32 1.442695, %v987_v5 }
 0x32a   :  { %6062 = vpow2.f32 %v1003_v13 }
 0x32b   :  { %v972_v22 = vpop.xlane.xlu1 %971 }
 0x32c   :  { %v995_v26 = vsub.f32 %v7454_v39, %v972_v22 }
 0x32d   :  { %v958_v32 = vpop.xlane.xlu2 %957 }
 0x32e   :  { %v1019_v33 = vmul.f32 1.442695, %v995_v26  ;;  %v988_v34 = vsub.f32 %v7467_v51, %v958_v32 }
 0x330   :  { %v7854_v9 = vpop.eup %6062  ;;  %6064 = vpow2.f32 %v1019_v33  ;;  %v1005_v60 = vmul.f32 1.442695, %v988_v34 }
 0x331   :  { %1035 = vadd.xlane.f32.xlu0 %v7854_v9 }
 0x332   :  { %6066 = vpow2.f32 %v1005_v60 }
 0x335   :  { %v960_v0 = vpop.xlane.xlu1 %959  ;;  %v974_v53 = vpop.xlane.xlu2 %973 }
 0x336   :  { %v7857_v52 = vpop.eup %6064  ;;  %v989_v14 = vsub.f32 %v7522_v21, %v960_v0  ;;  %v996_v5 = vsub.f32 %v7526_v38, %v974_v53 }
 0x337   :  { %1051 = vadd.xlane.f32.xlu2 %v7857_v52 }
 0x338   :  { %v7862_v39 = vpop.eup %6066  ;;  %v1007_v51 = vmul.f32 1.442695, %v989_v14  ;;  %v1021_v32 = vmul.f32 1.442695, %v996_v5 }
 0x339   :  { %1037 = vadd.xlane.f32.xlu1 %v7862_v39 }
 0x33a   :  { %6068 = vpow2.f32 %v1007_v51 }
 0x33b   :  { %6070 = vpow2.f32 %v1021_v32  ;;  %v976_v13 = vpop.xlane.xlu0 %975 }
 0x33c   :  { %v997_v22 = vsub.f32 %v7568_v6, %v976_v13 }
 0x33d   :  { %v962_v50 = vpop.xlane.xlu2 %961 }
 0x33e   :  { %v1023_v33 = vmul.f32 1.442695, %v997_v22  ;;  %v990_v34 = vsub.f32 %v7581_v2, %v962_v50 }
 0x340   :  { %v7867_v21 = vpop.eup %6068  ;;  %6072 = vpow2.f32 %v1023_v33  ;;  %v1009_v38 = vmul.f32 1.442695, %v990_v34 }
 0x341   :  { %v7869_v60 = vpop.eup %6070  ;;  %1039 = vadd.xlane.f32.xlu2 %v7867_v21 }
 0x342   :  { %6074 = vpow2.f32 %v1009_v38  ;;  %1053 = vadd.xlane.f32.xlu0 %v7869_v60 }
 0x346   :  { %v7874_v6 = vpop.eup %6072 }
 0x347   :  { %1055 = vadd.xlane.f32.xlu1 %v7874_v6 }
 0x348   :  { %v978_v0 = vpop.xlane.xlu1 %977  ;;  %v964_v26 = vpop.xlane.xlu0 %963 }
 0x349   :  { %v998_v53 = vsub.f32 %v7627_v44, %v978_v0  ;;  %v991_v2 = vsub.f32 %v7640_v40, %v964_v26  ;;  %v7878_v5 = vpop.eup %6074 }
 0x34a   :  { %1041 = vadd.xlane.f32.xlu0 %v7878_v5 }
 0x34b   :  { %v1025_v14 = vmul.f32 1.442695, %v998_v53  ;;  %v1011_v51 = vmul.f32 1.442695, %v991_v2 }
 0x34d   :  { %6076 = vpow2.f32 %v1025_v14  ;;  %v980_v32 = vpop.xlane.xlu2 %979 }
 0x34e   :  { %6078 = vpow2.f32 %v1011_v51  ;;  %v999_v13 = vsub.f32 %v7687_v23, %v980_v32 }
 0x350   :  { %v966_v22 = vpop.xlane.xlu1 %965  ;;  %v1027_v50 = vmul.f32 1.442695, %v999_v13 }
 0x351   :  { %v992_v33 = vsub.f32 %v7701_v3, %v966_v22 }
 0x352   :  { %6080 = vpow2.f32 %v1027_v50 }
 0x353   :  { %v7882_v44 = vpop.eup %6076  ;;  %v1013_v34 = vmul.f32 1.442695, %v992_v33 }
 0x354   :  { %1057 = vadd.xlane.f32.xlu2 %v7882_v44  ;;  %v7886_v40 = vpop.eup %6078 }
 0x355   :  { %1043 = vadd.xlane.f32.xlu1 %v7886_v40  ;;  %6082 = vpow2.f32 %v1013_v34 }
 0x358   :  { %v7890_v23 = vpop.eup %6080 }
 0x359   :  { %1059 = vadd.xlane.f32.xlu0 %v7890_v23 }
 0x35b   :  { %v7894_v3 = vpop.eup %6082 }
 0x35c   :  { %1045 = vadd.xlane.f32.xlu2 %v7894_v3 }
 0x35e   :  { %v982_v38 = vpop.xlane.xlu0 %981  ;;  %v968_v53 = vpop.xlane.xlu2 %967 }
 0x35f   :  { %v1000_v0 = vsub.f32 %v7748_v48, %v982_v38  ;;  %v993_v14 = vsub.f32 %v7759_v29, %v968_v53 }
 0x361   :  { %v1029_v26 = vmul.f32 1.442695, %v1000_v0  ;;  %v1015_v2 = vmul.f32 1.442695, %v993_v14 }
 0x363   :  { %6084 = vpow2.f32 %v1029_v26 }
 0x364   :  { %6086 = vpow2.f32 %v1015_v2  ;;  %v984_v51 = vpop.xlane.xlu1 %983 }
 0x365   :  { %v1001_v32 = vsub.f32 %v7796_v12, %v984_v51  ;;  %v11980_v51 = vld [vmem:[#allocation31_spill] sm:$0xff] }
 0x366   :  { %v970_v13 = vpop.xlane.xlu0 %969  ;;  %vm11487_vm1 = vcmp.gt.f32.partialorder %v11980_v51, 0.0 }
 0x367   :  { %v1031_v22 = vmul.f32 1.442695, %v1001_v32  ;;  %v994_v50 = vsub.f32 %v7805_v55, %v970_v13 }
 0x369   :  { %v7898_v48 = vpop.eup %6084  ;;  %6088 = vpow2.f32 %v1031_v22  ;;  %v1017_v33 = vmul.f32 1.442695, %v994_v50 }
 0x36a   :  { %1061 = vadd.xlane.f32.xlu1 %v7898_v48  ;;  %v7902_v29 = vpop.eup %6086 }
 0x36b   :  { %1047 = vadd.xlane.f32.xlu0 %v7902_v29  ;;  %6090 = vpow2.f32 %v1017_v33  ;;  %v986_v34 = vpop.xlane.xlu2 %985 }
 0x36c   :  { %v1002_v38 = vsub.f32 %v7820_v41, %v986_v34 }
 0x36e   :  { %v1033_v12 = vmul.f32 1.442695, %v1002_v38  ;;  %v11981_v38 = vld [vmem:[#allocation28_spill] sm:$0xff] }
 0x36f   :  { %v7906_v0 = vpop.eup %6088  ;;  %vm11490_vm15 = vcmp.gt.f32.partialorder %v11981_v38, 0.0  ;;  %v11983_v38 = vld [vmem:[#allocation30_spill] sm:$0xff] }
 0x370   :  { %1063 = vadd.xlane.f32.xlu2 %v7906_v0  ;;  %6092 = vpow2.f32 %v1033_v12 }
 0x371   :  { %v7909_v53 = vpop.eup %6090 }
 0x372   :  { %1049 = vadd.xlane.f32.xlu1 %v7909_v53 }
 0x376   :  { %v7912_v55 = vpop.eup %6092 }
 0x377   :  { %1065 = vadd.xlane.f32.xlu0 %v7912_v55 }
 0x3a4   :  { %v1036_v26 = vpop.xlane.xlu0 %1035 }
 0x3a5   :  { %6094 = vrcp.f32 %v1036_v26 }
 0x3aa   :  { %v1052_v14 = vpop.xlane.xlu2 %1051 }
 0x3ab   :  { %v6095_v2 = vpop.eup %6094  ;;  %6096 = vrcp.f32 %v1052_v14  ;;  %v11982_v14 = vld [vmem:[#allocation35_spill] sm:$0xff] }
 0x3ac   :  { %v1083_v41 = vsel %vm11487_vm1, %v6095_v2, 0.0  ;;  %v1038_v32 = vpop.xlane.xlu1 %1037  ;;  %vm11491_vm1 = vcmp.gt.f32.partialorder %v11982_v14, 0.0 }
 0x3ad   :  { %v1099_v13 = vmul.f32 %v7854_v9, %v1083_v41  ;;  %6098 = vrcp.f32 %v1038_v32 }
 0x3af   :  { %v1423_v22 = vmul.f32 %v7360_v56, %v1099_v13  ;;  %v1123_v50 = vmul.f32 %v7348_v30, %v1099_v13  ;;  %v1342_v33 = vmul.f32 %v7356_v49, %v1099_v13 }
 0x3b1   :  { %v6097_v34 = vpop.eup %6096  ;;  %1439 = vadd.xlane.f32.xlu2 %v1423_v22  ;;  %1139 = vadd.xlane.f32.xlu1 %v1123_v50  ;;  %v1261_v22 = vmul.f32 %v7352_v63, %v1099_v13 }
 0x3b2   :  { %v1091_v12 = vsel %vm11490_vm15, %v6097_v34, 0.0  ;;  %1358 = vadd.xlane.f32.xlu0 %v1342_v33  ;;  %vm11568_vm15 = vcmp.gt.f32.partialorder %v11983_v38, 0.0 }
 0x3b3   :  { %v6099_v26 = vpop.eup %6098  ;;  %v7927_v9 = vmul.f32 %v7857_v52, %v1091_v12 }
 0x3b4   :  { %v1084_v2 = vsel %vm11491_vm1, %v6099_v26, 0.0  ;;  %v1040_v51 = vpop.xlane.xlu2 %1039 }
 0x3b5   :  { %v1100_v41 = vmul.f32 %v7862_v39, %v1084_v2  ;;  %v1054_v32 = vpop.xlane.xlu0 %1053  ;;  %v1269_v34 = vmul.f32 %v7370_v31, %v7927_v9  ;;  %v1131_v33 = vmul.f32 %v7364_v59, %v7927_v9  ;;  %6100 = vrcp.f32 %v1040_v51 }
 0x3b6   :  { %v1350_v39 = vmul.f32 %v7382_v47, %v7927_v9  ;;  %v1431_v2 = vmul.f32 %v7398_v36, %v7927_v9  ;;  %v11989_v47 = vld [vmem:[#allocation160_spill] sm:$0xff] }
 0x3b7   :  { %v1115_v50 = vpack.c.bf16 %v1100_v41, %v1099_v13  ;;  %v1124_v13 = vmul.f32 %v7366_v18, %v1100_v41  ;;  %v1343_v38 = vmul.f32 %v7394_v61, %v1100_v41  ;;  %v1262_v36 = vmul.f32 %v7376_v54, %v1100_v41 }
 0x3b9   :  { %1277 = vadd.xlane.f32.xlu1 %v1261_v22  ;;  %1220 = vmatmul.bf16.vlgmr.msra.gmra.mxu2 %v1115_v50  ;;  %v11984_v50 = vld [vmem:[#allocation34_spill] sm:$0xff] }
 0x3ba   :  { %1293 = vadd.xlane.f32.xlu2 %v1269_v34  ;;  %1155 = vadd.xlane.f32.xlu0 %v1131_v33  ;;  %v1056_v12 = vpop.xlane.xlu1 %1055  ;;  %vm11499_vm1 = vcmp.gt.f32.partialorder %v11984_v50, 0.0 }
 0x3bb   :  { %v6101_v26 = vpop.eup %6100 }
 0x3bc   :  { %v1085_v51 = vsel %vm11568_vm15, %v6101_v26, 0.0 }
 0x3bd   :  { %v1042_v52 = vpop.xlane.xlu0 %1041 }
 0x3be   :  { %6102 = vrcp.f32 %v1042_v52  ;;  %v1101_v52 = vmul.f32 %v7867_v21, %v1085_v51 }
 0x3bf   :  { %6104 = vrcp.f32 %v1054_v32 }
 0x3c1   :  { %1374 = vadd.xlane.f32.xlu1 %v1350_v39 }
 0x3c2   :  { %1141 = vadd.xlane.f32.xlu2 %v1124_v13  ;;  %1455 = vadd.xlane.f32.xlu0 %v1431_v2  ;;  %v11985_v13 = vld [vmem:[#allocation42_spill] sm:$0xff]  ;;  %v1424_v2 = vmul.f32 %v7402_v37, %v1100_v41 }
 0x3c3   :  { %vm11498_vm11 = vcmp.gt.f32.partialorder %v11985_v13, 0.0  ;;  %v7991_v13 = vpop.f32.mrf.mxu3 }
 0x3c4   :  { %v6103_v22 = vpop.eup %6102 }
 0x3c5   :  { %v6105_v34 = vpop.eup %6104  ;;  %v1086_v33 = vsel %vm11499_vm1, %v6103_v22, 0.0 }
 0x3c6   :  { %v7952_v39 = vmul.f32 %v7878_v5, %v1086_v33  ;;  %v1092_v26 = vsel %vm11498_vm11, %v6105_v34, 0.0 }
 0x3c7   :  { %v7946_v32 = vpop.xlane.xlu2 %1057  ;;  %v7962_v21 = vmul.f32 %v7869_v60, %v1092_v26 }
 0x3c8   :  { %v1044_v14 = vpop.xlane.xlu1 %1043  ;;  %v1116_v50 = vpack.c.bf16 %v7952_v39, %v1101_v52 }
 0x3c9   :  { %6106 = vrcp.f32 %v1044_v14  ;;  %1441 = vadd.xlane.f32.xlu1 %v1424_v2  ;;  %v1132_v34 = vmul.f32 %v7417_v35, %v7962_v21  ;;  %v1432_v41 = vmul.f32 %v7446_v15, %v7962_v21  ;;  %v1119_v58 = vpack.c.bf16 %v7962_v21, %v7927_v9  ;;  %v12007_v9 = vld [vmem:[#allocation173_spill] sm:$0xff] }
 0x3ca   :  { %1360 = vadd.xlane.f32.xlu2 %v1343_v38  ;;  %1279 = vadd.xlane.f32.xlu0 %v1262_v36  ;;  %v1351_v38 = vmul.f32 %v7429_v19, %v7962_v21  ;;  %v11986_v36 = vld [vmem:[#allocation23_spill] sm:$0xff]  ;;  %v1425_v19 = vmul.f32 %v11989_v47, %v1101_v52 }
 0x3cb   :  { %1225 = vmatmul.bf16.gmra.mxu2 %v1116_v50  ;;  %vm11500_vm11 = vcmp.gt.f32.partialorder %v11986_v36, 0.0  ;;  %v11987_v50 = vld [vmem:[#allocation26_spill] sm:$0xff]  ;;  %v1344_v36 = vmul.f32 %v7442_v46, %v1101_v52 }
 0x3cc   :  { %v7964_v51 = vpop.xlane.xlu0 %1059  ;;  %vm11512_vm1 = vcmp.gt.f32.partialorder %v11987_v50, 0.0 }
 0x3cf   :  { %v1046_v5 = vpop.xlane.xlu2 %1045  ;;  %v6107_v22 = vpop.eup %6106 }
 0x3d0   :  { %6108 = vrcp.f32 %v1046_v5  ;;  %v1087_v60 = vsel %vm11500_vm11, %v6107_v22, 0.0  ;;  %v1270_v22 = vmul.f32 %v7412_v10, %v7962_v21  ;;  %v12001_v10 = vld [vmem:[#allocation79_spill] sm:$0xff] }
 0x3d1   :  { %6110 = vrcp.f32 %v1056_v12  ;;  %1157 = vadd.xlane.f32.xlu1 %v1132_v34  ;;  %v7981_v2 = vmul.f32 %v7886_v40, %v1087_v60  ;;  %v1125_v40 = vmul.f32 %v7431_v62, %v1101_v52 }
 0x3d2   :  { %1457 = vadd.xlane.f32.xlu2 %v1432_v41  ;;  %1376 = vadd.xlane.f32.xlu0 %v1351_v38  ;;  %v11988_v38 = vld [vmem:[#allocation41_spill] sm:$0xff] }
 0x3d3   :  { %vm11511_vm11 = vcmp.gt.f32.partialorder %v11988_v38, 0.0  ;;  %v11990_v38 = vld [vmem:[#allocation39_spill] sm:$0xff]  ;;  %v1346_v21 = vmul.f32 %v12007_v9, %v7981_v2 }
 0x3d6   :  { %v6109_v14 = vpop.eup %6108 }
 0x3d7   :  { %v1088_v12 = vsel %vm11512_vm1, %v6109_v14, 0.0  ;;  %v6111_v5 = vpop.eup %6110  ;;  %v1263_v14 = vmul.f32 %v7427_v17, %v1101_v52 }
 0x3d8   :  { %v7984_v26 = vmul.f32 %v7894_v3, %v1088_v12  ;;  %v1093_v3 = vsel %vm11511_vm11, %v6111_v5, 0.0  ;;  %vm11532_vm11 = vcmp.gt.f32.partialorder %v11990_v38, 0.0  ;;  %v8005_v5 = vpop.f32.mrf.mxu3  ;;  %v11998_v38 = vld [vmem:[#allocation168_spill] sm:$0xff] }
 0x3d9   :  { %1295 = vadd.xlane.f32.xlu1 %v1270_v22  ;;  %v7998_v60 = vmul.f32 %v7874_v6, %v1093_v3  ;;  %v11991_v22 = vld [vmem:[#allocation38_spill] sm:$0xff]  ;;  %v11994_v3 = vld [vmem:[#allocation163_spill] sm:$0xff] }
 0x3da   :  { %v1117_v41 = vpack.c.bf16 %v7984_v26, %v7981_v2  ;;  %1281 = vadd.xlane.f32.xlu2 %v1263_v14  ;;  %1143 = vadd.xlane.f32.xlu0 %v1125_v40  ;;  %vm11513_vm1 = vcmp.gt.f32.partialorder %v11991_v22, 0.0 }
 0x3db   :  { %v1133_v15 = vmul.f32 %v7463_v25, %v7998_v60  ;;  %v12011_v25 = vld [vmem:[#allocation177_spill] sm:$0xff] }
 0x3dc   :  { %1230 = vmatmul.bf16.gmra.mxu2 %v1117_v41 }
 0x3dd   :  { %v7978_v33 = vpop.xlane.xlu1 %1061 }
 0x3de   :  { %v1048_v34 = vpop.xlane.xlu0 %1047 }
 0x3df   :  { %6112 = vrcp.f32 %v1048_v34 }
 0x3e1   :  { %1362 = vadd.xlane.f32.xlu1 %v1344_v36  ;;  %v11992_v36 = vld [vmem:[#allocation169_spill] sm:$0xff] }
 0x3e2   :  { %1159 = vadd.xlane.f32.xlu2 %v1133_v15  ;;  %1443 = vadd.xlane.f32.xlu0 %v1425_v19  ;;  %v1433_v40 = vmul.f32 %v11992_v36, %v7998_v60  ;;  %v11993_v15 = vld [vmem:[#allocation165_spill] sm:$0xff]  ;;  %v1345_v36 = vmul.f32 %v11998_v38, %v7952_v39 }
 0x3e3   :  { %v1352_v19 = vmul.f32 %v11993_v15, %v7998_v60 }
 0x3e5   :  { %v1050_v12 = vpop.xlane.xlu1 %1049  ;;  %v6113_v50 = vpop.eup %6112 }
 0x3e6   :  { %6114 = vrcp.f32 %v1050_v12  ;;  %v1089_v34 = vsel %vm11532_vm11, %v6113_v50, 0.0  ;;  %v1271_v12 = vmul.f32 %v11994_v3, %v7998_v60  ;;  %v12000_v3 = vld [vmem:[#allocation172_spill] sm:$0xff] }
 0x3e7   :  { %v8013_v14 = vmul.f32 %v7902_v29, %v1089_v34  ;;  %6116 = vrcp.f32 %v7946_v32  ;;  %v8027_v29 = vpop.f32.mrf.mxu3  ;;  %v11995_v34 = vld [vmem:[#allocation162_spill] sm:$0xff]  ;;  %v11997_v32 = vld [vmem:[#allocation53_spill] sm:$0xff] }
 0x3e8   :  { %v1426_v22 = vmul.f32 %v11997_v32, %v7952_v39  ;;  %6118 = vrcp.f32 %v7964_v51  ;;  %v12008_v51 = vld [vmem:[#allocation72_spill] sm:$0xff] }
 0x3e9   :  { %1459 = vadd.xlane.f32.xlu1 %v1433_v40  ;;  %6120 = vrcp.f32 %v7978_v33 }
 0x3ea   :  { %1378 = vadd.xlane.f32.xlu2 %v1352_v19  ;;  %1297 = vadd.xlane.f32.xlu0 %v1271_v12  ;;  %v11999_v12 = vld [vmem:[#allocation164_spill] sm:$0xff] }
 0x3eb   :  { %v1264_v15 = vmul.f32 %v11999_v12, %v7952_v39 }
 0x3ec   :  { %v6115_v6 = vpop.eup %6114 }
 0x3ed   :  { %v1090_v41 = vsel %vm11513_vm1, %v6115_v6, 0.0  ;;  %v1126_v6 = vmul.f32 %v11995_v34, %v7952_v39 }
 0x3ee   :  { %v8016_v52 = vmul.f32 %v7909_v53, %v1090_v41  ;;  %v6117_v53 = vpop.eup %6116  ;;  %v11996_v41 = vld [vmem:[#allocation33_spill] sm:$0xff] }
 0x3ef   :  { %vm11521_vm1 = vcmp.gt.f32.partialorder %v11996_v41, 0.0  ;;  %v8039_v19 = vpop.f32.mrf.mxu3  ;;  %v12005_v41 = vld [vmem:[#allocation46_spill] sm:$0xff] }
 0x3f0   :  { %v1118_v50 = vpack.c.bf16 %v8016_v52, %v8013_v14  ;;  %v1094_v40 = vsel %vm11521_vm1, %v6117_v53, 0.0  ;;  %v12003_v53 = vld [vmem:[#allocation171_spill] sm:$0xff]  ;;  %vm11527_vm1 = vcmp.gt.f32.partialorder %v12005_v41, 0.0 }
 0x3f1   :  { %1145 = vadd.xlane.f32.xlu1 %v1126_v6  ;;  %v1127_v39 = vmul.f32 %v12003_v53, %v7981_v2  ;;  %v12004_v6 = vld [vmem:[#allocation60_spill] sm:$0xff] }
 0x3f2   :  { %1235 = vmatmul.bf16.gmra.mxu2 %v1118_v50  ;;  %1445 = vadd.xlane.f32.xlu2 %v1426_v22  ;;  %v1110_v50 = vmul.f32 %v7882_v44, %v1094_v40  ;;  %v12002_v22 = vld [vmem:[#allocation56_spill] sm:$0xff] }
 0x3f3   :  { %1364 = vadd.xlane.f32.xlu0 %v1345_v36 }
 0x3f4   :  { %v1272_v45 = vmul.f32 %v12000_v3, %v1110_v50  ;;  %v1134_v31 = vmul.f32 %v12001_v10, %v1110_v50  ;;  %v1353_v44 = vmul.f32 %v12002_v22, %v1110_v50  ;;  %v1434_v40 = vmul.f32 %v12004_v6, %v1110_v50  ;;  %v12010_v3 = vld [vmem:[#allocation178_spill] sm:$0xff] }
 0x3f5   :  { %v1265_v22 = vmul.f32 %v12008_v51, %v7981_v2 }
 0x3f7   :  { %v8049_v36 = vpop.f32.mrf.mxu3 }
 0x3f9   :  { %1283 = vadd.xlane.f32.xlu1 %v1264_v15  ;;  %v6119_v15 = vpop.eup %6118 }
 0x3fa   :  { %1299 = vadd.xlane.f32.xlu2 %v1272_v45  ;;  %v6121_v41 = vpop.eup %6120 }
 0x3fb   :  { %1161 = vadd.xlane.f32.xlu0 %v1134_v31  ;;  %v12006_v31 = vld [vmem:[#allocation74_spill] sm:$0xff] }
 0x3fc   :  { %v1427_v45 = vmul.f32 %v12006_v31, %v7981_v2  ;;  %v12012_v2 = vld [vmem:[#allocation45_spill] sm:$0xff]  ;;  %v12019_v31 = vld [vmem:[#allocation48_spill] sm:$0xff] }
 0x401   :  { %1380 = vadd.xlane.f32.xlu1 %v1353_v44  ;;  %v1120_v44 = vpack.c.bf16 %v1110_v50, %v7998_v60  ;;  %v1066_v50 = vpop.xlane.xlu0 %1065 }
 0x402   :  { %1240 = vmatmul.bf16.gmra.mxu2 %v1119_v58  ;;  %1147 = vadd.xlane.f32.xlu2 %v1127_v39  ;;  %v1095_v58 = vsel %vm11527_vm1, %v6119_v15, 0.0  ;;  %v8065_v39 = vpop.f32.mrf.mxu3  ;;  %v12009_v15 = vld [vmem:[#allocation81_spill] sm:$0xff]  ;;  %vm11531_vm1 = vcmp.gt.f32.partialorder %v12012_v2, 0.0  ;;  %6122 = vrcp.f32 %v1066_v50 }
 0x403   :  { %1461 = vadd.xlane.f32.xlu0 %v1434_v40  ;;  %v1111_v40 = vmul.f32 %v7890_v23, %v1095_v58  ;;  %v1096_v33 = vsel %vm11531_vm1, %v6121_v41, 0.0  ;;  %v1064_v58 = vpop.xlane.xlu2 %1063  ;;  %vm11615_vm1 = vcmp.gt.f32.partialorder %v12019_v31, 0.0 }
 0x404   :  { %v1112_v23 = vmul.f32 %v7898_v48, %v1096_v33  ;;  %6124 = vrcp.f32 %v1064_v58  ;;  %v12016_v48 = vld [vmem:[#allocation61_spill] sm:$0xff] }
 0x405   :  { %v1135_v6 = vmul.f32 %v12009_v15, %v1111_v40  ;;  %v1435_v10 = vmul.f32 %v12010_v3, %v1111_v40  ;;  %v1354_v35 = vmul.f32 %v12011_v25, %v1111_v40  ;;  %v12015_v3 = vld [vmem:[#allocation87_spill] sm:$0xff]  ;;  %v1347_v41 = vmul.f32 %v12016_v48, %v7984_v26  ;;  %v12017_v33 = vld [vmem:[#allocation57_spill] sm:$0xff] }
 0x406   :  { %v1128_v25 = vmul.f32 %v12015_v3, %v7984_v26  ;;  %v1136_v2 = vmul.f32 %v12017_v33, %v1112_v23  ;;  %v12026_v33 = vld [vmem:[#allocation68_spill] sm:$0xff] }
 0x409   :  { %1447 = vadd.xlane.f32.xlu1 %v1427_v45 }
 0x40a   :  { %1366 = vadd.xlane.f32.xlu2 %v1346_v21  ;;  %v8074_v60 = vpop.f32.mrf.mxu3  ;;  %v12014_v21 = vld [vmem:[#allocation176_spill] sm:$0xff] }
 0x40b   :  { %1285 = vadd.xlane.f32.xlu0 %v1265_v22  ;;  %v12013_v22 = vld [vmem:[#allocation58_spill] sm:$0xff] }
 0x40c   :  { %v1273_v45 = vmul.f32 %v12013_v22, %v1111_v40  ;;  %v12018_v22 = vld [vmem:[#allocation84_spill] sm:$0xff] }
 0x40d   :  { %v1428_v15 = vmul.f32 %v12018_v22, %v7984_v26 }
 0x411   :  { %1163 = vadd.xlane.f32.xlu1 %v1135_v6  ;;  %v1121_v6 = vpack.c.bf16 %v1112_v23, %v1111_v40  ;;  %v12020_v40 = vld [vmem:[#allocation37_spill] sm:$0xff] }
 0x412   :  { %1245 = vmatmul.bf16.gmra.mxu2 %v1120_v44  ;;  %1463 = vadd.xlane.f32.xlu2 %v1435_v10  ;;  %v1266_v44 = vmul.f32 %v12014_v21, %v7984_v26  ;;  %v8082_v10 = vpop.f32.mrf.mxu3  ;;  %vm11614_vm11 = vcmp.gt.f32.partialorder %v12020_v40, 0.0  ;;  %v1274_v40 = vmul.f32 %v12026_v33, %v1112_v23  ;;  %v12038_v33 = vld [vmem:[#allocation67_spill] sm:$0xff] }
 0x413   :  { %1382 = vadd.xlane.f32.xlu0 %v1354_v35  ;;  %v6123_v35 = vpop.eup %6122 }
 0x414   :  { %v6125_v59 = vpop.eup %6124 }
 0x415   :  { %v1097_v50 = vsel %vm11614_vm11, %v6125_v59, 0.0 }
 0x419   :  { %1301 = vadd.xlane.f32.xlu1 %v1273_v45 }
 0x41a   :  { %1287 = vadd.xlane.f32.xlu2 %v1266_v44 }
 0x41b   :  { %1149 = vadd.xlane.f32.xlu0 %v1128_v25  ;;  %v1098_v25 = vsel %vm11615_vm1, %v6123_v35, 0.0 }
 0x41c   :  { %v8100_v26 = vmul.f32 %v7912_v55, %v1098_v25 }
 0x421   :  { %1368 = vadd.xlane.f32.xlu1 %v1347_v41  ;;  %v12024_v41 = vld [vmem:[#allocation70_spill] sm:$0xff] }
 0x422   :  { %1250 = vmatmul.bf16.gmra.mxu2 %v1121_v6  ;;  %1165 = vadd.xlane.f32.xlu2 %v1136_v2  ;;  %v1113_v6 = vmul.f32 %v7906_v0, %v1097_v50  ;;  %v1436_v35 = vmul.f32 %v12024_v41, %v1112_v23  ;;  %v8106_v2 = vpop.f32.mrf.mxu3  ;;  %v12030_v0 = vld [vmem:[#allocation77_spill] sm:$0xff] }
 0x423   :  { %1449 = vadd.xlane.f32.xlu0 %v1428_v15  ;;  %v12025_v15 = vld [vmem:[#allocation86_spill] sm:$0xff]  ;;  %v1129_v50 = vmul.f32 %v12030_v0, %v8013_v14 }
 0x424   :  { %v8095_v45 = vpop.xlane.xlu1 %1139  ;;  %v8097_v58 = vpop.xlane.xlu2 %1439  ;;  %v1355_v31 = vmul.f32 %v12025_v15, %v1112_v23  ;;  %v1122_v59 = vpack.c.bf16 %v8100_v26, %v1113_v6  ;;  %v12032_v23 = vld [vmem:[#allocation182_spill] sm:$0xff] }
 0x425   :  { %12021 = vst [vmem:[#allocation196_spill] sm:$0xff] %v8095_v45  ;;  %v8102_v44 = vpop.xlane.xlu0 %1358 }
 0x426   :  { %12022 = vst [vmem:[#allocation197_spill] sm:$0xff] %v8097_v58 }
 0x427   :  { %12023 = vst [vmem:[#allocation198_spill] sm:$0xff] %v8102_v44  ;;  %v12031_v44 = vld [vmem:[#allocation91_spill] sm:$0xff] }
 0x428   :  { %v1429_v45 = vmul.f32 %v12031_v44, %v8013_v14  ;;  %v1137_v44 = vmul.f32 %v12038_v33, %v1113_v6 }
 0x429   :  { %1465 = vadd.xlane.f32.xlu1 %v1436_v35  ;;  %v1348_v35 = vmul.f32 %v12032_v23, %v8013_v14 }
 0x42a   :  { %1384 = vadd.xlane.f32.xlu2 %v1355_v31  ;;  %v8123_v41 = vpop.f32.mrf.mxu3 }
 0x42b   :  { %1303 = vadd.xlane.f32.xlu0 %v1274_v40 }
 0x42c   :  { %v8111_v55 = vpop.xlane.xlu1 %1277 }
 0x42d   :  { %12027 = vst [vmem:[#allocation199_spill] sm:$0xff] %v8111_v55  ;;  %v8113_v25 = vpop.xlane.xlu0 %1155  ;;  %v8115_v58 = vpop.xlane.xlu2 %1293  ;;  %v12037_v55 = vld [vmem:[#allocation183_spill] sm:$0xff] }
 0x42e   :  { %12028 = vst [vmem:[#allocation200_spill] sm:$0xff] %v8113_v25  ;;  %v1275_v15 = vmul.f32 %v12037_v55, %v1113_v6  ;;  %v1437_v55 = vmul.f32 %v7742_v42, %v1113_v6 }
 0x42f   :  { %12029 = vst [vmem:[#allocation201_spill] sm:$0xff] %v8115_v58  ;;  %v12036_v58 = vld [vmem:[#allocation64_spill] sm:$0xff] }
 0x430   :  { %v1267_v25 = vmul.f32 %v12036_v58, %v8013_v14 }
 0x431   :  { %1151 = vadd.xlane.f32.xlu1 %v1129_v50 }
 0x432   :  { %1255 = vmatmul.bf16.gmra.mxu2 %v1122_v59  ;;  %1451 = vadd.xlane.f32.xlu2 %v1429_v45  ;;  %v8135_v50 = vpop.f32.mrf.mxu3 }
 0x433   :  { %1370 = vadd.xlane.f32.xlu0 %v1348_v35 }
 0x434   :  { %v8125_v31 = vpop.xlane.xlu1 %1374 }
 0x435   :  { %12033 = vst [vmem:[#allocation202_spill] sm:$0xff] %v8125_v31  ;;  %v8127_v40 = vpop.xlane.xlu0 %1455  ;;  %v8129_v59 = vpop.xlane.xlu2 %1141 }
 0x436   :  { %12034 = vst [vmem:[#allocation203_spill] sm:$0xff] %v8127_v40  ;;  %v1356_v40 = vmul.f32 %v7726_v20, %v1113_v6  ;;  %v12047_v20 = vld [vmem:[#allocation90_spill] sm:$0xff]  ;;  %v1430_v6 = vmul.f32 %v7750_v27, %v8016_v52 }
 0x437   :  { %12035 = vst [vmem:[#allocation204_spill] sm:$0xff] %v8129_v59  ;;  %v12042_v59 = vld [vmem:[#allocation88_spill] sm:$0xff]  ;;  %v1569_v33 = vmul.f32 %v7366_v18, %v12047_v20 }
 0x438   :  { %v1130_v14 = vmul.f32 %v12042_v59, %v8016_v52  ;;  %v12049_v20 = vld [vmem:[#allocation124_spill] sm:$0xff] }
 0x439   :  { %1289 = vadd.xlane.f32.xlu1 %v1267_v25 }
 0x43a   :  { %1305 = vadd.xlane.f32.xlu2 %v1275_v15 }
 0x43b   :  { %1167 = vadd.xlane.f32.xlu0 %v1137_v44 }
 0x43c   :  { %v8137_v45 = vpop.xlane.xlu1 %1441 }
 0x43d   :  { %12039 = vst [vmem:[#allocation205_spill] sm:$0xff] %v8137_v45  ;;  %v8139_v35 = vpop.xlane.xlu0 %1279  ;;  %v8141_v31 = vpop.xlane.xlu2 %1360  ;;  %v12046_v45 = vld [vmem:[#allocation101_spill] sm:$0xff] }
 0x43e   :  { %12040 = vst [vmem:[#allocation206_spill] sm:$0xff] %v8139_v35  ;;  %v1568_v35 = vmul.f32 %v7348_v30, %v12046_v45  ;;  %v12048_v45 = vld [vmem:[#allocation108_spill] sm:$0xff] }
 0x43f   :  { %12041 = vst [vmem:[#allocation207_spill] sm:$0xff] %v8141_v31  ;;  %v8155_v31 = vpop.f32.mrf.mxu3 }
 0x441   :  { %1386 = vadd.xlane.f32.xlu1 %v1356_v40  ;;  %v1674_v40 = vadd.f32 %v7991_v13, %v1568_v35 }
 0x442   :  { %1153 = vadd.xlane.f32.xlu2 %v1130_v14  ;;  %v1268_v14 = vmul.f32 %v7722_v1, %v8016_v52 }
 0x443   :  { %1467 = vadd.xlane.f32.xlu0 %v1437_v55  ;;  %v1349_v55 = vmul.f32 %v7738_v7, %v8016_v52  ;;  %v12053_v52 = vld [vmem:[#allocation100_spill] sm:$0xff] }
 0x444   :  { %v8147_v15 = vpop.xlane.xlu1 %1157 }
 0x445   :  { %12043 = vst [vmem:[#allocation208_spill] sm:$0xff] %v8147_v15  ;;  %v8149_v44 = vpop.xlane.xlu0 %1376  ;;  %v8151_v25 = vpop.xlane.xlu2 %1457  ;;  %v1778_v15 = vmul.f32 %v7376_v54, %v12049_v20 }
 0x446   :  { %12044 = vst [vmem:[#allocation209_spill] sm:$0xff] %v8149_v44  ;;  %v1777_v44 = vmul.f32 %v7352_v63, %v12048_v45  ;;  %v12055_v45 = vld [vmem:[#allocation102_spill] sm:$0xff] }
 0x447   :  { %12045 = vst [vmem:[#allocation210_spill] sm:$0xff] %v8151_v25  ;;  %v1676_v25 = vadd.f32 %v8005_v5, %v1569_v33  ;;  %v1570_v5 = vmul.f32 %v7431_v62, %v12053_v52  ;;  %v12054_v33 = vld [vmem:[#allocation155_spill] sm:$0xff]  ;;  %v1438_v52 = vmul.f32 %v7788_v8, %v8100_v26 }
 0x448   :  { %v1793_v18 = vadd.f32 %v1777_v44, %v1674_v40  ;;  %v12057_v44 = vld [vmem:[#allocation117_spill] sm:$0xff] }
 0x449   :  { %1453 = vadd.xlane.f32.xlu1 %v1430_v6  ;;  %v1794_v13 = vadd.f32 %v1778_v15, %v1676_v25  ;;  %v1873_v6 = vmul.f32 %v7356_v49, %v12054_v33  ;;  %v1874_v40 = vmul.f32 %v7394_v61, %v12057_v44  ;;  %v1138_v15 = vmul.f32 %v7769_v16, %v8100_v26 }
 0x44a   :  { %1372 = vadd.xlane.f32.xlu2 %v1349_v55  ;;  %v1572_v55 = vmul.f32 %v12003_v53, %v12055_v45  ;;  %v1357_v33 = vmul.f32 %v7779_v43, %v8100_v26 }
 0x44b   :  { %1291 = vadd.xlane.f32.xlu0 %v1268_v14  ;;  %v12056_v14 = vld [vmem:[#allocation103_spill] sm:$0xff]  ;;  %v1889_v25 = vadd.f32 %v1873_v6, %v1793_v18  ;;  %v1890_v44 = vadd.f32 %v1874_v40, %v1794_v13  ;;  %v1969_v18 = vmul.f32 %v7360_v56, %v7825_v24  ;;  %v12060_v6 = vld [vmem:[#allocation126_spill] sm:$0xff] }
 0x44c   :  { %v8171_v30 = vpop.xlane.xlu1 %1295  ;;  %v1571_v20 = vmul.f32 %v11995_v34, %v12056_v14  ;;  %v1684_v14 = vadd.f32 %v8049_v36, %v1572_v55  ;;  %v1781_v49 = vmul.f32 %v12008_v51, %v12060_v6  ;;  %v12066_v56 = vld [vmem:[#allocation107_spill] sm:$0xff] }
 0x44d   :  { %12050 = vst [vmem:[#allocation101_spill] sm:$0xff] %v8171_v30  ;;  %v8173_v35 = vpop.xlane.xlu0 %1143  ;;  %v8175_v42 = vpop.xlane.xlu2 %1281  ;;  %v1679_v30 = vadd.f32 %v8027_v29, %v1570_v5  ;;  %v12059_v29 = vld [vmem:[#allocation127_spill] sm:$0xff]  ;;  %v1985_v13 = vadd.f32 %v1969_v18, %v1889_v25  ;;  %v12068_v25 = vld [vmem:[#allocation174_spill] sm:$0xff] }
 0x44e   :  { %12051 = vst [vmem:[#allocation90_spill] sm:$0xff] %v8173_v35  ;;  %v1681_v45 = vadd.f32 %v8039_v19, %v1571_v20  ;;  %v12058_v35 = vld [vmem:[#allocation123_spill] sm:$0xff]  ;;  %v1780_v5 = vmul.f32 %v11999_v12, %v12059_v29  ;;  %v1970_v19 = vmul.f32 %v7402_v37, %v7823_v11  ;;  %v12062_v20 = vld [vmem:[#allocation105_spill] sm:$0xff]  ;;  %v1797_v24 = vadd.f32 %v1781_v49, %v1684_v14  ;;  %v12065_v29 = vld [vmem:[#allocation104_spill] sm:$0xff] }
 0x44f   :  { %12052 = vst [vmem:[#allocation108_spill] sm:$0xff] %v8175_v42  ;;  %v8190_v42 = vpop.f32.mrf.mxu3  ;;  %v1779_v61 = vmul.f32 %v7427_v17, %v12058_v35  ;;  %v1573_v35 = vmul.f32 %v12015_v3, %v12062_v20  ;;  %v1574_v6 = vmul.f32 %v12030_v0, %v12065_v29  ;;  %v1575_v11 = vmul.f32 %v12042_v59, %v12066_v56  ;;  %v12069_v20 = vld [vmem:[#allocation82_spill] sm:$0xff]  ;;  %v12105_v37 = vld [vmem:[#allocation96_spill] sm:$0xff] }
 0x450   :  { %v1796_v40 = vadd.f32 %v1780_v5, %v1681_v45  ;;  %v1877_v18 = vmul.f32 %v12007_v9, %v12068_v25  ;;  %v1876_v49 = vmul.f32 %v11998_v38, %v12069_v20  ;;  %v1276_v14 = vmul.f32 %v7763_v57, %v8100_v26  ;;  %v12073_v26 = vld [vmem:[#allocation122_spill] sm:$0xff] }
 0x451   :  { %1169 = vadd.xlane.f32.xlu1 %v1138_v15  ;;  %v1795_v36 = vadd.f32 %v1779_v61, %v1679_v30  ;;  %v12067_v30 = vld [vmem:[#allocation170_spill] sm:$0xff]  ;;  %v1686_v45 = vadd.f32 %v8065_v39, %v1573_v35  ;;  %v1689_v56 = vadd.f32 %v8074_v60, %v1574_v6  ;;  %v1691_v25 = vadd.f32 %v8082_v10, %v1575_v11 }
 0x452   :  { %1469 = vadd.xlane.f32.xlu2 %v1438_v52  ;;  %v1875_v61 = vmul.f32 %v7442_v46, %v12067_v30  ;;  %v8234_v30 = vsel %vm270_vm2, %v1985_v13, -1e+30  ;;  %v1892_v35 = vadd.f32 %v1876_v49, %v1796_v40  ;;  %v12075_v13 = vld [vmem:[#allocation129_spill] sm:$0xff]  ;;  %v12078_v49 = vld [vmem:[#allocation63_spill] sm:$0xff] }
 0x453   :  { %1388 = vadd.xlane.f32.xlu0 %v1357_v33  ;;  %v1986_v33 = vadd.f32 %v1970_v19, %v1890_v44  ;;  %v12070_v44 = vld [vmem:[#allocation111_spill] sm:$0xff]  ;;  %v1784_v10 = vmul.f32 %v7722_v1, %v12075_v13 }
 0x454   :  { %v8208_v55 = vpop.xlane.xlu1 %1362  ;;  %v1782_v5 = vmul.f32 %v12014_v21, %v12070_v44  ;;  %v1891_v19 = vadd.f32 %v1875_v61, %v1795_v36  ;;  %v12074_v44 = vld [vmem:[#allocation130_spill] sm:$0xff] }
 0x455   :  { %12061 = vst [vmem:[#allocation124_spill] sm:$0xff] %v8208_v55  ;;  %v8212_v15 = vpop.xlane.xlu0 %1443  ;;  %v8214_v52 = vpop.xlane.xlu2 %1159  ;;  %v8239_v39 = vsel %vm271_vm4, %v1986_v33, -1e+30  ;;  %v1783_v36 = vmul.f32 %v12036_v58, %v12074_v44  ;;  %v12076_v33 = vld [vmem:[#allocation74_spill] sm:$0xff]  ;;  %v12081_v55 = vld [vmem:[#allocation93_spill] sm:$0xff] }
 0x456   :  { %12063 = vst [vmem:[#allocation100_spill] sm:$0xff] %v8212_v15  ;;  %v1971_v15 = vmul.f32 %v11989_v47, %v12073_v26  ;;  %v1973_v40 = vmul.f32 %v12076_v33, %v7827_v4  ;;  %v1798_v6 = vadd.f32 %v1782_v5, %v1686_v45  ;;  %v1800_v26 = vadd.f32 %v1784_v10, %v1691_v25  ;;  %v12084_v4 = vld [vmem:[#allocation150_spill] sm:$0xff]  ;;  %v12089_v10 = vld [vmem:[#allocation189_spill] sm:$0xff] }
 0x457   :  { %12064 = vst [vmem:[#allocation155_spill] sm:$0xff] %v8214_v52  ;;  %v1893_v52 = vadd.f32 %v1877_v18, %v1797_v24  ;;  %v1705_v60 = vpop.f32.mrf.mxu3  ;;  %v1972_v24 = vmul.f32 %v11997_v32, %v7831_v28  ;;  %v1799_v11 = vadd.f32 %v1783_v36, %v1689_v56  ;;  %v12082_v28 = vld [vmem:[#allocation138_spill] sm:$0xff] }
 0x458   :  { %v1987_v18 = vadd.f32 %v1971_v15, %v1891_v19  ;;  %v1576_v47 = vmul.f32 %v12082_v28, %v12081_v55  ;;  %v12083_v32 = vld [vmem:[#allocation106_spill] sm:$0xff]  ;;  %v12086_v15 = vld [vmem:[#allocation109_spill] sm:$0xff] }
 0x459   :  { %1307 = vadd.xlane.f32.xlu1 %v1276_v14  ;;  %v1878_v14 = vmul.f32 %v12016_v48, %v12078_v49  ;;  %v1989_v13 = vadd.f32 %v1973_v40, %v1893_v52  ;;  %v1988_v29 = vadd.f32 %v1972_v24, %v1892_v35  ;;  %v1577_v45 = vmul.f32 %v12084_v4, %v12083_v32  ;;  %v12085_v5 = vld [vmem:[#allocation118_spill] sm:$0xff]  ;;  %v12087_v19 = vld [vmem:[#allocation161_spill] sm:$0xff]  ;;  %v12088_v49 = vld [vmem:[#allocation180_spill] sm:$0xff] }
 0x45a   :  { %2019 = vmax.xlane.f32.xlu2 %v8239_v39  ;;  %v1879_v56 = vmul.f32 %v12032_v23, %v12085_v5  ;;  %v1578_v36 = vmul.f32 %v12087_v19, %v12086_v15  ;;  %v1880_v25 = vmul.f32 %v7738_v7, %v12088_v49  ;;  %v1694_v24 = vadd.f32 %v8106_v2, %v1576_v47  ;;  %v12093_v47 = vld [vmem:[#allocation114_spill] sm:$0xff]  ;;  %v12094_v2 = vld [vmem:[#allocation140_spill] sm:$0xff]  ;;  %v12106_v7 = vld [vmem:[#allocation79_spill] sm:$0xff] }
 0x45b   :  { %2017 = vmax.xlane.f32.xlu0 %v8234_v30  ;;  %v1894_v52 = vadd.f32 %v1878_v14, %v1798_v6  ;;  %v1696_v55 = vadd.f32 %v8123_v41, %v1577_v45  ;;  %v8277_v32 = vsel %vm272_vm5, %v1987_v18, -1e+30  ;;  %v8283_v49 = vsel %vm274_vm10, %v1989_v13, -1e+30  ;;  %v12095_v14 = vld [vmem:[#allocation134_spill] sm:$0xff]  ;;  %v12096_v45 = vld [vmem:[#allocation149_spill] sm:$0xff] }
 0x45c   :  { %v8253_v61 = vpop.xlane.xlu1 %1459  ;;  %v1895_v35 = vadd.f32 %v1879_v56, %v1799_v11  ;;  %v1699_v5 = vadd.f32 %v8135_v50, %v1578_v36  ;;  %v8287_v6 = vsel %vm273_vm8, %v1988_v29, -1e+30  ;;  %v1896_v11 = vadd.f32 %v1880_v25, %v1800_v26  ;;  %v12097_v56 = vld [vmem:[#allocation188_spill] sm:$0xff]  ;;  %v12099_v13 = vld [vmem:[#allocation125_spill] sm:$0xff]  ;;  %v12101_v29 = vld [vmem:[#allocation163_spill] sm:$0xff] }
 0x45d   :  { %12077 = vst [vmem:[#allocation102_spill] sm:$0xff] %v8253_v61  ;;  %v8257_v44 = vpop.xlane.xlu0 %1297  ;;  %v8259_v20 = vpop.xlane.xlu2 %1378  ;;  %v1974_v61 = vmul.f32 %v12018_v22, %v12089_v10  ;;  %v1785_v41 = vmul.f32 %v12094_v2, %v12093_v47  ;;  %v1786_v18 = vmul.f32 %v12096_v45, %v12095_v14  ;;  %v12098_v10 = vld [vmem:[#allocation91_spill] sm:$0xff]  ;;  %v1976_v36 = vmul.f32 %v7750_v27, %v12099_v13  ;;  %v12100_v15 = vld [vmem:[#allocation132_spill] sm:$0xff]  ;;  %v12108_v27 = vld [vmem:[#allocation153_spill] sm:$0xff] }
 0x45e   :  { %12079 = vst [vmem:[#allocation103_spill] sm:$0xff] %v8257_v44  ;;  %v1975_v50 = vmul.f32 %v12098_v10, %v12097_v56  ;;  %v1579_v23 = vmul.f32 %v12106_v7, %v12105_v37  ;;  %v12107_v13 = vld [vmem:[#allocation119_spill] sm:$0xff] }
 0x45f   :  { %12080 = vst [vmem:[#allocation117_spill] sm:$0xff] %v8259_v20  ;;  %v1787_v20 = vmul.f32 %v12101_v29, %v12100_v15  ;;  %v1990_v26 = vadd.f32 %v1974_v61, %v1894_v52  ;;  %v1801_v25 = vadd.f32 %v1785_v41, %v1694_v24  ;;  %v1802_v40 = vadd.f32 %v1786_v18, %v1696_v55  ;;  %v1708_v47 = vpop.f32.mrf.mxu3  ;;  %v12109_v15 = vld [vmem:[#allocation89_spill] sm:$0xff]  ;;  %v12110_v61 = vld [vmem:[#allocation143_spill] sm:$0xff]  ;;  %v12111_v24 = vld [vmem:[#allocation110_spill] sm:$0xff] }
 0x460   :  { %v1991_v14 = vadd.f32 %v1975_v50, %v1895_v35  ;;  %v1992_v10 = vadd.f32 %v1976_v36, %v1896_v11  ;;  %v1882_v48 = vmul.f32 %v12108_v27, %v12107_v13  ;;  %v1881_v52 = vmul.f32 %v12110_v61, %v12109_v15  ;;  %v12112_v55 = vld [vmem:[#allocation81_spill] sm:$0xff]  ;;  %v12113_v18 = vld [vmem:[#allocation112_spill] sm:$0xff]  ;;  %v12137_v29 = vld [vmem:[#allocation94_spill] sm:$0xff] }
 0x461   :  { %2021 = vmax.xlane.f32.xlu1 %v8277_v32  ;;  %v1803_v22 = vadd.f32 %v1787_v20, %v1699_v5  ;;  %v1580_v41 = vmul.f32 %v12112_v55, %v12111_v24  ;;  %v12114_v35 = vld [vmem:[#allocation57_spill] sm:$0xff]  ;;  %v8321_v11 = vsel %vm275_vm12, %v1990_v26, -1e+30  ;;  %v1701_v13 = vadd.f32 %v8155_v31, %v1579_v23  ;;  %v12120_v26 = vld [vmem:[#allocation115_spill] sm:$0xff]  ;;  %v12124_v31 = vld [vmem:[#allocation190_spill] sm:$0xff] }
 0x462   :  { %2025 = vmax.xlane.f32.xlu2 %v8283_v49  ;;  %v1581_v20 = vmul.f32 %v12114_v35, %v12113_v18  ;;  %v12115_v5 = vld [vmem:[#allocation185_spill] sm:$0xff]  ;;  %v1897_v37 = vadd.f32 %v1881_v52, %v1801_v25  ;;  %v1898_v36 = vadd.f32 %v1882_v48, %v1802_v40  ;;  %v8326_v15 = vsel %vm276_vm14, %v1991_v14, -1e+30  ;;  %v12122_v48 = vld [vmem:[#allocation191_spill] sm:$0xff]  ;;  %v12125_v52 = vld [vmem:[#allocation158_spill] sm:$0xff] }
 0x463   :  { %2023 = vmax.xlane.f32.xlu0 %v8287_v6  ;;  %v12116_v50 = vld [vmem:[#allocation165_spill] sm:$0xff]  ;;  %v1704_v24 = vadd.f32 %v8190_v42, %v1580_v41  ;;  %v12123_v40 = vld [vmem:[#allocation147_spill] sm:$0xff]  ;;  %v1978_v14 = vmul.f32 %v12125_v52, %v12124_v31  ;;  %v12126_v42 = vld [vmem:[#allocation128_spill] sm:$0xff] }
 0x464   :  { %v8301_v44 = vpop.xlane.xlu1 %1145  ;;  %v1706_v61 = vadd.f32 %v1705_v60, %v1581_v20  ;;  %v1977_v23 = vmul.f32 %v12123_v40, %v12122_v48  ;;  %v12129_v41 = vld [vmem:[#allocation58_spill] sm:$0xff]  ;;  %v12130_v20 = vld [vmem:[#allocation141_spill] sm:$0xff] }
 0x465   :  { %12102 = vst [vmem:[#allocation123_spill] sm:$0xff] %v8301_v44  ;;  %v8305_v56 = vpop.xlane.xlu2 %1445  ;;  %v12131_v44 = vld [vmem:[#allocation68_spill] sm:$0xff]  ;;  %v1994_v40 = vadd.f32 %v1978_v14, %v1898_v36 }
 0x466   :  { %v8303_v33 = vpop.xlane.xlu0 %1364  ;;  %12104 = vst [vmem:[#allocation126_spill] sm:$0xff] %v8305_v56  ;;  %v12121_v56 = vld [vmem:[#allocation172_spill] sm:$0xff]  ;;  %v1790_v18 = vmul.f32 %v12131_v44, %v12130_v20  ;;  %v1993_v48 = vadd.f32 %v1977_v23, %v1897_v37  ;;  %v12139_v20 = vld [vmem:[#allocation113_spill] sm:$0xff] }
 0x467   :  { %12103 = vst [vmem:[#allocation127_spill] sm:$0xff] %v8303_v33  ;;  %v1883_v33 = vmul.f32 %v12116_v50, %v12115_v5  ;;  %v8332_v5 = vsel %vm277_vm0, %v1992_v10, -1e+30  ;;  %v1788_v25 = vmul.f32 %v12121_v56, %v12120_v26  ;;  %v12135_v56 = vld [vmem:[#allocation98_spill] sm:$0xff]  ;;  %v1710_v45 = vpop.f32.mrf.mxu3  ;;  %v12141_v37 = vld [vmem:[#allocation177_spill] sm:$0xff] }
 0x468   :  { %v1806_v31 = vadd.f32 %v1790_v18, %v1706_v61  ;;  %v12143_v61 = vld [vmem:[#allocation86_spill] sm:$0xff] }
 0x469   :  { %v1899_v27 = vadd.f32 %v1883_v33, %v1803_v22  ;;  %2027 = vmax.xlane.f32.xlu1 %v8321_v11  ;;  %v12127_v22 = vld [vmem:[#allocation169_spill] sm:$0xff]  ;;  %v12128_v33 = vld [vmem:[#allocation144_spill] sm:$0xff]  ;;  %v1804_v26 = vadd.f32 %v1788_v25, %v1701_v13  ;;  %v1583_v13 = vmul.f32 %v7769_v16, %v12139_v20 }
 0x46a   :  { %2031 = vmax.xlane.f32.xlu2 %v8332_v5  ;;  %v1979_v60 = vmul.f32 %v12127_v22, %v12126_v42  ;;  %v1789_v10 = vmul.f32 %v12129_v41, %v12128_v33  ;;  %v12136_v42 = vld [vmem:[#allocation67_spill] sm:$0xff]  ;;  %v12138_v33 = vld [vmem:[#allocation56_spill] sm:$0xff] }
 0x46b   :  { %2029 = vmax.xlane.f32.xlu0 %v8326_v15  ;;  %v1582_v22 = vmul.f32 %v12136_v42, %v12135_v56  ;;  %v1884_v41 = vmul.f32 %v12138_v33, %v12137_v29  ;;  %v12140_v25 = vld [vmem:[#allocation120_spill] sm:$0xff]  ;;  %v12160_v33 = vld [vmem:[#allocation73_spill] sm:$0xff] }
 0x46c   :  { %v8348_v50 = vpop.xlane.xlu1 %1283  ;;  %v1805_v9 = vadd.f32 %v1789_v10, %v1704_v24  ;;  %v1995_v46 = vadd.f32 %v1979_v60, %v1899_v27  ;;  %v1885_v36 = vmul.f32 %v12141_v37, %v12140_v25  ;;  %v12142_v24 = vld [vmem:[#allocation83_spill] sm:$0xff]  ;;  %v8366_v27 = vsel %vm278_vm3, %v1993_v48, -1e+30 }
 0x46d   :  { %12132 = vst [vmem:[#allocation105_spill] sm:$0xff] %v8348_v50  ;;  %v8352_v38 = vpop.xlane.xlu2 %1299  ;;  %v1886_v18 = vmul.f32 %v12143_v61, %v12142_v24  ;;  %v1900_v23 = vadd.f32 %v1884_v41, %v1804_v26  ;;  %v1709_v14 = vadd.f32 %v1708_v47, %v1582_v22  ;;  %v8370_v60 = vsel %vm11616_vm6, %v1994_v40, -1e+30  ;;  %v12147_v24 = vld [vmem:[#allocation116_spill] sm:$0xff]  ;;  %v12148_v41 = vld [vmem:[#allocation183_spill] sm:$0xff]  ;;  %v12149_v22 = vld [vmem:[#allocation193_spill] sm:$0xff] }
 0x46e   :  { %v8350_v52 = vpop.xlane.xlu0 %1161  ;;  %12134 = vst [vmem:[#allocation107_spill] sm:$0xff] %v8352_v38  ;;  %v1901_v29 = vadd.f32 %v1885_v36, %v1805_v9  ;;  %v8375_v25 = vsel %vm11566_vm7, %v1995_v46, -1e+30  ;;  %v1791_v47 = vmul.f32 %v12148_v41, %v12147_v24  ;;  %v12150_v26 = vld [vmem:[#allocation60_spill] sm:$0xff]  ;;  %v12151_v40 = vld [vmem:[#allocation131_spill] sm:$0xff]  ;;  %v12152_v9 = vld [vmem:[#allocation70_spill] sm:$0xff] }
 0x46f   :  { %12133 = vst [vmem:[#allocation104_spill] sm:$0xff] %v8350_v52  ;;  %v1902_v38 = vadd.f32 %v1886_v18, %v1806_v31  ;;  %v1711_v52 = vadd.f32 %v1710_v45, %v1583_v13  ;;  %v1980_v48 = vmul.f32 %v12150_v26, %v12149_v22  ;;  %v1982_v31 = vmul.f32 %v12152_v9, %v12151_v40  ;;  %v12153_v45 = vld [vmem:[#allocation159_spill] sm:$0xff]  ;;  %v12154_v36 = vld [vmem:[#allocation192_spill] sm:$0xff]  ;;  %v12155_v18 = vld [vmem:[#allocation178_spill] sm:$0xff] }
 0x470   :  { %v1792_v13 = vmul.f32 %v7763_v57, %v12153_v45  ;;  %v1981_v46 = vmul.f32 %v12155_v18, %v12154_v36  ;;  %v1807_v20 = vadd.f32 %v1791_v47, %v1709_v14  ;;  %v12159_v37 = vld [vmem:[#allocation95_spill] sm:$0xff]  ;;  %v12161_v9 = vld [vmem:[#allocation121_spill] sm:$0xff] }
 0x471   :  { %2033 = vmax.xlane.f32.xlu1 %v8366_v27  ;;  %v1996_v24 = vadd.f32 %v1980_v48, %v1900_v23  ;;  %v1998_v26 = vadd.f32 %v1982_v31, %v1902_v38  ;;  %v1887_v40 = vmul.f32 %v12160_v33, %v12159_v37  ;;  %v1888_v45 = vmul.f32 %v7779_v43, %v12161_v9  ;;  %v12164_v38 = vld [vmem:[#allocation179_spill] sm:$0xff]  ;;  %v12167_v48 = vld [vmem:[#allocation80_spill] sm:$0xff] }
 0x472   :  { %2037 = vmax.xlane.f32.xlu2 %v8375_v25  ;;  %v1808_v10 = vadd.f32 %v1792_v13, %v1711_v52  ;;  %v1997_v61 = vadd.f32 %v1981_v46, %v1901_v29  ;;  %vm12165_vm7 = vcmp.gt.f32.partialorder %v12164_v38, 0.0  ;;  %v12166_v37 = vld [vmem:[#allocation195_spill] sm:$0xff] }
 0x473   :  { %2035 = vmax.xlane.f32.xlu0 %v8370_v60  ;;  %v1903_v57 = vadd.f32 %v1887_v40, %v1807_v20  ;;  %v8401_v14 = vsel %vm11690_vm9, %v1996_v24, -1e+30  ;;  %v8406_v23 = vsel %vm11567_vm13, %v1998_v26, -1e+30  ;;  %v1983_v31 = vmul.f32 %v12167_v48, %v12166_v37  ;;  %v12168_v20 = vld [vmem:[#allocation194_spill] sm:$0xff]  ;;  %v12174_v40 = vld [vmem:[#allocation99_spill] sm:$0xff] }
 0x474   :  { %v8389_v56 = vpop.xlane.xlu1 %1380  ;;  %v1904_v47 = vadd.f32 %v1888_v45, %v1808_v10  ;;  %v8410_v29 = vsel %vm12165_vm7, %v1997_v61, -1e+30  ;;  %v1984_v10 = vmul.f32 %v7788_v8, %v12168_v20  ;;  %v12172_v61 = vld [vmem:[#allocation71_spill] sm:$0xff]  ;;  %vm12175_vm13 = vcmp.gt.f32.partialorder %v12174_v40, 0.0 }
 0x475   :  { %12156 = vst [vmem:[#allocation170_spill] sm:$0xff] %v8389_v56  ;;  %v8393_v22 = vpop.xlane.xlu2 %1147  ;;  %v1999_v13 = vadd.f32 %v1983_v31, %v1903_v57  ;;  %vm12173_vm7 = vcmp.gt.f32.partialorder %v12172_v61, 0.0 }
 0x476   :  { %v8391_v50 = vpop.xlane.xlu0 %1461  ;;  %12158 = vst [vmem:[#allocation82_spill] sm:$0xff] %v8393_v22  ;;  %v2000_v46 = vadd.f32 %v1984_v10, %v1904_v47 }
 0x477   :  { %12157 = vst [vmem:[#allocation174_spill] sm:$0xff] %v8391_v50  ;;  %v8426_v24 = vsel %vm12173_vm7, %v1999_v13, -1e+30 }
 0x478   :  { %v8431_v45 = vsel %vm12175_vm13, %v2000_v46, -1e+30 }
 0x479   :  { %2039 = vmax.xlane.f32.xlu1 %v8401_v14 }
 0x47a   :  { %2043 = vmax.xlane.f32.xlu2 %v8406_v23 }
 0x47b   :  { %2041 = vmax.xlane.f32.xlu0 %v8410_v29 }
 0x47c   :  { %v8418_v9 = vpop.xlane.xlu1 %1447 }
 0x47d   :  { %12169 = vst [vmem:[#allocation111_spill] sm:$0xff] %v8418_v9  ;;  %v8422_v26 = vpop.xlane.xlu2 %1366 }
 0x47e   :  { %v8420_v36 = vpop.xlane.xlu0 %1285  ;;  %12171 = vst [vmem:[#allocation130_spill] sm:$0xff] %v8422_v26 }
 0x47f   :  { %12170 = vst [vmem:[#allocation122_spill] sm:$0xff] %v8420_v36 }
 0x481   :  { %2045 = vmax.xlane.f32.xlu1 %v8426_v24 }
 0x483   :  { %2047 = vmax.xlane.f32.xlu0 %v8431_v45 }
 0x484   :  { %v8434_v37 = vpop.xlane.xlu1 %1163 }
 0x485   :  { %12176 = vst [vmem:[#allocation129_spill] sm:$0xff] %v8434_v37  ;;  %v8438_v31 = vpop.xlane.xlu2 %1463 }
 0x486   :  { %v8436_v57 = vpop.xlane.xlu0 %1382  ;;  %12178 = vst [vmem:[#allocation93_spill] sm:$0xff] %v8438_v31 }
 0x487   :  { %12177 = vst [vmem:[#allocation63_spill] sm:$0xff] %v8436_v57 }
 0x48c   :  { %v8440_v20 = vpop.xlane.xlu1 %1301 }
 0x48d   :  { %12179 = vst [vmem:[#allocation106_spill] sm:$0xff] %v8440_v20  ;;  %v8444_v10 = vpop.xlane.xlu2 %1287 }
 0x48e   :  { %v8442_v47 = vpop.xlane.xlu0 %1149  ;;  %12181 = vst [vmem:[#allocation109_spill] sm:$0xff] %v8444_v10 }
 0x48f   :  { %12180 = vst [vmem:[#allocation118_spill] sm:$0xff] %v8442_v47 }
 0x494   :  { %v8446_v13 = vpop.xlane.xlu1 %1368 }
 0x495   :  { %12182 = vst [vmem:[#allocation180_spill] sm:$0xff] %v8446_v13  ;;  %v8450_v46 = vpop.xlane.xlu2 %1165 }
 0x496   :  { %v8448_v52 = vpop.xlane.xlu0 %1449  ;;  %12184 = vst [vmem:[#allocation114_spill] sm:$0xff] %v8450_v46 }
 0x497   :  { %12183 = vst [vmem:[#allocation189_spill] sm:$0xff] %v8448_v52 }
 0x49c   :  { %v8452_v40 = vpop.xlane.xlu1 %1465 }
 0x49d   :  { %12185 = vst [vmem:[#allocation134_spill] sm:$0xff] %v8452_v40  ;;  %v8456_v61 = vpop.xlane.xlu2 %1384 }
 0x49e   :  { %v8454_v38 = vpop.xlane.xlu0 %1303  ;;  %12187 = vst [vmem:[#allocation125_spill] sm:$0xff] %v8456_v61 }
 0x49f   :  { %12186 = vst [vmem:[#allocation188_spill] sm:$0xff] %v8454_v38 }
 0x4a4   :  { %v8458_v41 = vpop.xlane.xlu1 %1151 }
 0x4a5   :  { %12188 = vst [vmem:[#allocation132_spill] sm:$0xff] %v8458_v41  ;;  %v8462_v57 = vpop.xlane.xlu2 %1451 }
 0x4a6   :  { %v8460_v31 = vpop.xlane.xlu0 %1370  ;;  %12190 = vst [vmem:[#allocation119_spill] sm:$0xff] %v8462_v57 }
 0x4a7   :  { %12189 = vst [vmem:[#allocation96_spill] sm:$0xff] %v8460_v31 }
 0x4ac   :  { %v8464_v20 = vpop.xlane.xlu1 %1289 }
 0x4ad   :  { %12191 = vst [vmem:[#allocation89_spill] sm:$0xff] %v8464_v20  ;;  %v8468_v50 = vpop.xlane.xlu2 %1305 }
 0x4ae   :  { %v8466_v37 = vpop.xlane.xlu0 %1167  ;;  %12193 = vst [vmem:[#allocation112_spill] sm:$0xff] %v8468_v50 }
 0x4af   :  { %12192 = vst [vmem:[#allocation110_spill] sm:$0xff] %v8466_v37 }
 0x4b4   :  { %v8470_v56 = vpop.xlane.xlu1 %1386 }
 0x4b5   :  { %12194 = vst [vmem:[#allocation185_spill] sm:$0xff] %v8470_v56  ;;  %v8474_v40 = vpop.xlane.xlu2 %1153 }
 0x4b6   :  { %v8472_v46 = vpop.xlane.xlu0 %1467  ;;  %12196 = vst [vmem:[#allocation191_spill] sm:$0xff] %v8474_v40 }
 0x4b7   :  { %12195 = vst [vmem:[#allocation115_spill] sm:$0xff] %v8472_v46 }
 0x4bc   :  { %v8476_v38 = vpop.xlane.xlu1 %1453 }
 0x4bd   :  { %12197 = vst [vmem:[#allocation190_spill] sm:$0xff] %v8476_v38  ;;  %v8480_v41 = vpop.xlane.xlu2 %1372 }
 0x4be   :  { %v8478_v61 = vpop.xlane.xlu0 %1291  ;;  %12199 = vst [vmem:[#allocation144_spill] sm:$0xff] %v8480_v41 }
 0x4bf   :  { %12198 = vst [vmem:[#allocation128_spill] sm:$0xff] %v8478_v61 }
 0x4c4   :  { %v8482_v31 = vpop.xlane.xlu1 %1169 }
 0x4c5   :  { %12200 = vst [vmem:[#allocation141_spill] sm:$0xff] %v8482_v31  ;;  %v8486_v20 = vpop.xlane.xlu2 %1469 }
 0x4c6   :  { %v8484_v57 = vpop.xlane.xlu0 %1388  ;;  %12202 = vst [vmem:[#allocation94_spill] sm:$0xff] %v8486_v20 }
 0x4c7   :  { %12201 = vst [vmem:[#allocation98_spill] sm:$0xff] %v8484_v57 }
 0x4cc   :  { %v8488_v37 = vpop.xlane.xlu1 %1307 }
 0x4cd   :  { %12203 = vst [vmem:[#allocation113_spill] sm:$0xff] %v8488_v37  ;;  %v2020_v56 = vpop.xlane.xlu2 %2019 }
 0x4ce   :  { %v2018_v50 = vpop.xlane.xlu0 %2017  ;;  %v2050_v40 = vsub.f32 %v8239_v39, %v2020_v56 }
 0x4cf   :  { %v2049_v46 = vsub.f32 %v8234_v30, %v2018_v50 }
 0x4d0   :  { %v2067_v38 = vmul.f32 1.442695, %v2050_v40 }
 0x4d1   :  { %v2065_v9 = vmul.f32 1.442695, %v2049_v46 }
 0x4d3   :  { %6126 = vpow2.f32 %v2065_v9 }
 0x4d4   :  { %6128 = vpow2.f32 %v2067_v38  ;;  %v2022_v61 = vpop.xlane.xlu1 %2021 }
 0x4d5   :  { %v2051_v41 = vsub.f32 %v8277_v32, %v2022_v61  ;;  %v2026_v52 = vpop.xlane.xlu2 %2025 }
 0x4d6   :  { %v2024_v31 = vpop.xlane.xlu0 %2023  ;;  %v2053_v20 = vsub.f32 %v8283_v49, %v2026_v52 }
 0x4d7   :  { %v2052_v57 = vsub.f32 %v8287_v6, %v2024_v31  ;;  %v2069_v37 = vmul.f32 1.442695, %v2051_v41 }
 0x4d8   :  { %v2073_v30 = vmul.f32 1.442695, %v2053_v20 }
 0x4d9   :  { %v8495_v26 = vpop.eup %6126  ;;  %v2071_v13 = vmul.f32 1.442695, %v2052_v57  ;;  %6130 = vpow2.f32 %v2069_v37 }
 0x4da   :  { %v8497_v50 = vpop.eup %6128  ;;  %2097 = vadd.xlane.f32.xlu2 %v8495_v26 }
 0x4db   :  { %6132 = vpow2.f32 %v2071_v13  ;;  %2099 = vadd.xlane.f32.xlu1 %v8497_v50 }
 0x4dc   :  { %6134 = vpow2.f32 %v2073_v30  ;;  %v2028_v39 = vpop.xlane.xlu1 %2027 }
 0x4dd   :  { %v2054_v32 = vsub.f32 %v8321_v11, %v2028_v39  ;;  %v2032_v56 = vpop.xlane.xlu2 %2031 }
 0x4de   :  { %v2030_v6 = vpop.xlane.xlu0 %2029  ;;  %v2056_v41 = vsub.f32 %v8332_v5, %v2032_v56 }
 0x4df   :  { %v2055_v49 = vsub.f32 %v8326_v15, %v2030_v6  ;;  %v8504_v52 = vpop.eup %6130  ;;  %v2075_v38 = vmul.f32 1.442695, %v2054_v32 }
 0x4e0   :  { %v2079_v40 = vmul.f32 1.442695, %v2056_v41  ;;  %2101 = vadd.xlane.f32.xlu0 %v8504_v52 }
 0x4e1   :  { %v8506_v9 = vpop.eup %6132  ;;  %v2077_v61 = vmul.f32 1.442695, %v2055_v49  ;;  %6136 = vpow2.f32 %v2075_v38 }
 0x4e2   :  { %v8509_v37 = vpop.eup %6134  ;;  %2103 = vadd.xlane.f32.xlu2 %v8506_v9 }
 0x4e3   :  { %6138 = vpow2.f32 %v2077_v61  ;;  %2105 = vadd.xlane.f32.xlu1 %v8509_v37 }
 0x4e4   :  { %6140 = vpow2.f32 %v2079_v40  ;;  %v2034_v11 = vpop.xlane.xlu1 %2033 }
 0x4e5   :  { %v2057_v15 = vsub.f32 %v8366_v27, %v2034_v11  ;;  %v2038_v57 = vpop.xlane.xlu2 %2037 }
 0x4e6   :  { %v2036_v5 = vpop.xlane.xlu0 %2035  ;;  %v2059_v20 = vsub.f32 %v8375_v25, %v2038_v57 }
 0x4e7   :  { %v2058_v31 = vsub.f32 %v8370_v60, %v2036_v5  ;;  %v8516_v13 = vpop.eup %6136  ;;  %v2081_v46 = vmul.f32 1.442695, %v2057_v15 }
 0x4e8   :  { %v2085_v32 = vmul.f32 1.442695, %v2059_v20  ;;  %2107 = vadd.xlane.f32.xlu0 %v8516_v13 }
 0x4e9   :  { %v8518_v30 = vpop.eup %6138  ;;  %v2083_v39 = vmul.f32 1.442695, %v2058_v31  ;;  %6142 = vpow2.f32 %v2081_v46 }
 0x4ea   :  { %v8521_v6 = vpop.eup %6140  ;;  %2109 = vadd.xlane.f32.xlu2 %v8518_v30 }
 0x4eb   :  { %6144 = vpow2.f32 %v2083_v39  ;;  %2111 = vadd.xlane.f32.xlu1 %v8521_v6 }
 0x4ec   :  { %6146 = vpow2.f32 %v2085_v32  ;;  %v2040_v27 = vpop.xlane.xlu1 %2039 }
 0x4ed   :  { %v2060_v60 = vsub.f32 %v8401_v14, %v2040_v27  ;;  %v2044_v56 = vpop.xlane.xlu2 %2043 }
 0x4ee   :  { %v2042_v25 = vpop.xlane.xlu0 %2041  ;;  %v2062_v41 = vsub.f32 %v8406_v23, %v2044_v56 }
 0x4ef   :  { %v2061_v49 = vsub.f32 %v8410_v29, %v2042_v25  ;;  %v8528_v38 = vpop.eup %6142  ;;  %v2087_v61 = vmul.f32 1.442695, %v2060_v60 }
 0x4f0   :  { %v2091_v15 = vmul.f32 1.442695, %v2062_v41  ;;  %2113 = vadd.xlane.f32.xlu0 %v8528_v38  ;;  %v12204_v41 = vld [vmem:[#allocation31_spill] sm:$0xff] }
 0x4f1   :  { %v8530_v40 = vpop.eup %6144  ;;  %v2089_v11 = vmul.f32 1.442695, %v2061_v49  ;;  %6148 = vpow2.f32 %v2087_v61  ;;  %vm12205_vm13 = vcmp.gt.f32.partialorder %v12204_v41, 0.0 }
 0x4f2   :  { %v8533_v5 = vpop.eup %6146  ;;  %2115 = vadd.xlane.f32.xlu2 %v8530_v40 }
 0x4f3   :  { %6150 = vpow2.f32 %v2089_v11  ;;  %2117 = vadd.xlane.f32.xlu1 %v8533_v5 }
 0x4f4   :  { %6152 = vpow2.f32 %v2091_v15  ;;  %v2046_v14 = vpop.xlane.xlu1 %2045  ;;  %v12206_v15 = vld [vmem:[#allocation35_spill] sm:$0xff] }
 0x4f5   :  { %v2063_v23 = vsub.f32 %v8426_v24, %v2046_v14  ;;  %vm12207_vm7 = vcmp.gt.f32.partialorder %v12206_v15, 0.0 }
 0x4f6   :  { %v2048_v29 = vpop.xlane.xlu0 %2047 }
 0x4f7   :  { %v2064_v57 = vsub.f32 %v8431_v45, %v2048_v29  ;;  %v8539_v31 = vpop.eup %6148  ;;  %v2093_v20 = vmul.f32 1.442695, %v2063_v23 }
 0x4f8   :  { %2119 = vadd.xlane.f32.xlu0 %v8539_v31 }
 0x4f9   :  { %v8541_v46 = vpop.eup %6150  ;;  %v2095_v39 = vmul.f32 1.442695, %v2064_v57  ;;  %6154 = vpow2.f32 %v2093_v20  ;;  %v12208_v20 = vld [vmem:[#allocation133_spill] sm:$0xff] }
 0x4fa   :  { %v8544_v32 = vpop.eup %6152  ;;  %2121 = vadd.xlane.f32.xlu2 %v8541_v46 }
 0x4fb   :  { %6156 = vpow2.f32 %v2095_v39  ;;  %2123 = vadd.xlane.f32.xlu1 %v8544_v32 }
 0x4ff   :  { %v8548_v24 = vpop.eup %6154 }
 0x500   :  { %2125 = vadd.xlane.f32.xlu0 %v8548_v24 }
 0x501   :  { %v8550_v27 = vpop.eup %6156 }
 0x502   :  { %2127 = vadd.xlane.f32.xlu2 %v8550_v27 }
 0x54d   :  { %v2098_v45 = vpop.xlane.xlu2 %2097 }
 0x54e   :  { %v2100_v60 = vpop.xlane.xlu1 %2099  ;;  %6158 = vrcp.f32 %v2098_v45  ;;  %v12209_v45 = vld [vmem:[#allocation139_spill] sm:$0xff] }
 0x54f   :  { %6160 = vrcp.f32 %v2100_v60 }
 0x553   :  { %v2102_v56 = vpop.xlane.xlu0 %2101 }
 0x554   :  { %v6159_v25 = vpop.eup %6158  ;;  %6162 = vrcp.f32 %v2102_v56 }
 0x555   :  { %v6161_v49 = vpop.eup %6160  ;;  %v2145_v61 = vsel %vm12205_vm13, %v6159_v25, 0.0  ;;  %v2104_v11 = vpop.xlane.xlu2 %2103 }
 0x556   :  { %v2146_v14 = vsel %vm12207_vm7, %v6161_v49, 0.0  ;;  %v8559_v23 = vmul.f32 %v8495_v26, %v2145_v61  ;;  %v2106_v29 = vpop.xlane.xlu1 %2105  ;;  %6164 = vrcp.f32 %v2104_v11 }
 0x557   :  { %v8562_v57 = vmul.f32 %v8497_v50, %v2146_v14  ;;  %6166 = vrcp.f32 %v2106_v29  ;;  %v12211_v29 = vld [vmem:[#allocation34_spill] sm:$0xff] }
 0x558   :  { %v2185_v39 = vmul.f32 %v12208_v20, %v8559_v23  ;;  %vm12212_vm13 = vcmp.gt.f32.partialorder %v12211_v29, 0.0 }
 0x559   :  { %v2186_v60 = vmul.f32 %v12209_v45, %v8562_v57  ;;  %v12213_v45 = vld [vmem:[#allocation23_spill] sm:$0xff] }
 0x55a   :  { %2201 = vadd.xlane.f32.xlu1 %v2185_v39  ;;  %v6163_v56 = vpop.eup %6162  ;;  %vm12214_vm7 = vcmp.gt.f32.partialorder %v12213_v45, 0.0  ;;  %v12217_v45 = vld [vmem:[#allocation39_spill] sm:$0xff] }
 0x55b   :  { %2203 = vadd.xlane.f32.xlu0 %v2186_v60  ;;  %v2147_v61 = vsel %vm11568_vm15, %v6163_v56, 0.0  ;;  %v2108_v11 = vpop.xlane.xlu0 %2107 }
 0x55c   :  { %v6165_v26 = vpop.eup %6164  ;;  %v8573_v14 = vmul.f32 %v8504_v52, %v2147_v61  ;;  %6168 = vrcp.f32 %v2108_v11  ;;  %v12219_v61 = vld [vmem:[#allocation38_spill] sm:$0xff] }
 0x55d   :  { %v6167_v50 = vpop.eup %6166  ;;  %v2148_v41 = vsel %vm12212_vm13, %v6165_v26, 0.0  ;;  %v2110_v15 = vpop.xlane.xlu2 %2109  ;;  %vm12220_vm15 = vcmp.gt.f32.partialorder %v12219_v61, 0.0 }
 0x55e   :  { %v2149_v25 = vsel %vm12214_vm7, %v6167_v50, 0.0  ;;  %v8580_v39 = vmul.f32 %v8506_v9, %v2148_v41  ;;  %v2112_v60 = vpop.xlane.xlu1 %2111  ;;  %6170 = vrcp.f32 %v2110_v15  ;;  %v2187_v52 = vmul.f32 %v7431_v62, %v8573_v14 }
 0x55f   :  { %v8583_v56 = vmul.f32 %v8509_v37, %v2149_v25  ;;  %6172 = vrcp.f32 %v2112_v60  ;;  %v12215_v37 = vld [vmem:[#allocation26_spill] sm:$0xff]  ;;  %vm12218_vm7 = vcmp.gt.f32.partialorder %v12217_v45, 0.0 }
 0x560   :  { %v2188_v26 = vmul.f32 %v11995_v34, %v8580_v39  ;;  %2205 = vadd.xlane.f32.xlu2 %v2187_v52  ;;  %vm12216_vm13 = vcmp.gt.f32.partialorder %v12215_v37, 0.0  ;;  %v12225_v37 = vld [vmem:[#allocation41_spill] sm:$0xff]  ;;  %v12268_v34 = vld [vmem:[#allocation143_spill] sm:$0xff] }
 0x561   :  { %v2189_v9 = vmul.f32 %v12003_v53, %v8583_v56 }
 0x562   :  { %2207 = vadd.xlane.f32.xlu1 %v2188_v26  ;;  %v6169_v41 = vpop.eup %6168 }
 0x563   :  { %2209 = vadd.xlane.f32.xlu0 %v2189_v9  ;;  %v2150_v25 = vsel %vm12216_vm13, %v6169_v41, 0.0  ;;  %v2114_v11 = vpop.xlane.xlu0 %2113 }
 0x564   :  { %v6171_v15 = vpop.eup %6170  ;;  %v8596_v60 = vmul.f32 %v8516_v13, %v2150_v25  ;;  %6174 = vrcp.f32 %v2114_v11  ;;  %v12221_v11 = vld [vmem:[#allocation28_spill] sm:$0xff]  ;;  %v12223_v25 = vld [vmem:[#allocation42_spill] sm:$0xff] }
 0x565   :  { %v6173_v50 = vpop.eup %6172  ;;  %v2151_v49 = vsel %vm12218_vm7, %v6171_v15, 0.0  ;;  %v2116_v52 = vpop.xlane.xlu2 %2115  ;;  %vm12224_vm13 = vcmp.gt.f32.partialorder %v12223_v25, 0.0  ;;  %vm12226_vm7 = vcmp.gt.f32.partialorder %v12225_v37, 0.0  ;;  %v12229_v37 = vld [vmem:[#allocation46_spill] sm:$0xff] }
 0x566   :  { %v2152_v29 = vsel %vm12220_vm15, %v6173_v50, 0.0  ;;  %v8603_v26 = vmul.f32 %v8518_v30, %v2151_v49  ;;  %v2118_v9 = vpop.xlane.xlu1 %2117  ;;  %6176 = vrcp.f32 %v2116_v52  ;;  %v2190_v13 = vmul.f32 %v12015_v3, %v8596_v60 }
 0x567   :  { %v8606_v41 = vmul.f32 %v8521_v6, %v2152_v29  ;;  %6178 = vrcp.f32 %v2118_v9  ;;  %vm12222_vm15 = vcmp.gt.f32.partialorder %v12221_v11, 0.0 }
 0x568   :  { %v2191_v15 = vmul.f32 %v12030_v0, %v8603_v26  ;;  %2211 = vadd.xlane.f32.xlu2 %v2190_v13 }
 0x569   :  { %v2192_v30 = vmul.f32 %v12042_v59, %v8606_v41 }
 0x56a   :  { %2213 = vadd.xlane.f32.xlu1 %v2191_v15  ;;  %v6175_v6 = vpop.eup %6174 }
 0x56b   :  { %2215 = vadd.xlane.f32.xlu0 %v2192_v30  ;;  %v2153_v50 = vsel %vm12222_vm15, %v6175_v6, 0.0  ;;  %v2120_v52 = vpop.xlane.xlu0 %2119 }
 0x56c   :  { %v6177_v29 = vpop.eup %6176  ;;  %v8621_v61 = vmul.f32 %v8528_v38, %v2153_v50  ;;  %6180 = vrcp.f32 %v2120_v52  ;;  %v12231_v50 = vld [vmem:[#allocation45_spill] sm:$0xff] }
 0x56d   :  { %v6179_v9 = vpop.eup %6178  ;;  %v2154_v13 = vsel %vm12224_vm13, %v6177_v29, 0.0  ;;  %v2122_v45 = vpop.xlane.xlu2 %2121  ;;  %vm12230_vm13 = vcmp.gt.f32.partialorder %v12229_v37, 0.0 }
 0x56e   :  { %v2155_v49 = vsel %vm12226_vm7, %v6179_v9, 0.0  ;;  %v8628_v15 = vmul.f32 %v8530_v40, %v2154_v13  ;;  %v2124_v30 = vpop.xlane.xlu1 %2123  ;;  %6182 = vrcp.f32 %v2122_v45  ;;  %v2193_v38 = vmul.f32 %v12082_v28, %v8621_v61 }
 0x56f   :  { %v8631_v6 = vmul.f32 %v8533_v5, %v2155_v49  ;;  %6184 = vrcp.f32 %v2124_v30  ;;  %v12227_v5 = vld [vmem:[#allocation33_spill] sm:$0xff]  ;;  %vm12232_vm7 = vcmp.gt.f32.partialorder %v12231_v50, 0.0 }
 0x570   :  { %v2194_v29 = vmul.f32 %v12084_v4, %v8628_v15  ;;  %2217 = vadd.xlane.f32.xlu2 %v2193_v38  ;;  %vm12228_vm15 = vcmp.gt.f32.partialorder %v12227_v5, 0.0 }
 0x571   :  { %v2195_v40 = vmul.f32 %v12087_v19, %v8631_v6 }
 0x572   :  { %2219 = vadd.xlane.f32.xlu1 %v2194_v29  ;;  %v6181_v52 = vpop.eup %6180 }
 0x573   :  { %2221 = vadd.xlane.f32.xlu0 %v2195_v40  ;;  %v2156_v49 = vsel %vm12228_vm15, %v6181_v52, 0.0  ;;  %v2126_v9 = vpop.xlane.xlu0 %2125  ;;  %vm12328_vm15 = vcmask 64512  }
 0x574   :  { %v6183_v45 = vpop.eup %6182  ;;  %v8644_v30 = vmul.f32 %v8539_v31, %v2156_v49  ;;  %6186 = vrcp.f32 %v2126_v9 }
 0x575   :  { %v6185_v13 = vpop.eup %6184  ;;  %v2157_v25 = vsel %vm12230_vm13, %v6183_v45, 0.0  ;;  %v2128_v38 = vpop.xlane.xlu2 %2127  ;;  %vm12329_vm13 = vmmov %vm12328_vm15 }
 0x576   :  { %v2158_v11 = vsel %vm12232_vm7, %v6185_v13, 0.0  ;;  %v8651_v29 = vmul.f32 %v8541_v46, %v2157_v25  ;;  %6188 = vrcp.f32 %v2128_v38  ;;  %v2196_v52 = vmul.f32 %v12106_v7, %v8644_v30 }
 0x577   :  { %v8654_v40 = vmul.f32 %v8544_v32, %v2158_v11  ;;  %vm2998_vm7 = vcmask 130048  }
 0x578   :  { %v2197_v45 = vmul.f32 %v12112_v55, %v8651_v29  ;;  %2223 = vadd.xlane.f32.xlu2 %v2196_v52 }
 0x579   :  { %v2198_v49 = vmul.f32 %v12114_v35, %v8654_v40 }
 0x57a   :  { %2225 = vadd.xlane.f32.xlu1 %v2197_v45  ;;  %v6187_v25 = vpop.eup %6186 }
 0x57b   :  { %2227 = vadd.xlane.f32.xlu0 %v2198_v49  ;;  %v2159_v9 = vsel %vm11614_vm11, %v6187_v25, 0.0  ;;  %v12236_v25 = vld [vmem:[#allocation49_spill] sm:$0xff] }
 0x57c   :  { %v6189_v32 = vpop.eup %6188  ;;  %v8669_v13 = vmul.f32 %v8548_v24, %v2159_v9  ;;  %v12235_v24 = vld [vmem:[#allocation19_spill] sm:$0xff]  ;;  %v12240_v9 = vld [vmem:[#allocation52_spill] sm:$0xff] }
 0x57d   :  { %v2160_v31 = vsel %vm11615_vm1, %v6189_v32, 0.0  ;;  %v12239_v32 = vld [vmem:[#allocation44_spill] sm:$0xff] }
 0x57e   :  { %v8674_v52 = vmul.f32 %v8550_v27, %v2160_v31  ;;  %v2199_v50 = vmul.f32 %v12136_v42, %v8669_v13  ;;  %v12237_v27 = vld [vmem:[#allocation24_spill] sm:$0xff]  ;;  %v12238_v31 = vld [vmem:[#allocation25_spill] sm:$0xff]  ;;  %v12255_v42 = vpack.c.bf16 %v8644_v30, %v8631_v6 }
 0x580   :  { %v2200_v45 = vmul.f32 %v7769_v16, %v8674_v52  ;;  %2229 = vadd.xlane.f32.xlu2 %v2199_v50  ;;  %v12241_v50 = vld [vmem:[#allocation59_spill] sm:$0xff]  ;;  %v2386_v16 = vmul.f32 %v7352_v63, %v8559_v23 }
 0x582   :  { %2231 = vadd.xlane.f32.xlu1 %v2200_v45  ;;  %v12242_v45 = vld [vmem:[#allocation75_spill] sm:$0xff] }
 0x58f   :  { %2249 = vrot.lane.b32.xlu0 %v12235_v24, %s6505_s2  ;;  %v8698_v24 = vld [vmem:[#allocation7] sm:$0xf] }
 0x597   :  { %2255 = vrot.lane.b32.xlu0 %v12236_v25, %s6505_s2  ;;  %v8701_v25 = vperm.slane %v8698_v24, 0 }
 0x598   :  { %2251 = vrot.lane.b32.xlu2 %v12237_v27, %s6505_s2 }
 0x599   :  { %12243 = vst [vmem:[#allocation120_spill] sm:$0xff] %v8701_v25 }
 0x59b   :  { %2253 = vrot.lane.b32.xlu1 %v12238_v31, %s6505_s2 }
 0x59f   :  { %2259 = vrot.lane.b32.xlu0 %v12239_v32, %s6505_s2 }
 0x5a0   :  { %2257 = vrot.lane.b32.xlu2 %v12240_v9, %s6505_s2 }
 0x5a3   :  { %2261 = vrot.lane.b32.xlu1 %v12241_v50, %s6505_s2 }
 0x5a8   :  { %2263 = vrot.lane.b32.xlu2 %v12242_v45, %s6505_s2 }
 0x5cd   :  { %v2202_v27 = vpop.xlane.xlu1 %2201 }
 0x5ce   :  { %v2204_v49 = vpop.xlane.xlu0 %2203  ;;  %v2233_v31 = vmul.f32 %v2202_v27, %v8701_v25 }
 0x5cf   :  { %v2234_v32 = vmul.f32 %v2204_v49, %v8701_v25 }
 0x5d0   :  { %2289 = vrot.lane.b32.xlu0 %v2233_v31, %s6497_s0 }
 0x5d1   :  { %2291 = vrot.lane.b32.xlu1 %v2234_v32, %s6497_s0 }
 0x5d3   :  { %v2206_v9 = vpop.xlane.xlu2 %2205 }
 0x5d4   :  { %v2235_v46 = vmul.f32 %v2206_v9, %v8701_v25 }
 0x5d5   :  { %v2208_v50 = vpop.xlane.xlu1 %2207 }
 0x5d6   :  { %v2210_v45 = vpop.xlane.xlu0 %2209  ;;  %v2236_v11 = vmul.f32 %v2208_v50, %v8701_v25  ;;  %2293 = vrot.lane.b32.xlu2 %v2235_v46, %s6497_s0 }
 0x5d7   :  { %v2237_v38 = vmul.f32 %v2210_v45, %v8701_v25 }
 0x5d8   :  { %2295 = vrot.lane.b32.xlu0 %v2236_v11, %s6497_s0 }
 0x5d9   :  { %2297 = vrot.lane.b32.xlu1 %v2237_v38, %s6497_s0 }
 0x5db   :  { %v2212_v49 = vpop.xlane.xlu2 %2211 }
 0x5dc   :  { %v2238_v31 = vmul.f32 %v2212_v49, %v8701_v25 }
 0x5dd   :  { %v2214_v27 = vpop.xlane.xlu1 %2213 }
 0x5de   :  { %v2216_v32 = vpop.xlane.xlu0 %2215  ;;  %v2239_v37 = vmul.f32 %v2214_v27, %v8701_v25  ;;  %2299 = vrot.lane.b32.xlu2 %v2238_v31, %s6497_s0 }
 0x5df   :  { %v2240_v9 = vmul.f32 %v2216_v32, %v8701_v25 }
 0x5e0   :  { %2301 = vrot.lane.b32.xlu0 %v2239_v37, %s6497_s0 }
 0x5e1   :  { %2303 = vrot.lane.b32.xlu1 %v2240_v9, %s6497_s0 }
 0x5e3   :  { %v2218_v46 = vpop.xlane.xlu2 %2217 }
 0x5e4   :  { %v2241_v11 = vmul.f32 %v2218_v46, %v8701_v25 }
 0x5e5   :  { %v2220_v50 = vpop.xlane.xlu1 %2219 }
 0x5e6   :  { %v2222_v38 = vpop.xlane.xlu0 %2221  ;;  %v2242_v45 = vmul.f32 %v2220_v50, %v8701_v25  ;;  %2305 = vrot.lane.b32.xlu2 %v2241_v11, %s6497_s0 }
 0x5e7   :  { %v2243_v49 = vmul.f32 %v2222_v38, %v8701_v25 }
 0x5e8   :  { %2307 = vrot.lane.b32.xlu0 %v2242_v45, %s6497_s0 }
 0x5e9   :  { %2309 = vrot.lane.b32.xlu1 %v2243_v49, %s6497_s0 }
 0x5eb   :  { %v2224_v27 = vpop.xlane.xlu2 %2223 }
 0x5ec   :  { %v2244_v37 = vmul.f32 %v2224_v27, %v8701_v25 }
 0x5ed   :  { %v2226_v31 = vpop.xlane.xlu1 %2225 }
 0x5ee   :  { %v2228_v32 = vpop.xlane.xlu0 %2227  ;;  %v2245_v9 = vmul.f32 %v2226_v31, %v8701_v25  ;;  %2311 = vrot.lane.b32.xlu2 %v2244_v37, %s6497_s0 }
 0x5ef   :  { %v2246_v46 = vmul.f32 %v2228_v32, %v8701_v25 }
 0x5f0   :  { %2313 = vrot.lane.b32.xlu0 %v2245_v9, %s6497_s0 }
 0x5f1   :  { %2315 = vrot.lane.b32.xlu1 %v2246_v46, %s6497_s0 }
 0x5f3   :  { %v2230_v50 = vpop.xlane.xlu2 %2229 }
 0x5f4   :  { %v2247_v38 = vmul.f32 %v2230_v50, %v8701_v25  ;;  %v2387_v50 = vmul.f32 %v7376_v54, %v8562_v57 }
 0x5f5   :  { %v2232_v11 = vpop.xlane.xlu1 %2231 }
 0x5f6   :  { %v2248_v45 = vmul.f32 %v2232_v11, %v8701_v25  ;;  %2317 = vrot.lane.b32.xlu2 %v2247_v38, %s6497_s0  ;;  %v2388_v11 = vmul.f32 %v7427_v17, %v8573_v14  ;;  %v2389_v38 = vmul.f32 %v11999_v12, %v8580_v39  ;;  %v12267_v12 = vld [vmem:[#allocation69_spill] sm:$0xff]  ;;  %v8921_v17 = vperm.slane %v8698_v24, 2 }
 0x5f8   :  { %2319 = vrot.lane.b32.xlu0 %v2248_v45, %s6497_s0  ;;  %v2390_v45 = vmul.f32 %v12008_v51, %v8583_v56  ;;  %12276 = vst [vmem:[#allocation159_spill] sm:$0xff] %v8921_v17 }
 0x5fb   :  { %v2252_v49 = vpop.permute.xlu2 %2251 }
 0x601   :  { %v2250_v31 = vpop.permute.xlu0 %2249 }
 0x603   :  { %v2258_v27 = vpop.permute.xlu2 %2257 }
 0x609   :  { %v2256_v37 = vpop.permute.xlu0 %2255 }
 0x60b   :  { %v2264_v32 = vpop.permute.xlu2 %2263 }
 0x60c   :  { %2337 = vmatpush.bf16.msrb.mxu0 %v2264_v32  ;;  %v2393_v32 = vmul.f32 %v7722_v1, %v8606_v41 }
 0x60d   :  { %v2254_v5 = vpop.permute.xlu1 %2253 }
 0x611   :  { %v2260_v46 = vpop.permute.xlu0 %2259 }
 0x615   :  { %v2262_v9 = vpop.permute.xlu1 %2261 }
 0x616   :  { %2338 = vmatpush.bf16.msrb.mxu0 %v2262_v9  ;;  %v12245_v9 = vld [vmem:[#allocation149_spill] sm:$0xff] }
 0x61a   :  { %2339 = vmatpush.bf16.msrb.mxu0 %v2260_v46  ;;  %v2395_v46 = vmul.f32 %v12245_v9, %v8628_v15 }
 0x61b   :  { %2402 = vadd.xlane.f32.xlu1 %v2386_v16  ;;  %v2391_v16 = vmul.f32 %v12014_v21, %v8596_v60 }
 0x61e   :  { %2340 = vmatpush.bf16.msrb.mxu0 %v2258_v27  ;;  %v2392_v27 = vmul.f32 %v12036_v58, %v8603_v26 }
 0x61f   :  { %2404 = vadd.xlane.f32.xlu2 %v2387_v50 }
 0x622   :  { %2406 = vadd.xlane.f32.xlu0 %v2388_v11  ;;  %2341 = vmatpush.bf16.msrb.mxu0 %v2256_v37  ;;  %v12244_v37 = vpack.c.bf16 %v8562_v57, %v8559_v23 }
 0x623   :  { %2408 = vadd.xlane.f32.xlu1 %v2389_v38  ;;  %v12248_v38 = vld [vmem:[#allocation58_spill] sm:$0xff] }
 0x626   :  { %2342 = vmatpush.bf16.msrb.mxu0 %v2254_v5  ;;  %v2394_v5 = vmul.f32 %v12094_v2, %v8621_v61 }
 0x627   :  { %2410 = vadd.xlane.f32.xlu2 %v2390_v45  ;;  %v2398_v45 = vmul.f32 %v12248_v38, %v8651_v29 }
 0x62a   :  { %2412 = vadd.xlane.f32.xlu0 %v2391_v16  ;;  %2343 = vmatpush.bf16.msrb.mxu0 %v2252_v49  ;;  %v12246_v49 = vld [vmem:[#allocation163_spill] sm:$0xff]  ;;  %v2399_v16 = vmul.f32 %v12131_v44, %v8654_v40 }
 0x62b   :  { %2414 = vadd.xlane.f32.xlu1 %v2392_v27  ;;  %v2396_v50 = vmul.f32 %v12246_v49, %v8631_v6  ;;  %v12249_v27 = vld [vmem:[#allocation183_spill] sm:$0xff] }
 0x62e   :  { %2344 = vmatpush.bf16.msrb.mxu0 %v2250_v31  ;;  %v12247_v31 = vld [vmem:[#allocation172_spill] sm:$0xff] }
 0x62f   :  { %2416 = vadd.xlane.f32.xlu2 %v2393_v32  ;;  %v2397_v11 = vmul.f32 %v12247_v31, %v8644_v30  ;;  %v2400_v32 = vmul.f32 %v12249_v27, %v8669_v13  ;;  %v12258_v31 = vpack.c.bf16 %v8654_v40, %v8651_v29 }
 0x630   :  { %v8783_v44 = vpop.permute.xlu2 %2293 }
 0x631   :  { %2345 = vmatmul.bf16.vlgmr.msrb.gmra.mxu0 %v12244_v37  ;;  %v12251_v37 = vld [vmem:[#allocation76_spill] sm:$0xff] }
 0x632   :  { %2418 = vadd.xlane.f32.xlu0 %v2394_v5  ;;  %v12250_v5 = vpack.c.bf16 %v8580_v39, %v8573_v14 }
 0x633   :  { %2420 = vadd.xlane.f32.xlu1 %v2395_v46  ;;  %v2401_v46 = vmul.f32 %v12251_v37, %v8674_v52 }
 0x637   :  { %2422 = vadd.xlane.f32.xlu2 %v2396_v50  ;;  %v12252_v50 = vpack.c.bf16 %v8596_v60, %v8583_v56 }
 0x63a   :  { %2424 = vadd.xlane.f32.xlu0 %v2397_v11 }
 0x63b   :  { %2426 = vadd.xlane.f32.xlu1 %v2398_v45 }
 0x63f   :  { %2428 = vadd.xlane.f32.xlu2 %v2399_v16  ;;  %v12253_v16 = vpack.c.bf16 %v8606_v41, %v8603_v26 }
 0x641   :  { %2350 = vmatmul.bf16.gmra.mxu0 %v12250_v5 }
 0x642   :  { %2430 = vadd.xlane.f32.xlu0 %v2400_v32  ;;  %v8776_v11 = vpop.permute.xlu0 %2289  ;;  %v8789_v32 = vpop.permute.xlu2 %2299 }
 0x643   :  { %2432 = vadd.xlane.f32.xlu1 %v2401_v46  ;;  %v8778_v45 = vpop.permute.xlu1 %2291 }
 0x64a   :  { %v8785_v5 = vpop.permute.xlu0 %2295  ;;  %v8798_v38 = vpop.permute.xlu2 %2305 }
 0x64b   :  { %v8787_v35 = vpop.permute.xlu1 %2297 }
 0x651   :  { %2355 = vmatmul.bf16.gmra.mxu0 %v12252_v50  ;;  %v12254_v50 = vpack.c.bf16 %v8628_v15, %v8621_v61 }
 0x652   :  { %v8791_v46 = vpop.permute.xlu0 %2301  ;;  %v8804_v27 = vpop.permute.xlu2 %2311 }
 0x653   :  { %v8796_v37 = vpop.permute.xlu1 %2303 }
 0x65a   :  { %v8800_v55 = vpop.permute.xlu0 %2307  ;;  %v8813_v19 = vpop.permute.xlu2 %2317 }
 0x661   :  { %2360 = vmatmul.bf16.gmra.mxu0 %v12253_v16  ;;  %v8802_v16 = vpop.permute.xlu1 %2309 }
 0x662   :  { %v8809_v49 = vpop.permute.xlu0 %2313 }
 0x669   :  { %v8811_v9 = vpop.permute.xlu1 %2315 }
 0x66a   :  { %v8818_v4 = vpop.permute.xlu0 %2319 }
 0x66b   :  { %12257 = vst [vmem:[#allocation116_spill] sm:$0xff] %v8818_v4 }
 0x671   :  { %2365 = vmatmul.bf16.gmra.mxu0 %v12254_v50  ;;  %v8816_v50 = vperm.slane %v8698_v24, 1 }
 0x673   :  { %12256 = vst [vmem:[#allocation83_spill] sm:$0xff] %v8816_v50 }
 0x681   :  { %2370 = vmatmul.bf16.gmra.mxu0 %v12255_v42 }
 0x68e   :  { %v2403_v58 = vpop.xlane.xlu1 %2402 }
 0x68f   :  { %v2434_v0 = vmul.f32 %v2403_v58, %v8816_v50 }
 0x691   :  { %2466 = vrot.lane.b32.xlu2 %v2434_v0, %s6497_s0  ;;  %2375 = vmatmul.bf16.gmra.mxu0 %v12258_v31  ;;  %v12259_v31 = vpack.c.bf16 %v8674_v52, %v8669_v13 }
 0x692   :  { %v2405_v42 = vpop.xlane.xlu2 %2404 }
 0x693   :  { %v2435_v7 = vmul.f32 %v2405_v42, %v8816_v50 }
 0x695   :  { %v2407_v2 = vpop.xlane.xlu0 %2406  ;;  %2468 = vrot.lane.b32.xlu0 %v2435_v7, %s6497_s0 }
 0x696   :  { %v2436_v28 = vmul.f32 %v2407_v2, %v8816_v50  ;;  %v2409_v1 = vpop.xlane.xlu1 %2408 }
 0x697   :  { %v2437_v58 = vmul.f32 %v2409_v1, %v8816_v50 }
 0x698   :  { %2470 = vrot.lane.b32.xlu1 %v2436_v28, %s6497_s0 }
 0x69a   :  { %v2411_v21 = vpop.xlane.xlu2 %2410 }
 0x69b   :  { %v2438_v0 = vmul.f32 %v2411_v21, %v8816_v50 }
 0x69d   :  { %v2413_v59 = vpop.xlane.xlu0 %2412  ;;  %2472 = vrot.lane.b32.xlu0 %v2437_v58, %s6497_s0  ;;  %2474 = vrot.lane.b32.xlu2 %v2438_v0, %s6497_s0 }
 0x69e   :  { %v2415_v3 = vpop.xlane.xlu1 %2414  ;;  %v2439_v7 = vmul.f32 %v2413_v59, %v8816_v50 }
 0x69f   :  { %v2440_v28 = vmul.f32 %v2415_v3, %v8816_v50 }
 0x6a1   :  { %2380 = vmatmul.bf16.gmra.mxu0 %v12259_v31 }
 0x6a2   :  { %v2417_v2 = vpop.xlane.xlu2 %2416 }
 0x6a3   :  { %v2441_v42 = vmul.f32 %v2417_v2, %v8816_v50 }
 0x6a5   :  { %v2419_v1 = vpop.xlane.xlu0 %2418  ;;  %2476 = vrot.lane.b32.xlu0 %v2439_v7, %s6497_s0  ;;  %2478 = vrot.lane.b32.xlu2 %v2440_v28, %s6497_s0 }
 0x6a6   :  { %v2421_v51 = vpop.xlane.xlu1 %2420  ;;  %2480 = vrot.lane.b32.xlu1 %v2441_v42, %s6497_s0  ;;  %v2442_v58 = vmul.f32 %v2419_v1, %v8816_v50 }
 0x6a7   :  { %v2443_v0 = vmul.f32 %v2421_v51, %v8816_v50 }
 0x6aa   :  { %v2423_v21 = vpop.xlane.xlu2 %2422 }
 0x6ab   :  { %v2444_v31 = vmul.f32 %v2423_v21, %v8816_v50 }
 0x6ad   :  { %2482 = vrot.lane.b32.xlu0 %v2442_v58, %s6497_s0  ;;  %2484 = vrot.lane.b32.xlu2 %v2443_v0, %s6497_s0  ;;  %v2425_v3 = vpop.xlane.xlu0 %2424  ;;  %v12260_v0 = vld [vmem:[#allocation136_spill] sm:$0xff] }
 0x6ae   :  { %v2427_v59 = vpop.xlane.xlu1 %2426  ;;  %2486 = vrot.lane.b32.xlu1 %v2444_v31, %s6497_s0  ;;  %v2445_v7 = vmul.f32 %v2425_v3, %v8816_v50  ;;  %v2530_v31 = vmul.f32 %v12260_v0, %v8559_v23  ;;  %v12261_v3 = vld [vmem:[#allocation157_spill] sm:$0xff] }
 0x6af   :  { %v2446_v28 = vmul.f32 %v2427_v59, %v8816_v50  ;;  %v2532_v59 = vmul.f32 %v12261_v3, %v8573_v14 }
 0x6b2   :  { %v2429_v2 = vpop.xlane.xlu2 %2428 }
 0x6b3   :  { %v2447_v42 = vmul.f32 %v2429_v2, %v8816_v50  ;;  %v12262_v2 = vld [vmem:[#allocation146_spill] sm:$0xff] }
 0x6b5   :  { %2488 = vrot.lane.b32.xlu0 %v2445_v7, %s6497_s0  ;;  %2490 = vrot.lane.b32.xlu2 %v2446_v28, %s6497_s0  ;;  %v2431_v51 = vpop.xlane.xlu0 %2430  ;;  %v2531_v7 = vmul.f32 %v12262_v2, %v8562_v57  ;;  %v12263_v28 = vld [vmem:[#allocation168_spill] sm:$0xff] }
 0x6b6   :  { %2492 = vrot.lane.b32.xlu1 %v2447_v42, %s6497_s0  ;;  %v2433_v1 = vpop.xlane.xlu1 %2432  ;;  %v2448_v21 = vmul.f32 %v2431_v51, %v8816_v50  ;;  %v2533_v42 = vmul.f32 %v12263_v28, %v8580_v39  ;;  %v12264_v51 = vld [vmem:[#allocation173_spill] sm:$0xff]  ;;  %v2538_v28 = vmul.f32 %v12268_v34, %v8621_v61  ;;  %v12273_v34 = vld [vmem:[#allocation86_spill] sm:$0xff] }
 0x6b7   :  { %v2449_v58 = vmul.f32 %v2433_v1, %v8816_v50  ;;  %v2534_v1 = vmul.f32 %v12264_v51, %v8583_v56  ;;  %v12271_v51 = vld [vmem:[#allocation56_spill] sm:$0xff] }
 0x6bd   :  { %2494 = vrot.lane.b32.xlu0 %v2448_v21, %s6497_s0  ;;  %2496 = vrot.lane.b32.xlu2 %v2449_v58, %s6497_s0  ;;  %v12265_v21 = vld [vmem:[#allocation61_spill] sm:$0xff] }
 0x6be   :  { %v2535_v58 = vmul.f32 %v12265_v21, %v8596_v60  ;;  %v12270_v21 = vld [vmem:[#allocation165_spill] sm:$0xff] }
 0x6e0   :  { %2546 = vadd.xlane.f32.xlu1 %v2530_v31  ;;  %v12266_v31 = vld [vmem:[#allocation182_spill] sm:$0xff] }
 0x6e1   :  { %v2536_v53 = vmul.f32 %v12266_v31, %v8603_v26  ;;  %v2541_v31 = vmul.f32 %v12271_v51, %v8644_v30 }
 0x6e6   :  { %2550 = vadd.xlane.f32.xlu2 %v2532_v59  ;;  %v2537_v59 = vmul.f32 %v12267_v12, %v8606_v41 }
 0x6e7   :  { %2548 = vadd.xlane.f32.xlu0 %v2531_v7  ;;  %v12269_v7 = vld [vmem:[#allocation153_spill] sm:$0xff] }
 0x6e8   :  { %2552 = vadd.xlane.f32.xlu1 %v2533_v42  ;;  %v2539_v42 = vmul.f32 %v12269_v7, %v8628_v15  ;;  %v2544_v7 = vmul.f32 %v12160_v33, %v8669_v13 }
 0x6ee   :  { %2554 = vadd.xlane.f32.xlu2 %v2534_v1  ;;  %v2540_v1 = vmul.f32 %v12270_v21, %v8631_v6 }
 0x6ef   :  { %2556 = vadd.xlane.f32.xlu0 %v2535_v58 }
 0x6f0   :  { %2558 = vadd.xlane.f32.xlu1 %v2536_v53  ;;  %v12272_v53 = vld [vmem:[#allocation177_spill] sm:$0xff] }
 0x6f1   :  { %v2542_v58 = vmul.f32 %v12272_v53, %v8651_v29 }
 0x6f6   :  { %2560 = vadd.xlane.f32.xlu2 %v2537_v59  ;;  %v2543_v59 = vmul.f32 %v12273_v34, %v8654_v40 }
 0x6f7   :  { %2562 = vadd.xlane.f32.xlu0 %v2538_v28  ;;  %v2545_v28 = vmul.f32 %v7779_v43, %v8674_v52 }
 0x6f8   :  { %2564 = vadd.xlane.f32.xlu1 %v2539_v42 }
 0x6fe   :  { %2566 = vadd.xlane.f32.xlu2 %v2540_v1  ;;  %v8892_v1 = vpop.permute.xlu2 %2466 }
 0x6ff   :  { %2568 = vadd.xlane.f32.xlu0 %v2541_v31 }
 0x700   :  { %2570 = vadd.xlane.f32.xlu1 %v2542_v58 }
 0x706   :  { %2572 = vadd.xlane.f32.xlu2 %v2543_v59  ;;  %v8894_v21 = vpop.permute.xlu2 %2474 }
 0x707   :  { %2574 = vadd.xlane.f32.xlu0 %v2544_v7  ;;  %v8890_v42 = vpop.permute.xlu0 %2468 }
 0x708   :  { %2576 = vadd.xlane.f32.xlu1 %v2545_v28 }
 0x70a   :  { %v8898_v58 = vpop.permute.xlu1 %2470 }
 0x70e   :  { %v8900_v34 = vpop.permute.xlu2 %2478 }
 0x70f   :  { %v8896_v31 = vpop.permute.xlu0 %2472 }
 0x716   :  { %v8906_v33 = vpop.permute.xlu2 %2484 }
 0x717   :  { %v8902_v53 = vpop.permute.xlu0 %2476 }
 0x718   :  { %v8904_v59 = vpop.permute.xlu1 %2480 }
 0x71e   :  { %v8912_v43 = vpop.permute.xlu2 %2490 }
 0x71f   :  { %v8908_v7 = vpop.permute.xlu0 %2482  ;;  %12274 = vst [vmem:[#allocation193_spill] sm:$0xff] %v8912_v43 }
 0x720   :  { %v8910_v28 = vpop.permute.xlu1 %2486 }
 0x726   :  { %v8918_v3 = vpop.permute.xlu2 %2496 }
 0x727   :  { %v8914_v51 = vpop.permute.xlu0 %2488  ;;  %12275 = vst [vmem:[#allocation131_spill] sm:$0xff] %v8918_v3 }
 0x728   :  { %v8916_v12 = vpop.permute.xlu1 %2492 }
 0x72f   :  { %v8923_v62 = vpop.permute.xlu0 %2494 }
 0x753   :  { %v2547_v2 = vpop.xlane.xlu1 %2546 }
 0x754   :  { %v2578_v54 = vmul.f32 %v2547_v2, %v8921_v17 }
 0x756   :  { %2610 = vrot.lane.b32.xlu2 %v2578_v54, %s6497_s0 }
 0x759   :  { %v2551_v0 = vpop.xlane.xlu2 %2550 }
 0x75a   :  { %v2580_v63 = vmul.f32 %v2551_v0, %v8921_v17  ;;  %v2549_v20 = vpop.xlane.xlu0 %2548 }
 0x75b   :  { %v2579_v10 = vmul.f32 %v2549_v20, %v8921_v17  ;;  %v2553_v36 = vpop.xlane.xlu1 %2552 }
 0x75c   :  { %2614 = vrot.lane.b32.xlu1 %v2580_v63, %s6497_s0  ;;  %v2581_v25 = vmul.f32 %v2553_v36, %v8921_v17 }
 0x75d   :  { %2612 = vrot.lane.b32.xlu0 %v2579_v10, %s6497_s0 }
 0x761   :  { %v2555_v22 = vpop.xlane.xlu2 %2554 }
 0x762   :  { %v2582_v47 = vmul.f32 %v2555_v22, %v8921_v17  ;;  %v2557_v50 = vpop.xlane.xlu0 %2556 }
 0x763   :  { %v2583_v2 = vmul.f32 %v2557_v50, %v8921_v17  ;;  %v2559_v54 = vpop.xlane.xlu1 %2558 }
 0x764   :  { %2618 = vrot.lane.b32.xlu2 %v2582_v47, %s6497_s0  ;;  %v2584_v10 = vmul.f32 %v2559_v54, %v8921_v17 }
 0x765   :  { %2616 = vrot.lane.b32.xlu0 %v2581_v25, %s6497_s0  ;;  %2620 = vrot.lane.b32.xlu1 %v2583_v2, %s6497_s0 }
 0x769   :  { %v2561_v20 = vpop.xlane.xlu2 %2560 }
 0x76a   :  { %v2585_v63 = vmul.f32 %v2561_v20, %v8921_v17  ;;  %v2563_v0 = vpop.xlane.xlu0 %2562 }
 0x76b   :  { %v2586_v22 = vmul.f32 %v2563_v0, %v8921_v17  ;;  %v2565_v3 = vpop.xlane.xlu1 %2564 }
 0x76c   :  { %2624 = vrot.lane.b32.xlu2 %v2585_v63, %s6497_s0  ;;  %v2587_v50 = vmul.f32 %v2565_v3, %v8921_v17 }
 0x76d   :  { %2622 = vrot.lane.b32.xlu0 %v2584_v10, %s6497_s0  ;;  %2626 = vrot.lane.b32.xlu1 %v2586_v22, %s6497_s0 }
 0x771   :  { %v2567_v36 = vpop.xlane.xlu2 %2566 }
 0x772   :  { %v2588_v47 = vmul.f32 %v2567_v36, %v8921_v17  ;;  %v2569_v25 = vpop.xlane.xlu0 %2568 }
 0x773   :  { %v2589_v2 = vmul.f32 %v2569_v25, %v8921_v17  ;;  %v2571_v54 = vpop.xlane.xlu1 %2570 }
 0x774   :  { %2630 = vrot.lane.b32.xlu2 %v2588_v47, %s6497_s0  ;;  %v2590_v10 = vmul.f32 %v2571_v54, %v8921_v17  ;;  %v12277_v47 = vld [vmem:[#allocation137_spill] sm:$0xff] }
 0x775   :  { %2628 = vrot.lane.b32.xlu0 %v2587_v50, %s6497_s0  ;;  %2632 = vrot.lane.b32.xlu1 %v2589_v2, %s6497_s0  ;;  %v2674_v25 = vmul.f32 %v12277_v47, %v8559_v23  ;;  %v12278_v50 = vld [vmem:[#allocation148_spill] sm:$0xff]  ;;  %v12279_v54 = vld [vmem:[#allocation53_spill] sm:$0xff] }
 0x776   :  { %v2675_v2 = vmul.f32 %v12278_v50, %v8562_v57 }
 0x779   :  { %v2573_v20 = vpop.xlane.xlu2 %2572 }
 0x77a   :  { %v2591_v63 = vmul.f32 %v2573_v20, %v8921_v17  ;;  %v2575_v0 = vpop.xlane.xlu0 %2574  ;;  %v2677_v20 = vmul.f32 %v12279_v54, %v8580_v39  ;;  %v12285_v39 = vld [vmem:[#allocation158_spill] sm:$0xff] }
 0x77b   :  { %v2592_v22 = vmul.f32 %v2575_v0, %v8921_v17  ;;  %v2577_v3 = vpop.xlane.xlu1 %2576 }
 0x77c   :  { %2636 = vrot.lane.b32.xlu2 %v2591_v63, %s6497_s0  ;;  %v2593_v36 = vmul.f32 %v2577_v3, %v8921_v17  ;;  %v12280_v63 = vld [vmem:[#allocation160_spill] sm:$0xff]  ;;  %v12282_v3 = vld [vmem:[#allocation91_spill] sm:$0xff] }
 0x77d   :  { %2634 = vrot.lane.b32.xlu0 %v2590_v10, %s6497_s0  ;;  %2638 = vrot.lane.b32.xlu1 %v2592_v22, %s6497_s0  ;;  %v2676_v0 = vmul.f32 %v12280_v63, %v8573_v14  ;;  %v12281_v10 = vld [vmem:[#allocation74_spill] sm:$0xff]  ;;  %v2680_v23 = vmul.f32 %v12282_v3, %v8603_v26  ;;  %v2683_v14 = vmul.f32 %v12285_v39, %v8628_v15  ;;  %v12288_v26 = vld [vmem:[#allocation60_spill] sm:$0xff] }
 0x77e   :  { %v2678_v22 = vmul.f32 %v12281_v10, %v8583_v56  ;;  %v12286_v56 = vld [vmem:[#allocation147_spill] sm:$0xff]  ;;  %v2688_v15 = vmul.f32 %v12167_v48, %v8669_v13 }
 0x785   :  { %2640 = vrot.lane.b32.xlu0 %v2593_v36, %s6497_s0  ;;  %v12283_v36 = vld [vmem:[#allocation84_spill] sm:$0xff] }
 0x786   :  { %v2679_v57 = vmul.f32 %v12283_v36, %v8596_v60  ;;  %v2686_v60 = vmul.f32 %v12155_v18, %v8651_v29  ;;  %v9024_v18 = vperm.slane %v8698_v24, 3 }
 0x788   :  { %12292 = vst [vmem:[#allocation121_spill] sm:$0xff] %v9024_v18 }
 0x7a5   :  { %2690 = vadd.xlane.f32.xlu2 %v2674_v25  ;;  %v12284_v25 = vld [vmem:[#allocation186_spill] sm:$0xff] }
 0x7a7   :  { %2692 = vadd.xlane.f32.xlu1 %v2675_v2  ;;  %v2681_v2 = vmul.f32 %v12284_v25, %v8606_v41  ;;  %v2685_v41 = vmul.f32 %v12288_v26, %v8644_v30 }
 0x7ad   :  { %2696 = vadd.xlane.f32.xlu2 %v2677_v20  ;;  %v2682_v20 = vmul.f32 %v12286_v56, %v8621_v61  ;;  %v2689_v61 = vmul.f32 %v7788_v8, %v8674_v52 }
 0x7af   :  { %2694 = vadd.xlane.f32.xlu0 %v2676_v0  ;;  %2698 = vadd.xlane.f32.xlu1 %v2678_v22  ;;  %v12287_v0 = vld [vmem:[#allocation169_spill] sm:$0xff] }
 0x7b0   :  { %v2684_v22 = vmul.f32 %v12287_v0, %v8631_v6  ;;  %v8991_v29 = vpop.permute.xlu2 %2610 }
 0x7b5   :  { %2702 = vadd.xlane.f32.xlu2 %v2680_v23  ;;  %v12289_v23 = vld [vmem:[#allocation70_spill] sm:$0xff] }
 0x7b7   :  { %2700 = vadd.xlane.f32.xlu0 %v2679_v57  ;;  %2704 = vadd.xlane.f32.xlu1 %v2681_v2  ;;  %v2687_v57 = vmul.f32 %v12289_v23, %v8654_v40 }
 0x7bd   :  { %2708 = vadd.xlane.f32.xlu2 %v2683_v14 }
 0x7be   :  { %v8995_v30 = vpop.permute.xlu2 %2618 }
 0x7bf   :  { %2706 = vadd.xlane.f32.xlu0 %v2682_v20  ;;  %2710 = vadd.xlane.f32.xlu1 %v2684_v22 }
 0x7c5   :  { %2714 = vadd.xlane.f32.xlu2 %v2686_v60 }
 0x7c6   :  { %v9001_v20 = vpop.permute.xlu2 %2624 }
 0x7c7   :  { %2712 = vadd.xlane.f32.xlu0 %v2685_v41  ;;  %2716 = vadd.xlane.f32.xlu1 %v2687_v57  ;;  %v9013_v57 = vpop.f32.mrf.mxu0 }
 0x7cd   :  { %2720 = vadd.xlane.f32.xlu2 %v2689_v61 }
 0x7ce   :  { %v8993_v2 = vpop.permute.xlu1 %2614  ;;  %v9007_v13 = vpop.permute.xlu2 %2630 }
 0x7cf   :  { %2718 = vadd.xlane.f32.xlu0 %v2688_v15  ;;  %v8989_v6 = vpop.permute.xlu0 %2612  ;;  %v9021_v23 = vpop.f32.mrf.mxu0 }
 0x7d6   :  { %v9015_v61 = vpop.permute.xlu2 %2636 }
 0x7d7   :  { %v8997_v14 = vpop.permute.xlu0 %2616  ;;  %v8999_v40 = vpop.permute.xlu1 %2620  ;;  %12290 = vst [vmem:[#allocation192_spill] sm:$0xff] %v9015_v61 }
 0x7d8   :  { %v2351_v56 = vpop.f32.mrf.mxu0 }
 0x7df   :  { %v9003_v52 = vpop.permute.xlu0 %2622  ;;  %v9005_v22 = vpop.permute.xlu1 %2626 }
 0x7e7   :  { %v9009_v60 = vpop.permute.xlu0 %2628  ;;  %v9011_v41 = vpop.permute.xlu1 %2632 }
 0x7ef   :  { %v9017_v15 = vpop.permute.xlu0 %2634  ;;  %v9019_v8 = vpop.permute.xlu1 %2638 }
 0x7f0   :  { %12291 = vst [vmem:[#allocation95_spill] sm:$0xff] %v9017_v15 }
 0x7f7   :  { %v9027_v39 = vpop.permute.xlu0 %2640 }
 0x7f8   :  { %12293 = vst [vmem:[#allocation195_spill] sm:$0xff] %v9027_v39 }
 0x818   :  { %v2691_v48 = vpop.xlane.xlu2 %2690 }
 0x819   :  { %v2722_v0 = vmul.f32 %v2691_v48, %v9024_v18  ;;  %v9038_v48 = vpop.f32.mrf.mxu0 }
 0x81a   :  { %v2693_v3 = vpop.xlane.xlu1 %2692 }
 0x81b   :  { %v2723_v26 = vmul.f32 %v2693_v3, %v9024_v18  ;;  %2754 = vrot.lane.b32.xlu1 %v2722_v0, %s6497_s0 }
 0x81d   :  { %2756 = vrot.lane.b32.xlu0 %v2723_v26, %s6497_s0 }
 0x820   :  { %v2697_v25 = vpop.xlane.xlu2 %2696 }
 0x821   :  { %v2725_v63 = vmul.f32 %v2697_v25, %v9024_v18 }
 0x822   :  { %v2695_v36 = vpop.xlane.xlu0 %2694  ;;  %v2699_v10 = vpop.xlane.xlu1 %2698 }
 0x823   :  { %v2724_v54 = vmul.f32 %v2695_v36, %v9024_v18  ;;  %v2726_v24 = vmul.f32 %v2699_v10, %v9024_v18  ;;  %v2356_v10 = vpop.f32.mrf.mxu0 }
 0x825   :  { %2758 = vrot.lane.b32.xlu2 %v2724_v54, %s6497_s0  ;;  %2762 = vrot.lane.b32.xlu1 %v2726_v24, %s6497_s0 }
 0x826   :  { %2760 = vrot.lane.b32.xlu0 %v2725_v63, %s6497_s0 }
 0x828   :  { %v2703_v3 = vpop.xlane.xlu2 %2702 }
 0x829   :  { %v2728_v36 = vmul.f32 %v2703_v3, %v9024_v18 }
 0x82a   :  { %v2701_v0 = vpop.xlane.xlu0 %2700  ;;  %v2705_v26 = vpop.xlane.xlu1 %2704 }
 0x82b   :  { %v2727_v50 = vmul.f32 %v2701_v0, %v9024_v18  ;;  %v2729_v47 = vmul.f32 %v2705_v26, %v9024_v18  ;;  %v2358_v39 = vpop.f32.mrf.mxu0 }
 0x82d   :  { %2764 = vrot.lane.b32.xlu2 %v2727_v50, %s6497_s0  ;;  %2768 = vrot.lane.b32.xlu1 %v2729_v47, %s6497_s0 }
 0x82e   :  { %2766 = vrot.lane.b32.xlu0 %v2728_v36, %s6497_s0 }
 0x830   :  { %v2709_v54 = vpop.xlane.xlu2 %2708 }
 0x831   :  { %v2731_v0 = vmul.f32 %v2709_v54, %v9024_v18 }
 0x832   :  { %v2707_v63 = vpop.xlane.xlu0 %2706  ;;  %v2711_v25 = vpop.xlane.xlu1 %2710 }
 0x833   :  { %v2730_v24 = vmul.f32 %v2707_v63, %v9024_v18  ;;  %v2732_v17 = vmul.f32 %v2711_v25, %v9024_v18 }
 0x835   :  { %2770 = vrot.lane.b32.xlu2 %v2730_v24, %s6497_s0  ;;  %2774 = vrot.lane.b32.xlu1 %v2732_v17, %s6497_s0 }
 0x836   :  { %2772 = vrot.lane.b32.xlu0 %v2731_v0, %s6497_s0  ;;  %v2361_v0 = vpop.f32.mrf.mxu0 }
 0x838   :  { %v2715_v50 = vpop.xlane.xlu2 %2714 }
 0x839   :  { %v2734_v63 = vmul.f32 %v2715_v50, %v9024_v18 }
 0x83a   :  { %v2713_v47 = vpop.xlane.xlu0 %2712  ;;  %v2717_v3 = vpop.xlane.xlu1 %2716 }
 0x83b   :  { %v2733_v26 = vmul.f32 %v2713_v47, %v9024_v18  ;;  %v2735_v36 = vmul.f32 %v2717_v3, %v9024_v18 }
 0x83d   :  { %2776 = vrot.lane.b32.xlu2 %v2733_v26, %s6497_s0  ;;  %2780 = vrot.lane.b32.xlu1 %v2735_v36, %s6497_s0 }
 0x83e   :  { %2778 = vrot.lane.b32.xlu0 %v2734_v63, %s6497_s0  ;;  %v2363_v47 = vpop.f32.mrf.mxu0  ;;  %v2352_v63 = vadd.f32 %v2351_v56, %v8783_v44  ;;  %v2347_v44 = vadd.f32 %v9013_v57, %v8776_v11 }
 0x840   :  { %v2721_v54 = vpop.xlane.xlu2 %2720  ;;  %v2516_v4 = vadd.f32 %v8898_v58, %v2352_v63  ;;  %v2514_v56 = vadd.f32 %v8892_v1, %v2347_v44 }
 0x841   :  { %v2737_v24 = vmul.f32 %v2721_v54, %v9024_v18 }
 0x842   :  { %v2719_v17 = vpop.xlane.xlu0 %2718 }
 0x843   :  { %v2736_v25 = vmul.f32 %v2719_v17, %v9024_v18  ;;  %v2660_v17 = vadd.f32 %v8993_v2, %v2516_v4  ;;  %v2349_v4 = vadd.f32 %v9021_v23, %v8778_v45 }
 0x845   :  { %2782 = vrot.lane.b32.xlu2 %v2736_v25, %s6497_s0  ;;  %v2359_v25 = vadd.f32 %v2358_v39, %v8789_v32  ;;  %v2515_v39 = vadd.f32 %v8890_v42, %v2349_v4 }
 0x846   :  { %2784 = vrot.lane.b32.xlu0 %v2737_v24, %s6497_s0  ;;  %v2366_v3 = vpop.f32.mrf.mxu0 }
 0x847   :  { %v2519_v24 = vadd.f32 %v8902_v53, %v2359_v25  ;;  %v2367_v32 = vadd.f32 %v2366_v3, %v8798_v38  ;;  %v2659_v11 = vadd.f32 %v8989_v6, %v2515_v39  ;;  %v2357_v38 = vadd.f32 %v2356_v10, %v8787_v35 }
 0x849   :  { %v2663_v61 = vadd.f32 %v8999_v40, %v2519_v24  ;;  %v2522_v53 = vadd.f32 %v8908_v7, %v2367_v32  ;;  %v2658_v40 = vadd.f32 %v8991_v29, %v2514_v56  ;;  %v2354_v7 = vadd.f32 %v9038_v48, %v8785_v5 }
 0x84a   :  { %v2518_v6 = vadd.f32 %v8894_v21, %v2357_v38  ;;  %v2364_v5 = vadd.f32 %v2363_v47, %v8796_v37 }
 0x84c   :  { %v2662_v63 = vadd.f32 %v8995_v30, %v2518_v6  ;;  %v12304_v6 = vld [vmem:[#allocation20_spill] sm:$0xff] }
 0x84e   :  { %v9062_v50 = vpop.f32.mrf.mxu0 }
 0x856   :  { %v9064_v26 = vpop.f32.mrf.mxu0 }
 0x85e   :  { %v2373_v36 = vpop.f32.mrf.mxu0 }
 0x85f   :  { %v2374_v42 = vadd.f32 %v2373_v36, %v8804_v27 }
 0x861   :  { %v2525_v29 = vadd.f32 %v8914_v51, %v2374_v42  ;;  %v2362_v51 = vadd.f32 %v2361_v0, %v8791_v46  ;;  %v2372_v0 = vadd.f32 %v9064_v26, %v8802_v16  ;;  %v12302_v42 = vld [vmem:[#allocation16_spill] sm:$0xff] }
 0x863   :  { %v2669_v35 = vadd.f32 %v9011_v41, %v2525_v29  ;;  %v12305_v29 = vld [vmem:[#allocation40_spill] sm:$0xff] }
 0x866   :  { %v9070_v18 = vpop.f32.mrf.mxu0 }
 0x867   :  { %v2377_v26 = vadd.f32 %v9070_v18, %v8809_v49 }
 0x86e   :  { %v2378_v2 = vpop.f32.mrf.mxu0 }
 0x86f   :  { %v2379_v39 = vadd.f32 %v2378_v2, %v8811_v9  ;;  %v12298_v2 = vld [vmem:[#allocation116_spill] sm:$0xff] }
 0x876   :  { %v2381_v3 = vpop.f32.mrf.mxu0 }
 0x877   :  { %v2382_v21 = vadd.f32 %v2381_v3, %v8813_v19  ;;  %v5763_v3 = vld [vmem:[%s11312_s6] sm:$0xff] }
 0x878   :  { %3030 = vmatpush.bf16.msrb.mxu2 %v5763_v3 }
 0x879   :  { %v2528_v30 = vadd.f32 %v8923_v62, %v2382_v21  ;;  %v2369_v62 = vadd.f32 %v9062_v50, %v8800_v55  ;;  %v12294_v55 = vld [vmem:[#allocation17_spill] sm:$0xff]  ;;  %v12296_v50 = vld [vmem:[#allocation192_spill] sm:$0xff]  ;;  %v1221_v21 = vpop.f32.mrf.mxu2 }
 0x87b   :  { %v2672_v37 = vadd.f32 %v9019_v8, %v2528_v30  ;;  %v2524_v8 = vadd.f32 %v8910_v28, %v2372_v0  ;;  %v12295_v28 = vld [vmem:[#allocation193_spill] sm:$0xff] }
 0x87f   :  { %v2759_v15 = vpop.permute.xlu2 %2758 }
 0x880   :  { %v2804_v54 = vadd.f32 %v2759_v15, %v2660_v17 }
 0x881   :  { %v1223_v30 = vpop.f32.mrf.mxu2 }
 0x882   :  { %2838 = vrot.lane.b32.xlu0 %v2804_v54, %s6506_s26 }
 0x887   :  { %v2765_v43 = vpop.permute.xlu2 %2764 }
 0x888   :  { %v2807_v58 = vadd.f32 %v2765_v43, %v2663_v61  ;;  %v2666_v43 = vadd.f32 %v9005_v22, %v2522_v53  ;;  %v2517_v22 = vadd.f32 %v8896_v31, %v2354_v7  ;;  %v2521_v31 = vadd.f32 %v8904_v59, %v2364_v5  ;;  %v12303_v7 = vld [vmem:[#allocation29_spill] sm:$0xff] }
 0x889   :  { %v2668_v59 = vadd.f32 %v9007_v13, %v2524_v8  ;;  %v2526_v13 = vadd.f32 %v12295_v28, %v2377_v26  ;;  %v12323_v28 = vld [vmem:[#allocation159_spill] sm:$0xff] }
 0x88a   :  { %2844 = vrot.lane.b32.xlu0 %v2807_v58, %s6506_s26  ;;  %v2661_v27 = vadd.f32 %v8997_v14, %v2517_v22  ;;  %v2520_v14 = vadd.f32 %v8900_v34, %v2362_v51  ;;  %v2665_v41 = vadd.f32 %v9001_v20, %v2521_v31  ;;  %v2523_v34 = vadd.f32 %v8906_v33, %v2369_v62  ;;  %v12306_v22 = vld [vmem:[#allocation18_spill] sm:$0xff] }
 0x88b   :  { %v2527_v33 = vadd.f32 %v8916_v12, %v2379_v39  ;;  %v12300_v12 = vld [vmem:[#allocation131_spill] sm:$0xff]  ;;  %v12321_v39 = vld [vmem:[#allocation206_spill] sm:$0xff] }
 0x88c   :  { %v2664_v19 = vadd.f32 %v9003_v52, %v2520_v14  ;;  %v2667_v20 = vadd.f32 %v9009_v60, %v2523_v34  ;;  %v2383_v60 = vpop.f32.mrf.mxu0 }
 0x88d   :  { %v2755_v15 = vpop.permute.xlu1 %2754  ;;  %v2671_v53 = vadd.f32 %v12296_v50, %v2527_v33  ;;  %v12322_v33 = vld [vmem:[#allocation198_spill] sm:$0xff] }
 0x88e   :  { %v2802_v57 = vadd.f32 %v2755_v15, %v2658_v40  ;;  %v12297_v40 = vld [vmem:[#allocation95_spill] sm:$0xff] }
 0x88f   :  { %v2757_v45 = vpop.permute.xlu0 %2756  ;;  %v2771_v23 = vpop.permute.xlu2 %2770  ;;  %v2670_v18 = vadd.f32 %v12297_v40, %v2526_v13  ;;  %v1391_v13 = vmul.f32 %v12323_v28, %v12322_v33 }
 0x890   :  { %v2803_v1 = vadd.f32 %v2757_v45, %v2659_v11  ;;  %v2810_v61 = vadd.f32 %v2771_v23, %v2666_v43  ;;  %2834 = vrot.lane.b32.xlu1 %v2802_v57, %s6506_s26  ;;  %v2384_v11 = vadd.f32 %v2383_v60, %v12298_v2  ;;  %v12299_v57 = vld [vmem:[#allocation22_spill] sm:$0xff]  ;;  %v12301_v23 = vld [vmem:[#allocation195_spill] sm:$0xff] }
 0x892   :  { %2836 = vrot.lane.b32.xlu2 %v2803_v1, %s6506_s26  ;;  %2850 = vrot.lane.b32.xlu0 %v2810_v61, %s6506_s26  ;;  %v2529_v45 = vadd.f32 %v12300_v12, %v2384_v11 }
 0x894   :  { %v2673_v1 = vadd.f32 %v12301_v23, %v2529_v45 }
 0x897   :  { %v2763_v10 = vpop.permute.xlu1 %2762  ;;  %v2777_v36 = vpop.permute.xlu2 %2776 }
 0x898   :  { %v2806_v17 = vadd.f32 %v2763_v10, %v2662_v63  ;;  %v2761_v54 = vpop.permute.xlu0 %2760  ;;  %v2813_v25 = vadd.f32 %v2777_v36, %v2669_v35  ;;  %v12307_v63 = vld [vmem:[#allocation27_spill] sm:$0xff]  ;;  %v12308_v35 = vld [vmem:[#allocation50_spill] sm:$0xff]  ;;  %v12310_v10 = vld [vmem:[#allocation36_spill] sm:$0xff] }
 0x899   :  { %v2805_v24 = vadd.f32 %v2761_v54, %v2661_v27  ;;  %v12309_v27 = vld [vmem:[#allocation21_spill] sm:$0xff]  ;;  %v12311_v36 = vld [vmem:[#allocation32_spill] sm:$0xff]  ;;  %v12313_v54 = vld [vmem:[#allocation43_spill] sm:$0xff] }
 0x89a   :  { %2842 = vrot.lane.b32.xlu2 %v2806_v17, %s6506_s26  ;;  %2856 = vrot.lane.b32.xlu0 %v2813_v25, %s6506_s26  ;;  %v12312_v17 = vld [vmem:[#allocation47_spill] sm:$0xff]  ;;  %v12314_v25 = vld [vmem:[#allocation54_spill] sm:$0xff] }
 0x89b   :  { %2840 = vrot.lane.b32.xlu1 %v2805_v24, %s6506_s26  ;;  %v12315_v24 = vld [vmem:[#allocation51_spill] sm:$0xff] }
 0x89f   :  { %v2769_v48 = vpop.permute.xlu1 %2768  ;;  %v2783_v47 = vpop.permute.xlu2 %2782 }
 0x8a0   :  { %v2809_v44 = vadd.f32 %v2769_v48, %v2665_v41  ;;  %v2767_v58 = vpop.permute.xlu0 %2766  ;;  %v2816_v4 = vadd.f32 %v2783_v47, %v2672_v37  ;;  %v1226_v37 = vpop.f32.mrf.mxu2 }
 0x8a1   :  { %v2808_v46 = vadd.f32 %v2767_v58, %v2664_v19  ;;  %v12317_v58 = vld [vmem:[#allocation120_spill] sm:$0xff] }
 0x8a2   :  { %2848 = vrot.lane.b32.xlu2 %v2809_v44, %s6506_s26  ;;  %2862 = vrot.lane.b32.xlu0 %v2816_v4, %s6506_s26  ;;  %v12316_v44 = vld [vmem:[#allocation196_spill] sm:$0xff] }
 0x8a3   :  { %2846 = vrot.lane.b32.xlu1 %v2808_v46, %s6506_s26  ;;  %v1172_v4 = vmul.f32 %v12317_v58, %v12316_v44  ;;  %v12318_v46 = vld [vmem:[#allocation204_spill] sm:$0xff] }
 0x8a4   :  { %v1173_v0 = vmul.f32 %v12317_v58, %v12318_v46  ;;  %v12333_v44 = vld [vmem:[#allocation108_spill] sm:$0xff] }
 0x8a5   :  { %v1222_v62 = vadd.f32 %v1221_v21, %v1172_v4  ;;  %v12334_v46 = vld [vmem:[#allocation124_spill] sm:$0xff] }
 0x8a7   :  { %v2775_v52 = vpop.permute.xlu1 %2774 }
 0x8a8   :  { %v2812_v56 = vadd.f32 %v2775_v52, %v2668_v59  ;;  %v2773_v16 = vpop.permute.xlu0 %2772  ;;  %v1228_v8 = vpop.f32.mrf.mxu2  ;;  %v12320_v52 = vld [vmem:[#allocation83_spill] sm:$0xff] }
 0x8a9   :  { %v2811_v32 = vadd.f32 %v2773_v16, %v2667_v20  ;;  %v12319_v20 = vld [vmem:[#allocation199_spill] sm:$0xff]  ;;  %v1224_v16 = vadd.f32 %v1223_v30, %v1173_v0  ;;  %v1312_v4 = vmul.f32 %v12320_v52, %v12333_v44  ;;  %v1393_v0 = vmul.f32 %v12323_v28, %v12334_v46 }
 0x8aa   :  { %2854 = vrot.lane.b32.xlu2 %v2812_v56, %s6506_s26  ;;  %2900 = vrot.lane.b32.xlu0 %v12294_v55, %s6507_s27  ;;  %v1310_v56 = vmul.f32 %v12320_v52, %v12319_v20  ;;  %v1311_v55 = vmul.f32 %v12320_v52, %v12321_v39 }
 0x8ab   :  { %2852 = vrot.lane.b32.xlu1 %v2811_v32, %s6506_s26 }
 0x8ac   :  { %v1326_v32 = vadd.f32 %v1310_v56, %v1222_v62  ;;  %v1327_v60 = vadd.f32 %v1311_v55, %v1224_v16  ;;  %v12335_v62 = vld [vmem:[#allocation127_spill] sm:$0xff]  ;;  %v12336_v55 = vld [vmem:[#allocation126_spill] sm:$0xff] }
 0x8ad   :  { %v1394_v20 = vmul.f32 %v12323_v28, %v12335_v62  ;;  %v12347_v62 = vld [vmem:[#allocation191_spill] sm:$0xff] }
 0x8ae   :  { %v1407_v50 = vadd.f32 %v1391_v13, %v1326_v32  ;;  %v12338_v13 = vld [vmem:[#allocation118_spill] sm:$0xff] }
 0x8af   :  { %v2781_v49 = vpop.permute.xlu1 %2780 }
 0x8b0   :  { %v2815_v15 = vadd.f32 %v2781_v49, %v2671_v53  ;;  %v2779_v9 = vpop.permute.xlu0 %2778  ;;  %v12324_v53 = vld [vmem:[#allocation207_spill] sm:$0xff] }
 0x8b1   :  { %v2814_v43 = vadd.f32 %v2779_v9, %v2670_v18  ;;  %v1392_v40 = vmul.f32 %v12323_v28, %v12324_v53  ;;  %v12326_v9 = vld [vmem:[#allocation121_spill] sm:$0xff] }
 0x8b2   :  { %2860 = vrot.lane.b32.xlu2 %v2815_v15, %s6506_s26  ;;  %2906 = vrot.lane.b32.xlu0 %v12299_v57, %s6507_s27  ;;  %v12325_v15 = vld [vmem:[#allocation197_spill] sm:$0xff] }
 0x8b3   :  { %2858 = vrot.lane.b32.xlu1 %v2814_v43, %s6506_s26  ;;  %v1472_v2 = vmul.f32 %v12326_v9, %v12325_v15  ;;  %v1408_v11 = vadd.f32 %v1392_v40, %v1327_v60  ;;  %v1231_v43 = vpop.f32.mrf.mxu2  ;;  %v12327_v57 = vld [vmem:[#allocation205_spill] sm:$0xff]  ;;  %v1177_v60 = vmul.f32 %v12317_v58, %v12338_v13  ;;  %v12339_v15 = vld [vmem:[#allocation82_spill] sm:$0xff] }
 0x8b4   :  { %v1473_v12 = vmul.f32 %v12326_v9, %v12327_v57 }
 0x8b5   :  { %v1488_v45 = vadd.f32 %v1472_v2, %v1407_v50  ;;  %v1176_v2 = vmul.f32 %v12317_v58, %v12339_v15 }
 0x8b8   :  { %v2785_v61 = vpop.permute.xlu0 %2784 }
 0x8b9   :  { %v2817_v38 = vadd.f32 %v2785_v61, %v2673_v1  ;;  %v1489_v1 = vadd.f32 %v1473_v12, %v1408_v11 }
 0x8ba   :  { %2898 = vrot.lane.b32.xlu2 %v12302_v42, %s6507_s27  ;;  %2912 = vrot.lane.b32.xlu0 %v12303_v7, %s6507_s27 }
 0x8bb   :  { %2864 = vrot.lane.b32.xlu1 %v2817_v38, %s6506_s26 }
 0x8c2   :  { %2904 = vrot.lane.b32.xlu2 %v12304_v6, %s6507_s27  ;;  %2918 = vrot.lane.b32.xlu0 %v12305_v29, %s6507_s27 }
 0x8c3   :  { %2902 = vrot.lane.b32.xlu1 %v12306_v22, %s6507_s27 }
 0x8ca   :  { %2910 = vrot.lane.b32.xlu2 %v12307_v63, %s6507_s27  ;;  %2924 = vrot.lane.b32.xlu0 %v12308_v35, %s6507_s27  ;;  %v1233_v63 = vpop.f32.mrf.mxu2 }
 0x8cb   :  { %2908 = vrot.lane.b32.xlu1 %v12309_v27, %s6507_s27  ;;  %v12330_v27 = vld [vmem:[#allocation123_spill] sm:$0xff] }
 0x8d2   :  { %2916 = vrot.lane.b32.xlu2 %v12310_v10, %s6507_s27  ;;  %v1175_v10 = vmul.f32 %v12317_v58, %v12330_v27 }
 0x8d3   :  { %2914 = vrot.lane.b32.xlu1 %v12311_v36, %s6507_s27  ;;  %v12331_v36 = vld [vmem:[#allocation90_spill] sm:$0xff] }
 0x8da   :  { %2922 = vrot.lane.b32.xlu2 %v12312_v17, %s6507_s27  ;;  %v1174_v17 = vmul.f32 %v12317_v58, %v12331_v36 }
 0x8db   :  { %2920 = vrot.lane.b32.xlu1 %v12313_v54, %s6507_s27  ;;  %v12332_v54 = vld [vmem:[#allocation105_spill] sm:$0xff] }
 0x8dc   :  { %v1227_v21 = vadd.f32 %v1226_v37, %v1174_v17  ;;  %v12337_v37 = vld [vmem:[#allocation100_spill] sm:$0xff] }
 0x8dd   :  { %v1474_v33 = vmul.f32 %v12326_v9, %v12337_v37  ;;  %v12350_v37 = vld [vmem:[#allocation128_spill] sm:$0xff] }
 0x8de   :  { %v1328_v56 = vadd.f32 %v1312_v4, %v1227_v21 }
 0x8e0   :  { %v1409_v39 = vadd.f32 %v1393_v0, %v1328_v56 }
 0x8e2   :  { %2928 = vrot.lane.b32.xlu2 %v12314_v25, %s6507_s27  ;;  %v1313_v25 = vmul.f32 %v12320_v52, %v12332_v54  ;;  %v1490_v40 = vadd.f32 %v1474_v33, %v1409_v39  ;;  %v12344_v54 = vld [vmem:[#allocation130_spill] sm:$0xff]  ;;  %v1317_v33 = vmul.f32 %v12320_v52, %v12350_v37 }
 0x8e3   :  { %2926 = vrot.lane.b32.xlu1 %v12315_v24, %s6507_s27 }
 0x8ec   :  { %v2837_v5 = vpop.permute.xlu2 %2836 }
 0x8ed   :  { %v2883_v42 = vsel %vm12329_vm13, %v1489_v1, %v2837_v5  ;;  %v1229_v5 = vadd.f32 %v1228_v8, %v1175_v10  ;;  %v1475_v8 = vmul.f32 %v12326_v9, %v12336_v55  ;;  %v1234_v1 = vadd.f32 %v1233_v63, %v1177_v60  ;;  %v12349_v55 = vld [vmem:[#allocation132_spill] sm:$0xff] }
 0x8ee   :  { %v1395_v63 = vmul.f32 %v12323_v28, %v12344_v54 }
 0x8ef   :  { %v1329_v30 = vadd.f32 %v1313_v25, %v1229_v5  ;;  %v12345_v5 = vld [vmem:[#allocation189_spill] sm:$0xff] }
 0x8f1   :  { %v1410_v16 = vadd.f32 %v1394_v20, %v1329_v30  ;;  %v12346_v30 = vld [vmem:[#allocation111_spill] sm:$0xff]  ;;  %v1179_v20 = vmul.f32 %v12317_v58, %v12347_v62  ;;  %v12360_v62 = vld [vmem:[#allocation101_spill] sm:$0xff] }
 0x8f2   :  { %v1476_v44 = vmul.f32 %v12326_v9, %v12346_v30 }
 0x8f3   :  { %v1491_v50 = vadd.f32 %v1475_v8, %v1410_v16  ;;  %v1178_v8 = vmul.f32 %v12317_v58, %v12349_v55 }
 0x8f4   :  { %v9173_v51 = vpop.permute.xlu0 %2838  ;;  %v9175_v31 = vpop.permute.xlu2 %2842 }
 0x8fc   :  { %v9177_v14 = vpop.permute.xlu0 %2844  ;;  %v9179_v41 = vpop.permute.xlu2 %2848 }
 0x902   :  { %v2835_v47 = vpop.permute.xlu1 %2834 }
 0x903   :  { %v2882_v61 = vsel %vm12328_vm15, %v1488_v45, %v2835_v47  ;;  %v1236_v47 = vpop.f32.mrf.mxu2  ;;  %vm12340_vm15 = vmmov %vm12329_vm13  ;;  %v12341_v45 = vld [vmem:[#allocation122_spill] sm:$0xff] }
 0x904   :  { %v9181_v19 = vpop.permute.xlu0 %2850  ;;  %v9183_v48 = vpop.permute.xlu2 %2854 }
 0x90b   :  { %v1238_v57 = vpop.f32.mrf.mxu2 }
 0x90c   :  { %v9189_v34 = vpop.permute.xlu0 %2856  ;;  %v9193_v26 = vpop.permute.xlu2 %2860 }
 0x90d   :  { %v2841_v59 = vpop.permute.xlu1 %2840 }
 0x90e   :  { %v2885_v11 = vsel %vm12340_vm15, %v1491_v50, %v2841_v59  ;;  %vm12348_vm15 = vmmov %vm12329_vm13  ;;  %v12351_v50 = vld [vmem:[#allocation89_spill] sm:$0xff] }
 0x913   :  { %v1241_v21 = vpop.f32.mrf.mxu2 }
 0x914   :  { %v9201_v18 = vpop.permute.xlu0 %2862  ;;  %v2899_v23 = vpop.permute.xlu2 %2898 }
 0x915   :  { %v9203_v49 = vpop.permute.xlu1 %2846  ;;  %v2946_v38 = vadd.f32 %v2899_v23, %v2882_v61  ;;  %v1314_v23 = vmul.f32 %v12320_v52, %v12341_v45  ;;  %v2884_v61 = vsel %vm12329_vm13, %v1490_v40, %v9173_v51  ;;  %v1239_v40 = vadd.f32 %v1238_v57, %v1179_v20 }
 0x917   :  { %v2962_v22 = vmax.f32 %v2946_v38, 0.0 }
 0x91c   :  { %v2901_v7 = vpop.permute.xlu0 %2900  ;;  %v2905_v53 = vpop.permute.xlu2 %2904 }
 0x91d   :  { %v9211_v6 = vpop.permute.xlu1 %2852  ;;  %v2947_v29 = vadd.f32 %v2901_v7, %v2883_v42  ;;  %v2949_v12 = vadd.f32 %v2905_v53, %v2885_v11  ;;  %v1232_v7 = vadd.f32 %v1231_v43, %v1176_v2  ;;  %v1477_v43 = vmul.f32 %v12326_v9, %v12345_v5 }
 0x91e   :  { %v1316_v53 = vmul.f32 %v12320_v52, %v12351_v50  ;;  %v1237_v2 = vadd.f32 %v1236_v47, %v1178_v8  ;;  %v1333_v11 = vadd.f32 %v1317_v33, %v1239_v40 }
 0x91f   :  { %v2963_v3 = vmax.f32 %v2947_v29, 0.0  ;;  %v12342_v29 = vld [vmem:[#allocation109_spill] sm:$0xff]  ;;  %v2965_v27 = vmax.f32 %v2949_v12, 0.0  ;;  %v1330_v10 = vadd.f32 %v1314_v23, %v1232_v7  ;;  %v12352_v23 = vld [vmem:[#allocation144_spill] sm:$0xff] }
 0x920   :  { %v1332_v45 = vadd.f32 %v1316_v53, %v1237_v2  ;;  %v12364_v53 = vld [vmem:[#allocation210_spill] sm:$0xff] }
 0x921   :  { %v2978_v35 = vpack.c.bf16 %v2963_v3, %v2962_v22  ;;  %v1315_v22 = vmul.f32 %v12320_v52, %v12342_v29  ;;  %v12343_v3 = vld [vmem:[#allocation180_spill] sm:$0xff]  ;;  %v1411_v51 = vadd.f32 %v1395_v63, %v1330_v10  ;;  %v12354_v29 = vld [vmem:[#allocation190_spill] sm:$0xff]  ;;  %v1481_v40 = vmul.f32 %v12326_v9, %v12364_v53 }
 0x922   :  { %v1479_v57 = vmul.f32 %v12326_v9, %v12354_v29  ;;  %v12368_v29 = vld [vmem:[#allocation107_spill] sm:$0xff]  ;;  %v12378_v53 = vld [vmem:[#allocation106_spill] sm:$0xff] }
 0x923   :  { %5731 = vmatmul.msk.bf16.vlgmr.msrb.gmra.mxu2 %vm2998_vm7, %v2978_v35  ;;  %v1396_v35 = vmul.f32 %v12323_v28, %v12343_v3  ;;  %v1331_v36 = vadd.f32 %v1315_v22, %v1234_v1  ;;  %v1492_v0 = vadd.f32 %v1476_v44, %v1411_v51  ;;  %v1398_v1 = vmul.f32 %v12323_v28, %v12352_v23  ;;  %v12355_v22 = vld [vmem:[#allocation119_spill] sm:$0xff]  ;;  %v12359_v44 = vld [vmem:[#allocation201_spill] sm:$0xff] }
 0x924   :  { %v2907_v16 = vpop.permute.xlu0 %2906  ;;  %v1478_v47 = vmul.f32 %v12326_v9, %v12355_v22 }
 0x925   :  { %v9220_v24 = vpop.permute.xlu1 %2858  ;;  %v1412_v25 = vadd.f32 %v1396_v35, %v1331_v36  ;;  %v2886_v13 = vsel %vm12329_vm13, %v1492_v0, %v9175_v31  ;;  %v1414_v7 = vadd.f32 %v1398_v1, %v1333_v11  ;;  %v12365_v11 = vld [vmem:[#allocation104_spill] sm:$0xff] }
 0x926   :  { %v2950_v60 = vadd.f32 %v2907_v16, %v2886_v13  ;;  %v12361_v16 = vld [vmem:[#allocation202_spill] sm:$0xff]  ;;  %v12363_v13 = vld [vmem:[#allocation203_spill] sm:$0xff] }
 0x927   :  { %v1493_v4 = vadd.f32 %v1477_v43, %v1412_v25  ;;  %v1495_v3 = vadd.f32 %v1479_v57, %v1414_v7  ;;  %v12358_v25 = vld [vmem:[#allocation208_spill] sm:$0xff]  ;;  %v1321_v57 = vmul.f32 %v12320_v52, %v12368_v29 }
 0x928   :  { %v2966_v12 = vmax.f32 %v2950_v60, 0.0  ;;  %v1181_v51 = vmul.f32 %v12317_v58, %v12358_v25  ;;  %v1480_v60 = vmul.f32 %v12326_v9, %v12363_v13  ;;  %v12371_v25 = vld [vmem:[#allocation117_spill] sm:$0xff] }
 0x929   :  { %v2887_v56 = vsel %vm12348_vm15, %v1493_v4, %v9177_v14  ;;  %v1243_v14 = vpop.f32.mrf.mxu2  ;;  %vm12357_vm15 = vmmov %vm12329_vm13  ;;  %v1318_v4 = vmul.f32 %v12320_v52, %v12359_v44 }
 0x92a   :  { %v2889_v10 = vsel %vm12357_vm15, %v1495_v3, %v9179_v41  ;;  %v1319_v41 = vmul.f32 %v12320_v52, %v12360_v62  ;;  %vm12366_vm15 = vmmov %vm12329_vm13  ;;  %v12374_v62 = vld [vmem:[#allocation114_spill] sm:$0xff] }
 0x92c   :  { %v2913_v35 = vpop.permute.xlu0 %2912 }
 0x92d   :  { %v9228_v32 = vpop.permute.xlu1 %2864  ;;  %v2953_v63 = vadd.f32 %v2913_v35, %v2889_v10  ;;  %v12369_v35 = vld [vmem:[#allocation103_spill] sm:$0xff]  ;;  %v12370_v10 = vld [vmem:[#allocation170_spill] sm:$0xff] }
 0x92f   :  { %v2969_v0 = vmax.f32 %v2953_v63, 0.0 }
 0x931   :  { %v1246_v54 = vpop.f32.mrf.mxu2 }
 0x935   :  { %v2903_v38 = vpop.permute.xlu1 %2902 }
 0x936   :  { %v2948_v42 = vadd.f32 %v2903_v38, %v2884_v61  ;;  %v12353_v38 = vld [vmem:[#allocation96_spill] sm:$0xff] }
 0x938   :  { %v2964_v59 = vmax.f32 %v2948_v42, 0.0  ;;  %v1397_v42 = vmul.f32 %v12323_v28, %v12353_v38 }
 0x939   :  { %v1248_v33 = vpop.f32.mrf.mxu2 }
 0x93a   :  { %v2979_v17 = vpack.c.bf16 %v2965_v27, %v2964_v59  ;;  %v1413_v31 = vadd.f32 %v1397_v42, %v1332_v45  ;;  %v12356_v27 = vld [vmem:[#allocation200_spill] sm:$0xff] }
 0x93b   :  { %v1180_v59 = vmul.f32 %v12317_v58, %v12356_v27 }
 0x93c   :  { %5732 = vmatmul.msk.bf16.gmra.mxu2 %vm2998_vm7, %v2979_v17  ;;  %v1494_v36 = vadd.f32 %v1478_v47, %v1413_v31  ;;  %v2911_v17 = vpop.permute.xlu2 %2910 }
 0x93d   :  { %v2909_v46 = vpop.permute.xlu1 %2908  ;;  %v1242_v5 = vadd.f32 %v1241_v21, %v1180_v59  ;;  %v12362_v21 = vld [vmem:[#allocation209_spill] sm:$0xff] }
 0x93e   :  { %v2951_v39 = vadd.f32 %v2909_v46, %v2887_v56  ;;  %v2888_v43 = vsel %vm12329_vm13, %v1494_v36, %v9203_v49  ;;  %v1244_v46 = vadd.f32 %v1243_v14, %v1181_v51  ;;  %v1400_v37 = vmul.f32 %v12323_v28, %v12362_v21 }
 0x93f   :  { %v2952_v30 = vadd.f32 %v2911_v17, %v2888_v43  ;;  %v1334_v20 = vadd.f32 %v1318_v4, %v1242_v5  ;;  %v1183_v14 = vmul.f32 %v12317_v58, %v12365_v11  ;;  %v1402_v36 = vmul.f32 %v12323_v28, %v12370_v10  ;;  %v12372_v5 = vld [vmem:[#allocation174_spill] sm:$0xff]  ;;  %v12379_v11 = vld [vmem:[#allocation125_spill] sm:$0xff] }
 0x940   :  { %v2967_v15 = vmax.f32 %v2951_v39, 0.0  ;;  %v1399_v39 = vmul.f32 %v12323_v28, %v12361_v16  ;;  %v1335_v55 = vadd.f32 %v1319_v41, %v1244_v46  ;;  %v1185_v41 = vmul.f32 %v12317_v58, %v12374_v62  ;;  %v2919_v16 = vpop.permute.xlu0 %2918 }
 0x941   :  { %v2968_v56 = vmax.f32 %v2952_v30, 0.0  ;;  %v1249_v42 = vadd.f32 %v1248_v33, %v1183_v14  ;;  %v1251_v47 = vpop.f32.mrf.mxu2  ;;  %v12373_v30 = vld [vmem:[#allocation102_spill] sm:$0xff]  ;;  %v12377_v33 = vld [vmem:[#allocation188_spill] sm:$0xff]  ;;  %v1404_v14 = vmul.f32 %v12323_v28, %v12379_v11 }
 0x942   :  { %v2980_v61 = vpack.c.bf16 %v2967_v15, %v2966_v12  ;;  %v1415_v49 = vadd.f32 %v1399_v39, %v1334_v20  ;;  %v1416_v50 = vadd.f32 %v1400_v37, %v1335_v55  ;;  %v1482_v44 = vmul.f32 %v12326_v9, %v12373_v30  ;;  %v12376_v55 = vld [vmem:[#allocation129_spill] sm:$0xff] }
 0x943   :  { %v2981_v8 = vpack.c.bf16 %v2969_v0, %v2968_v56  ;;  %v1337_v27 = vadd.f32 %v1321_v57, %v1249_v42  ;;  %v1323_v13 = vmul.f32 %v12320_v52, %v12377_v33 }
 0x944   :  { %v1496_v15 = vadd.f32 %v1480_v60, %v1415_v49  ;;  %v1497_v45 = vadd.f32 %v1481_v40, %v1416_v50  ;;  %v2917_v23 = vpop.permute.xlu2 %2916  ;;  %v1322_v40 = vmul.f32 %v12320_v52, %v12378_v53 }
 0x945   :  { %v2915_v2 = vpop.permute.xlu1 %2914  ;;  %v1418_v51 = vadd.f32 %v1402_v36, %v1337_v27 }
 0x946   :  { %v2890_v12 = vsel %vm12366_vm15, %v1496_v15, %v9181_v19  ;;  %v2891_v7 = vsel %vm12329_vm13, %v1497_v45, %v9211_v6  ;;  %v1320_v19 = vmul.f32 %v12320_v52, %v12369_v35  ;;  %v1401_v6 = vmul.f32 %v12323_v28, %v12371_v25  ;;  %vm12375_vm15 = vmmov %vm12329_vm13  ;;  %v12380_v45 = vld [vmem:[#allocation63_spill] sm:$0xff]  ;;  %v12386_v25 = vld [vmem:[#allocation113_spill] sm:$0xff] }
 0x947   :  { %v2954_v1 = vadd.f32 %v2915_v2, %v2890_v12  ;;  %v2955_v31 = vadd.f32 %v2917_v23, %v2891_v7  ;;  %v1403_v23 = vmul.f32 %v12323_v28, %v12380_v45  ;;  %v12382_v7 = vld [vmem:[#allocation93_spill] sm:$0xff] }
 0x948   :  { %v2925_v57 = vpop.permute.xlu0 %2924 }
 0x949   :  { %v2970_v3 = vmax.f32 %v2954_v1, 0.0  ;;  %v2971_v59 = vmax.f32 %v2955_v31, 0.0  ;;  %v1253_v0 = vpop.f32.mrf.mxu2  ;;  %v1484_v31 = vmul.f32 %v12326_v9, %v12382_v7 }
 0x94a   :  { %v1254_v21 = vadd.f32 %v1253_v0, %v1185_v41 }
 0x94b   :  { %v2982_v63 = vpack.c.bf16 %v2971_v59, %v2970_v3  ;;  %v12385_v59 = vld [vmem:[#allocation141_spill] sm:$0xff] }
 0x94c   :  { %5733 = vmatmul.msk.bf16.gmra.mxu2 %vm2998_vm7, %v2980_v61  ;;  %v12367_v61 = vld [vmem:[#allocation155_spill] sm:$0xff]  ;;  %v1339_v15 = vadd.f32 %v1323_v13, %v1254_v21  ;;  %v1187_v10 = vmul.f32 %v12317_v58, %v12385_v59 }
 0x94d   :  { %v1182_v38 = vmul.f32 %v12317_v58, %v12367_v61  ;;  %v2921_v46 = vpop.permute.xlu1 %2920  ;;  %v12381_v61 = vld [vmem:[#allocation134_spill] sm:$0xff] }
 0x94f   :  { %v1247_v22 = vadd.f32 %v1246_v54, %v1182_v38  ;;  %v1483_v54 = vmul.f32 %v12326_v9, %v12372_v5  ;;  %v1485_v38 = vmul.f32 %v12326_v9, %v12381_v61 }
 0x951   :  { %v1336_v17 = vadd.f32 %v1320_v19, %v1247_v22  ;;  %v1499_v4 = vadd.f32 %v1483_v54, %v1418_v51  ;;  %v1256_v1 = vpop.f32.mrf.mxu2  ;;  %v12383_v22 = vld [vmem:[#allocation110_spill] sm:$0xff]  ;;  %v2923_v19 = vpop.permute.xlu2 %2922  ;;  %v12387_v54 = vld [vmem:[#allocation112_spill] sm:$0xff] }
 0x953   :  { %v1417_v43 = vadd.f32 %v1401_v6, %v1336_v17  ;;  %v2893_v56 = vsel %vm12375_vm15, %v1499_v4, %v9189_v34  ;;  %vm12384_vm15 = vmmov %vm12329_vm13  ;;  %v1325_v6 = vmul.f32 %v12320_v52, %v12386_v25  ;;  %v12409_v25 = vmov 25  }
 0x954   :  { %v2957_v39 = vadd.f32 %v2921_v46, %v2893_v56 }
 0x955   :  { %v1498_v20 = vadd.f32 %v1482_v44, %v1417_v43  ;;  %v1324_v43 = vmul.f32 %v12320_v52, %v12387_v54  ;;  %v12391_v52 = vld [vmem:[#allocation94_spill] sm:$0xff] }
 0x956   :  { %v2973_v50 = vmax.f32 %v2957_v39, 0.0 }
 0x957   :  { %v2892_v37 = vsel %vm12329_vm13, %v1498_v20, %v9183_v48  ;;  %v1420_v48 = vadd.f32 %v1404_v14, %v1339_v15  ;;  %v12390_v20 = vld [vmem:[#allocation115_spill] sm:$0xff] }
 0x958   :  { %v2956_v49 = vadd.f32 %v2919_v16, %v2892_v37  ;;  %v1486_v56 = vmul.f32 %v12326_v9, %v12390_v20 }
 0x959   :  { %v1501_v29 = vadd.f32 %v1485_v38, %v1420_v48  ;;  %v1258_v51 = vpop.f32.mrf.mxu2 }
 0x95a   :  { %v2972_v34 = vmax.f32 %v2956_v49, 0.0  ;;  %v1259_v44 = vadd.f32 %v1258_v51, %v1187_v10  ;;  %v2929_v49 = vpop.permute.xlu2 %2928 }
 0x95b   :  { %v2895_v3 = vsel %vm12384_vm15, %v1501_v29, %v9193_v26  ;;  %v12388_v26 = vld [vmem:[#allocation185_spill] sm:$0xff]  ;;  %vm12392_vm15 = vmmov %vm12329_vm13 }
 0x95c   :  { %5734 = vmatmul.msk.bf16.gmra.mxu2 %vm2998_vm7, %v2981_v8  ;;  %v1184_v8 = vmul.f32 %v12317_v58, %v12376_v55  ;;  %v2983_v12 = vpack.c.bf16 %v2973_v50, %v2972_v34  ;;  %v2959_v27 = vadd.f32 %v2925_v57, %v2895_v3  ;;  %v1405_v30 = vmul.f32 %v12323_v28, %v12388_v26 }
 0x95d   :  { %v1487_v55 = vmul.f32 %v12326_v9, %v12391_v52  ;;  %v12419_v52 = vmov 27  }
 0x95e   :  { %v1252_v60 = vadd.f32 %v1251_v47, %v1184_v8  ;;  %v1186_v47 = vmul.f32 %v12317_v58, %v12383_v22  ;;  %v2975_v5 = vmax.f32 %v2959_v27, 0.0  ;;  %v1341_v58 = vadd.f32 %v1325_v6, %v1259_v44  ;;  %v2927_v8 = vpop.permute.xlu1 %2926 }
 0x960   :  { %v1338_v2 = vadd.f32 %v1322_v40, %v1252_v60  ;;  %v6060_v40 = vld [vmem:[#allocation8] ss:$0 sm:$0xff] }
 0x962   :  { %v1419_v42 = vadd.f32 %v1403_v23, %v1338_v2 }
 0x964   :  { %v1500_v35 = vadd.f32 %v1484_v31, %v1419_v42 }
 0x966   :  { %v2894_v36 = vsel %vm12329_vm13, %v1500_v35, %v9220_v24  ;;  %v12389_v24 = vld [vmem:[#allocation98_spill] sm:$0xff] }
 0x967   :  { %v2958_v17 = vadd.f32 %v2923_v19, %v2894_v36  ;;  %v1406_v41 = vmul.f32 %v12323_v28, %v12389_v24 }
 0x969   :  { %v2974_v4 = vmax.f32 %v2958_v17, 0.0  ;;  %v1422_v16 = vadd.f32 %v1406_v41, %v1341_v58 }
 0x96b   :  { %v2984_v0 = vpack.c.bf16 %v2975_v5, %v2974_v4  ;;  %v1503_v37 = vadd.f32 %v1487_v55, %v1422_v16 }
 0x96c   :  { %5735 = vmatmul.msk.bf16.gmra.mxu2 %vm2998_vm7, %v2982_v63  ;;  %v1257_v63 = vadd.f32 %v1256_v1, %v1186_v47 }
 0x96d   :  { %v2897_v28 = vsel %vm12329_vm13, %v1503_v37, %v9228_v32 }
 0x96e   :  { %v1340_v46 = vadd.f32 %v1324_v43, %v1257_v63  ;;  %v2961_v13 = vadd.f32 %v2929_v49, %v2897_v28 }
 0x970   :  { %v1421_v62 = vadd.f32 %v1405_v30, %v1340_v46  ;;  %v2977_v50 = vmax.f32 %v2961_v13, 0.0  ;;  %v12418_v46 = vmov 26  }
 0x972   :  { %v1502_v39 = vadd.f32 %v1486_v56, %v1421_v62 }
 0x974   :  { %v2896_v21 = vsel %vm12392_vm15, %v1502_v39, %v9201_v18 }
 0x975   :  { %v2960_v33 = vadd.f32 %v2927_v8, %v2896_v21 }
 0x977   :  { %v2976_v60 = vmax.f32 %v2960_v33, 0.0 }
 0x979   :  { %v2985_v53 = vpack.c.bf16 %v2977_v50, %v2976_v60 }
 0x97c   :  { %5736 = vmatmul.msk.bf16.gmra.mxu2 %vm2998_vm7, %v2983_v12 }
 0x98c   :  { %5737 = vmatmul.msk.bf16.gmra.mxu2 %vm2998_vm7, %v2984_v0 }
 0x99c   :  { %5738 = vmatmul.msk.bf16.gmra.mxu2 %vm2998_vm7, %v2985_v53  ;;  %vm12424_vm7 = vmmov %vm12329_vm13 }
 0x99d   :  { %vm12425_vm15 = vmmov %vm12424_vm7 }
 0x99e   :  { %vm12427_vm13 = vmmov %vm12424_vm7 }
 0x99f   :  { %vm12429_vm11 = vmmov %vm12424_vm7 }
 0x9a0   :  { %vm12430_vm1 = vmmov %vm12424_vm7 }
 0x9a1   :  { %vm12432_vm6 = vmmov %vm12430_vm1 }
 0x9a6   :  { %v3032_v15 = vpop.f32.mrf.mxu2 }
 0x9a7   :  { %v9364_v34 = vadd.f32 %v6060_v40, %v3032_v15 }
 0x9a9   :  { %12393 = vst [vmem:[#allocation194_spill] sm:$0xff] %v9364_v34  ;;  %3083 = vperm.xlu0 %6035, %v9364_v34  }
 0x9ae   :  { %v3034_v9 = vpop.f32.mrf.mxu2 }
 0x9af   :  { %v9367_v18 = vadd.f32 %v6060_v40, %v3034_v9 }
 0x9b1   :  { %12394 = vst [vmem:[#allocation19_spill] sm:$0xff] %v9367_v18  ;;  %3088 = vperm.xlu1 %6036, %v9367_v18   ;;  %v9410_v63 = vpack.c.bf16 %v9367_v18, %v9364_v34 }
 0x9b3   :  { %12408 = vst [vmem:[#allocation131_spill] sm:$0xff] %v9410_v63 }
 0x9bf   :  { %v3037_v2 = vpop.f32.mrf.mxu2 }
 0x9c0   :  { %v9370_v11 = vadd.f32 %v6060_v40, %v3037_v2 }
 0x9c2   :  { %12395 = vst [vmem:[#allocation49_spill] sm:$0xff] %v9370_v11  ;;  %3093 = vperm.xlu2 %6037, %v9370_v11  }
 0x9c7   :  { %v3039_v32 = vpop.f32.mrf.mxu2 }
 0x9c8   :  { %v9373_v14 = vadd.f32 %v6060_v40, %v3039_v32 }
 0x9ca   :  { %12396 = vst [vmem:[#allocation24_spill] sm:$0xff] %v9373_v14  ;;  %3098 = vperm.xlu1 %6036, %v9373_v14   ;;  %v9424_v54 = vpack.c.bf16 %v9373_v14, %v9370_v11 }
 0x9cc   :  { %12412 = vst [vmem:[#allocation29_spill] sm:$0xff] %v9424_v54 }
 0x9cf   :  { %v3042_v12 = vpop.f32.mrf.mxu2 }
 0x9d0   :  { %v9376_v45 = vadd.f32 %v6060_v40, %v3042_v12  ;;  %v12426_v12 = vmov 52  }
 0x9d2   :  { %12397 = vst [vmem:[#allocation25_spill] sm:$0xff] %v9376_v45  ;;  %3103 = vperm.xlu2 %6037, %v9376_v45  }
 0x9d7   :  { %v3044_v23 = vpop.f32.mrf.mxu2 }
 0x9d8   :  { %v9379_v48 = vadd.f32 %v6060_v40, %v3044_v23 }
 0x9da   :  { %12398 = vst [vmem:[#allocation44_spill] sm:$0xff] %v9379_v48  ;;  %3108 = vperm.xlu0 %6035, %v9379_v48   ;;  %v9438_v26 = vpack.c.bf16 %v9379_v48, %v9376_v45 }
 0x9dc   :  { %12414 = vst [vmem:[#allocation40_spill] sm:$0xff] %v9438_v26 }
 0x9df   :  { %v3047_v1 = vpop.f32.mrf.mxu2 }
 0x9e0   :  { %v9382_v61 = vadd.f32 %v6060_v40, %v3047_v1 }
 0x9e2   :  { %12399 = vst [vmem:[#allocation52_spill] sm:$0xff] %v9382_v61  ;;  %3113 = vperm.xlu1 %6036, %v9382_v61  }
 0x9e7   :  { %v3049_v38 = vpop.f32.mrf.mxu2 }
 0x9e8   :  { %v9385_v42 = vadd.f32 %v6060_v40, %v3049_v38 }
 0x9ea   :  { %12400 = vst [vmem:[#allocation59_spill] sm:$0xff] %v9385_v42  ;;  %3118 = vperm.xlu2 %6037, %v9385_v42   ;;  %v9420_v5 = vpack.c.bf16 %v9385_v42, %v9382_v61 }
 0x9ec   :  { %12411 = vst [vmem:[#allocation16_spill] sm:$0xff] %v9420_v5 }
 0x9ef   :  { %v3052_v7 = vpop.f32.mrf.mxu2 }
 0x9f0   :  { %v9388_v31 = vadd.f32 %v6060_v40, %v3052_v7 }
 0x9f2   :  { %12401 = vst [vmem:[#allocation75_spill] sm:$0xff] %v9388_v31  ;;  %3123 = vperm.xlu0 %6035, %v9388_v31  }
 0x9f7   :  { %v3054_v29 = vpop.f32.mrf.mxu2 }
 0x9f8   :  { %v9391_v57 = vadd.f32 %v6060_v40, %v3054_v29 }
 0x9fa   :  { %12402 = vst [vmem:[#allocation17_spill] sm:$0xff] %v9391_v57  ;;  %3128 = vperm.xlu1 %6036, %v9391_v57   ;;  %v9442_v30 = vpack.c.bf16 %v9391_v57, %v9388_v31 }
 0x9fc   :  { %12415 = vst [vmem:[#allocation18_spill] sm:$0xff] %v9442_v30 }
 0x9ff   :  { %v3057_v22 = vpop.f32.mrf.mxu2 }
 0xa00   :  { %v9394_v47 = vadd.f32 %v6060_v40, %v3057_v22 }
 0xa02   :  { %12403 = vst [vmem:[#allocation193_spill] sm:$0xff] %v9394_v47  ;;  %3133 = vperm.xlu2 %6037, %v9394_v47  }
 0xa07   :  { %v3059_v3 = vpop.f32.mrf.mxu2 }
 0xa08   :  { %v9397_v35 = vadd.f32 %v6060_v40, %v3059_v3 }
 0xa0a   :  { %12404 = vst [vmem:[#allocation192_spill] sm:$0xff] %v9397_v35  ;;  %3138 = vperm.xlu0 %6035, %v9397_v35   ;;  %v9453_v44 = vpack.c.bf16 %v9397_v35, %v9394_v47 }
 0xa0c   :  { %12416 = vst [vmem:[#allocation27_spill] sm:$0xff] %v9453_v44 }
 0xa0f   :  { %v3062_v19 = vpop.f32.mrf.mxu2 }
 0xa10   :  { %v9400_v27 = vadd.f32 %v6060_v40, %v3062_v19 }
 0xa12   :  { %12405 = vst [vmem:[#allocation95_spill] sm:$0xff] %v9400_v27  ;;  %3143 = vperm.xlu1 %6036, %v9400_v27  }
 0xa17   :  { %v3064_v59 = vpop.f32.mrf.mxu2 }
 0xa18   :  { %v9403_v10 = vadd.f32 %v6060_v40, %v3064_v59 }
 0xa1a   :  { %12406 = vst [vmem:[#allocation116_spill] sm:$0xff] %v9403_v10  ;;  %3148 = vperm.xlu2 %6037, %v9403_v10   ;;  %v9434_v43 = vpack.c.bf16 %v9403_v10, %v9400_v27 }
 0xa1b   :  { %v9487_v58 = vpop.permute.xlu0 %3083 }
 0xa1c   :  { %12413 = vst [vmem:[#allocation20_spill] sm:$0xff] %v9434_v43  ;;  %v9490_v0 = vpop.permute.xlu2 %3093 }
 0xa1f   :  { %v3067_v36 = vpop.f32.mrf.mxu2 }
 0xa20   :  { %v9406_v17 = vadd.f32 %v6060_v40, %v3067_v36 }
 0xa22   :  { %12407 = vst [vmem:[#allocation22_spill] sm:$0xff] %v9406_v17  ;;  %3185 = vrot.lane.b32.xlu2 %v9410_v63, %s6497_s0  ;;  %3153 = vperm.xlu0 %6035, %v9406_v17  }
 0xa23   :  { %6039 = vset.pattern.permute.xlu2 %v12409_v25  ;;  %v9499_v41 = vpop.permute.xlu1 %3088 }
 0xa27   :  { %v3069_v6 = vpop.f32.mrf.mxu2 }
 0xa28   :  { %v9416_v51 = vadd.f32 %v6060_v40, %v3069_v6 }
 0xa2a   :  { %12410 = vst [vmem:[#allocation195_spill] sm:$0xff] %v9416_v51  ;;  %3191 = vrot.lane.b32.xlu2 %v9420_v5, %s6497_s0  ;;  %3158 = vperm.xlu1 %6036, %v9416_v51   ;;  %v9457_v4 = vpack.c.bf16 %v9416_v51, %v9406_v17 }
 0xa2b   :  { %3187 = vrot.lane.b32.xlu0 %v9424_v54, %s6497_s0 }
 0xa2c   :  { %6040 = vset.pattern.permute.xlu0 %v12409_v25  ;;  %12417 = vst [vmem:[#allocation50_spill] sm:$0xff] %v9457_v4  ;;  %v9497_v24 = vpop.permute.xlu2 %3103 }
 0xa32   :  { %3197 = vrot.lane.b32.xlu2 %v9434_v43, %s6497_s0  ;;  %3189 = vrot.lane.b32.xlu1 %v9438_v26, %s6497_s0 }
 0xa33   :  { %3193 = vrot.lane.b32.xlu0 %v9442_v30, %s6497_s0  ;;  %6038 = vset.pattern.permute.xlu1 %v12409_v25 }
 0xa3a   :  { %3303 = vperm.xlu2 %6039, %v9367_v18   ;;  %3195 = vrot.lane.b32.xlu1 %v9453_v44, %s6497_s0 }
 0xa3b   :  { %3199 = vrot.lane.b32.xlu0 %v9457_v4, %s6497_s0 }
 0xa3c   :  { %v9508_v16 = vpop.permute.xlu1 %3098 }
 0xa42   :  { %3315 = vperm.xlu2 %6039, %v9376_v45   ;;  %3299 = vperm.xlu1 %6038, %v9364_v34  }
 0xa43   :  { %3307 = vperm.xlu0 %6040, %v9370_v11  }
 0xa44   :  { %v9506_v56 = vpop.permute.xlu2 %3118 }
 0xa4a   :  { %3323 = vperm.xlu2 %6039, %v9382_v61   ;;  %3311 = vperm.xlu1 %6038, %v9373_v14  }
 0xa4b   :  { %3327 = vperm.xlu0 %6040, %v9385_v42  }
 0xa4c   :  { %v9494_v62 = vpop.permute.xlu0 %3108 }
 0xa52   :  { %3335 = vperm.xlu2 %6039, %v9391_v57   ;;  %3319 = vperm.xlu1 %6038, %v9379_v48  }
 0xa53   :  { %3339 = vperm.xlu0 %6040, %v9394_v47  }
 0xa54   :  { %v9518_v8 = vpop.permute.xlu1 %3113 }
 0xa5a   :  { %3347 = vperm.xlu2 %6039, %v9400_v27   ;;  %3331 = vperm.xlu1 %6038, %v9388_v31  }
 0xa5b   :  { %3351 = vperm.xlu0 %6040, %v9403_v10  }
 0xa5c   :  { %v9515_v55 = vpop.permute.xlu2 %3133 }
 0xa62   :  { %3359 = vperm.xlu2 %6039, %v9416_v51   ;;  %3343 = vperm.xlu1 %6038, %v9397_v35  }
 0xa63   :  { %6041 = vset.pattern.permute.xlu0 %v12418_v46 }
 0xa64   :  { %3395 = vperm.xlu0 %6041, %v9364_v34   ;;  %v9503_v20 = vpop.permute.xlu0 %3123 }
 0xa6a   :  { %6043 = vset.pattern.permute.xlu2 %v12418_v46  ;;  %3355 = vperm.xlu1 %6038, %v9406_v17  }
 0xa6b   :  { %3403 = vperm.xlu2 %6043, %v9370_v11  }
 0xa6c   :  { %3415 = vperm.xlu0 %6041, %v9379_v48   ;;  %v9528_v49 = vpop.permute.xlu1 %3128 }
 0xa72   :  { %6042 = vset.pattern.permute.xlu1 %v12418_v46 }
 0xa73   :  { %3411 = vperm.xlu2 %6043, %v9376_v45   ;;  %3399 = vperm.xlu1 %6042, %v9367_v18  }
 0xa74   :  { %3427 = vperm.xlu0 %6041, %v9388_v31   ;;  %v9525_v37 = vpop.permute.xlu2 %3148 }
 0xa75   :  { %12421 = vst [vmem:[#allocation36_spill] sm:$0xff] %v9525_v37  ;;  %v12449_v37 = vld [vmem:[#allocation135_spill] sm:$0xff] }
 0xa7b   :  { %3423 = vperm.xlu2 %6043, %v9385_v42   ;;  %3407 = vperm.xlu1 %6042, %v9373_v14  }
 0xa7c   :  { %3439 = vperm.xlu0 %6041, %v9397_v35   ;;  %v9512_v39 = vpop.permute.xlu0 %3138  ;;  %v3186_v28 = vpop.permute.xlu2 %3185 }
 0xa83   :  { %3435 = vperm.xlu2 %6043, %v9394_v47   ;;  %3419 = vperm.xlu1 %6042, %v9382_v61  }
 0xa84   :  { %3451 = vperm.xlu0 %6041, %v9406_v17   ;;  %v9533_v13 = vpop.permute.xlu1 %3143  ;;  %v3192_v53 = vpop.permute.xlu2 %3191 }
 0xa85   :  { %12422 = vst [vmem:[#allocation32_spill] sm:$0xff] %v9533_v13 }
 0xa8b   :  { %3447 = vperm.xlu2 %6043, %v9403_v10   ;;  %3431 = vperm.xlu1 %6042, %v9391_v57  }
 0xa8c   :  { %6045 = vset.pattern.permute.xlu0 %v12419_v52  ;;  %v3198_v2 = vpop.permute.xlu2 %3197 }
 0xa8d   :  { %3495 = vperm.xlu0 %6045, %v9367_v18   ;;  %v3244_v32 = vsel %vm12425_vm15, %v3198_v2, 0  ;;  %vm12428_vm15 = vmmov %vm12424_vm7 }
 0xa8e   :  { %v3235_v7 = vsel %vm12428_vm15, %v3192_v53, 0  ;;  %vm12434_vm15 = vmmov %vm12430_vm1 }
 0xa93   :  { %6044 = vset.pattern.permute.xlu2 %v12419_v52  ;;  %3443 = vperm.xlu1 %6042, %v9400_v27  }
 0xa94   :  { %3491 = vperm.xlu2 %6044, %v9364_v34   ;;  %v9523_v21 = vpop.permute.xlu0 %3153  ;;  %v3304_v19 = vpop.permute.xlu2 %3303 }
 0xa95   :  { %12420 = vst [vmem:[#allocation21_spill] sm:$0xff] %v9523_v21  ;;  %3515 = vperm.xlu0 %6045, %v9382_v61   ;;  %v12450_v61 = vld [vmem:[#allocation136_spill] sm:$0xff] }
 0xa9b   :  { %3455 = vperm.xlu1 %6042, %v9416_v51  }
 0xa9c   :  { %3503 = vperm.xlu2 %6044, %v9373_v14   ;;  %v9539_v50 = vpop.permute.xlu1 %3158  ;;  %v9566_v36 = vpop.permute.xlu2 %3315 }
 0xa9d   :  { %v3188_v33 = vpop.permute.xlu0 %3187  ;;  %3527 = vperm.xlu0 %6045, %v9391_v57   ;;  %12423 = vst [vmem:[#allocation47_spill] sm:$0xff] %v9539_v50  ;;  %v12447_v57 = vld [vmem:[#allocation133_spill] sm:$0xff] }
 0xa9e   :  { %v3229_v22 = vsel %vm12430_vm1, %v3188_v33, 0 }
 0xaa3   :  { %6046 = vset.pattern.permute.xlu1 %v12419_v52 }
 0xaa4   :  { %3511 = vperm.xlu2 %6044, %v9379_v48   ;;  %3499 = vperm.xlu1 %6046, %v9370_v11   ;;  %v3190_v9 = vpop.permute.xlu1 %3189  ;;  %v9572_v6 = vpop.permute.xlu2 %3323  ;;  %v12451_v48 = vld [vmem:[#allocation137_spill] sm:$0xff] }
 0xaa5   :  { %v3194_v60 = vpop.permute.xlu0 %3193  ;;  %3539 = vperm.xlu0 %6045, %v9400_v27   ;;  %v3232_v29 = vsel %vm12429_vm11, %v3190_v9, 0  ;;  %vm12440_vm11 = vmmov %vm12430_vm1 }
 0xaa6   :  { %v3238_v38 = vsel %vm12424_vm7, %v3194_v60, 0 }
 0xaac   :  { %3523 = vperm.xlu2 %6044, %v9388_v31   ;;  %3507 = vperm.xlu1 %6046, %v9376_v45   ;;  %v3196_v23 = vpop.permute.xlu1 %3195  ;;  %v9576_v33 = vpop.permute.xlu2 %3335 }
 0xaad   :  { %3551 = vperm.xlu0 %6045, %v9416_v51   ;;  %v3200_v40 = vpop.permute.xlu0 %3199  ;;  %v3241_v1 = vsel %vm12427_vm13, %v3196_v23, 0  ;;  %vm12431_vm13 = vmmov %vm12430_vm1 }
 0xaae   :  { %v3247_v15 = vsel %vm12424_vm7, %v3200_v40, 0  ;;  %v3226_v3 = vsel %vm12431_vm13, %v3186_v28, 0  ;;  %vm12433_vm7 = vmmov %vm12430_vm1 }
 0xaaf   :  { %3249 = vmatpush.bf16.xpose.msrb.mxu1 %v3247_v15  ;;  %vm12441_vm13 = vmmov %vm12430_vm1 }
 0xab4   :  { %3535 = vperm.xlu2 %6044, %v9397_v35   ;;  %3519 = vperm.xlu1 %6046, %v9385_v42   ;;  %v3300_v59 = vpop.permute.xlu1 %3299  ;;  %v9584_v53 = vpop.permute.xlu2 %3347 }
 0xab5   :  { %3839 = vrot.lane.b32.xlu0 %v9438_v26, %s6498_s4  ;;  %v3308_v52 = vpop.permute.xlu0 %3307  ;;  %12435 = vst [vmem:[#allocation43_spill] sm:$0xff] %v9584_v53  ;;  %v3362_v53 = vmul.f32 %v12449_v37, %v3300_v59 }
 0xab6   :  { %6048 = vset.pattern.permute.xlu0 %v12426_v12 }
 0xab7   :  { %3250 = vmatpush.bf16.xpose.msrb.mxu1 %v3244_v32 }
 0xabc   :  { %3547 = vperm.xlu2 %6044, %v9406_v17   ;;  %3531 = vperm.xlu1 %6046, %v9394_v47   ;;  %v9570_v25 = vpop.permute.xlu1 %3311  ;;  %v9592_v9 = vpop.permute.xlu2 %3359  ;;  %v3161_v47 = vmul.f32 %v12447_v57, %v9487_v58  ;;  %v12453_v57 = vld [vmem:[#allocation142_spill] sm:$0xff] }
 0xabd   :  { %v9582_v60 = vpop.permute.xlu0 %3327  ;;  %12437 = vst [vmem:[#allocation54_spill] sm:$0xff] %v9592_v9 }
 0xabf   :  { %3251 = vmatpush.bf16.xpose.msrb.mxu1 %v3241_v1 }
 0xac4   :  { %3543 = vperm.xlu1 %6046, %v9403_v10   ;;  %6047 = vset.pattern.permute.xlu2 %v12426_v12  ;;  %v9574_v46 = vpop.permute.xlu1 %3319 }
 0xac5   :  { %v9590_v15 = vpop.permute.xlu0 %3339 }
 0xac7   :  { %3252 = vmatpush.bf16.xpose.msrb.mxu1 %v3238_v38 }
 0xacc   :  { %6049 = vset.pattern.permute.xlu1 %v12426_v12  ;;  %v9580_v28 = vpop.permute.xlu1 %3331  ;;  %v3404_v12 = vpop.permute.xlu2 %3403 }
 0xacd   :  { %v9596_v32 = vpop.permute.xlu0 %3351 }
 0xace   :  { %12439 = vst [vmem:[#allocation196_spill] sm:$0xff] %v9596_v32 }
 0xacf   :  { %3253 = vmatpush.bf16.xpose.msrb.mxu1 %v3235_v7 }
 0xad4   :  { %v9586_v40 = vpop.permute.xlu1 %3343  ;;  %v9600_v38 = vpop.permute.xlu2 %3411 }
 0xad6   :  { %v3396_v1 = vpop.permute.xlu0 %3395 }
 0xad7   :  { %3254 = vmatpush.bf16.xpose.msrb.mxu1 %v3232_v29  ;;  %v3458_v35 = vmul.f32 %v12450_v61, %v3396_v1 }
 0xadc   :  { %v9594_v2 = vpop.permute.xlu1 %3355 }
 0xadd   :  { %12438 = vst [vmem:[#allocation51_spill] sm:$0xff] %v9594_v2 }
 0xade   :  { %v9604_v29 = vpop.permute.xlu0 %3415 }
 0xadf   :  { %3255 = vmatpush.bf16.xpose.msrb.mxu1 %v3229_v22  ;;  %v9608_v22 = vpop.permute.xlu2 %3423 }
 0xae5   :  { %v3400_v23 = vpop.permute.xlu1 %3399 }
 0xae7   :  { %3256 = vmatpush.bf16.xpose.msrb.mxu1 %v3226_v3  ;;  %v9614_v51 = vpop.permute.xlu2 %3435 }
 0xae8   :  { %12442 = vst [vmem:[#allocation120_spill] sm:$0xff] %v9614_v51 }
 0xaed   :  { %v9602_v7 = vpop.permute.xlu1 %3407 }
 0xaee   :  { %5739 = vmatmul.msk.bf16.vlgmr.msrb.gmra.mxu1 %vm12432_vm6, %v9410_v63  ;;  %vm12436_vm6 = vmmov %vm12430_vm1 }
 0xaef   :  { %v9622_v50 = vpop.permute.xlu2 %3447 }
 0xaf0   :  { %12445 = vst [vmem:[#allocation199_spill] sm:$0xff] %v9622_v50  ;;  %v12452_v50 = vld [vmem:[#allocation139_spill] sm:$0xff] }
 0xaf1   :  { %v3162_v2 = vmul.f32 %v12452_v50, %v9499_v41 }
 0xaf5   :  { %v9610_v3 = vpop.permute.xlu1 %3419 }
 0xaf7   :  { %v3492_v17 = vpop.permute.xlu2 %3491 }
 0xaf8   :  { %v3554_v14 = vmul.f32 %v12451_v48, %v3492_v17 }
 0xafd   :  { %v9618_v10 = vpop.permute.xlu1 %3431 }
 0xafe   :  { %5740 = vmatmul.msk.bf16.gmra.mxu1 %vm12433_vm7, %v9424_v54  ;;  %vm12443_vm7 = vmmov %vm12430_vm1  ;;  %12444 = vst [vmem:[#allocation204_spill] sm:$0xff] %v9618_v10 }
 0xb05   :  { %v9624_v27 = vpop.permute.xlu1 %3443 }
 0xb06   :  { %12446 = vst [vmem:[#allocation83_spill] sm:$0xff] %v9624_v27 }
 0xb0d   :  { %v9635_v21 = vpop.permute.xlu1 %3455 }
 0xb0e   :  { %5741 = vmatmul.msk.bf16.gmra.mxu1 %vm12434_vm15, %v9438_v26  ;;  %v9612_v26 = vpop.permute.xlu0 %3427 }
 0xb16   :  { %v9620_v9 = vpop.permute.xlu0 %3439 }
 0xb1e   :  { %5742 = vmatmul.msk.bf16.gmra.mxu1 %vm12430_vm1, %v9420_v5  ;;  %v9628_v42 = vpop.permute.xlu0 %3451 }
 0xb1f   :  { %12448 = vst [vmem:[#allocation206_spill] sm:$0xff] %v9628_v42  ;;  %v3363_v42 = vmul.f32 %v12453_v57, %v3304_v19  ;;  %v12458_v19 = vld [vmem:[#allocation152_spill] sm:$0xff]  ;;  %v3500_v57 = vpop.permute.xlu1 %3499 }
 0xb26   :  { %v3496_v59 = vpop.permute.xlu0 %3495 }
 0xb2e   :  { %5743 = vmatmul.msk.bf16.gmra.mxu1 %vm12436_vm6, %v9442_v30 }
 0xb3e   :  { %5744 = vmatmul.msk.bf16.gmra.mxu1 %vm12440_vm11, %v9453_v44 }
 0xb4e   :  { %5745 = vmatmul.msk.bf16.gmra.mxu1 %vm12441_vm13, %v9434_v43 }
 0xb5e   :  { %5746 = vmatmul.msk.bf16.gmra.mxu1 %vm12443_vm7, %v9457_v4 }
 0xb6b   :  { %v3258_v32 = vpop.f32.mrf.mxu1 }
 0xb6c   :  { %v3259_v13 = vadd.f32 %v3258_v32, %v3161_v47 }
 0xb6e   :  { %v3378_v45 = vadd.f32 %v3362_v53, %v3259_v13  ;;  %v12455_v13 = vld [vmem:[#allocation146_spill] sm:$0xff] }
 0xb6f   :  { %v3459_v17 = vmul.f32 %v12455_v13, %v3400_v23  ;;  %v12460_v23 = vld [vmem:[#allocation157_spill] sm:$0xff] }
 0xb70   :  { %v3474_v11 = vadd.f32 %v3458_v35, %v3378_v45  ;;  %v12456_v35 = vld [vmem:[#allocation148_spill] sm:$0xff] }
 0xb71   :  { %v3555_v53 = vmul.f32 %v12456_v35, %v3496_v59  ;;  %v12461_v59 = vld [vmem:[#allocation160_spill] sm:$0xff] }
 0xb72   :  { %v3570_v27 = vadd.f32 %v3554_v14, %v3474_v11  ;;  %v12457_v11 = vld [vmem:[#allocation154_spill] sm:$0xff] }
 0xb73   :  { %v3260_v58 = vpop.f32.mrf.mxu1  ;;  %v3163_v14 = vmul.f32 %v12457_v11, %v9490_v0 }
 0xb74   :  { %v3261_v51 = vadd.f32 %v3260_v58, %v3162_v2  ;;  %v9640_v47 = vsel %vm270_vm2, %v3570_v27, -1e+30  ;;  %v3364_v2 = vmul.f32 %v12458_v19, %v3308_v52 }
 0xb75   :  { %3602 = vmax.xlane.f32.xlu1 %v9640_v47 }
 0xb76   :  { %v3379_v45 = vadd.f32 %v3363_v42, %v3261_v51  ;;  %v3460_v42 = vmul.f32 %v12460_v23, %v3404_v12 }
 0xb78   :  { %v3475_v41 = vadd.f32 %v3459_v17, %v3379_v45  ;;  %v3556_v17 = vmul.f32 %v12461_v59, %v3500_v57 }
 0xb7a   :  { %v3571_v32 = vadd.f32 %v3555_v53, %v3475_v41  ;;  %v3504_v53 = vpop.permute.xlu2 %3503 }
 0xb7b   :  { %v3263_v1 = vpop.f32.mrf.mxu1 }
 0xb7c   :  { %v3264_v58 = vadd.f32 %v3263_v1, %v3163_v14  ;;  %v9650_v27 = vsel %vm271_vm4, %v3571_v32, -1e+30 }
 0xb7d   :  { %3604 = vmax.xlane.f32.xlu2 %v9650_v27 }
 0xb7e   :  { %v3380_v51 = vadd.f32 %v3364_v2, %v3264_v58  ;;  %v12464_v2 = vld [vmem:[#allocation164_spill] sm:$0xff] }
 0xb7f   :  { %v3365_v58 = vmul.f32 %v12464_v2, %v9570_v25 }
 0xb80   :  { %v3476_v45 = vadd.f32 %v3460_v42, %v3380_v51 }
 0xb82   :  { %v3572_v13 = vadd.f32 %v3556_v17, %v3476_v45  ;;  %v12465_v17 = vld [vmem:[#allocation168_spill] sm:$0xff] }
 0xb83   :  { %v3265_v0 = vpop.f32.mrf.mxu1  ;;  %v3461_v45 = vmul.f32 %v12465_v17, %v9602_v7  ;;  %v12470_v7 = vld [vmem:[#allocation87_spill] sm:$0xff] }
 0xb84   :  { %v9657_v41 = vsel %vm272_vm5, %v3572_v13, -1e+30  ;;  %v12463_v13 = vld [vmem:[#allocation162_spill] sm:$0xff] }
 0xb85   :  { %3606 = vmax.xlane.f32.xlu0 %v9657_v41  ;;  %v3164_v32 = vmul.f32 %v12463_v13, %v9508_v16 }
 0xb87   :  { %v3266_v1 = vadd.f32 %v3265_v0, %v3164_v32  ;;  %v12468_v0 = vld [vmem:[#allocation72_spill] sm:$0xff] }
 0xb88   :  { %v3366_v32 = vmul.f32 %v12468_v0, %v9566_v36 }
 0xb89   :  { %v3381_v42 = vadd.f32 %v3365_v58, %v3266_v1  ;;  %v3166_v58 = vmul.f32 %v12470_v7, %v9494_v62  ;;  %v12474_v7 = vld [vmem:[#allocation78_spill] sm:$0xff] }
 0xb8b   :  { %v3268_v52 = vpop.f32.mrf.mxu1  ;;  %v3477_v10 = vadd.f32 %v3461_v45, %v3381_v42  ;;  %v3508_v42 = vpop.permute.xlu1 %3507 }
 0xb8e   :  { %3835 = vrot.lane.b32.xlu1 %v9410_v63, %s6498_s4 }
 0xb93   :  { %v3270_v14 = vpop.f32.mrf.mxu1 }
 0xb94   :  { %v3271_v45 = vadd.f32 %v3270_v14, %v3166_v58  ;;  %v12476_v58 = vld [vmem:[#allocation138_spill] sm:$0xff] }
 0xb95   :  { %3837 = vrot.lane.b32.xlu2 %v9424_v54, %s6498_s4  ;;  %v12466_v54 = vld [vmem:[#allocation53_spill] sm:$0xff] }
 0xb99   :  { %3841 = vrot.lane.b32.xlu0 %v9420_v5, %s6498_s4  ;;  %v12467_v5 = vld [vmem:[#allocation171_spill] sm:$0xff] }
 0xb9b   :  { %v9666_v57 = vpop.f32.mrf.mxu1 }
 0xb9d   :  { %3845 = vrot.lane.b32.xlu2 %v9453_v44, %s6498_s4  ;;  %v3557_v44 = vmul.f32 %v12466_v54, %v3504_v53 }
 0xb9f   :  { %v3573_v59 = vadd.f32 %v3557_v44, %v3477_v10  ;;  %v12472_v10 = vld [vmem:[#allocation173_spill] sm:$0xff]  ;;  %v12473_v44 = vld [vmem:[#allocation176_spill] sm:$0xff] }
 0xba0   :  { %v3367_v36 = vmul.f32 %v12473_v44, %v9574_v46 }
 0xba1   :  { %3847 = vrot.lane.b32.xlu0 %v9434_v43, %s6498_s4  ;;  %v3165_v43 = vmul.f32 %v12467_v5, %v9497_v24  ;;  %v9687_v1 = vsel %vm273_vm8, %v3573_v59, -1e+30  ;;  %v12471_v24 = vld [vmem:[#allocation88_spill] sm:$0xff] }
 0xba2   :  { %v3168_v17 = vmul.f32 %v12471_v24, %v9506_v56  ;;  %v3383_v62 = vadd.f32 %v3367_v36, %v3271_v45  ;;  %v3169_v56 = vmul.f32 %v12476_v58, %v9503_v20  ;;  %v12477_v24 = vld [vmem:[#allocation61_spill] sm:$0xff]  ;;  %v3520_v36 = vpop.permute.xlu1 %3519 }
 0xba3   :  { %v3275_v12 = vpop.f32.mrf.mxu1  ;;  %v3269_v16 = vadd.f32 %v3268_v52, %v3165_v43  ;;  %v3462_v43 = vmul.f32 %v12472_v10, %v9600_v38  ;;  %v3512_v52 = vpop.permute.xlu2 %3511  ;;  %v3463_v38 = vmul.f32 %v12477_v24, %v9604_v29 }
 0xba4   :  { %v3276_v25 = vadd.f32 %v3275_v12, %v3168_v17  ;;  %v12478_v12 = vld [vmem:[#allocation69_spill] sm:$0xff] }
 0xba5   :  { %v3382_v53 = vadd.f32 %v3366_v32, %v3269_v16  ;;  %v3369_v16 = vmul.f32 %v12474_v7, %v9582_v60  ;;  %v12475_v32 = vld [vmem:[#allocation74_spill] sm:$0xff]  ;;  %v3479_v44 = vadd.f32 %v3463_v38, %v3383_v62  ;;  %v3465_v17 = vmul.f32 %v12478_v12, %v9608_v22  ;;  %v12483_v22 = vld [vmem:[#allocation79_spill] sm:$0xff]  ;;  %v12538_v12 = vld [vmem:[#allocation196_spill] sm:$0xff] }
 0xba6   :  { %v3558_v14 = vmul.f32 %v12475_v32, %v3508_v42 }
 0xba7   :  { %v3478_v59 = vadd.f32 %v3462_v43, %v3382_v53  ;;  %v3385_v10 = vadd.f32 %v3369_v16, %v3276_v25  ;;  %v12479_v53 = vld [vmem:[#allocation140_spill] sm:$0xff]  ;;  %v12482_v25 = vld [vmem:[#allocation186_spill] sm:$0xff]  ;;  %v3172_v16 = vmul.f32 %v12483_v22, %v9512_v39 }
 0xba8   :  { %v3370_v45 = vmul.f32 %v12479_v53, %v9580_v28  ;;  %v12480_v43 = vld [vmem:[#allocation84_spill] sm:$0xff]  ;;  %v12484_v28 = vld [vmem:[#allocation143_spill] sm:$0xff] }
 0xba9   :  { %v3574_v2 = vadd.f32 %v3558_v14, %v3478_v59  ;;  %v3559_v60 = vmul.f32 %v12480_v43, %v3512_v52  ;;  %v3481_v20 = vadd.f32 %v3465_v17, %v3385_v10  ;;  %v3561_v59 = vmul.f32 %v12482_v25, %v3520_v36  ;;  %v12487_v17 = vld [vmem:[#allocation147_spill] sm:$0xff]  ;;  %v12518_v22 = vld [vmem:[#allocation80_spill] sm:$0xff] }
 0xbaa   :  { %v3466_v52 = vmul.f32 %v12484_v28, %v9612_v26 }
 0xbab   :  { %v3278_v51 = vpop.f32.mrf.mxu1  ;;  %v9714_v7 = vsel %vm274_vm10, %v3574_v2, -1e+30  ;;  %v3575_v29 = vadd.f32 %v3559_v60, %v3479_v44  ;;  %v3577_v14 = vadd.f32 %v3561_v59, %v3481_v20  ;;  %v12486_v44 = vld [vmem:[#allocation172_spill] sm:$0xff] }
 0xbac   :  { %v3279_v46 = vadd.f32 %v3278_v51, %v3169_v56  ;;  %v3524_v51 = vpop.permute.xlu2 %3523 }
 0xbad   :  { %v9724_v10 = vsel %vm275_vm12, %v3575_v29, -1e+30  ;;  %v9732_v39 = vsel %vm277_vm0, %v3577_v14, -1e+30 }
 0xbae   :  { %v3386_v58 = vadd.f32 %v3370_v45, %v3279_v46  ;;  %v3373_v46 = vmul.f32 %v12486_v44, %v9586_v40  ;;  %v3562_v45 = vmul.f32 %v12487_v17, %v3524_v51  ;;  %v12491_v51 = vld [vmem:[#allocation60_spill] sm:$0xff]  ;;  %v12536_v17 = vld [vmem:[#allocation57_spill] sm:$0xff] }
 0xbb0   :  { %v3482_v56 = vadd.f32 %v3466_v52, %v3386_v58  ;;  %v12489_v58 = vld [vmem:[#allocation56_spill] sm:$0xff] }
 0xbb1   :  { %v3469_v20 = vmul.f32 %v12489_v58, %v9620_v9  ;;  %v12508_v58 = vld [vmem:[#allocation167_spill] sm:$0xff] }
 0xbb2   :  { %v3578_v26 = vadd.f32 %v3562_v45, %v3482_v56  ;;  %v12493_v56 = vld [vmem:[#allocation77_spill] sm:$0xff]  ;;  %v12494_v45 = vld [vmem:[#allocation64_spill] sm:$0xff]  ;;  %vm12509_vm15 = vcmp.gt.f32.partialorder %v12508_v58, 0.0 }
 0xbb3   :  { %v9681_v23 = vpop.f32.mrf.mxu1 }
 0xbb4   :  { %v3536_v29 = vpop.permute.xlu2 %3535  ;;  %v9741_v40 = vsel %vm278_vm3, %v3578_v26, -1e+30 }
 0xbb8   :  { %3608 = vmax.xlane.f32.xlu1 %v9687_v1 }
 0xbbb   :  { %v9698_v0 = vpop.f32.mrf.mxu1 }
 0xbc3   :  { %v3285_v62 = vpop.f32.mrf.mxu1 }
 0xbc4   :  { %v3286_v38 = vadd.f32 %v3285_v62, %v3172_v16  ;;  %v3565_v16 = vmul.f32 %v12491_v51, %v3536_v29  ;;  %v12495_v29 = vld [vmem:[#allocation150_spill] sm:$0xff]  ;;  %v12512_v51 = vld [vmem:[#allocation55_spill] sm:$0xff] }
 0xbc5   :  { %vm12513_vm1 = vcmp.gt.f32.partialorder %v12512_v51, 0.0 }
 0xbc6   :  { %3610 = vmax.xlane.f32.xlu2 %v9714_v7  ;;  %v3389_v36 = vadd.f32 %v3373_v46, %v3286_v38  ;;  %v3167_v38 = vmul.f32 %v12493_v56, %v9518_v8  ;;  %v12497_v8 = vld [vmem:[#allocation161_spill] sm:$0xff] }
 0xbc8   :  { %v3485_v59 = vadd.f32 %v3469_v20, %v3389_v36  ;;  %v3274_v46 = vadd.f32 %v9666_v57, %v3167_v38  ;;  %v3368_v36 = vmul.f32 %v12494_v45, %v9572_v6  ;;  %v3516_v20 = vpop.permute.xlu0 %3515  ;;  %v3171_v57 = vmul.f32 %v12497_v8, %v9515_v55  ;;  %v12498_v38 = vld [vmem:[#allocation149_spill] sm:$0xff]  ;;  %v12533_v8 = vld [vmem:[#allocation83_spill] sm:$0xff] }
 0xbc9   :  { %v3371_v6 = vmul.f32 %v12498_v38, %v9576_v33 }
 0xbca   :  { %v3581_v52 = vadd.f32 %v3565_v16, %v3485_v59  ;;  %v3384_v26 = vadd.f32 %v3368_v36, %v3274_v46  ;;  %v3170_v59 = vmul.f32 %v12495_v29, %v9528_v49  ;;  %v12496_v16 = vld [vmem:[#allocation182_spill] sm:$0xff]  ;;  %v12499_v46 = vld [vmem:[#allocation91_spill] sm:$0xff]  ;;  %v3284_v42 = vadd.f32 %v9698_v0, %v3171_v57  ;;  %v12534_v29 = vld [vmem:[#allocation177_spill] sm:$0xff] }
 0xbcb   :  { %3612 = vmax.xlane.f32.xlu0 %v9724_v10  ;;  %v3288_v14 = vpop.f32.mrf.mxu1  ;;  %v3560_v36 = vmul.f32 %v12499_v46, %v3516_v20  ;;  %v12500_v49 = vld [vmem:[#allocation163_spill] sm:$0xff]  ;;  %v12505_v20 = vld [vmem:[#allocation165_spill] sm:$0xff] }
 0xbcc   :  { %v9749_v9 = vsel %vm11690_vm9, %v3581_v52, -1e+30  ;;  %v3464_v52 = vmul.f32 %v12496_v16, %v9610_v3  ;;  %v3281_v60 = vadd.f32 %v9681_v23, %v3170_v59  ;;  %v12501_v3 = vld [vmem:[#allocation204_spill] sm:$0xff] }
 0xbcd   :  { %v12539_v16 = vld [vmem:[#allocation68_spill] sm:$0xff] }
 0xbce   :  { %3616 = vmax.xlane.f32.xlu2 %v9732_v39  ;;  %v3480_v62 = vadd.f32 %v3464_v52, %v3384_v26  ;;  %v3387_v2 = vadd.f32 %v3371_v6, %v3281_v60  ;;  %v12504_v60 = vld [vmem:[#allocation120_spill] sm:$0xff]  ;;  %v3532_v6 = vpop.permute.xlu1 %3531  ;;  %v3375_v45 = vmul.f32 %v12539_v16, %v12538_v12 }
 0xbcf   :  { %v3468_v0 = vmul.f32 %v12505_v20, %v12504_v60  ;;  %v12531_v20 = vld [vmem:[#allocation43_spill] sm:$0xff] }
 0xbd0   :  { %v3528_v52 = vpop.permute.xlu0 %3527 }
 0xbd1   :  { %3843 = vrot.lane.b32.xlu1 %v9442_v30, %s6498_s4  ;;  %v12507_v30 = vld [vmem:[#allocation169_spill] sm:$0xff] }
 0xbd3   :  { %3618 = vmax.xlane.f32.xlu0 %v9741_v40  ;;  %v3290_v33 = vpop.f32.mrf.mxu1 }
 0xbd9   :  { %3849 = vrot.lane.b32.xlu1 %v9457_v4, %s6498_s4 }
 0xbdb   :  { %3624 = vmax.xlane.f32.xlu0 %v9749_v9 }
 0xbe6   :  { %4152 = vperm.xlu2 %6047, %v9364_v34   ;;  %v12502_v34 = vld [vmem:[#allocation153_spill] sm:$0xff] }
 0xbe7   :  { %v3467_v26 = vmul.f32 %v12502_v34, %v12501_v3  ;;  %v3564_v3 = vmul.f32 %v12507_v30, %v3532_v6  ;;  %v12516_v6 = vld [vmem:[#allocation206_spill] sm:$0xff] }
 0xbe8   :  { %v12532_v34 = vld [vmem:[#allocation58_spill] sm:$0xff] }
 0xbe9   :  { %v3483_v4 = vadd.f32 %v3467_v26, %v3387_v2  ;;  %v12510_v2 = vld [vmem:[#allocation21_spill] sm:$0xff]  ;;  %v12511_v26 = vld [vmem:[#allocation67_spill] sm:$0xff] }
 0xbea   :  { %v3175_v59 = vmul.f32 %v12511_v26, %v12510_v2  ;;  %v12519_v2 = vld [vmem:[#allocation71_spill] sm:$0xff] }
 0xbeb   :  { %vm12520_vm6 = vcmp.gt.f32.partialorder %v12519_v2, 0.0 }
 0xbef   :  { %4156 = vperm.xlu0 %6048, %v9367_v18   ;;  %v3372_v18 = vmul.f32 %v12500_v49, %v9590_v15 }
 0xbf1   :  { %v3388_v23 = vadd.f32 %v3372_v18, %v3284_v42  ;;  %v3293_v42 = vpop.f32.mrf.mxu1 }
 0xbf3   :  { %v3484_v15 = vadd.f32 %v3468_v0, %v3388_v23  ;;  %v12515_v23 = vld [vmem:[#allocation183_spill] sm:$0xff] }
 0xbf7   :  { %4184 = vperm.xlu0 %6048, %v9388_v31   ;;  %v3576_v31 = vadd.f32 %v3560_v36, %v3480_v62  ;;  %v12506_v62 = vld [vmem:[#allocation158_spill] sm:$0xff] }
 0xbf8   :  { %v3563_v57 = vmul.f32 %v12506_v62, %v3528_v52  ;;  %v12514_v52 = vld [vmem:[#allocation51_spill] sm:$0xff]  ;;  %v3470_v62 = vmul.f32 %v12534_v29, %v12533_v8  ;;  %v12541_v8 = vld [vmem:[#allocation86_spill] sm:$0xff] }
 0xbf9   :  { %v9777_v55 = vsel %vm276_vm14, %v3576_v31, -1e+30  ;;  %v3580_v31 = vadd.f32 %v3564_v3, %v3484_v15  ;;  %v3376_v0 = vmul.f32 %v12515_v23, %v12514_v52  ;;  %v3548_v3 = vpop.permute.xlu2 %3547  ;;  %v12522_v52 = vld [vmem:[#allocation24_spill] sm:$0xff] }
 0xbfa   :  { %v3579_v36 = vadd.f32 %v3563_v57, %v3483_v4  ;;  %v3294_v4 = vadd.f32 %v3293_v42, %v3175_v59  ;;  %v3568_v44 = vmul.f32 %v12518_v22, %v3548_v3  ;;  %v3544_v59 = vpop.permute.xlu1 %3543  ;;  %v12521_v42 = vld [vmem:[#allocation49_spill] sm:$0xff] }
 0xbfb   :  { %v9793_v60 = vsel %vm12513_vm1, %v3580_v31, -1e+30  ;;  %v3540_v31 = vpop.permute.xlu0 %3539  ;;  %v12529_v22 = vld [vmem:[#allocation81_spill] sm:$0xff] }
 0xbfc   :  { %v9786_v18 = vsel %vm12509_vm15, %v3579_v36, -1e+30  ;;  %v3392_v57 = vadd.f32 %v3376_v0, %v3294_v4  ;;  %v12517_v36 = vld [vmem:[#allocation73_spill] sm:$0xff] }
 0xbfd   :  { %v3472_v15 = vmul.f32 %v12517_v36, %v12516_v6  ;;  %v12524_v6 = vld [vmem:[#allocation25_spill] sm:$0xff]  ;;  %v12528_v36 = vld [vmem:[#allocation32_spill] sm:$0xff] }
 0xbfe   :  { %v3173_v26 = vmul.f32 %v12529_v22, %v12528_v36  ;;  %v12537_v36 = vld [vmem:[#allocation178_spill] sm:$0xff] }
 0xbff   :  { %v3488_v58 = vadd.f32 %v3472_v15, %v3392_v57  ;;  %v12523_v57 = vld [vmem:[#allocation44_spill] sm:$0xff]  ;;  %v3566_v22 = vmul.f32 %v12537_v36, %v3540_v31 }
 0xc00   :  { %v12526_v15 = vld [vmem:[#allocation52_spill] sm:$0xff] }
 0xc01   :  { %v3584_v49 = vadd.f32 %v3568_v44, %v3488_v58 }
 0xc02   :  { %v9810_v0 = vpop.xlane.xlu1 %3602 }
 0xc03   :  { %3614 = vmax.xlane.f32.xlu1 %v9777_v55  ;;  %v9803_v51 = vsel %vm12520_vm6, %v3584_v49, -1e+30  ;;  %v9808_v4 = vpop.permute.xlu0 %3551  ;;  %v12525_v49 = vld [vmem:[#allocation192_spill] sm:$0xff] }
 0xc0a   :  { %v3836_v44 = vpop.permute.xlu1 %3835 }
 0xc0b   :  { %3620 = vmax.xlane.f32.xlu1 %v9786_v18  ;;  %v3840_v58 = vpop.permute.xlu0 %3839 }
 0xc0f   :  { %3622 = vmax.xlane.f32.xlu2 %v9793_v60 }
 0xc13   :  { %v9818_v2 = vpop.xlane.xlu0 %3606 }
 0xc1b   :  { %v3842_v30 = vpop.permute.xlu0 %3841 }
 0xc21   :  { %3630 = vmax.xlane.f32.xlu0 %v9803_v51 }
 0xc24   :  { %4160 = vperm.xlu1 %6049, %v12521_v42   ;;  %v12527_v42 = vld [vmem:[#allocation22_spill] sm:$0xff] }
 0xc27   :  { %4164 = vperm.xlu2 %6047, %v12522_v52   ;;  %v3605_v52 = vpop.xlane.xlu2 %3604 }
 0xc2b   :  { %v9816_v3 = vpop.xlane.xlu1 %3608 }
 0xc2c   :  { %4172 = vperm.xlu1 %6049, %v12523_v57   ;;  %v3289_v57 = vadd.f32 %v3288_v14, %v3173_v26  ;;  %v3848_v26 = vpop.permute.xlu0 %3847 }
 0xc2f   :  { %4168 = vperm.xlu2 %6047, %v12524_v6   ;;  %v12530_v6 = vmov 53  }
 0xc35   :  { %4196 = vperm.xlu0 %6048, %v12525_v49   ;;  %v3374_v49 = vmul.f32 %v12532_v34, %v12531_v20  ;;  %v12540_v34 = vld [vmem:[#allocation199_spill] sm:$0xff] }
 0xc36   :  { %v3471_v29 = vmul.f32 %v12541_v8, %v12540_v34 }
 0xc37   :  { %4176 = vperm.xlu2 %6047, %v12526_v15   ;;  %v3390_v38 = vadd.f32 %v3374_v49, %v3289_v57  ;;  %v3838_v15 = vpop.permute.xlu2 %3837 }
 0xc39   :  { %v3486_v25 = vadd.f32 %v3470_v62, %v3390_v38 }
 0xc3b   :  { %v3582_v20 = vadd.f32 %v3566_v22, %v3486_v25 }
 0xc3d   :  { %4208 = vperm.xlu0 %6048, %v12527_v42   ;;  %v12535_v42 = vld [vmem:[#allocation36_spill] sm:$0xff] }
 0xc3e   :  { %v3174_v53 = vmul.f32 %v12536_v17, %v12535_v42 }
 0xc3f   :  { %v3846_v49 = vpop.permute.xlu2 %3845 }
 0xc40   :  { %v3291_v14 = vadd.f32 %v3290_v33, %v3174_v53  ;;  %v3635_v53 = vsub.f32 %v9650_v27, %v3605_v52  ;;  %v12544_v33 = vld [vmem:[#allocation70_spill] sm:$0xff]  ;;  %v12548_v52 = vld [vmem:[#allocation193_spill] sm:$0xff] }
 0xc41   :  { %v3567_v62 = vmul.f32 %v12544_v33, %v3544_v59  ;;  %v12547_v59 = vld [vmem:[#allocation59_spill] sm:$0xff] }
 0xc42   :  { %v3391_v57 = vadd.f32 %v3375_v45, %v3291_v14  ;;  %v3652_v22 = vmul.f32 1.442695, %v3635_v53  ;;  %v12545_v45 = vld [vmem:[#allocation62_spill] sm:$0xff]  ;;  %v12552_v53 = vld [vmem:[#allocation97_spill] sm:$0xff] }
 0xc43   :  { %v3844_v23 = vpop.permute.xlu1 %3843  ;;  %vm12546_vm13 = vcmp.gt.f32.partialorder %v12545_v45, 0.0 }
 0xc44   :  { %v3487_v38 = vadd.f32 %v3471_v29, %v3391_v57  ;;  %6190 = vpow2.f32 %v3652_v22  ;;  %v12554_v22 = vld [vmem:[#allocation76_spill] sm:$0xff] }
 0xc45   :  { %6050 = vset.pattern.permute.xlu0 %v12530_v6 }
 0xc46   :  { %v3583_v25 = vadd.f32 %v3567_v62, %v3487_v38  ;;  %v12551_v38 = vld [vmem:[#allocation47_spill] sm:$0xff] }
 0xc47   :  { %v3611_v12 = vpop.xlane.xlu2 %3610  ;;  %v3176_v62 = vmul.f32 %v12552_v53, %v12551_v38  ;;  %v12557_v38 = vld [vmem:[#allocation99_spill] sm:$0xff] }
 0xc48   :  { %v3599_v31 = vsel %vm12546_vm13, %v3583_v25, -1e+30  ;;  %v3638_v34 = vsub.f32 %v9714_v7, %v3611_v12  ;;  %v12553_v25 = vld [vmem:[#allocation54_spill] sm:$0xff]  ;;  %vm12558_vm7 = vcmp.gt.f32.partialorder %v12557_v38, 0.0 }
 0xc4a   :  { %v3658_v42 = vmul.f32 1.442695, %v3638_v34  ;;  %v9845_v14 = vpop.eup %6190  ;;  %v3377_v34 = vmul.f32 %v12554_v22, %v12553_v25 }
 0xc4b   :  { %v3850_v28 = vpop.permute.xlu1 %3849 }
 0xc4c   :  { %3859 = vmatpush.bf16.msra.mxu3 %v3850_v28  ;;  %v12542_v28 = vld [vmem:[#allocation179_spill] sm:$0xff]  ;;  %6192 = vpow2.f32 %v3658_v42 }
 0xc4d   :  { %vm12543_vm11 = vcmp.gt.f32.partialorder %v12542_v28, 0.0 }
 0xc4e   :  { %v9837_v56 = vsel %vm12543_vm11, %v3582_v20, -1e+30 }
 0xc4f   :  { %v3617_v29 = vpop.xlane.xlu2 %3616 }
 0xc50   :  { %3860 = vmatpush.bf16.msra.mxu3 %v3848_v26  ;;  %v3641_v27 = vsub.f32 %v9732_v39, %v3617_v29  ;;  %v12550_v39 = vld [vmem:[#allocation95_spill] sm:$0xff]  ;;  %v12555_v29 = vld [vmem:[#allocation92_spill] sm:$0xff] }
 0xc54   :  { %3861 = vmatpush.bf16.msra.mxu3 %v3846_v49  ;;  %v3295_v49 = vpop.f32.mrf.mxu1 }
 0xc55   :  { %v3296_v12 = vadd.f32 %v3295_v49, %v3176_v62  ;;  %v12560_v62 = vld [vmem:[#allocation116_spill] sm:$0xff] }
 0xc56   :  { %3626 = vmax.xlane.f32.xlu1 %v9837_v56 }
 0xc57   :  { %v3393_v42 = vadd.f32 %v3377_v34, %v3296_v12 }
 0xc58   :  { %3862 = vmatpush.bf16.msra.mxu3 %v3844_v23  ;;  %v9849_v23 = vpop.eup %6192 }
 0xc5c   :  { %3863 = vmatpush.bf16.msra.mxu3 %v3842_v30  ;;  %v3664_v30 = vmul.f32 1.442695, %v3641_v27  ;;  %v3473_v27 = vmul.f32 %v12555_v29, %v9635_v21 }
 0xc5e   :  { %6194 = vpow2.f32 %v3664_v30  ;;  %v3489_v30 = vadd.f32 %v3473_v27, %v3393_v42 }
 0xc60   :  { %3628 = vmax.xlane.f32.xlu2 %v3599_v31  ;;  %3864 = vmatpush.bf16.msra.mxu3 %v3840_v58  ;;  %v12549_v58 = vld [vmem:[#allocation17_spill] sm:$0xff] }
 0xc64   :  { %3865 = vmatpush.bf16.msra.mxu3 %v3838_v15  ;;  %v9853_v7 = vpop.eup %6194  ;;  %v9858_v15 = vpop.permute.xlu2 %4152 }
 0xc67   :  { %3684 = vadd.xlane.f32.xlu0 %v9845_v14 }
 0xc68   :  { %3866 = vmatpush.bf16.msra.mxu3 %v3836_v44 }
 0xc6f   :  { %4180 = vperm.xlu1 %6049, %v12547_v59   ;;  %3690 = vadd.xlane.f32.xlu0 %v9849_v23 }
 0xc76   :  { %v3615_v12 = vpop.xlane.xlu1 %3614 }
 0xc77   :  { %4192 = vperm.xlu1 %6049, %v12548_v52   ;;  %3696 = vadd.xlane.f32.xlu0 %v9853_v7 }
 0xc78   :  { %4188 = vperm.xlu2 %6047, %v12549_v58  }
 0xc7e   :  { %v3621_v27 = vpop.xlane.xlu1 %3620 }
 0xc80   :  { %4200 = vperm.xlu2 %6047, %v12550_v39  }
 0xc82   :  { %v3623_v44 = vpop.xlane.xlu2 %3622 }
 0xc83   :  { %v3644_v26 = vsub.f32 %v9793_v60, %v3623_v44  ;;  %v12556_v60 = vld [vmem:[#allocation187_spill] sm:$0xff] }
 0xc84   :  { %v3569_v44 = vmul.f32 %v12556_v60, %v9808_v4 }
 0xc85   :  { %v3670_v20 = vmul.f32 1.442695, %v3644_v26  ;;  %v3634_v26 = vsub.f32 %v9640_v47, %v9810_v0  ;;  %v12562_v47 = vld [vmem:[#allocation195_spill] sm:$0xff] }
 0xc87   :  { %6196 = vpow2.f32 %v3670_v20  ;;  %v3585_v20 = vadd.f32 %v3569_v44, %v3489_v30  ;;  %v3650_v45 = vmul.f32 1.442695, %v3634_v26  ;;  %v3637_v44 = vsub.f32 %v9687_v1, %v9816_v3 }
 0xc88   :  { %v3636_v26 = vsub.f32 %v9657_v41, %v9818_v2 }
 0xc89   :  { %v9877_v28 = vsel %vm12558_vm7, %v3585_v20, -1e+30  ;;  %6198 = vpow2.f32 %v3650_v45  ;;  %v3613_v45 = vpop.xlane.xlu0 %3612 }
 0xc8a   :  { %v9883_v21 = vpop.permute.xlu2 %4164 }
 0xc8b   :  { %12559 = vst [vmem:[#allocation198_spill] sm:$0xff] %v9883_v21  ;;  %v12584_v21 = vld [vmem:[#allocation30_spill] sm:$0xff] }
 0xc8c   :  { %vm12585_vm11 = vcmp.gt.f32.partialorder %v12584_v21, 0.0  ;;  %v12590_v21 = vld [vmem:[#allocation26_spill] sm:$0xff] }
 0xc8d   :  { %v9862_v57 = vpop.eup %6196  ;;  %vm12591_vm7 = vcmp.gt.f32.partialorder %v12590_v21, 0.0 }
 0xc8e   :  { %3702 = vadd.xlane.f32.xlu0 %v9862_v57 }
 0xc8f   :  { %v9880_v49 = vpop.eup %6198 }
 0xc91   :  { %v3619_v42 = vpop.xlane.xlu0 %3618 }
 0xc92   :  { %v9886_v4 = vpop.permute.xlu2 %4168 }
 0xc93   :  { %12561 = vst [vmem:[#allocation159_spill] sm:$0xff] %v9886_v4  ;;  %v3654_v4 = vmul.f32 1.442695, %v3636_v26 }
 0xc96   :  { %v9901_v38 = vpop.permute.xlu1 %4160 }
 0xc97   :  { %12564 = vst [vmem:[#allocation197_spill] sm:$0xff] %v9901_v38 }
 0xc9a   :  { %v9893_v0 = vpop.permute.xlu2 %4176 }
 0xc9b   :  { %12563 = vst [vmem:[#allocation207_spill] sm:$0xff] %v9893_v0  ;;  %v3625_v0 = vpop.xlane.xlu0 %3624 }
 0xc9e   :  { %v9908_v3 = vpop.permute.xlu1 %4172 }
 0xc9f   :  { %12565 = vst [vmem:[#allocation121_spill] sm:$0xff] %v9908_v3 }
 0xca1   :  { %3632 = vmax.xlane.f32.xlu1 %v9877_v28 }
 0xca3   :  { %v9906_v1 = vpop.permute.xlu0 %4156 }
 0xca9   :  { %3682 = vadd.xlane.f32.xlu2 %v9880_v49 }
 0xcab   :  { %v9920_v26 = vpop.permute.xlu0 %4184 }
 0xcac   :  { %12566 = vst [vmem:[#allocation205_spill] sm:$0xff] %v9920_v26  ;;  %v12575_v26 = vld [vmem:[#allocation31_spill] sm:$0xff] }
 0xcad   :  { %vm12576_vm1 = vcmp.gt.f32.partialorder %v12575_v26, 0.0 }
 0xcba   :  { %4204 = vperm.xlu1 %6049, %v12560_v62  }
 0xcc1   :  { %4212 = vperm.xlu2 %6047, %v12562_v47  }
 0xcc2   :  { %4231 = vrot.lane.b32.xlu1 %v9410_v63, %s6500_s17 }
 0xcc3   :  { %6052 = vset.pattern.permute.xlu1 %v12530_v6 }
 0xcc9   :  { %6051 = vset.pattern.permute.xlu2 %v12530_v6  ;;  %v3656_v6 = vmul.f32 1.442695, %v3637_v44  ;;  %v3643_v44 = vsub.f32 %v9786_v18, %v3621_v27  ;;  %v3645_v18 = vsub.f32 %v9749_v9, %v3625_v0 }
 0xccb   :  { %v3672_v27 = vmul.f32 1.442695, %v3645_v18 }
 0xcd3   :  { %v3629_v25 = vpop.xlane.xlu2 %3628 }
 0xcd4   :  { %v3647_v34 = vsub.f32 %v3599_v31, %v3629_v25  ;;  %v3640_v31 = vsub.f32 %v9777_v55, %v3615_v12  ;;  %v3639_v25 = vsub.f32 %v9724_v10, %v3613_v45  ;;  %v3642_v10 = vsub.f32 %v9741_v40, %v3619_v42 }
 0xcd5   :  { %v3668_v55 = vmul.f32 1.442695, %v3643_v44 }
 0xcd6   :  { %v3676_v30 = vmul.f32 1.442695, %v3647_v34  ;;  %v3662_v34 = vmul.f32 1.442695, %v3640_v31  ;;  %v3660_v2 = vmul.f32 1.442695, %v3639_v25  ;;  %v3631_v25 = vpop.xlane.xlu0 %3630 }
 0xcd7   :  { %v3666_v12 = vmul.f32 1.442695, %v3642_v10 }
 0xcd8   :  { %6200 = vpow2.f32 %v3676_v30 }
 0xcd9   :  { %6202 = vpow2.f32 %v3656_v6 }
 0xcda   :  { %6204 = vpow2.f32 %v3654_v4  ;;  %v3627_v4 = vpop.xlane.xlu1 %3626 }
 0xcdb   :  { %6206 = vpow2.f32 %v3662_v34  ;;  %v3646_v31 = vsub.f32 %v9837_v56, %v3627_v4  ;;  %v3648_v56 = vsub.f32 %v9803_v51, %v3631_v25 }
 0xcdc   :  { %6208 = vpow2.f32 %v3660_v2 }
 0xcdd   :  { %6210 = vpow2.f32 %v3668_v55  ;;  %v3674_v40 = vmul.f32 1.442695, %v3646_v31  ;;  %v3678_v44 = vmul.f32 1.442695, %v3648_v56  ;;  %v9945_v55 = vpop.permute.xlu2 %4188 }
 0xcde   :  { %v9899_v20 = vpop.eup %6200  ;;  %6212 = vpow2.f32 %v3666_v12  ;;  %v9942_v0 = vpop.permute.xlu0 %4196  ;;  %12569 = vst [vmem:[#allocation105_spill] sm:$0xff] %v9945_v55 }
 0xcdf   :  { %3708 = vadd.xlane.f32.xlu0 %v9899_v20  ;;  %v9910_v41 = vpop.eup %6202  ;;  %6214 = vpow2.f32 %v3674_v40  ;;  %12568 = vst [vmem:[#allocation90_spill] sm:$0xff] %v9942_v0 }
 0xce0   :  { %v9913_v30 = vpop.eup %6204  ;;  %6216 = vpow2.f32 %v3672_v27 }
 0xce1   :  { %v9918_v45 = vpop.eup %6206  ;;  %6218 = vpow2.f32 %v3678_v44 }
 0xce2   :  { %v9923_v6 = vpop.eup %6208  ;;  %v9937_v10 = vpop.permute.xlu1 %4180 }
 0xce3   :  { %v9928_v42 = vpop.eup %6210  ;;  %12567 = vst [vmem:[#allocation123_spill] sm:$0xff] %v9937_v10 }
 0xce4   :  { %v9931_v34 = vpop.eup %6212 }
 0xce5   :  { %v9935_v2 = vpop.eup %6214  ;;  %v9954_v31 = vpop.permute.xlu2 %4200 }
 0xce6   :  { %v9940_v9 = vpop.eup %6216  ;;  %v9952_v51 = vpop.permute.xlu0 %4208  ;;  %12572 = vst [vmem:[#allocation127_spill] sm:$0xff] %v9954_v31 }
 0xce7   :  { %v9947_v4 = vpop.eup %6218  ;;  %12571 = vst [vmem:[#allocation124_spill] sm:$0xff] %v9952_v51 }
 0xcea   :  { %3688 = vadd.xlane.f32.xlu2 %v9910_v41  ;;  %v9949_v12 = vpop.permute.xlu1 %4192 }
 0xceb   :  { %12570 = vst [vmem:[#allocation108_spill] sm:$0xff] %v9949_v12  ;;  %v12573_v12 = vld [vmem:[#allocation35_spill] sm:$0xff] }
 0xcec   :  { %3686 = vadd.xlane.f32.xlu1 %v9913_v30  ;;  %vm12574_vm15 = vcmp.gt.f32.partialorder %v12573_v12, 0.0 }
 0xcee   :  { %v3685_v40 = vpop.xlane.xlu0 %3684 }
 0xcef   :  { %6220 = vrcp.f32 %v3685_v40 }
 0xcf2   :  { %3694 = vadd.xlane.f32.xlu2 %v9918_v45 }
 0xcf4   :  { %3692 = vadd.xlane.f32.xlu1 %v9923_v6 }
 0xcf5   :  { %v6221_v44 = vpop.eup %6220 }
 0xcf6   :  { %v3731_v55 = vsel %vm12574_vm15, %v6221_v44, 0.0  ;;  %v3691_v3 = vpop.xlane.xlu0 %3690 }
 0xcf7   :  { %v3747_v10 = vmul.f32 %v9845_v14, %v3731_v55  ;;  %v12578_v14 = vld [vmem:[#allocation146_spill] sm:$0xff] }
 0xcf8   :  { %v12579_v55 = vld [vmem:[#allocation142_spill] sm:$0xff] }
 0xcf9   :  { %v3771_v44 = vmul.f32 %v12452_v50, %v3747_v10  ;;  %v4071_v12 = vmul.f32 %v12456_v35, %v3747_v10 }
 0xcfa   :  { %3700 = vadd.xlane.f32.xlu2 %v9928_v42 }
 0xcfc   :  { %3698 = vadd.xlane.f32.xlu1 %v9931_v34 }
 0xd02   :  { %3706 = vadd.xlane.f32.xlu2 %v9935_v2 }
 0xd04   :  { %3704 = vadd.xlane.f32.xlu1 %v9940_v9 }
 0xd0c   :  { %3710 = vadd.xlane.f32.xlu1 %v9947_v4 }
 0xd14   :  { %v3633_v18 = vpop.xlane.xlu1 %3632 }
 0xd15   :  { %v3649_v27 = vsub.f32 %v9877_v28, %v3633_v18 }
 0xd17   :  { %v3680_v25 = vmul.f32 1.442695, %v3649_v27  ;;  %v12577_v27 = vld [vmem:[#allocation133_spill] sm:$0xff] }
 0xd19   :  { %6222 = vpow2.f32 %v3680_v25 }
 0xd1c   :  { %v3683_v56 = vpop.xlane.xlu2 %3682 }
 0xd1d   :  { %6224 = vrcp.f32 %v3683_v56 }
 0xd1f   :  { %v9957_v0 = vpop.eup %6222 }
 0xd20   :  { %3712 = vadd.xlane.f32.xlu2 %v9957_v0 }
 0xd23   :  { %v6225_v51 = vpop.eup %6224 }
 0xd24   :  { %v3730_v31 = vsel %vm12576_vm1, %v6225_v51, 0.0 }
 0xd25   :  { %v3746_v28 = vmul.f32 %v9880_v49, %v3730_v31  ;;  %v3990_v49 = vmul.f32 %v12578_v14, %v3747_v10  ;;  %v3909_v31 = vmul.f32 %v12579_v55, %v3747_v10 }
 0xd27   :  { %v4070_v18 = vmul.f32 %v12451_v48, %v3746_v28  ;;  %v3908_v40 = vmul.f32 %v12449_v37, %v3746_v28  ;;  %v3770_v25 = vmul.f32 %v12577_v27, %v3746_v28  ;;  %v3762_v56 = vpack.c.bf16 %v3747_v10, %v3746_v28 }
 0xd28   :  { %v3989_v51 = vmul.f32 %v12450_v61, %v3746_v28 }
 0xd29   :  { %4086 = vadd.xlane.f32.xlu1 %v4070_v18  ;;  %3924 = vadd.xlane.f32.xlu2 %v3908_v40  ;;  %v9976_v18 = vpop.permute.xlu2 %4212 }
 0xd2a   :  { %3786 = vadd.xlane.f32.xlu0 %v3770_v25  ;;  %3867 = vmatmul.bf16.vlgmr.msra.gmra.mxu3 %v3762_v56  ;;  %12581 = vst [vmem:[#allocation100_spill] sm:$0xff] %v9976_v18 }
 0xd2c   :  { %v9974_v26 = vpop.permute.xlu1 %4204 }
 0xd2d   :  { %12580 = vst [vmem:[#allocation126_spill] sm:$0xff] %v9974_v26 }
 0xd31   :  { %3788 = vadd.xlane.f32.xlu1 %v3771_v44  ;;  %4088 = vadd.xlane.f32.xlu2 %v4071_v12  ;;  %v12582_v44 = vld [vmem:[#allocation34_spill] sm:$0xff] }
 0xd32   :  { %4005 = vadd.xlane.f32.xlu0 %v3989_v51  ;;  %vm12583_vm6 = vcmp.gt.f32.partialorder %v12582_v44, 0.0  ;;  %v12587_v44 = vld [vmem:[#allocation157_spill] sm:$0xff] }
 0xd34   :  { %v9978_v40 = vpop.permute.xlu1 %4231 }
 0xd39   :  { %4007 = vadd.xlane.f32.xlu1 %v3990_v49 }
 0xd3a   :  { %3926 = vadd.xlane.f32.xlu0 %v3909_v31 }
 0xd5d   :  { %v3689_v25 = vpop.xlane.xlu2 %3688 }
 0xd5e   :  { %6226 = vrcp.f32 %v3689_v25 }
 0xd5f   :  { %v3687_v56 = vpop.xlane.xlu1 %3686 }
 0xd60   :  { %6228 = vrcp.f32 %v3687_v56  ;;  %v12586_v56 = vld [vmem:[#allocation160_spill] sm:$0xff] }
 0xd61   :  { %6230 = vrcp.f32 %v3691_v3 }
 0xd64   :  { %v6227_v28 = vpop.eup %6226 }
 0xd65   :  { %v3733_v12 = vsel %vm12583_vm6, %v6227_v28, 0.0 }
 0xd66   :  { %v6229_v51 = vpop.eup %6228  ;;  %v3749_v49 = vmul.f32 %v9910_v41, %v3733_v12  ;;  %v12588_v12 = vld [vmem:[#allocation23_spill] sm:$0xff] }
 0xd67   :  { %v3732_v10 = vsel %vm12585_vm11, %v6229_v51, 0.0  ;;  %v3693_v18 = vpop.xlane.xlu1 %3692  ;;  %v6231_v28 = vpop.eup %6230  ;;  %vm12589_vm13 = vcmp.gt.f32.partialorder %v12588_v12, 0.0 }
 0xd68   :  { %v3748_v31 = vmul.f32 %v9913_v30, %v3732_v10  ;;  %6232 = vrcp.f32 %v3693_v18  ;;  %v4073_v30 = vmul.f32 %v12466_v54, %v3749_v49  ;;  %v3734_v3 = vsel %vm12589_vm13, %v6231_v28, 0.0  ;;  %v3697_v18 = vpop.xlane.xlu0 %3696  ;;  %v12593_v28 = vld [vmem:[#allocation168_spill] sm:$0xff] }
 0xd69   :  { %v3773_v10 = vmul.f32 %v12463_v13, %v3749_v49  ;;  %v3992_v12 = vmul.f32 %v12593_v28, %v3749_v49 }
 0xd6a   :  { %v3910_v26 = vmul.f32 %v12458_v19, %v3748_v31  ;;  %v3772_v25 = vmul.f32 %v12457_v11, %v3748_v31  ;;  %v4072_v38 = vmul.f32 %v12586_v56, %v3748_v31  ;;  %v3763_v35 = vpack.c.bf16 %v3749_v49, %v3748_v31 }
 0xd6b   :  { %v3991_v41 = vmul.f32 %v12587_v44, %v3748_v31 }
 0xd6c   :  { %3928 = vadd.xlane.f32.xlu1 %v3910_v26  ;;  %3790 = vadd.xlane.f32.xlu2 %v3772_v25  ;;  %v3695_v26 = vpop.xlane.xlu2 %3694  ;;  %v12592_v25 = vld [vmem:[#allocation164_spill] sm:$0xff] }
 0xd6d   :  { %4090 = vadd.xlane.f32.xlu0 %v4072_v38  ;;  %3872 = vmatmul.bf16.gmra.mxu3 %v3763_v35  ;;  %v3750_v38 = vmul.f32 %v9849_v23, %v3734_v3  ;;  %v3911_v54 = vmul.f32 %v12592_v25, %v3749_v49  ;;  %6234 = vrcp.f32 %v3695_v26  ;;  %v12598_v49 = vld [vmem:[#allocation38_spill] sm:$0xff] }
 0xd6e   :  { %v6233_v51 = vpop.eup %6232  ;;  %6236 = vrcp.f32 %v3697_v18  ;;  %vm12599_vm1 = vcmp.gt.f32.partialorder %v12598_v49, 0.0 }
 0xd6f   :  { %v3735_v56 = vsel %vm12591_vm7, %v6233_v51, 0.0  ;;  %v3774_v31 = vmul.f32 %v12467_v5, %v3750_v38 }
 0xd70   :  { %v3751_v35 = vmul.f32 %v9923_v6, %v3735_v56  ;;  %v4074_v6 = vmul.f32 %v12475_v32, %v3750_v38 }
 0xd72   :  { %v3764_v13 = vpack.c.bf16 %v3751_v35, %v3750_v38 }
 0xd73   :  { %v6235_v51 = vpop.eup %6234 }
 0xd74   :  { %4009 = vadd.xlane.f32.xlu2 %v3991_v41  ;;  %4092 = vadd.xlane.f32.xlu1 %v4073_v30  ;;  %v12594_v41 = vld [vmem:[#allocation173_spill] sm:$0xff]  ;;  %v6237_v56 = vpop.eup %6236  ;;  %v12595_v30 = vld [vmem:[#allocation72_spill] sm:$0xff]  ;;  %v3701_v18 = vpop.xlane.xlu2 %3700 }
 0xd75   :  { %3792 = vadd.xlane.f32.xlu0 %v3773_v10  ;;  %v3993_v23 = vmul.f32 %v12594_v41, %v3750_v38  ;;  %v3912_v3 = vmul.f32 %v12595_v30, %v3750_v38  ;;  %v12596_v10 = vld [vmem:[#allocation39_spill] sm:$0xff]  ;;  %v4075_v38 = vmul.f32 %v12480_v43, %v3751_v35 }
 0xd76   :  { %vm12597_vm15 = vcmp.gt.f32.partialorder %v12596_v10, 0.0  ;;  %v12601_v41 = vld [vmem:[#allocation87_spill] sm:$0xff]  ;;  %v12608_v10 = vld [vmem:[#allocation64_spill] sm:$0xff] }
 0xd77   :  { %v3736_v21 = vsel %vm12597_vm15, %v6235_v51, 0.0  ;;  %v3775_v5 = vmul.f32 %v12601_v41, %v3751_v35 }
 0xd7c   :  { %3794 = vadd.xlane.f32.xlu1 %v3774_v31  ;;  %3930 = vadd.xlane.f32.xlu2 %v3911_v54  ;;  %v3737_v54 = vsel %vm12599_vm1, %v6237_v56, 0.0  ;;  %v12600_v31 = vld [vmem:[#allocation176_spill] sm:$0xff] }
 0xd7d   :  { %4011 = vadd.xlane.f32.xlu0 %v3992_v12  ;;  %3877 = vmatmul.bf16.gmra.mxu3 %v3764_v13  ;;  %v3752_v12 = vmul.f32 %v9918_v45, %v3736_v21  ;;  %v3699_v13 = vpop.xlane.xlu1 %3698  ;;  %v3753_v26 = vmul.f32 %v9853_v7, %v3737_v54  ;;  %v3913_v32 = vmul.f32 %v12600_v31, %v3751_v35 }
 0xd7e   :  { %6238 = vrcp.f32 %v3699_v13  ;;  %v3994_v21 = vmul.f32 %v12477_v24, %v3751_v35  ;;  %v12605_v13 = vld [vmem:[#allocation42_spill] sm:$0xff]  ;;  %v3703_v35 = vpop.xlane.xlu0 %3702 }
 0xd7f   :  { %v3765_v51 = vpack.c.bf16 %v3753_v26, %v3752_v12  ;;  %6240 = vrcp.f32 %v3701_v18  ;;  %v4076_v45 = vmul.f32 %v12499_v46, %v3752_v12  ;;  %vm12606_vm11 = vcmp.gt.f32.partialorder %v12605_v13, 0.0  ;;  %v12613_v13 = vld [vmem:[#allocation33_spill] sm:$0xff] }
 0xd80   :  { %v3914_v46 = vmul.f32 %v12608_v10, %v3752_v12  ;;  %vm12614_vm13 = vcmp.gt.f32.partialorder %v12613_v13, 0.0  ;;  %v12619_v13 = vld [vmem:[#allocation147_spill] sm:$0xff] }
 0xd84   :  { %4013 = vadd.xlane.f32.xlu1 %v3993_v23  ;;  %4094 = vadd.xlane.f32.xlu2 %v4074_v6  ;;  %v6239_v23 = vpop.eup %6238  ;;  %v12602_v6 = vld [vmem:[#allocation77_spill] sm:$0xff] }
 0xd85   :  { %3932 = vadd.xlane.f32.xlu0 %v3912_v3  ;;  %v6241_v7 = vpop.eup %6240  ;;  %v3776_v56 = vmul.f32 %v12602_v6, %v3752_v12  ;;  %v12603_v3 = vld [vmem:[#allocation28_spill] sm:$0xff]  ;;  %v3705_v18 = vpop.xlane.xlu1 %3704  ;;  %v12609_v6 = vld [vmem:[#allocation182_spill] sm:$0xff] }
 0xd86   :  { %vm12604_vm6 = vcmp.gt.f32.partialorder %v12603_v3, 0.0  ;;  %6242 = vrcp.f32 %v3705_v18  ;;  %v3995_v3 = vmul.f32 %v12609_v6, %v3752_v12  ;;  %v12615_v12 = vld [vmem:[#allocation41_spill] sm:$0xff] }
 0xd87   :  { %v3738_v54 = vsel %vm12604_vm6, %v6239_v23, 0.0  ;;  %6244 = vrcp.f32 %v3703_v35  ;;  %vm12616_vm7 = vcmp.gt.f32.partialorder %v12615_v12, 0.0  ;;  %v3709_v35 = vpop.xlane.xlu0 %3708 }
 0xd8c   :  { %3934 = vadd.xlane.f32.xlu1 %v3913_v32  ;;  %3796 = vadd.xlane.f32.xlu2 %v3775_v5  ;;  %v3739_v5 = vsel %vm12606_vm11, %v6241_v7, 0.0  ;;  %v3754_v32 = vmul.f32 %v9931_v34, %v3738_v54  ;;  %v12611_v7 = vld [vmem:[#allocation186_spill] sm:$0xff] }
 0xd8d   :  { %4096 = vadd.xlane.f32.xlu0 %v4075_v38  ;;  %3882 = vmatmul.bf16.gmra.mxu3 %v3765_v51  ;;  %v3755_v38 = vmul.f32 %v9928_v42, %v3739_v5  ;;  %v12607_v51 = vld [vmem:[#allocation88_spill] sm:$0xff]  ;;  %v12612_v54 = vld [vmem:[#allocation78_spill] sm:$0xff] }
 0xd8e   :  { %v3777_v49 = vmul.f32 %v12607_v51, %v3753_v26  ;;  %v3915_v5 = vmul.f32 %v12612_v54, %v3753_v26 }
 0xd8f   :  { %v3766_v23 = vpack.c.bf16 %v3755_v38, %v3754_v32 }
 0xd94   :  { %4015 = vadd.xlane.f32.xlu2 %v3994_v21  ;;  %4098 = vadd.xlane.f32.xlu1 %v4076_v45  ;;  %v6243_v21 = vpop.eup %6242  ;;  %v12610_v45 = vld [vmem:[#allocation69_spill] sm:$0xff] }
 0xd95   :  { %3798 = vadd.xlane.f32.xlu0 %v3776_v56  ;;  %v3996_v34 = vmul.f32 %v12610_v45, %v3753_v26  ;;  %v4077_v56 = vmul.f32 %v12611_v7, %v3753_v26  ;;  %v6245_v42 = vpop.eup %6244  ;;  %v3741_v51 = vsel %vm12614_vm13, %v6243_v21, 0.0  ;;  %v12618_v45 = vld [vmem:[#allocation138_spill] sm:$0xff]  ;;  %v4078_v21 = vmul.f32 %v12619_v13, %v3754_v32  ;;  %v12625_v13 = vld [vmem:[#allocation45_spill] sm:$0xff] }
 0xd96   :  { %v3778_v26 = vmul.f32 %v12618_v45, %v3754_v32  ;;  %vm12626_vm1 = vcmp.gt.f32.partialorder %v12625_v13, 0.0  ;;  %vm12731_vm13 = vcmask 64512  }
 0xd9c   :  { %3800 = vadd.xlane.f32.xlu1 %v3777_v49  ;;  %3936 = vadd.xlane.f32.xlu2 %v3914_v46  ;;  %v3740_v46 = vsel %vm12616_vm7, %v6245_v42, 0.0  ;;  %v10033_v49 = vmul.f32 %v9940_v9, %v3741_v51  ;;  %v12620_v51 = vld [vmem:[#allocation143_spill] sm:$0xff]  ;;  %v12621_v42 = vld [vmem:[#allocation158_spill] sm:$0xff]  ;;  %vm12732_vm7 = vmmov %vm12731_vm13 }
 0xd9d   :  { %4017 = vadd.xlane.f32.xlu0 %v3995_v3  ;;  %3887 = vmatmul.bf16.gmra.mxu3 %v3766_v23  ;;  %v3707_v3 = vpop.xlane.xlu2 %3706  ;;  %v3756_v18 = vmul.f32 %v9862_v57, %v3740_v46  ;;  %v12617_v23 = vld [vmem:[#allocation140_spill] sm:$0xff]  ;;  %v4079_v57 = vmul.f32 %v12621_v42, %v3755_v38  ;;  %v12622_v46 = vld [vmem:[#allocation150_spill] sm:$0xff] }
 0xd9e   :  { %v3916_v7 = vmul.f32 %v12617_v23, %v3754_v32  ;;  %6246 = vrcp.f32 %v3707_v3  ;;  %v3779_v12 = vmul.f32 %v12622_v46, %v3755_v38  ;;  %v12623_v23 = vld [vmem:[#allocation46_spill] sm:$0xff]  ;;  %v12629_v46 = vld [vmem:[#allocation153_spill] sm:$0xff] }
 0xd9f   :  { %6248 = vrcp.f32 %v3709_v35  ;;  %vm12624_vm15 = vcmp.gt.f32.partialorder %v12623_v23, 0.0  ;;  %v3998_v23 = vmul.f32 %v12629_v46, %v3755_v38 }
 0xda4   :  { %4019 = vadd.xlane.f32.xlu1 %v3996_v34  ;;  %4100 = vadd.xlane.f32.xlu2 %v4077_v56  ;;  %v3767_v34 = vpack.c.bf16 %v10033_v49, %v3756_v18  ;;  %v6247_v9 = vpop.eup %6246  ;;  %v3997_v56 = vmul.f32 %v12620_v51, %v3754_v32  ;;  %v3711_v32 = vpop.xlane.xlu1 %3710  ;;  %v12628_v51 = vld [vmem:[#allocation149_spill] sm:$0xff] }
 0xda5   :  { %3938 = vadd.xlane.f32.xlu0 %v3915_v5  ;;  %v6249_v5 = vpop.eup %6248  ;;  %v3742_v3 = vsel %vm12624_vm15, %v6247_v9, 0.0  ;;  %v3917_v45 = vmul.f32 %v12628_v51, %v3755_v38  ;;  %v10059_v38 = vpop.xlane.xlu0 %3786  ;;  %vm12733_vm15 = vmmov %vm12732_vm7 }
 0xda6   :  { %v3758_v35 = vmul.f32 %v9935_v2, %v3742_v3  ;;  %12636 = vst [vmem:[#allocation82_spill] sm:$0xff] %v10059_v38 }
 0xdac   :  { %3940 = vadd.xlane.f32.xlu1 %v3916_v7  ;;  %3802 = vadd.xlane.f32.xlu2 %v3778_v26  ;;  %v3743_v7 = vsel %vm12626_vm1, %v6249_v5, 0.0  ;;  %v3713_v26 = vpop.xlane.xlu2 %3712  ;;  %v10054_v3 = vpop.xlane.xlu1 %4086  ;;  %vm12734_vm1 = vmmov %vm12732_vm7 }
 0xdad   :  { %4102 = vadd.xlane.f32.xlu0 %v4078_v21  ;;  %3892 = vmatmul.bf16.gmra.mxu3 %v3767_v34  ;;  %v3759_v21 = vmul.f32 %v9899_v20, %v3743_v7  ;;  %v12627_v34 = vld [vmem:[#allocation161_spill] sm:$0xff]  ;;  %6250 = vrcp.f32 %v3713_v26  ;;  %12632 = vst [vmem:[#allocation118_spill] sm:$0xff] %v10054_v3  ;;  %v12633_v7 = vld [vmem:[#allocation163_spill] sm:$0xff]  ;;  %vm12740_vm9 = vmmov %vm12734_vm1 }
 0xdae   :  { %v3780_v42 = vmul.f32 %v12627_v34, %v3756_v18  ;;  %6252 = vrcp.f32 %v3711_v32  ;;  %v3918_v13 = vmul.f32 %v12633_v7, %v3756_v18  ;;  %v12634_v34 = vld [vmem:[#allocation48_spill] sm:$0xff] }
 0xdaf   :  { %v3768_v9 = vpack.c.bf16 %v3759_v21, %v3758_v35  ;;  %vm12635_vm6 = vcmp.gt.f32.partialorder %v12634_v34, 0.0 }
 0xdb4   :  { %4021 = vadd.xlane.f32.xlu2 %v3997_v56  ;;  %4104 = vadd.xlane.f32.xlu1 %v4079_v57  ;;  %v12630_v56 = vld [vmem:[#allocation165_spill] sm:$0xff] }
 0xdb5   :  { %3804 = vadd.xlane.f32.xlu0 %v3779_v12  ;;  %v6251_v12 = vpop.eup %6250  ;;  %v3999_v2 = vmul.f32 %v12630_v56, %v3756_v18  ;;  %v12631_v57 = vld [vmem:[#allocation169_spill] sm:$0xff] }
 0xdb6   :  { %v4080_v5 = vmul.f32 %v12631_v57, %v3756_v18  ;;  %v6253_v20 = vpop.eup %6252  ;;  %v3745_v26 = vsel %vm12635_vm6, %v6251_v12, 0.0  ;;  %v12640_v18 = vld [vmem:[#allocation79_spill] sm:$0xff]  ;;  %v12641_v12 = vld [vmem:[#allocation60_spill] sm:$0xff]  ;;  %vm12735_vm6 = vmmov %vm12734_vm1 }
 0xdb7   :  { %v3781_v57 = vmul.f32 %v12640_v18, %v10033_v49  ;;  %v4081_v34 = vmul.f32 %v12641_v12, %v10033_v49 }
 0xdbc   :  { %3806 = vadd.xlane.f32.xlu1 %v3780_v42  ;;  %3942 = vadd.xlane.f32.xlu2 %v3917_v45  ;;  %v12637_v45 = vld [vmem:[#allocation37_spill] sm:$0xff]  ;;  %v3761_v42 = vmul.f32 %v9957_v0, %v3745_v26  ;;  %v10075_v0 = vpop.xlane.xlu0 %4005 }
 0xdbd   :  { %4023 = vadd.xlane.f32.xlu0 %v3998_v23  ;;  %3897 = vmatmul.bf16.gmra.mxu3 %v3768_v9  ;;  %vm12638_vm11 = vcmp.gt.f32.partialorder %v12637_v45, 0.0  ;;  %v12639_v9 = vld [vmem:[#allocation172_spill] sm:$0xff]  ;;  %12644 = vst [vmem:[#allocation180_spill] sm:$0xff] %v10075_v0  ;;  %v12646_v26 = vld [vmem:[#allocation81_spill] sm:$0xff] }
 0xdbe   :  { %v3744_v23 = vsel %vm12638_vm11, %v6253_v20, 0.0  ;;  %v3919_v3 = vmul.f32 %v12639_v9, %v10033_v49  ;;  %v4082_v20 = vmul.f32 %v12537_v36, %v3758_v35  ;;  %vm12736_vm11 = vmmov %vm12734_vm1 }
 0xdbf   :  { %v3760_v32 = vmul.f32 %v9947_v4, %v3744_v23  ;;  %v12645_v4 = vld [vmem:[#allocation56_spill] sm:$0xff]  ;;  %v3782_v23 = vmul.f32 %v12646_v26, %v3758_v35 }
 0xdc1   :  { %v3769_v38 = vpack.c.bf16 %v3761_v42, %v3760_v32 }
 0xdc4   :  { %4025 = vadd.xlane.f32.xlu1 %v3999_v2  ;;  %4106 = vadd.xlane.f32.xlu2 %v4080_v5  ;;  %v10073_v2 = vpop.xlane.xlu1 %3788  ;;  %v4000_v5 = vmul.f32 %v12645_v4, %v10033_v49 }
 0xdc5   :  { %3944 = vadd.xlane.f32.xlu0 %v3918_v13  ;;  %v10071_v13 = vpop.xlane.xlu2 %3924  ;;  %12643 = vst [vmem:[#allocation109_spill] sm:$0xff] %v10073_v2  ;;  %v12651_v2 = vld [vmem:[#allocation177_spill] sm:$0xff] }
 0xdc6   :  { %12642 = vst [vmem:[#allocation122_spill] sm:$0xff] %v10071_v13  ;;  %v10085_v13 = vpop.xlane.xlu0 %3926  ;;  %v4001_v45 = vmul.f32 %v12651_v2, %v3758_v35 }
 0xdc7   :  { %12649 = vst [vmem:[#allocation111_spill] sm:$0xff] %v10085_v13 }
 0xdcc   :  { %3946 = vadd.xlane.f32.xlu1 %v3919_v3  ;;  %3808 = vadd.xlane.f32.xlu2 %v3781_v57  ;;  %v10083_v57 = vpop.xlane.xlu1 %4007 }
 0xdcd   :  { %4108 = vadd.xlane.f32.xlu0 %v4081_v34  ;;  %3902 = vmatmul.bf16.gmra.mxu3 %v3769_v38  ;;  %v10081_v3 = vpop.xlane.xlu2 %4088  ;;  %12648 = vst [vmem:[#allocation189_spill] sm:$0xff] %v10083_v57  ;;  %v3783_v34 = vmul.f32 %v12536_v17, %v3759_v21  ;;  %v12650_v38 = vld [vmem:[#allocation58_spill] sm:$0xff]  ;;  %v3921_v57 = vmul.f32 %v12539_v16, %v3759_v21 }
 0xdce   :  { %12647 = vst [vmem:[#allocation130_spill] sm:$0xff] %v10081_v3  ;;  %v3920_v0 = vmul.f32 %v12650_v38, %v3758_v35  ;;  %v4083_v3 = vmul.f32 %v12544_v33, %v3759_v21 }
 0xdd4   :  { %4027 = vadd.xlane.f32.xlu2 %v4000_v5  ;;  %4110 = vadd.xlane.f32.xlu1 %v4082_v20 }
 0xdd5   :  { %3810 = vadd.xlane.f32.xlu0 %v3782_v23  ;;  %v4002_v23 = vmul.f32 %v12541_v8, %v3759_v21 }
 0xddc   :  { %3812 = vadd.xlane.f32.xlu1 %v3783_v34  ;;  %3948 = vadd.xlane.f32.xlu2 %v3920_v0  ;;  %v12658_v0 = vld [vmem:[#allocation183_spill] sm:$0xff] }
 0xddd   :  { %4029 = vadd.xlane.f32.xlu0 %v4001_v45  ;;  %v3922_v34 = vmul.f32 %v12658_v0, %v3760_v32 }
 0xddf   :  { %v10090_v49 = vpop.xlane.xlu1 %3928  ;;  %v10092_v5 = vpop.xlane.xlu2 %3790 }
 0xde0   :  { %12652 = vst [vmem:[#allocation191_spill] sm:$0xff] %v10090_v49  ;;  %v10094_v20 = vpop.xlane.xlu0 %4090  ;;  %v12659_v49 = vld [vmem:[#allocation67_spill] sm:$0xff] }
 0xde1   :  { %12653 = vst [vmem:[#allocation132_spill] sm:$0xff] %v10092_v5  ;;  %v3784_v5 = vmul.f32 %v12659_v49, %v3760_v32 }
 0xde2   :  { %12654 = vst [vmem:[#allocation128_spill] sm:$0xff] %v10094_v20  ;;  %v12660_v20 = vld [vmem:[#allocation80_spill] sm:$0xff] }
 0xde3   :  { %v4084_v17 = vmul.f32 %v12660_v20, %v3760_v32 }
 0xde4   :  { %4031 = vadd.xlane.f32.xlu1 %v4002_v23  ;;  %4112 = vadd.xlane.f32.xlu2 %v4083_v3 }
 0xde5   :  { %3950 = vadd.xlane.f32.xlu0 %v3921_v57  ;;  %v12664_v57 = vld [vmem:[#allocation73_spill] sm:$0xff] }
 0xde6   :  { %v4003_v23 = vmul.f32 %v12664_v57, %v3760_v32 }
 0xde7   :  { %v10099_v13 = vpop.xlane.xlu1 %4092  ;;  %v10101_v35 = vpop.xlane.xlu2 %4009 }
 0xde8   :  { %12655 = vst [vmem:[#allocation89_spill] sm:$0xff] %v10099_v13  ;;  %v10103_v45 = vpop.xlane.xlu0 %3792  ;;  %v4085_v13 = vmul.f32 %v12556_v60, %v3761_v42  ;;  %v12714_v60 = vld [vmem:[#allocation192_spill] sm:$0xff] }
 0xde9   :  { %12656 = vst [vmem:[#allocation144_spill] sm:$0xff] %v10101_v35  ;;  %v3785_v35 = vmul.f32 %v12552_v53, %v3761_v42  ;;  %v12730_v53 = vmov 55  }
 0xdea   :  { %12657 = vst [vmem:[#allocation96_spill] sm:$0xff] %v10103_v45 }
 0xdec   :  { %3952 = vadd.xlane.f32.xlu1 %v3922_v34  ;;  %3814 = vadd.xlane.f32.xlu2 %v3784_v5  ;;  %v3923_v5 = vmul.f32 %v12554_v22, %v3761_v42  ;;  %v12719_v22 = vmov 54  }
 0xded   :  { %4114 = vadd.xlane.f32.xlu0 %v4084_v17 }
 0xdef   :  { %v10108_v33 = vpop.xlane.xlu1 %3794  ;;  %v10110_v21 = vpop.xlane.xlu2 %3930 }
 0xdf0   :  { %12661 = vst [vmem:[#allocation190_spill] sm:$0xff] %v10108_v33  ;;  %v10112_v3 = vpop.xlane.xlu0 %4011  ;;  %v4004_v33 = vmul.f32 %v12555_v29, %v3761_v42 }
 0xdf1   :  { %12662 = vst [vmem:[#allocation119_spill] sm:$0xff] %v10110_v21 }
 0xdf2   :  { %12663 = vst [vmem:[#allocation200_spill] sm:$0xff] %v10112_v3 }
 0xdf4   :  { %4033 = vadd.xlane.f32.xlu2 %v4003_v23  ;;  %4116 = vadd.xlane.f32.xlu1 %v4085_v13 }
 0xdf5   :  { %3816 = vadd.xlane.f32.xlu0 %v3785_v35 }
 0xdf7   :  { %v10117_v45 = vpop.xlane.xlu1 %4013  ;;  %v10119_v34 = vpop.xlane.xlu2 %4094 }
 0xdf8   :  { %12665 = vst [vmem:[#allocation208_spill] sm:$0xff] %v10117_v45  ;;  %v10121_v17 = vpop.xlane.xlu0 %3932 }
 0xdf9   :  { %12666 = vst [vmem:[#allocation201_spill] sm:$0xff] %v10119_v34  ;;  %v12674_v34 = vld [vmem:[#allocation16_spill] sm:$0xff] }
 0xdfa   :  { %12667 = vst [vmem:[#allocation101_spill] sm:$0xff] %v10121_v17 }
 0xdfc   :  { %3954 = vadd.xlane.f32.xlu2 %v3923_v5  ;;  %v12678_v5 = vld [vmem:[#allocation29_spill] sm:$0xff] }
 0xdfd   :  { %4035 = vadd.xlane.f32.xlu0 %v4004_v33 }
 0xdff   :  { %v10125_v32 = vpop.xlane.xlu1 %3934  ;;  %v10127_v3 = vpop.xlane.xlu2 %3796 }
 0xe00   :  { %12668 = vst [vmem:[#allocation202_spill] sm:$0xff] %v10125_v32  ;;  %v10129_v21 = vpop.xlane.xlu0 %4096 }
 0xe01   :  { %12669 = vst [vmem:[#allocation209_spill] sm:$0xff] %v10127_v3 }
 0xe02   :  { %12670 = vst [vmem:[#allocation203_spill] sm:$0xff] %v10129_v21  ;;  %v12679_v21 = vld [vmem:[#allocation40_spill] sm:$0xff] }
 0xe07   :  { %v10131_v13 = vpop.xlane.xlu1 %4098  ;;  %v10133_v35 = vpop.xlane.xlu2 %4015 }
 0xe08   :  { %12671 = vst [vmem:[#allocation210_spill] sm:$0xff] %v10131_v13  ;;  %v10135_v23 = vpop.xlane.xlu0 %3798  ;;  %v12680_v13 = vld [vmem:[#allocation20_spill] sm:$0xff] }
 0xe09   :  { %12672 = vst [vmem:[#allocation104_spill] sm:$0xff] %v10133_v35 }
 0xe0a   :  { %12673 = vst [vmem:[#allocation155_spill] sm:$0xff] %v10135_v23 }
 0xe0d   :  { %4237 = vrot.lane.b32.xlu1 %v12674_v34, %s6500_s17 }
 0xe0f   :  { %v10139_v45 = vpop.xlane.xlu1 %3800  ;;  %v10141_v42 = vpop.xlane.xlu2 %3936 }
 0xe10   :  { %12675 = vst [vmem:[#allocation107_spill] sm:$0xff] %v10139_v45  ;;  %v10143_v33 = vpop.xlane.xlu0 %4017  ;;  %v12684_v45 = vld [vmem:[#allocation18_spill] sm:$0xff] }
 0xe11   :  { %12676 = vst [vmem:[#allocation103_spill] sm:$0xff] %v10141_v42  ;;  %4233 = vrot.lane.b32.xlu0 %v12678_v5, %s6500_s17 }
 0xe12   :  { %12677 = vst [vmem:[#allocation170_spill] sm:$0xff] %v10143_v33  ;;  %v12685_v33 = vld [vmem:[#allocation27_spill] sm:$0xff] }
 0xe14   :  { %4235 = vrot.lane.b32.xlu2 %v12679_v21, %s6500_s17 }
 0xe15   :  { %4243 = vrot.lane.b32.xlu1 %v12680_v13, %s6500_s17 }
 0xe17   :  { %v10151_v35 = vpop.xlane.xlu1 %4019  ;;  %v10153_v23 = vpop.xlane.xlu2 %4100 }
 0xe18   :  { %12681 = vst [vmem:[#allocation117_spill] sm:$0xff] %v10151_v35  ;;  %v10155_v32 = vpop.xlane.xlu0 %3938  ;;  %v12689_v35 = vld [vmem:[#allocation50_spill] sm:$0xff] }
 0xe19   :  { %12682 = vst [vmem:[#allocation174_spill] sm:$0xff] %v10153_v23  ;;  %4239 = vrot.lane.b32.xlu0 %v12684_v45, %s6500_s17 }
 0xe1a   :  { %12683 = vst [vmem:[#allocation102_spill] sm:$0xff] %v10155_v32 }
 0xe1c   :  { %4241 = vrot.lane.b32.xlu2 %v12685_v33, %s6500_s17 }
 0xe1d   :  { %4249 = vrot.lane.b32.xlu1 %v12678_v5, %s6502_s18 }
 0xe1f   :  { %v10163_v42 = vpop.xlane.xlu1 %3940  ;;  %v10165_v17 = vpop.xlane.xlu2 %3802 }
 0xe20   :  { %12686 = vst [vmem:[#allocation114_spill] sm:$0xff] %v10163_v42  ;;  %v10167_v3 = vpop.xlane.xlu0 %4102 }
 0xe21   :  { %12687 = vst [vmem:[#allocation129_spill] sm:$0xff] %v10165_v17  ;;  %4245 = vrot.lane.b32.xlu0 %v12689_v35, %s6500_s17 }
 0xe22   :  { %12688 = vst [vmem:[#allocation188_spill] sm:$0xff] %v10167_v3 }
 0xe24   :  { %4247 = vrot.lane.b32.xlu2 %v9410_v63, %s6502_s18  ;;  %v12699_v63 = vld [vmem:[#allocation194_spill] sm:$0xff] }
 0xe25   :  { %4255 = vrot.lane.b32.xlu1 %v12684_v45, %s6502_s18  ;;  %v12706_v45 = vld [vmem:[#allocation24_spill] sm:$0xff] }
 0xe27   :  { %v10175_v23 = vpop.xlane.xlu1 %4104  ;;  %v10177_v32 = vpop.xlane.xlu2 %4021 }
 0xe28   :  { %12690 = vst [vmem:[#allocation106_spill] sm:$0xff] %v10175_v23  ;;  %v10179_v5 = vpop.xlane.xlu0 %3804  ;;  %v12696_v23 = vld [vmem:[#allocation49_spill] sm:$0xff] }
 0xe29   :  { %12691 = vst [vmem:[#allocation125_spill] sm:$0xff] %v10177_v32  ;;  %4251 = vrot.lane.b32.xlu0 %v12679_v21, %s6502_s18 }
 0xe2a   :  { %12692 = vst [vmem:[#allocation63_spill] sm:$0xff] %v10179_v5 }
 0xe2c   :  { %4253 = vrot.lane.b32.xlu2 %v12674_v34, %s6502_s18 }
 0xe2d   :  { %4261 = vrot.lane.b32.xlu1 %v12689_v35, %s6502_s18  ;;  %v12711_v35 = vld [vmem:[#allocation52_spill] sm:$0xff] }
 0xe2f   :  { %v10187_v3 = vpop.xlane.xlu2 %3942  ;;  %v10191_v17 = vpop.xlane.xlu1 %3806 }
 0xe30   :  { %12693 = vst [vmem:[#allocation134_spill] sm:$0xff] %v10187_v3  ;;  %v10189_v42 = vpop.xlane.xlu0 %4023  ;;  %v12701_v3 = vld [vmem:[#allocation19_spill] sm:$0xff] }
 0xe31   :  { %12694 = vst [vmem:[#allocation93_spill] sm:$0xff] %v10189_v42  ;;  %4257 = vrot.lane.b32.xlu0 %v12685_v33, %s6502_s18  ;;  %v12702_v42 = vld [vmem:[#allocation25_spill] sm:$0xff]  ;;  %v12705_v33 = vld [vmem:[#allocation44_spill] sm:$0xff] }
 0xe32   :  { %12695 = vst [vmem:[#allocation110_spill] sm:$0xff] %v10191_v17 }
 0xe34   :  { %4259 = vrot.lane.b32.xlu2 %v12680_v13, %s6502_s18 }
 0xe35   :  { %4369 = vperm.xlu1 %6052, %v12696_v23  }
 0xe37   :  { %v10198_v32 = vpop.xlane.xlu2 %4106  ;;  %v10203_v34 = vpop.xlane.xlu1 %4025 }
 0xe38   :  { %12697 = vst [vmem:[#allocation141_spill] sm:$0xff] %v10198_v32  ;;  %v10200_v5 = vpop.xlane.xlu0 %3944 }
 0xe39   :  { %12698 = vst [vmem:[#allocation113_spill] sm:$0xff] %v10200_v5  ;;  %4361 = vperm.xlu0 %6050, %v12699_v63   ;;  %v12709_v5 = vld [vmem:[#allocation75_spill] sm:$0xff] }
 0xe3a   :  { %12700 = vst [vmem:[#allocation112_spill] sm:$0xff] %v10203_v34 }
 0xe3c   :  { %4365 = vperm.xlu2 %6051, %v12701_v3  }
 0xe3d   :  { %4377 = vperm.xlu1 %6052, %v12702_v42  }
 0xe3f   :  { %v10207_v17 = vpop.xlane.xlu2 %3808  ;;  %v10213_v13 = vpop.xlane.xlu1 %3946 }
 0xe40   :  { %12703 = vst [vmem:[#allocation185_spill] sm:$0xff] %v10207_v17  ;;  %v10209_v21 = vpop.xlane.xlu0 %4108 }
 0xe41   :  { %12704 = vst [vmem:[#allocation98_spill] sm:$0xff] %v10209_v21  ;;  %4381 = vperm.xlu0 %6050, %v12705_v33  }
 0xe42   :  { %12707 = vst [vmem:[#allocation115_spill] sm:$0xff] %v10213_v13 }
 0xe44   :  { %4373 = vperm.xlu2 %6051, %v12706_v45  }
 0xe45   :  { %4389 = vperm.xlu1 %6052, %v12547_v59  }
 0xe47   :  { %v10216_v32 = vpop.xlane.xlu2 %4027  ;;  %v10223_v17 = vpop.xlane.xlu1 %4110 }
 0xe48   :  { %12708 = vst [vmem:[#allocation94_spill] sm:$0xff] %v10216_v32  ;;  %v10219_v34 = vpop.xlane.xlu0 %3810 }
 0xe49   :  { %4393 = vperm.xlu0 %6050, %v12709_v5   ;;  %12710 = vst [vmem:[#allocation135_spill] sm:$0xff] %v10219_v34  ;;  %v12718_v34 = vld [vmem:[#allocation22_spill] sm:$0xff] }
 0xe4a   :  { %12712 = vst [vmem:[#allocation136_spill] sm:$0xff] %v10223_v17 }
 0xe4c   :  { %4385 = vperm.xlu2 %6051, %v12711_v35  }
 0xe4d   :  { %4401 = vperm.xlu1 %6052, %v12548_v52  }
 0xe4f   :  { %v10225_v21 = vpop.xlane.xlu2 %3948  ;;  %v10234_v29 = vpop.xlane.xlu1 %3812 }
 0xe50   :  { %12713 = vst [vmem:[#allocation137_spill] sm:$0xff] %v10225_v21  ;;  %v10229_v13 = vpop.xlane.xlu0 %4029 }
 0xe51   :  { %4405 = vperm.xlu0 %6050, %v12714_v60   ;;  %12715 = vst [vmem:[#allocation139_spill] sm:$0xff] %v10229_v13 }
 0xe52   :  { %12717 = vst [vmem:[#allocation152_spill] sm:$0xff] %v10234_v29 }
 0xe54   :  { %4397 = vperm.xlu2 %6051, %v12549_v58  }
 0xe55   :  { %4413 = vperm.xlu1 %6052, %v12560_v62  }
 0xe57   :  { %v10232_v32 = vpop.xlane.xlu2 %4112  ;;  %v10246_v13 = vpop.xlane.xlu1 %4031 }
 0xe58   :  { %12716 = vst [vmem:[#allocation154_spill] sm:$0xff] %v10232_v32  ;;  %v10240_v17 = vpop.xlane.xlu0 %3950 }
 0xe59   :  { %4417 = vperm.xlu0 %6050, %v12718_v34   ;;  %12720 = vst [vmem:[#allocation61_spill] sm:$0xff] %v10240_v17 }
 0xe5a   :  { %12722 = vst [vmem:[#allocation120_spill] sm:$0xff] %v10246_v13 }
 0xe5c   :  { %4409 = vperm.xlu2 %6051, %v12550_v39  }
 0xe5d   :  { %6053 = vset.pattern.permute.xlu1 %v12719_v22 }
 0xe5e   :  { %4457 = vperm.xlu1 %6053, %v12699_v63  }
 0xe5f   :  { %v10242_v21 = vpop.xlane.xlu2 %3814  ;;  %v10256_v17 = vpop.xlane.xlu1 %3952 }
 0xe60   :  { %12721 = vst [vmem:[#allocation204_spill] sm:$0xff] %v10242_v21  ;;  %v10250_v32 = vpop.xlane.xlu0 %4114 }
 0xe61   :  { %6054 = vset.pattern.permute.xlu0 %v12719_v22  ;;  %12723 = vst [vmem:[#allocation21_spill] sm:$0xff] %v10250_v32 }
 0xe62   :  { %4461 = vperm.xlu0 %6054, %v12701_v3   ;;  %12725 = vst [vmem:[#allocation206_spill] sm:$0xff] %v10256_v17 }
 0xe64   :  { %4421 = vperm.xlu2 %6051, %v12562_v47  }
 0xe66   :  { %4469 = vperm.xlu1 %6053, %v12706_v45  }
 0xe67   :  { %v10252_v29 = vpop.xlane.xlu2 %4033  ;;  %v10267_v32 = vpop.xlane.xlu1 %4116 }
 0xe68   :  { %12724 = vst [vmem:[#allocation51_spill] sm:$0xff] %v10252_v29  ;;  %v10261_v21 = vpop.xlane.xlu0 %3816 }
 0xe69   :  { %12726 = vst [vmem:[#allocation32_spill] sm:$0xff] %v10261_v21 }
 0xe6a   :  { %4481 = vperm.xlu0 %6054, %v12711_v35   ;;  %12728 = vst [vmem:[#allocation83_spill] sm:$0xff] %v10267_v32 }
 0xe6c   :  { %6055 = vset.pattern.permute.xlu2 %v12719_v22 }
 0xe6d   :  { %4465 = vperm.xlu2 %6055, %v12696_v23  }
 0xe6e   :  { %4477 = vperm.xlu1 %6053, %v12705_v33  }
 0xe6f   :  { %v10263_v13 = vpop.xlane.xlu2 %3954 }
 0xe70   :  { %12727 = vst [vmem:[#allocation43_spill] sm:$0xff] %v10263_v13  ;;  %v10270_v22 = vpop.xlane.xlu0 %4035 }
 0xe71   :  { %12729 = vst [vmem:[#allocation36_spill] sm:$0xff] %v10270_v22 }
 0xe72   :  { %4493 = vperm.xlu0 %6054, %v12549_v58  }
 0xe75   :  { %4473 = vperm.xlu2 %6055, %v12702_v42  }
 0xe76   :  { %4489 = vperm.xlu1 %6053, %v12709_v5  }
 0xe77   :  { %v4236_v29 = vpop.permute.xlu2 %4235 }
 0xe7a   :  { %4505 = vperm.xlu0 %6054, %v12550_v39  }
 0xe7d   :  { %4485 = vperm.xlu2 %6055, %v12547_v59  }
 0xe7e   :  { %4501 = vperm.xlu1 %6053, %v12714_v60  }
 0xe7f   :  { %v10274_v17 = vpop.permute.xlu1 %4237  ;;  %v10279_v21 = vpop.permute.xlu2 %4241 }
 0xe82   :  { %4517 = vperm.xlu0 %6054, %v12562_v47  }
 0xe83   :  { %v4234_v13 = vpop.permute.xlu0 %4233 }
 0xe85   :  { %4497 = vperm.xlu2 %6055, %v12548_v52  }
 0xe86   :  { %4513 = vperm.xlu1 %6053, %v12718_v34  }
 0xe87   :  { %v10281_v32 = vpop.permute.xlu1 %4243  ;;  %v4248_v57 = vpop.permute.xlu2 %4247 }
 0xe8a   :  { %6058 = vset.pattern.permute.xlu0 %v12730_v53 }
 0xe8b   :  { %4561 = vperm.xlu0 %6058, %v12696_v23   ;;  %v4240_v22 = vpop.permute.xlu0 %4239 }
 0xe8d   :  { %4509 = vperm.xlu2 %6055, %v12560_v62  }
 0xe8e   :  { %6057 = vset.pattern.permute.xlu1 %v12730_v53 }
 0xe8f   :  { %4557 = vperm.xlu1 %6057, %v12701_v3   ;;  %v4250_v20 = vpop.permute.xlu1 %4249  ;;  %v4254_v23 = vpop.permute.xlu2 %4253 }
 0xe93   :  { %4581 = vperm.xlu0 %6058, %v12547_v59   ;;  %v10292_v49 = vpop.permute.xlu0 %4245 }
 0xe95   :  { %6056 = vset.pattern.permute.xlu2 %v12730_v53 }
 0xe96   :  { %4553 = vperm.xlu2 %6056, %v12699_v63  }
 0xe97   :  { %4569 = vperm.xlu1 %6057, %v12702_v42   ;;  %v4256_v0 = vpop.permute.xlu1 %4255  ;;  %v4260_v53 = vpop.permute.xlu2 %4259 }
 0xe98   :  { %v4306_v42 = vsel %vm12732_vm7, %v4260_v53, 0  ;;  %vm12738_vm7 = vmmov %vm12734_vm1 }
 0xe9b   :  { %4593 = vperm.xlu0 %6058, %v12548_v52   ;;  %v4252_v59 = vpop.permute.xlu0 %4251 }
 0xe9e   :  { %4565 = vperm.xlu2 %6056, %v12706_v45  }
 0xe9f   :  { %4577 = vperm.xlu1 %6057, %v12711_v35   ;;  %v4262_v3 = vpop.permute.xlu1 %4261 }
 0xea0   :  { %v4309_v8 = vsel %vm12731_vm13, %v4262_v3, 0  ;;  %v4297_v3 = vsel %vm12735_vm6, %v4254_v23, 0  ;;  %vm12737_vm13 = vmmov %vm12734_vm1 }
 0xea1   :  { %4311 = vmatpush.bf16.xpose.msra.mxu0 %v4309_v8  ;;  %v4300_v8 = vsel %vm12734_vm1, %v4256_v0, 0  ;;  %v4291_v53 = vsel %vm12737_vm13, %v4250_v20, 0  ;;  %v4366_v0 = vpop.permute.xlu2 %4365  ;;  %vm12741_vm6 = vmmov %vm12734_vm1 }
 0xea2   :  { %vm12748_vm13 = vmmov %vm12734_vm1 }
 0xea3   :  { %4605 = vperm.xlu0 %6058, %v12560_v62   ;;  %v4258_v52 = vpop.permute.xlu0 %4257 }
 0xea4   :  { %v4303_v35 = vsel %vm12733_vm15, %v4258_v52, 0  ;;  %v4288_v52 = vsel %vm12738_vm7, %v4248_v57, 0  ;;  %vm12739_vm15 = vmmov %vm12734_vm1 }
 0xea5   :  { %vm12749_vm7 = vmmov %vm12734_vm1 }
 0xea6   :  { %4573 = vperm.xlu2 %6056, %v12705_v33  }
 0xea7   :  { %4589 = vperm.xlu1 %6057, %v12549_v58  }
 0xea9   :  { %4312 = vmatpush.bf16.xpose.msra.mxu0 %v4306_v42  ;;  %v4294_v42 = vsel %vm12736_vm11, %v4252_v59, 0  ;;  %vm12746_vm11 = vmmov %vm12734_vm1 }
 0xeab   :  { %v4362_v20 = vpop.permute.xlu0 %4361 }
 0xeac   :  { %v4424_v2 = vmul.f32 %v12449_v37, %v4362_v20 }
 0xeae   :  { %4585 = vperm.xlu2 %6056, %v12709_v5  }
 0xeaf   :  { %4601 = vperm.xlu1 %6057, %v12550_v39  }
 0xeb1   :  { %4313 = vmatpush.bf16.xpose.msra.mxu0 %v4303_v35  ;;  %v4370_v35 = vpop.permute.xlu1 %4369 }
 0xeb6   :  { %4597 = vperm.xlu2 %6056, %v12714_v60  }
 0xeb7   :  { %4613 = vperm.xlu1 %6057, %v12562_v47  }
 0xeb9   :  { %4314 = vmatpush.bf16.xpose.msra.mxu0 %v4300_v8  ;;  %v10316_v8 = vpop.permute.xlu2 %4373  ;;  %v10319_v23 = vpop.permute.xlu1 %4377 }
 0xebe   :  { %4609 = vperm.xlu2 %6056, %v12718_v34  }
 0xec1   :  { %4315 = vmatpush.bf16.xpose.msra.mxu0 %v4297_v3  ;;  %v10321_v59 = vpop.permute.xlu2 %4385  ;;  %v10323_v3 = vpop.permute.xlu1 %4389 }
 0xec9   :  { %4316 = vmatpush.bf16.xpose.msra.mxu0 %v4294_v42  ;;  %v10325_v57 = vpop.permute.xlu2 %4397 }
 0xed1   :  { %4317 = vmatpush.bf16.xpose.msra.mxu0 %v4291_v53  ;;  %v10333_v42 = vpop.permute.xlu2 %4409 }
 0xed2   :  { %12742 = vst [vmem:[#allocation196_spill] sm:$0xff] %v10333_v42 }
 0xed9   :  { %4318 = vmatpush.bf16.xpose.msra.mxu0 %v4288_v52  ;;  %v10340_v52 = vpop.permute.xlu2 %4421 }
 0xeda   :  { %12745 = vst [vmem:[#allocation47_spill] sm:$0xff] %v10340_v52 }
 0xee0   :  { %5747 = vmatmul.msk.bf16.vlgmr.msra.gmra.mxu0 %vm12739_vm15, %v9978_v40  ;;  %v10329_v40 = vpop.permute.xlu0 %4381 }
 0xee1   :  { %v4466_v62 = vpop.permute.xlu2 %4465 }
 0xee8   :  { %v10335_v53 = vpop.permute.xlu0 %4393 }
 0xee9   :  { %v10348_v60 = vpop.permute.xlu2 %4473 }
 0xef0   :  { %5748 = vmatmul.msk.bf16.gmra.mxu0 %vm12740_vm9, %v4234_v13  ;;  %v10331_v13 = vpop.permute.xlu1 %4401  ;;  %vm12743_vm9 = vmmov %vm12734_vm1  ;;  %v10342_v47 = vpop.permute.xlu0 %4405 }
 0xf00   :  { %5749 = vmatmul.msk.bf16.gmra.mxu0 %vm12734_vm1, %v4236_v29  ;;  %v10338_v29 = vpop.permute.xlu1 %4413 }
 0xf01   :  { %12744 = vst [vmem:[#allocation199_spill] sm:$0xff] %v10338_v29 }
 0xf08   :  { %v4458_v34 = vpop.permute.xlu1 %4457 }
 0xf10   :  { %5750 = vmatmul.msk.bf16.gmra.mxu0 %vm12741_vm6, %v10274_v17  ;;  %v10346_v17 = vpop.permute.xlu0 %4417  ;;  %v4470_v39 = vpop.permute.xlu1 %4469 }
 0xf11   :  { %12747 = vst [vmem:[#allocation54_spill] sm:$0xff] %v10346_v17 }
 0xf18   :  { %v4462_v58 = vpop.permute.xlu0 %4461  ;;  %v10350_v5 = vpop.permute.xlu1 %4477 }
 0xf20   :  { %5751 = vmatmul.msk.bf16.gmra.mxu0 %vm12743_vm9, %v4240_v22  ;;  %v10354_v22 = vpop.permute.xlu2 %4485  ;;  %v10356_v33 = vpop.permute.xlu0 %4481 }
 0xf21   :  { %v10358_v45 = vpop.permute.xlu1 %4489 }
 0xf28   :  { %v10360_v63 = vpop.permute.xlu2 %4497 }
 0xf29   :  { %v10366_v52 = vpop.permute.xlu1 %4501 }
 0xf2a   :  { %12750 = vst [vmem:[#allocation146_spill] sm:$0xff] %v10366_v52 }
 0xf30   :  { %5752 = vmatmul.msk.bf16.gmra.mxu0 %vm12746_vm11, %v10279_v21  ;;  %v10364_v21 = vpop.permute.xlu0 %4493  ;;  %v10368_v17 = vpop.permute.xlu2 %4509 }
 0xf31   :  { %12751 = vst [vmem:[#allocation142_spill] sm:$0xff] %v10368_v17  ;;  %v10374_v29 = vpop.permute.xlu1 %4513  ;;  %v4216_v17 = vmul.f32 %v12452_v50, %v9906_v1 }
 0xf32   :  { %12753 = vst [vmem:[#allocation164_spill] sm:$0xff] %v10374_v29 }
 0xf38   :  { %v10370_v16 = vpop.permute.xlu0 %4505  ;;  %v4554_v42 = vpop.permute.xlu2 %4553 }
 0xf39   :  { %12752 = vst [vmem:[#allocation157_spill] sm:$0xff] %v10370_v16  ;;  %v4616_v12 = vmul.f32 %v12451_v48, %v4554_v42  ;;  %v4558_v20 = vpop.permute.xlu1 %4557 }
 0xf40   :  { %5753 = vmatmul.msk.bf16.gmra.mxu0 %vm12748_vm13, %v10281_v32  ;;  %v4215_v32 = vmul.f32 %v12577_v27, %v9858_v15  ;;  %v10381_v52 = vpop.permute.xlu0 %4517  ;;  %v4425_v27 = vmul.f32 %v12579_v55, %v4366_v0  ;;  %v4426_v0 = vmul.f32 %v12458_v19, %v4370_v35  ;;  %v4427_v35 = vmul.f32 %v12592_v25, %v10316_v8  ;;  %v4566_v9 = vpop.permute.xlu2 %4565 }
 0xf41   :  { %v4428_v8 = vmul.f32 %v12595_v30, %v10319_v23 }
 0xf50   :  { %5754 = vmatmul.msk.bf16.gmra.mxu0 %vm12749_vm7, %v10292_v49  ;;  %v4520_v49 = vmul.f32 %v12450_v61, %v4458_v34 }
 0xf5d   :  { %v4320_v36 = vpop.f32.mrf.mxu0 }
 0xf5e   :  { %v4321_v38 = vadd.f32 %v4320_v36, %v4215_v32 }
 0xf60   :  { %v4440_v26 = vadd.f32 %v4424_v2, %v4321_v38  ;;  %v4521_v2 = vmul.f32 %v12578_v14, %v4462_v58  ;;  %v12755_v38 = vld [vmem:[#allocation148_spill] sm:$0xff]  ;;  %v4522_v58 = vmul.f32 %v12587_v44, %v4466_v62  ;;  %v4523_v62 = vmul.f32 %v12593_v28, %v4470_v39  ;;  %v12766_v39 = vld [vmem:[#allocation173_spill] sm:$0xff] }
 0xf61   :  { %v4617_v34 = vmul.f32 %v12755_v38, %v4558_v20 }
 0xf62   :  { %v4536_v4 = vadd.f32 %v4520_v49, %v4440_v26  ;;  %v4562_v49 = vpop.permute.xlu0 %4561 }
 0xf64   :  { %v4632_v16 = vadd.f32 %v4616_v12, %v4536_v4  ;;  %v12756_v12 = vld [vmem:[#allocation197_spill] sm:$0xff] }
 0xf65   :  { %v4322_v15 = vpop.f32.mrf.mxu0  ;;  %v4217_v4 = vmul.f32 %v12457_v11, %v12756_v12 }
 0xf66   :  { %v4323_v29 = vadd.f32 %v4322_v15, %v4216_v17  ;;  %v10386_v36 = vsel %vm270_vm2, %v4632_v16, -1e+30 }
 0xf67   :  { %4664 = vmax.xlane.f32.xlu0 %v10386_v36 }
 0xf68   :  { %v4441_v26 = vadd.f32 %v4425_v27, %v4323_v29  ;;  %v12758_v29 = vld [vmem:[#allocation160_spill] sm:$0xff] }
 0xf69   :  { %v4618_v15 = vmul.f32 %v12758_v29, %v4562_v49 }
 0xf6a   :  { %v4537_v1 = vadd.f32 %v4521_v2, %v4441_v26  ;;  %v12759_v2 = vld [vmem:[#allocation198_spill] sm:$0xff] }
 0xf6b   :  { %v12760_v26 = vld [vmem:[#allocation162_spill] sm:$0xff] }
 0xf6c   :  { %v4633_v42 = vadd.f32 %v4617_v34, %v4537_v1  ;;  %v4218_v34 = vmul.f32 %v12760_v26, %v12759_v2 }
 0xf6d   :  { %v4325_v32 = vpop.f32.mrf.mxu0 }
 0xf6e   :  { %v4326_v17 = vadd.f32 %v4325_v32, %v4217_v4  ;;  %v10396_v16 = vsel %vm271_vm4, %v4633_v42, -1e+30  ;;  %v4570_v42 = vpop.permute.xlu1 %4569 }
 0xf6f   :  { %4666 = vmax.xlane.f32.xlu2 %v10396_v16 }
 0xf70   :  { %v4442_v27 = vadd.f32 %v4426_v0, %v4326_v17  ;;  %v12762_v17 = vld [vmem:[#allocation53_spill] sm:$0xff] }
 0xf71   :  { %v4619_v49 = vmul.f32 %v12762_v17, %v4566_v9  ;;  %v12767_v9 = vld [vmem:[#allocation74_spill] sm:$0xff]  ;;  %v4574_v17 = vpop.permute.xlu2 %4573 }
 0xf72   :  { %v4538_v20 = vadd.f32 %v4522_v58, %v4442_v27  ;;  %v12763_v27 = vld [vmem:[#allocation159_spill] sm:$0xff] }
 0xf74   :  { %v4634_v1 = vadd.f32 %v4618_v15, %v4538_v20  ;;  %v12764_v15 = vld [vmem:[#allocation171_spill] sm:$0xff] }
 0xf75   :  { %v4327_v12 = vpop.f32.mrf.mxu0  ;;  %v4219_v20 = vmul.f32 %v12764_v15, %v12763_v27 }
 0xf76   :  { %v4328_v4 = vadd.f32 %v4327_v12, %v4218_v34  ;;  %v10407_v32 = vsel %vm272_vm5, %v4634_v1, -1e+30 }
 0xf77   :  { %4668 = vmax.xlane.f32.xlu1 %v10407_v32 }
 0xf78   :  { %v4443_v0 = vadd.f32 %v4427_v35, %v4328_v4  ;;  %v4524_v35 = vmul.f32 %v12766_v39, %v10348_v60  ;;  %v4525_v60 = vmul.f32 %v12477_v24, %v10350_v5  ;;  %v4526_v5 = vmul.f32 %v12609_v6, %v10356_v33  ;;  %v12777_v33 = vld [vmem:[#allocation69_spill] sm:$0xff] }
 0xf7a   :  { %v4539_v58 = vadd.f32 %v4523_v62, %v4443_v0  ;;  %v4620_v62 = vmul.f32 %v12767_v9, %v4570_v42 }
 0xf7c   :  { %v4635_v2 = vadd.f32 %v4619_v49, %v4539_v58  ;;  %v12768_v49 = vld [vmem:[#allocation121_spill] sm:$0xff] }
 0xf7d   :  { %v4330_v29 = vpop.f32.mrf.mxu0  ;;  %v4220_v58 = vmul.f32 %v12601_v41, %v12768_v49  ;;  %v4430_v49 = vmul.f32 %v12608_v10, %v10321_v59  ;;  %v4582_v10 = vpop.permute.xlu0 %4581 }
 0xf7e   :  { %v4331_v34 = vadd.f32 %v4330_v29, %v4219_v20  ;;  %v10418_v12 = vsel %vm273_vm8, %v4635_v2, -1e+30  ;;  %v4429_v29 = vmul.f32 %v12600_v31, %v10329_v40  ;;  %v4578_v2 = vpop.permute.xlu1 %4577 }
 0xf7f   :  { %4670 = vmax.xlane.f32.xlu2 %v10418_v12 }
 0xf80   :  { %v4444_v4 = vadd.f32 %v4428_v8, %v4331_v34  ;;  %v4621_v34 = vmul.f32 %v12480_v43, %v4574_v17 }
 0xf82   :  { %v4540_v0 = vadd.f32 %v4524_v35, %v4444_v4  ;;  %v12770_v35 = vld [vmem:[#allocation207_spill] sm:$0xff]  ;;  %v12771_v4 = vld [vmem:[#allocation77_spill] sm:$0xff] }
 0xf84   :  { %v4636_v27 = vadd.f32 %v4620_v62, %v4540_v0  ;;  %v4221_v62 = vmul.f32 %v12771_v4, %v12770_v35 }
 0xf85   :  { %v4332_v23 = vpop.f32.mrf.mxu0 }
 0xf86   :  { %v4333_v20 = vadd.f32 %v4332_v23, %v4220_v58  ;;  %v10430_v1 = vsel %vm274_vm10, %v4636_v27, -1e+30 }
 0xf87   :  { %4672 = vmax.xlane.f32.xlu0 %v10430_v1 }
 0xf88   :  { %v4445_v8 = vadd.f32 %v4429_v29, %v4333_v20  ;;  %v12773_v29 = vld [vmem:[#allocation91_spill] sm:$0xff] }
 0xf89   :  { %v4622_v20 = vmul.f32 %v12773_v29, %v4578_v2  ;;  %v12778_v2 = vld [vmem:[#allocation186_spill] sm:$0xff] }
 0xf8a   :  { %v4541_v42 = vadd.f32 %v4525_v60, %v4445_v8  ;;  %v12774_v8 = vld [vmem:[#allocation123_spill] sm:$0xff] }
 0xf8c   :  { %v4637_v0 = vadd.f32 %v4621_v34, %v4541_v42  ;;  %v12775_v34 = vld [vmem:[#allocation88_spill] sm:$0xff] }
 0xf8d   :  { %v4335_v40 = vpop.f32.mrf.mxu0  ;;  %v4222_v42 = vmul.f32 %v12775_v34, %v12774_v8 }
 0xf8e   :  { %v4336_v58 = vadd.f32 %v4335_v40, %v4221_v62  ;;  %v10442_v23 = vsel %vm275_vm12, %v4637_v0, -1e+30  ;;  %v4431_v62 = vmul.f32 %v12612_v54, %v10323_v3  ;;  %v4586_v54 = vpop.permute.xlu2 %4585 }
 0xf8f   :  { %4674 = vmax.xlane.f32.xlu1 %v10442_v23 }
 0xf90   :  { %v4446_v17 = vadd.f32 %v4430_v49, %v4336_v58  ;;  %v4527_v49 = vmul.f32 %v12777_v33, %v10354_v22  ;;  %v12783_v22 = vld [vmem:[#allocation143_spill] sm:$0xff] }
 0xf92   :  { %v4542_v60 = vadd.f32 %v4526_v5, %v4446_v17  ;;  %v4623_v5 = vmul.f32 %v12778_v2, %v4582_v10  ;;  %v4528_v10 = vmul.f32 %v12783_v22, %v10358_v45 }
 0xf94   :  { %v4638_v35 = vadd.f32 %v4622_v20, %v4542_v60  ;;  %v12779_v20 = vld [vmem:[#allocation205_spill] sm:$0xff]  ;;  %v12780_v60 = vld [vmem:[#allocation138_spill] sm:$0xff] }
 0xf95   :  { %v4337_v59 = vpop.f32.mrf.mxu0  ;;  %v4223_v8 = vmul.f32 %v12780_v60, %v12779_v20 }
 0xf96   :  { %v4338_v0 = vadd.f32 %v4337_v59, %v4222_v42  ;;  %v10454_v27 = vsel %vm276_vm14, %v4638_v35, -1e+30  ;;  %v12781_v42 = vld [vmem:[#allocation140_spill] sm:$0xff] }
 0xf97   :  { %4676 = vmax.xlane.f32.xlu2 %v10454_v27  ;;  %v4432_v59 = vmul.f32 %v12781_v42, %v10335_v53  ;;  %v4590_v42 = vpop.permute.xlu1 %4589 }
 0xf98   :  { %v4447_v58 = vadd.f32 %v4431_v62, %v4338_v0  ;;  %v12784_v0 = vld [vmem:[#allocation147_spill] sm:$0xff] }
 0xf9a   :  { %v4543_v17 = vadd.f32 %v4527_v49, %v4447_v58  ;;  %v4624_v49 = vmul.f32 %v12784_v0, %v4586_v54  ;;  %v4529_v54 = vmul.f32 %v12629_v46, %v10364_v21  ;;  %v4594_v0 = vpop.permute.xlu0 %4593  ;;  %v4530_v21 = vmul.f32 %v12630_v56, %v10360_v63  ;;  %v12798_v63 = vld [vmem:[#allocation146_spill] sm:$0xff] }
 0xf9c   :  { %v4639_v29 = vadd.f32 %v4623_v5, %v4543_v17  ;;  %v12785_v5 = vld [vmem:[#allocation105_spill] sm:$0xff]  ;;  %v12786_v17 = vld [vmem:[#allocation150_spill] sm:$0xff] }
 0xf9d   :  { %v4340_v3 = vpop.f32.mrf.mxu0  ;;  %v4224_v20 = vmul.f32 %v12786_v17, %v12785_v5 }
 0xf9e   :  { %v4341_v35 = vadd.f32 %v4340_v3, %v4223_v8  ;;  %v10466_v6 = vsel %vm277_vm0, %v4639_v29, -1e+30  ;;  %v4433_v8 = vmul.f32 %v12628_v51, %v10325_v57 }
 0xf9f   :  { %4678 = vmax.xlane.f32.xlu0 %v10466_v6  ;;  %v4602_v22 = vpop.permute.xlu1 %4601 }
 0xfa0   :  { %v4448_v62 = vadd.f32 %v4432_v59, %v4341_v35  ;;  %v12788_v59 = vld [vmem:[#allocation158_spill] sm:$0xff] }
 0xfa1   :  { %v4625_v35 = vmul.f32 %v12788_v59, %v4590_v42 }
 0xfa2   :  { %v4544_v58 = vadd.f32 %v4528_v10, %v4448_v62  ;;  %v12789_v62 = vld [vmem:[#allocation108_spill] sm:$0xff]  ;;  %v4606_v46 = vpop.permute.xlu0 %4605 }
 0xfa4   :  { %v4640_v33 = vadd.f32 %v4624_v49, %v4544_v58  ;;  %v12790_v49 = vld [vmem:[#allocation161_spill] sm:$0xff] }
 0xfa5   :  { %v4342_v53 = vpop.f32.mrf.mxu0  ;;  %v4225_v58 = vmul.f32 %v12790_v49, %v12789_v62  ;;  %v12795_v62 = vld [vmem:[#allocation172_spill] sm:$0xff] }
 0xfa6   :  { %v4343_v29 = vadd.f32 %v4342_v53, %v4224_v20  ;;  %v10478_v40 = vsel %vm278_vm3, %v4640_v33, -1e+30  ;;  %v4434_v20 = vmul.f32 %v12633_v7, %v10331_v13  ;;  %v12791_v53 = vld [vmem:[#allocation167_spill] sm:$0xff]  ;;  %v4598_v7 = vpop.permute.xlu2 %4597 }
 0xfa7   :  { %4680 = vmax.xlane.f32.xlu1 %v10478_v40  ;;  %vm12792_vm0 = vcmp.gt.f32.partialorder %v12791_v53, 0.0  ;;  %v4614_v39 = vpop.permute.xlu1 %4613 }
 0xfa8   :  { %v4449_v45 = vadd.f32 %v4433_v8, %v4343_v29  ;;  %v12793_v8 = vld [vmem:[#allocation169_spill] sm:$0xff] }
 0xfa9   :  { %v4626_v29 = vmul.f32 %v12793_v8, %v4594_v0 }
 0xfaa   :  { %v4545_v10 = vadd.f32 %v4529_v54, %v4449_v45  ;;  %v12794_v45 = vld [vmem:[#allocation90_spill] sm:$0xff] }
 0xfac   :  { %v4641_v5 = vadd.f32 %v4625_v35, %v4545_v10  ;;  %v4226_v35 = vmul.f32 %v12640_v18, %v12794_v45 }
 0xfad   :  { %v4345_v57 = vpop.f32.mrf.mxu0 }
 0xfae   :  { %v4346_v33 = vadd.f32 %v4345_v57, %v4225_v58  ;;  %v10490_v3 = vsel %vm12792_vm0, %v4641_v5, -1e+30  ;;  %v4435_v58 = vmul.f32 %v12795_v62, %v10342_v47  ;;  %v12796_v57 = vld [vmem:[#allocation55_spill] sm:$0xff]  ;;  %v4610_v43 = vpop.permute.xlu2 %4609 }
 0xfaf   :  { %4682 = vmax.xlane.f32.xlu2 %v10490_v3  ;;  %vm12797_vm2 = vcmp.gt.f32.partialorder %v12796_v57, 0.0  ;;  %v12805_v62 = vld [vmem:[#allocation175_spill] sm:$0xff] }
 0xfb0   :  { %v4450_v42 = vadd.f32 %v4434_v20, %v4346_v33  ;;  %v12799_v20 = vld [vmem:[#allocation56_spill] sm:$0xff]  ;;  %vm12806_vm3 = vcmp.gt.f32.partialorder %v12805_v62, 0.0 }
 0xfb1   :  { %v4531_v0 = vmul.f32 %v12799_v20, %v12798_v63 }
 0xfb2   :  { %v4546_v54 = vadd.f32 %v4530_v21, %v4450_v42  ;;  %v12800_v21 = vld [vmem:[#allocation60_spill] sm:$0xff] }
 0xfb3   :  { %v4627_v42 = vmul.f32 %v12800_v21, %v4598_v7 }
 0xfb4   :  { %v4642_v10 = vadd.f32 %v4626_v29, %v4546_v54  ;;  %v12801_v29 = vld [vmem:[#allocation127_spill] sm:$0xff]  ;;  %v12802_v54 = vld [vmem:[#allocation81_spill] sm:$0xff] }
 0xfb5   :  { %v4347_v13 = vpop.f32.mrf.mxu0  ;;  %v4227_v8 = vmul.f32 %v12802_v54, %v12801_v29 }
 0xfb6   :  { %v4348_v5 = vadd.f32 %v4347_v13, %v4226_v35  ;;  %v10502_v53 = vsel %vm12797_vm2, %v4642_v10, -1e+30  ;;  %v12803_v35 = vld [vmem:[#allocation196_spill] sm:$0xff]  ;;  %v12804_v13 = vld [vmem:[#allocation58_spill] sm:$0xff] }
 0xfb7   :  { %4684 = vmax.xlane.f32.xlu0 %v10502_v53  ;;  %v4436_v57 = vmul.f32 %v12804_v13, %v12803_v35  ;;  %v12814_v13 = vld [vmem:[#allocation179_spill] sm:$0xff] }
 0xfb8   :  { %v4451_v33 = vadd.f32 %v4435_v58, %v4348_v5  ;;  %v12807_v58 = vld [vmem:[#allocation157_spill] sm:$0xff]  ;;  %vm12815_vm4 = vcmp.gt.f32.partialorder %v12814_v13, 0.0 }
 0xfb9   :  { %v12808_v5 = vld [vmem:[#allocation177_spill] sm:$0xff] }
 0xfba   :  { %v4547_v45 = vadd.f32 %v4531_v0, %v4451_v33  ;;  %v4532_v7 = vmul.f32 %v12808_v5, %v12807_v58  ;;  %v12809_v0 = vld [vmem:[#allocation178_spill] sm:$0xff] }
 0xfbb   :  { %v4628_v33 = vmul.f32 %v12809_v0, %v4602_v22 }
 0xfbc   :  { %v4643_v56 = vadd.f32 %v4627_v42, %v4547_v45  ;;  %v12810_v42 = vld [vmem:[#allocation126_spill] sm:$0xff]  ;;  %v12811_v45 = vld [vmem:[#allocation57_spill] sm:$0xff] }
 0xfbd   :  { %v4350_v47 = vpop.f32.mrf.mxu0  ;;  %v4228_v20 = vmul.f32 %v12811_v45, %v12810_v42 }
 0xfbe   :  { %v4351_v10 = vadd.f32 %v4350_v47, %v4227_v8  ;;  %v10514_v59 = vsel %vm12806_vm3, %v4643_v56, -1e+30  ;;  %v12812_v8 = vld [vmem:[#allocation199_spill] sm:$0xff]  ;;  %v12813_v47 = vld [vmem:[#allocation68_spill] sm:$0xff] }
 0xfbf   :  { %4686 = vmax.xlane.f32.xlu1 %v10514_v59  ;;  %v4437_v62 = vmul.f32 %v12813_v47, %v12812_v8  ;;  %v12823_v47 = vld [vmem:[#allocation62_spill] sm:$0xff] }
 0xfc0   :  { %v4452_v63 = vadd.f32 %v4436_v57, %v4351_v10  ;;  %v12816_v57 = vld [vmem:[#allocation142_spill] sm:$0xff]  ;;  %vm12824_vm5 = vcmp.gt.f32.partialorder %v12823_v47, 0.0 }
 0xfc1   :  { %v12817_v10 = vld [vmem:[#allocation86_spill] sm:$0xff] }
 0xfc2   :  { %v4548_v29 = vadd.f32 %v4532_v7, %v4452_v63  ;;  %v4533_v22 = vmul.f32 %v12817_v10, %v12816_v57  ;;  %v12818_v7 = vld [vmem:[#allocation70_spill] sm:$0xff] }
 0xfc3   :  { %v4629_v63 = vmul.f32 %v12818_v7, %v4606_v46 }
 0xfc4   :  { %v4644_v21 = vadd.f32 %v4628_v33, %v4548_v29  ;;  %v12819_v33 = vld [vmem:[#allocation124_spill] sm:$0xff]  ;;  %v12820_v29 = vld [vmem:[#allocation67_spill] sm:$0xff] }
 0xfc5   :  { %v4352_v35 = vpop.f32.mrf.mxu0  ;;  %v4229_v0 = vmul.f32 %v12820_v29, %v12819_v33 }
 0xfc6   :  { %v4353_v56 = vadd.f32 %v4352_v35, %v4228_v20  ;;  %v10526_v51 = vsel %vm12815_vm4, %v4644_v21, -1e+30  ;;  %v12821_v20 = vld [vmem:[#allocation54_spill] sm:$0xff]  ;;  %v12822_v35 = vld [vmem:[#allocation183_spill] sm:$0xff] }
 0xfc7   :  { %4688 = vmax.xlane.f32.xlu2 %v10526_v51  ;;  %v4438_v13 = vmul.f32 %v12822_v35, %v12821_v20  ;;  %v12832_v35 = vld [vmem:[#allocation71_spill] sm:$0xff] }
 0xfc8   :  { %v4453_v58 = vadd.f32 %v4437_v62, %v4353_v56  ;;  %v12825_v62 = vld [vmem:[#allocation164_spill] sm:$0xff]  ;;  %v12826_v56 = vld [vmem:[#allocation73_spill] sm:$0xff]  ;;  %vm12833_vm8 = vcmp.gt.f32.partialorder %v12832_v35, 0.0 }
 0xfc9   :  { %v4534_v46 = vmul.f32 %v12826_v56, %v12825_v62  ;;  %v12835_v62 = vld [vmem:[#allocation187_spill] sm:$0xff] }
 0xfca   :  { %v4549_v42 = vadd.f32 %v4533_v22, %v4453_v58  ;;  %v12827_v22 = vld [vmem:[#allocation80_spill] sm:$0xff] }
 0xfcb   :  { %v4630_v58 = vmul.f32 %v12827_v22, %v4610_v43 }
 0xfcc   :  { %v4645_v5 = vadd.f32 %v4629_v63, %v4549_v42  ;;  %v12828_v63 = vld [vmem:[#allocation100_spill] sm:$0xff]  ;;  %v12829_v42 = vld [vmem:[#allocation97_spill] sm:$0xff] }
 0xfcd   :  { %v4355_v8 = vpop.f32.mrf.mxu0  ;;  %v4230_v7 = vmul.f32 %v12829_v42, %v12828_v63 }
 0xfce   :  { %v4356_v21 = vadd.f32 %v4355_v8, %v4229_v0  ;;  %v10538_v2 = vsel %vm12824_vm5, %v4645_v5, -1e+30  ;;  %v12830_v0 = vld [vmem:[#allocation47_spill] sm:$0xff]  ;;  %v12831_v8 = vld [vmem:[#allocation76_spill] sm:$0xff] }
 0xfcf   :  { %4690 = vmax.xlane.f32.xlu0 %v10538_v2  ;;  %v4439_v47 = vmul.f32 %v12831_v8, %v12830_v0 }
 0xfd0   :  { %v4454_v57 = vadd.f32 %v4438_v13, %v4356_v21  ;;  %v12834_v13 = vld [vmem:[#allocation92_spill] sm:$0xff] }
 0xfd1   :  { %v4535_v43 = vmul.f32 %v12834_v13, %v10381_v52 }
 0xfd2   :  { %v4550_v33 = vadd.f32 %v4534_v46, %v4454_v57  ;;  %v4631_v46 = vmul.f32 %v12835_v62, %v4614_v39 }
 0xfd4   :  { %v4646_v10 = vadd.f32 %v4630_v58, %v4550_v33 }
 0xfd5   :  { %v4357_v20 = vpop.f32.mrf.mxu0 }
 0xfd6   :  { %v4358_v5 = vadd.f32 %v4357_v20, %v4230_v7  ;;  %v10550_v9 = vsel %vm12833_vm8, %v4646_v10, -1e+30  ;;  %v12836_v7 = vld [vmem:[#allocation99_spill] sm:$0xff] }
 0xfd7   :  { %4692 = vmax.xlane.f32.xlu1 %v10550_v9  ;;  %vm12837_vm10 = vcmp.gt.f32.partialorder %v12836_v7, 0.0 }
 0xfd8   :  { %v4455_v21 = vadd.f32 %v4439_v47, %v4358_v5 }
 0xfda   :  { %v4551_v57 = vadd.f32 %v4535_v43, %v4455_v21  ;;  %v4665_v58 = vpop.xlane.xlu0 %4664 }
 0xfdb   :  { %v4696_v33 = vsub.f32 %v10386_v36, %v4665_v58 }
 0xfdc   :  { %v4647_v63 = vadd.f32 %v4631_v46, %v4551_v57 }
 0xfdd   :  { %v4712_v0 = vmul.f32 1.442695, %v4696_v33 }
 0xfde   :  { %v10559_v35 = vsel %vm12837_vm10, %v4647_v63, -1e+30 }
 0xfdf   :  { %6254 = vpow2.f32 %v4712_v0  ;;  %4694 = vmax.xlane.f32.xlu2 %v10559_v35 }
 0xfe2   :  { %v4667_v10 = vpop.xlane.xlu2 %4666 }
 0xfe3   :  { %v4697_v20 = vsub.f32 %v10396_v16, %v4667_v10 }
 0xfe5   :  { %v10563_v52 = vpop.eup %6254  ;;  %v4714_v47 = vmul.f32 1.442695, %v4697_v20 }
 0xfe6   :  { %4744 = vadd.xlane.f32.xlu0 %v10563_v52 }
 0xfe7   :  { %6256 = vpow2.f32 %v4714_v47 }
 0xfea   :  { %v4669_v39 = vpop.xlane.xlu1 %4668 }
 0xfeb   :  { %v4698_v36 = vsub.f32 %v10407_v32, %v4669_v39 }
 0xfed   :  { %v10567_v5 = vpop.eup %6256  ;;  %v4716_v43 = vmul.f32 1.442695, %v4698_v36 }
 0xfee   :  { %4746 = vadd.xlane.f32.xlu1 %v10567_v5 }
 0xfef   :  { %6258 = vpow2.f32 %v4716_v43 }
 0xff2   :  { %v4671_v21 = vpop.xlane.xlu2 %4670 }
 0xff3   :  { %v4699_v46 = vsub.f32 %v10418_v12, %v4671_v21 }
 0xff5   :  { %v10571_v57 = vpop.eup %6258  ;;  %v4718_v16 = vmul.f32 1.442695, %v4699_v46 }
 0xff6   :  { %4748 = vadd.xlane.f32.xlu2 %v10571_v57 }
 0xff7   :  { %6260 = vpow2.f32 %v4718_v16 }
 0xffa   :  { %v4673_v58 = vpop.xlane.xlu0 %4672 }
 0xffb   :  { %v4700_v33 = vsub.f32 %v10430_v1, %v4673_v58 }
 0xffd   :  { %v10575_v63 = vpop.eup %6260  ;;  %v4720_v32 = vmul.f32 1.442695, %v4700_v33 }
 0xffe   :  { %4750 = vadd.xlane.f32.xlu0 %v10575_v63 }
 0xfff   :  { %6262 = vpow2.f32 %v4720_v32 }
0x1002   :  { %v4675_v0 = vpop.xlane.xlu1 %4674 }
0x1003   :  { %v4701_v7 = vsub.f32 %v10442_v23, %v4675_v0 }
0x1005   :  { %v10579_v10 = vpop.eup %6262  ;;  %v4722_v12 = vmul.f32 1.442695, %v4701_v7 }
0x1006   :  { %4752 = vadd.xlane.f32.xlu1 %v10579_v10 }
0x1007   :  { %6264 = vpow2.f32 %v4722_v12 }
0x100a   :  { %v4677_v20 = vpop.xlane.xlu2 %4676 }
0x100b   :  { %v4702_v47 = vsub.f32 %v10454_v27, %v4677_v20 }
0x100d   :  { %v10583_v39 = vpop.eup %6264  ;;  %v4724_v1 = vmul.f32 1.442695, %v4702_v47 }
0x100e   :  { %4754 = vadd.xlane.f32.xlu2 %v10583_v39 }
0x100f   :  { %6266 = vpow2.f32 %v4724_v1 }
0x1012   :  { %v4679_v36 = vpop.xlane.xlu0 %4678 }
0x1013   :  { %v4703_v43 = vsub.f32 %v10466_v6, %v4679_v36 }
0x1015   :  { %v10587_v21 = vpop.eup %6266  ;;  %v4726_v23 = vmul.f32 1.442695, %v4703_v43 }
0x1016   :  { %4756 = vadd.xlane.f32.xlu0 %v10587_v21 }
0x1017   :  { %6268 = vpow2.f32 %v4726_v23 }
0x101a   :  { %v4681_v46 = vpop.xlane.xlu1 %4680 }
0x101b   :  { %v4704_v16 = vsub.f32 %v10478_v40, %v4681_v46 }
0x101d   :  { %v10591_v58 = vpop.eup %6268  ;;  %v4728_v27 = vmul.f32 1.442695, %v4704_v16 }
0x101e   :  { %4758 = vadd.xlane.f32.xlu1 %v10591_v58 }
0x101f   :  { %6270 = vpow2.f32 %v4728_v27 }
0x1022   :  { %v4683_v33 = vpop.xlane.xlu2 %4682 }
0x1023   :  { %v4705_v32 = vsub.f32 %v10490_v3, %v4683_v33 }
0x1025   :  { %v10595_v0 = vpop.eup %6270  ;;  %v4730_v6 = vmul.f32 1.442695, %v4705_v32 }
0x1026   :  { %4760 = vadd.xlane.f32.xlu2 %v10595_v0 }
0x1027   :  { %6272 = vpow2.f32 %v4730_v6 }
0x102a   :  { %v4685_v7 = vpop.xlane.xlu0 %4684 }
0x102b   :  { %v4706_v12 = vsub.f32 %v10502_v53, %v4685_v7 }
0x102d   :  { %v10599_v20 = vpop.eup %6272  ;;  %v4732_v40 = vmul.f32 1.442695, %v4706_v12 }
0x102e   :  { %4762 = vadd.xlane.f32.xlu0 %v10599_v20 }
0x102f   :  { %6274 = vpow2.f32 %v4732_v40 }
0x1032   :  { %v4687_v47 = vpop.xlane.xlu1 %4686 }
0x1033   :  { %v4707_v1 = vsub.f32 %v10514_v59, %v4687_v47 }
0x1035   :  { %v10603_v36 = vpop.eup %6274  ;;  %v4734_v3 = vmul.f32 1.442695, %v4707_v1 }
0x1036   :  { %4764 = vadd.xlane.f32.xlu1 %v10603_v36 }
0x1037   :  { %6276 = vpow2.f32 %v4734_v3 }
0x103a   :  { %v4689_v43 = vpop.xlane.xlu2 %4688 }
0x103b   :  { %v4708_v23 = vsub.f32 %v10526_v51, %v4689_v43  ;;  %v12838_v43 = vld [vmem:[#allocation31_spill] sm:$0xff] }
0x103c   :  { %vm12839_vm12 = vcmp.gt.f32.partialorder %v12838_v43, 0.0 }
0x103d   :  { %v10607_v46 = vpop.eup %6276  ;;  %v4736_v53 = vmul.f32 1.442695, %v4708_v23 }
0x103e   :  { %4766 = vadd.xlane.f32.xlu2 %v10607_v46 }
0x103f   :  { %6278 = vpow2.f32 %v4736_v53 }
0x1042   :  { %v4691_v16 = vpop.xlane.xlu0 %4690 }
0x1043   :  { %v4709_v27 = vsub.f32 %v10538_v2, %v4691_v16 }
0x1045   :  { %v10611_v33 = vpop.eup %6278  ;;  %v4738_v59 = vmul.f32 1.442695, %v4709_v27 }
0x1046   :  { %4768 = vadd.xlane.f32.xlu0 %v10611_v33 }
0x1047   :  { %6280 = vpow2.f32 %v4738_v59 }
0x104a   :  { %v4693_v32 = vpop.xlane.xlu1 %4692 }
0x104b   :  { %v4710_v6 = vsub.f32 %v10550_v9, %v4693_v32  ;;  %v12841_v32 = vld [vmem:[#allocation35_spill] sm:$0xff] }
0x104c   :  { %vm12842_vm14 = vcmp.gt.f32.partialorder %v12841_v32, 0.0 }
0x104d   :  { %v10615_v7 = vpop.eup %6280  ;;  %v4740_v51 = vmul.f32 1.442695, %v4710_v6 }
0x104e   :  { %4770 = vadd.xlane.f32.xlu1 %v10615_v7 }
0x104f   :  { %6282 = vpow2.f32 %v4740_v51 }
0x1052   :  { %v4695_v12 = vpop.xlane.xlu2 %4694 }
0x1053   :  { %v4711_v40 = vsub.f32 %v10559_v35, %v4695_v12  ;;  %v12840_v35 = vld [vmem:[#allocation133_spill] sm:$0xff] }
0x1055   :  { %v10619_v47 = vpop.eup %6282  ;;  %v4742_v2 = vmul.f32 1.442695, %v4711_v40 }
0x1056   :  { %4772 = vadd.xlane.f32.xlu2 %v10619_v47 }
0x1057   :  { %6284 = vpow2.f32 %v4742_v2 }
0x1059   :  { %v4745_v1 = vpop.xlane.xlu0 %4744 }
0x105a   :  { %6286 = vrcp.f32 %v4745_v1  ;;  %v12843_v1 = vld [vmem:[#allocation30_spill] sm:$0xff] }
0x105b   :  { %vm12844_vm15 = vcmp.gt.f32.partialorder %v12843_v1, 0.0 }
0x105d   :  { %v10622_v3 = vpop.eup %6284 }
0x105e   :  { %4774 = vadd.xlane.f32.xlu0 %v10622_v3 }
0x1060   :  { %v6287_v9 = vpop.eup %6286 }
0x1061   :  { %v4792_v23 = vsel %vm12839_vm12, %v6287_v9, 0.0  ;;  %v4747_v53 = vpop.xlane.xlu1 %4746  ;;  %vm12879_vm12 = vcmask 1043456  }
0x1062   :  { %v10628_v16 = vmul.f32 %v10563_v52, %v4792_v23  ;;  %6288 = vrcp.f32 %v4747_v53 }
0x1064   :  { %v4832_v27 = vmul.f32 %v12840_v35, %v10628_v16  ;;  %v12845_v35 = vld [vmem:[#allocation34_spill] sm:$0xff] }
0x1065   :  { %vm12846_vm1 = vcmp.gt.f32.partialorder %v12845_v35, 0.0 }
0x1066   :  { %4848 = vadd.xlane.f32.xlu1 %v4832_v27 }
0x1068   :  { %v6289_v59 = vpop.eup %6288 }
0x1069   :  { %v4793_v6 = vsel %vm12842_vm14, %v6289_v59, 0.0  ;;  %v4749_v51 = vpop.xlane.xlu2 %4748  ;;  %vm12909_vm14 = vcmask 64512  }
0x106a   :  { %v10635_v12 = vmul.f32 %v10567_v5, %v4793_v6  ;;  %6290 = vrcp.f32 %v4749_v51  ;;  %v12847_v51 = vld [vmem:[#allocation23_spill] sm:$0xff] }
0x106b   :  { %vm12848_vm6 = vcmp.gt.f32.partialorder %v12847_v51, 0.0  ;;  %v12853_v51 = vld [vmem:[#allocation38_spill] sm:$0xff] }
0x106c   :  { %v4833_v40 = vmul.f32 %v12452_v50, %v10635_v12  ;;  %v4824_v52 = vpack.c.bf16 %v10635_v12, %v10628_v16  ;;  %vm12854_vm13 = vcmp.gt.f32.partialorder %v12853_v51, 0.0 }
0x106e   :  { %4850 = vadd.xlane.f32.xlu2 %v4833_v40 }
0x1070   :  { %v6291_v2 = vpop.eup %6290 }
0x1071   :  { %v4794_v9 = vsel %vm12844_vm15, %v6291_v2, 0.0  ;;  %v4751_v43 = vpop.xlane.xlu0 %4750  ;;  %vm12926_vm15 = vmmov %vm12909_vm14 }
0x1072   :  { %v10644_v23 = vmul.f32 %v10571_v57, %v4794_v9  ;;  %6292 = vrcp.f32 %v4751_v43  ;;  %v12849_v9 = vld [vmem:[#allocation26_spill] sm:$0xff] }
0x1073   :  { %vm12850_vm9 = vcmp.gt.f32.partialorder %v12849_v9, 0.0  ;;  %v12855_v9 = vld [vmem:[#allocation28_spill] sm:$0xff] }
0x1074   :  { %v4834_v5 = vmul.f32 %v12457_v11, %v10644_v23  ;;  %vm12856_vm7 = vcmp.gt.f32.partialorder %v12855_v9, 0.0 }
0x1076   :  { %4852 = vadd.xlane.f32.xlu0 %v4834_v5 }
0x1078   :  { %v6293_v53 = vpop.eup %6292 }
0x1079   :  { %v4795_v50 = vsel %vm12846_vm1, %v6293_v53, 0.0  ;;  %v4753_v27 = vpop.xlane.xlu1 %4752  ;;  %vm12943_vm1 = vmmov %vm12909_vm14 }
0x107a   :  { %v10651_v59 = vmul.f32 %v10575_v63, %v4795_v50  ;;  %6294 = vrcp.f32 %v4753_v27  ;;  %v12851_v50 = vld [vmem:[#allocation39_spill] sm:$0xff] }
0x107b   :  { %vm12852_vm11 = vcmp.gt.f32.partialorder %v12851_v50, 0.0 }
0x107c   :  { %v4835_v32 = vmul.f32 %v12760_v26, %v10651_v59  ;;  %v4825_v57 = vpack.c.bf16 %v10651_v59, %v10644_v23 }
0x107e   :  { %4854 = vadd.xlane.f32.xlu1 %v4835_v32 }
0x1080   :  { %v6295_v6 = vpop.eup %6294 }
0x1081   :  { %v4796_v11 = vsel %vm12848_vm6, %v6295_v6, 0.0  ;;  %v4755_v40 = vpop.xlane.xlu2 %4754  ;;  %vm12958_vm6 = vmmov %vm12943_vm1 }
0x1082   :  { %v10660_v2 = vmul.f32 %v10579_v10, %v4796_v11  ;;  %6296 = vrcp.f32 %v4755_v40 }
0x1084   :  { %v4836_v63 = vmul.f32 %v12764_v15, %v10660_v2 }
0x1086   :  { %4856 = vadd.xlane.f32.xlu2 %v4836_v63 }
0x1088   :  { %v6297_v1 = vpop.eup %6296 }
0x1089   :  { %v4797_v26 = vsel %vm12850_vm9, %v6297_v1, 0.0  ;;  %v4757_v43 = vpop.xlane.xlu0 %4756  ;;  %vm12973_vm9 = vmmov %vm12943_vm1 }
0x108a   :  { %v10667_v5 = vmul.f32 %v10583_v39, %v4797_v26  ;;  %6298 = vrcp.f32 %v4757_v43 }
0x108c   :  { %v4837_v53 = vmul.f32 %v12601_v41, %v10667_v5  ;;  %v4826_v10 = vpack.c.bf16 %v10667_v5, %v10660_v2 }
0x108e   :  { %4858 = vadd.xlane.f32.xlu0 %v4837_v53 }
0x1090   :  { %v6299_v35 = vpop.eup %6298 }
0x1091   :  { %v4798_v15 = vsel %vm12852_vm11, %v6299_v35, 0.0  ;;  %v4759_v27 = vpop.xlane.xlu1 %4758  ;;  %v12857_v35 = vld [vmem:[#allocation42_spill] sm:$0xff]  ;;  %vm12983_vm11 = vmmov %vm12943_vm1 }
0x1092   :  { %v10676_v32 = vmul.f32 %v10587_v21, %v4798_v15  ;;  %6300 = vrcp.f32 %v4759_v27  ;;  %vm12858_vm0 = vcmp.gt.f32.partialorder %v12857_v35, 0.0  ;;  %v12865_v35 = vld [vmem:[#allocation50_spill] sm:$0xff] }
0x1094   :  { %v4838_v39 = vmul.f32 %v12771_v4, %v10676_v32 }
0x1096   :  { %4860 = vadd.xlane.f32.xlu1 %v4838_v39 }
0x1098   :  { %v6301_v6 = vpop.eup %6300 }
0x1099   :  { %v4799_v41 = vsel %vm12854_vm13, %v6301_v6, 0.0  ;;  %v4761_v11 = vpop.xlane.xlu2 %4760  ;;  %v12859_v6 = vld [vmem:[#allocation41_spill] sm:$0xff]  ;;  %vm12988_vm13 = vmmov %vm12943_vm1 }
0x109a   :  { %v10683_v40 = vmul.f32 %v10591_v58, %v4799_v41  ;;  %6302 = vrcp.f32 %v4761_v11  ;;  %vm12860_vm2 = vcmp.gt.f32.partialorder %v12859_v6, 0.0 }
0x109c   :  { %v4839_v63 = vmul.f32 %v12775_v34, %v10683_v40  ;;  %v4827_v21 = vpack.c.bf16 %v10683_v40, %v10676_v32 }
0x109e   :  { %4862 = vadd.xlane.f32.xlu2 %v4839_v63  ;;  %v12861_v63 = vld [vmem:[#allocation33_spill] sm:$0xff] }
0x109f   :  { %vm12862_vm3 = vcmp.gt.f32.partialorder %v12861_v63, 0.0  ;;  %v12872_v63 = vld [vmem:[#allocation37_spill] sm:$0xff] }
0x10a0   :  { %v6303_v1 = vpop.eup %6302  ;;  %vm12873_vm8 = vcmp.gt.f32.partialorder %v12872_v63, 0.0 }
0x10a1   :  { %v4800_v4 = vsel %vm12856_vm7, %v6303_v1, 0.0  ;;  %v4763_v26 = vpop.xlane.xlu0 %4762  ;;  %vm12997_vm7 = vmmov %vm12943_vm1 }
0x10a2   :  { %v10692_v43 = vmul.f32 %v10595_v0, %v4800_v4  ;;  %6304 = vrcp.f32 %v4763_v26 }
0x10a4   :  { %v4840_v58 = vmul.f32 %v12780_v60, %v10692_v43 }
0x10a6   :  { %4864 = vadd.xlane.f32.xlu0 %v4840_v58  ;;  %v12863_v58 = vld [vmem:[#allocation46_spill] sm:$0xff] }
0x10a7   :  { %vm12864_vm4 = vcmp.gt.f32.partialorder %v12863_v58, 0.0 }
0x10a8   :  { %v6305_v53 = vpop.eup %6304 }
0x10a9   :  { %v4801_v34 = vsel %vm12858_vm0, %v6305_v53, 0.0  ;;  %v4765_v50 = vpop.xlane.xlu1 %4764 }
0x10aa   :  { %v10699_v15 = vmul.f32 %v10599_v20, %v4801_v34  ;;  %6306 = vrcp.f32 %v4765_v50  ;;  %v12866_v34 = vld [vmem:[#allocation45_spill] sm:$0xff] }
0x10ab   :  { %vm12867_vm5 = vcmp.gt.f32.partialorder %v12866_v34, 0.0  ;;  %v12878_v34 = vld [vmem:[#allocation131_spill] sm:$0xff] }
0x10ac   :  { %v4841_v27 = vmul.f32 %v12786_v17, %v10699_v15  ;;  %v4828_v0 = vpack.c.bf16 %v10699_v15, %v10692_v43 }
0x10ae   :  { %4866 = vadd.xlane.f32.xlu1 %v4841_v27 }
0x10b0   :  { %v6307_v39 = vpop.eup %6306 }
0x10b1   :  { %v4802_v60 = vsel %vm12860_vm2, %v6307_v39, 0.0  ;;  %v4767_v51 = vpop.xlane.xlu2 %4766 }
0x10b2   :  { %v10708_v41 = vmul.f32 %v10603_v36, %v4802_v60  ;;  %6308 = vrcp.f32 %v4767_v51  ;;  %v12868_v60 = vld [vmem:[#allocation20_spill] sm:$0xff]  ;;  %v12869_v51 = vld [vmem:[#allocation18_spill] sm:$0xff] }
0x10b4   :  { %v4842_v20 = vmul.f32 %v12790_v49, %v10708_v41 }
0x10b6   :  { %4868 = vadd.xlane.f32.xlu2 %v4842_v20 }
0x10b8   :  { %v6309_v11 = vpop.eup %6308 }
0x10b9   :  { %v4803_v17 = vsel %vm12862_vm3, %v6309_v11, 0.0  ;;  %v4769_v9 = vpop.xlane.xlu0 %4768  ;;  %v12870_v11 = vld [vmem:[#allocation27_spill] sm:$0xff] }
0x10ba   :  { %v10715_v1 = vmul.f32 %v10607_v46, %v4803_v17  ;;  %6310 = vrcp.f32 %v4769_v9  ;;  %v12874_v9 = vld [vmem:[#allocation29_spill] sm:$0xff] }
0x10bc   :  { %v4843_v4 = vmul.f32 %v12640_v18, %v10715_v1  ;;  %v4829_v36 = vpack.c.bf16 %v10715_v1, %v10708_v41 }
0x10be   :  { %4870 = vadd.xlane.f32.xlu0 %v4843_v4 }
0x10c0   :  { %v6311_v49 = vpop.eup %6310 }
0x10c1   :  { %v4771_v26 = vpop.xlane.xlu1 %4770  ;;  %v4804_v53 = vsel %vm12864_vm4, %v6311_v49, 0.0 }
0x10c2   :  { %6312 = vrcp.f32 %v4771_v26  ;;  %v10728_v18 = vmul.f32 %v10611_v33, %v4804_v53  ;;  %v12875_v26 = vld [vmem:[#allocation48_spill] sm:$0xff] }
0x10c3   :  { %vm12876_vm10 = vcmp.gt.f32.partialorder %v12875_v26, 0.0 }
0x10c7   :  { %4910 = vrot.lane.b32.xlu1 %v12865_v35, %s6505_s2  ;;  %v12877_v35 = vld [vmem:[#allocation16_spill] sm:$0xff] }
0x10c8   :  { %v6313_v46 = vpop.eup %6312 }
0x10c9   :  { %v4805_v50 = vsel %vm12867_vm5, %v6313_v46, 0.0  ;;  %v4773_v39 = vpop.xlane.xlu2 %4772 }
0x10ca   :  { %v10731_v27 = vmul.f32 %v10615_v7, %v4805_v50  ;;  %6314 = vrcp.f32 %v4773_v39  ;;  %v12871_v7 = vld [vmem:[#allocation40_spill] sm:$0xff] }
0x10cc   :  { %v4830_v6 = vpack.c.bf16 %v10731_v27, %v10728_v18  ;;  %v4845_v50 = vmul.f32 %v12811_v45, %v10731_v27 }
0x10ce   :  { %4908 = vrot.lane.b32.xlu2 %v12868_v60, %s6505_s2  ;;  %v10772_v60 = vld [vmem:[%s11314_s8] sm:$0xf] }
0x10cf   :  { %4904 = vrot.lane.b32.xlu1 %v12869_v51, %s6505_s2 }
0x10d0   :  { %v6315_v33 = vpop.eup %6314 }
0x10d1   :  { %v4775_v20 = vpop.xlane.xlu0 %4774  ;;  %v4806_v17 = vsel %vm12873_vm8, %v6315_v33, 0.0 }
0x10d2   :  { %6316 = vrcp.f32 %v4775_v20  ;;  %4906 = vrot.lane.b32.xlu0 %v12870_v11, %s6505_s2  ;;  %v10750_v58 = vmul.f32 %v10619_v47, %v4806_v17  ;;  %v4844_v47 = vmul.f32 %v12802_v54, %v10728_v18  ;;  %v10775_v20 = vperm.slane %v10772_v60, 0 }
0x10d6   :  { %4900 = vrot.lane.b32.xlu2 %v12871_v7, %s6505_s2 }
0x10d7   :  { %4898 = vrot.lane.b32.xlu1 %v12874_v9, %s6505_s2 }
0x10d8   :  { %v6317_v4 = vpop.eup %6316 }
0x10d9   :  { %v4807_v49 = vsel %vm12876_vm10, %v6317_v4, 0.0  ;;  %v4849_v51 = vpop.xlane.xlu1 %4848 }
0x10da   :  { %v10753_v53 = vmul.f32 %v10622_v3, %v4807_v49  ;;  %4902 = vrot.lane.b32.xlu0 %v12877_v35, %s6505_s2  ;;  %v4846_v3 = vmul.f32 %v12820_v29, %v10750_v58  ;;  %v4880_v54 = vmul.f32 %v4849_v51, %v10775_v20 }
0x10dc   :  { %v4831_v46 = vpack.c.bf16 %v10753_v53, %v10750_v58  ;;  %v4847_v39 = vmul.f32 %v12829_v42, %v10753_v53 }
0x10de   :  { %4896 = vrot.lane.b32.xlu2 %v12878_v34, %s6505_s2 }
0x10e1   :  { %v4851_v45 = vpop.xlane.xlu2 %4850 }
0x10e2   :  { %v4881_v42 = vmul.f32 %v4851_v45, %v10775_v20 }
0x10e9   :  { %v4853_v11 = vpop.xlane.xlu0 %4852 }
0x10ea   :  { %v4882_v29 = vmul.f32 %v4853_v11, %v10775_v20 }
0x10f1   :  { %v4855_v63 = vpop.xlane.xlu1 %4854 }
0x10f2   :  { %v4883_v26 = vmul.f32 %v4855_v63, %v10775_v20 }
0x10f9   :  { %v4857_v33 = vpop.xlane.xlu2 %4856 }
0x10fa   :  { %v4884_v7 = vmul.f32 %v4857_v33, %v10775_v20 }
0x1101   :  { %4874 = vadd.xlane.f32.xlu1 %v4845_v50  ;;  %v4859_v17 = vpop.xlane.xlu0 %4858 }
0x1102   :  { %v4885_v9 = vmul.f32 %v4859_v17, %v10775_v20 }
0x1104   :  { %4872 = vadd.xlane.f32.xlu0 %v4844_v47 }
0x1107   :  { %4876 = vadd.xlane.f32.xlu2 %v4846_v3 }
0x1109   :  { %v4861_v35 = vpop.xlane.xlu1 %4860 }
0x110a   :  { %v4886_v3 = vmul.f32 %v4861_v35, %v10775_v20 }
0x110c   :  { %4878 = vadd.xlane.f32.xlu0 %v4847_v39 }
0x1111   :  { %v4863_v4 = vpop.xlane.xlu2 %4862 }
0x1112   :  { %v4887_v49 = vmul.f32 %v4863_v4, %v10775_v20 }
0x1119   :  { %v4865_v34 = vpop.xlane.xlu0 %4864 }
0x111a   :  { %4936 = vrot.lane.b32.xlu1 %v4880_v54, %s6497_s0  ;;  %v4888_v50 = vmul.f32 %v4865_v34, %v10775_v20 }
0x111f   :  { %4940 = vrot.lane.b32.xlu2 %v4882_v29, %s6497_s0 }
0x1120   :  { %4938 = vrot.lane.b32.xlu0 %v4881_v42, %s6497_s0 }
0x1121   :  { %v4867_v51 = vpop.xlane.xlu1 %4866 }
0x1122   :  { %4944 = vrot.lane.b32.xlu1 %v4884_v7, %s6497_s0  ;;  %v4889_v11 = vmul.f32 %v4867_v51, %v10775_v20  ;;  %v5178_v51 = vmul.f32 %v12578_v14, %v10635_v12  ;;  %v5322_v14 = vmul.f32 %v12755_v38, %v10635_v12 }
0x1127   :  { %4946 = vrot.lane.b32.xlu2 %v4885_v9, %s6497_s0  ;;  %v5585_v9 = vld [vmem:[#allocation10] sm:$0xf] }
0x1128   :  { %4942 = vrot.lane.b32.xlu0 %v4883_v26, %s6497_s0  ;;  %v5615_v26 = vsel %vm12879_vm12, %v5585_v9, 0 }
0x1129   :  { %v4869_v47 = vpop.xlane.xlu2 %4868 }
0x112a   :  { %4950 = vrot.lane.b32.xlu1 %v4887_v49, %s6497_s0  ;;  %v4890_v39 = vmul.f32 %v4869_v47, %v10775_v20 }
0x112f   :  { %4952 = vrot.lane.b32.xlu2 %v4888_v50, %s6497_s0 }
0x1130   :  { %4948 = vrot.lane.b32.xlu0 %v4886_v3, %s6497_s0 }
0x1131   :  { %v4871_v45 = vpop.xlane.xlu0 %4870  ;;  %v4909_v33 = vpop.permute.xlu2 %4908 }
0x1132   :  { %4956 = vrot.lane.b32.xlu1 %v4890_v39, %s6497_s0  ;;  %v4891_v54 = vmul.f32 %v4871_v45, %v10775_v20  ;;  %v5033_v39 = vmul.f32 %v12449_v37, %v10628_v16  ;;  %v5177_v45 = vmul.f32 %v12450_v61, %v10628_v16  ;;  %v5321_v37 = vmul.f32 %v12451_v48, %v10628_v16  ;;  %v12881_v16 = vld [vmem:[#allocation53_spill] sm:$0xff] }
0x1133   :  { %v5036_v61 = vmul.f32 %v12592_v25, %v10651_v59  ;;  %v5179_v48 = vmul.f32 %v12587_v44, %v10644_v23  ;;  %v5037_v25 = vmul.f32 %v12595_v30, %v10660_v2  ;;  %v5038_v44 = vmul.f32 %v12600_v31, %v10667_v5 }
0x1137   :  { %4958 = vrot.lane.b32.xlu2 %v4891_v54, %s6497_s0 }
0x1138   :  { %4954 = vrot.lane.b32.xlu0 %v4889_v11, %s6497_s0 }
0x1139   :  { %v4911_v29 = vpop.permute.xlu1 %4910  ;;  %v4901_v17 = vpop.permute.xlu2 %4900 }
0x113a   :  { %4984 = vmatpush.bf16.msra.mxu1 %v4911_v29  ;;  %5931 = vmatpush.bf16.msra.mxu2 %v4911_v29 }
0x113e   :  { %4985 = vmatpush.bf16.msra.mxu1 %v4909_v33  ;;  %5932 = vmatpush.bf16.msra.mxu2 %v4909_v33 }
0x1141   :  { %v4905_v7 = vpop.permute.xlu1 %4904  ;;  %v4897_v49 = vpop.permute.xlu2 %4896 }
0x1144   :  { %v4907_v42 = vpop.permute.xlu0 %4906 }
0x1145   :  { %4986 = vmatpush.bf16.msra.mxu1 %v4907_v42  ;;  %5933 = vmatpush.bf16.msra.mxu2 %v4907_v42 }
0x1149   :  { %4987 = vmatpush.bf16.msra.mxu1 %v4905_v7  ;;  %5934 = vmatpush.bf16.msra.mxu2 %v4905_v7  ;;  %v4899_v4 = vpop.permute.xlu1 %4898 }
0x114c   :  { %v4903_v63 = vpop.permute.xlu0 %4902 }
0x114d   :  { %4988 = vmatpush.bf16.msra.mxu1 %v4903_v63  ;;  %5935 = vmatpush.bf16.msra.mxu2 %v4903_v63 }
0x1151   :  { %4989 = vmatpush.bf16.msra.mxu1 %v4901_v17  ;;  %5936 = vmatpush.bf16.msra.mxu2 %v4901_v17 }
0x1155   :  { %4990 = vmatpush.bf16.msra.mxu1 %v4899_v4  ;;  %5937 = vmatpush.bf16.msra.mxu2 %v4899_v4 }
0x1159   :  { %4991 = vmatpush.bf16.msra.mxu1 %v4897_v49  ;;  %5938 = vmatpush.bf16.msra.mxu2 %v4897_v49  ;;  %v10901_v49 = vperm.slane %v10772_v60, 1 }
0x115c   :  { %4992 = vmatmul.bf16.vlgmr.msra.gmra.mxu1 %v4824_v52  ;;  %4997 = vmatmul.bf16.vlgmr.msra.gmra.mxu2 %v4825_v57 }
0x115d   :  { %5624 = vmatpush.bf16.msrb.mxu1 %v5615_v26 }
0x116c   :  { %5002 = vmatmul.bf16.gmra.mxu2 %v4826_v10 }
0x1174   :  { %v4875_v35 = vpop.xlane.xlu1 %4874 }
0x1175   :  { %v4893_v34 = vmul.f32 %v4875_v35, %v10775_v20 }
0x1177   :  { %v4873_v50 = vpop.xlane.xlu0 %4872  ;;  %4962 = vrot.lane.b32.xlu1 %v4893_v34, %s6497_s0 }
0x1178   :  { %v4892_v47 = vmul.f32 %v4873_v50, %v10775_v20 }
0x117a   :  { %4960 = vrot.lane.b32.xlu0 %v4892_v47, %s6497_s0  ;;  %v4877_v3 = vpop.xlane.xlu2 %4876 }
0x117b   :  { %v4894_v52 = vmul.f32 %v4877_v3, %v10775_v20 }
0x117c   :  { %5007 = vmatmul.bf16.gmra.mxu2 %v4827_v21  ;;  %v5034_v21 = vmul.f32 %v12579_v55, %v10635_v12  ;;  %v5035_v55 = vmul.f32 %v12458_v19, %v10644_v23  ;;  %v12880_v19 = vld [vmem:[#allocation160_spill] sm:$0xff]  ;;  %v5182_v12 = vmul.f32 %v12477_v24, %v10667_v5 }
0x117d   :  { %4964 = vrot.lane.b32.xlu2 %v4894_v52, %s6497_s0  ;;  %v5323_v38 = vmul.f32 %v12880_v19, %v10644_v23  ;;  %v10910_v52 = vperm.slane %v10772_v60, 2  ;;  %v12887_v19 = vld [vmem:[#allocation64_spill] sm:$0xff] }
0x117f   :  { %v4879_v57 = vpop.xlane.xlu0 %4878 }
0x1180   :  { %v4895_v10 = vmul.f32 %v4879_v57, %v10775_v20 }
0x1182   :  { %4966 = vrot.lane.b32.xlu0 %v4895_v10, %s6497_s0  ;;  %v10874_v11 = vpop.permute.xlu2 %4940  ;;  %v10913_v10 = vperm.slane %v10772_v60, 3  ;;  %v12885_v60 = vld [vmem:[#allocation78_spill] sm:$0xff] }
0x118a   :  { %v10880_v33 = vpop.permute.xlu2 %4946 }
0x118c   :  { %5012 = vmatmul.bf16.gmra.mxu2 %v4828_v0  ;;  %v5180_v0 = vmul.f32 %v12593_v28, %v10651_v59  ;;  %v5324_v28 = vmul.f32 %v12881_v16, %v10651_v59  ;;  %v10870_v54 = vpop.permute.xlu1 %4936 }
0x1192   :  { %v10872_v31 = vpop.permute.xlu0 %4938  ;;  %v10886_v7 = vpop.permute.xlu2 %4952 }
0x1194   :  { %v10876_v24 = vpop.permute.xlu1 %4944 }
0x119a   :  { %v10878_v29 = vpop.permute.xlu0 %4942  ;;  %v10892_v17 = vpop.permute.xlu2 %4958 }
0x119c   :  { %5017 = vmatmul.bf16.gmra.mxu2 %v4829_v36  ;;  %v12882_v36 = vld [vmem:[#allocation173_spill] sm:$0xff]  ;;  %v10882_v42 = vpop.permute.xlu1 %4950 }
0x119d   :  { %v5181_v23 = vmul.f32 %v12882_v36, %v10660_v2 }
0x11a1   :  { %5049 = vadd.xlane.f32.xlu1 %v5033_v39 }
0x11a6   :  { %5051 = vadd.xlane.f32.xlu2 %v5034_v21 }
0x11a9   :  { %5195 = vadd.xlane.f32.xlu1 %v5178_v51 }
0x11ac   :  { %5193 = vadd.xlane.f32.xlu0 %v5177_v45  ;;  %5022 = vmatmul.bf16.gmra.mxu2 %v4830_v6  ;;  %v12883_v6 = vld [vmem:[#allocation74_spill] sm:$0xff] }
0x11ad   :  { %v5325_v30 = vmul.f32 %v12883_v6, %v10660_v2  ;;  %v10884_v2 = vpop.permute.xlu0 %4948  ;;  %v12891_v6 = vld [vmem:[#allocation19_spill] sm:$0xff] }
0x11ae   :  { %5337 = vadd.xlane.f32.xlu2 %v5321_v37 }
0x11b1   :  { %5053 = vadd.xlane.f32.xlu1 %v5035_v55 }
0x11b4   :  { %5339 = vadd.xlane.f32.xlu0 %v5322_v14 }
0x11b5   :  { %v10890_v63 = vpop.permute.xlu0 %4954 }
0x11b6   :  { %5055 = vadd.xlane.f32.xlu2 %v5036_v61  ;;  %v5040_v61 = vmul.f32 %v12885_v60, %v10683_v40 }
0x11b9   :  { %5199 = vadd.xlane.f32.xlu1 %v5180_v0  ;;  %v12886_v0 = vld [vmem:[#allocation182_spill] sm:$0xff] }
0x11bc   :  { %5197 = vadd.xlane.f32.xlu0 %v5179_v48  ;;  %5027 = vmatmul.bf16.gmra.mxu2 %v4831_v46  ;;  %v12884_v46 = vld [vmem:[#allocation84_spill] sm:$0xff]  ;;  %v5183_v48 = vmul.f32 %v12886_v0, %v10676_v32 }
0x11bd   :  { %v5326_v59 = vmul.f32 %v12884_v46, %v10667_v5  ;;  %v10888_v5 = vpop.permute.xlu1 %4956 }
0x11be   :  { %5341 = vadd.xlane.f32.xlu2 %v5323_v38  ;;  %v5039_v38 = vmul.f32 %v12887_v19, %v10676_v32 }
0x11c1   :  { %5057 = vadd.xlane.f32.xlu1 %v5037_v25  ;;  %v12888_v25 = vld [vmem:[#allocation91_spill] sm:$0xff] }
0x11c2   :  { %v5327_v16 = vmul.f32 %v12888_v25, %v10676_v32 }
0x11c4   :  { %5343 = vadd.xlane.f32.xlu0 %v5324_v28  ;;  %v12889_v28 = vld [vmem:[#allocation186_spill] sm:$0xff] }
0x11c6   :  { %5059 = vadd.xlane.f32.xlu2 %v5038_v44  ;;  %v5328_v44 = vmul.f32 %v12889_v28, %v10683_v40 }
0x11c9   :  { %5203 = vadd.xlane.f32.xlu1 %v5182_v12  ;;  %v12890_v12 = vld [vmem:[#allocation69_spill] sm:$0xff] }
0x11ca   :  { %v5184_v36 = vmul.f32 %v12890_v12, %v10683_v40 }
0x11cc   :  { %5201 = vadd.xlane.f32.xlu0 %v5181_v23 }
0x11ce   :  { %5345 = vadd.xlane.f32.xlu2 %v5325_v30  ;;  %v12892_v30 = vld [vmem:[#allocation194_spill] sm:$0xff] }
0x11d4   :  { %5347 = vadd.xlane.f32.xlu0 %v5326_v59 }
0x11d7   :  { %v10898_v26 = vpop.permute.xlu2 %4964 }
0x11e9   :  { %v10894_v9 = vpop.permute.xlu1 %4962 }
0x11ec   :  { %v10896_v4 = vpop.permute.xlu0 %4960 }
0x11f4   :  { %v10904_v50 = vpop.permute.xlu0 %4966 }
0x1214   :  { %v5050_v35 = vpop.xlane.xlu1 %5049 }
0x1215   :  { %v5081_v34 = vmul.f32 %v5050_v35, %v10901_v49 }
0x1217   :  { %5113 = vrot.lane.b32.xlu1 %v5081_v34, %s6497_s0 }
0x1219   :  { %v5052_v47 = vpop.xlane.xlu2 %5051 }
0x121a   :  { %v5082_v3 = vmul.f32 %v5052_v47, %v10901_v49 }
0x121c   :  { %5115 = vrot.lane.b32.xlu2 %v5082_v3, %s6497_s0  ;;  %v5196_v45 = vpop.xlane.xlu1 %5195 }
0x121d   :  { %v5226_v55 = vmul.f32 %v5196_v45, %v10910_v52 }
0x121f   :  { %v5194_v57 = vpop.xlane.xlu0 %5193 }
0x1220   :  { %v5225_v39 = vmul.f32 %v5194_v57, %v10910_v52 }
0x1221   :  { %v5338_v21 = vpop.xlane.xlu2 %5337 }
0x1222   :  { %v5369_v51 = vmul.f32 %v5338_v21, %v10913_v10  ;;  %5257 = vrot.lane.b32.xlu0 %v5225_v39, %s6497_s0 }
0x1224   :  { %5401 = vrot.lane.b32.xlu1 %v5369_v51, %s6497_s0  ;;  %v5054_v23 = vpop.xlane.xlu1 %5053  ;;  %v12893_v51 = vld [vmem:[#allocation140_spill] sm:$0xff] }
0x1225   :  { %v5083_v46 = vmul.f32 %v5054_v23, %v10901_v49  ;;  %v5041_v45 = vmul.f32 %v12893_v51, %v10692_v43 }
0x1227   :  { %v5340_v37 = vpop.xlane.xlu0 %5339 }
0x1228   :  { %v5370_v14 = vmul.f32 %v5340_v37, %v10913_v10  ;;  %v12894_v37 = vld [vmem:[#allocation153_spill] sm:$0xff] }
0x1229   :  { %v5056_v59 = vpop.xlane.xlu2 %5055 }
0x122a   :  { %5259 = vrot.lane.b32.xlu0 %v5226_v55, %s6497_s0  ;;  %5403 = vrot.lane.b32.xlu2 %v5370_v14, %s6497_s0  ;;  %v5084_v40 = vmul.f32 %v5056_v59, %v10901_v49  ;;  %v5186_v55 = vmul.f32 %v12894_v37, %v10699_v15  ;;  %v12895_v14 = vld [vmem:[#allocation149_spill] sm:$0xff]  ;;  %v4993_v59 = vpop.f32.mrf.mxu1 }
0x122b   :  { %v5042_v60 = vmul.f32 %v12895_v14, %v10699_v15 }
0x122c   :  { %v5200_v32 = vpop.xlane.xlu1 %5199 }
0x122d   :  { %v5228_v34 = vmul.f32 %v5200_v32, %v10910_v52  ;;  %v12900_v32 = vld [vmem:[#allocation24_spill] sm:$0xff] }
0x122f   :  { %v5198_v35 = vpop.xlane.xlu0 %5197 }
0x1230   :  { %v5227_v47 = vmul.f32 %v5198_v35, %v10910_v52 }
0x1231   :  { %v5342_v3 = vpop.xlane.xlu2 %5341 }
0x1232   :  { %v5371_v57 = vmul.f32 %v5342_v3, %v10913_v10  ;;  %v12901_v3 = vld [vmem:[#allocation109_spill] sm:$0xff] }
0x1234   :  { %v5058_v19 = vpop.xlane.xlu1 %5057 }
0x1237   :  { %v5344_v39 = vpop.xlane.xlu0 %5343 }
0x1238   :  { %v5372_v21 = vmul.f32 %v5344_v39, %v10913_v10 }
0x123c   :  { %v5204_v12 = vpop.xlane.xlu1 %5203 }
0x124e   :  { %5063 = vadd.xlane.f32.xlu1 %v5040_v61  ;;  %v12896_v61 = vld [vmem:[#allocation143_spill] sm:$0xff] }
0x124f   :  { %v5185_v0 = vmul.f32 %v12896_v61, %v10692_v43  ;;  %v12903_v61 = vld [vmem:[#allocation111_spill] sm:$0xff] }
0x1253   :  { %5205 = vadd.xlane.f32.xlu2 %v5183_v48  ;;  %v5202_v48 = vpop.xlane.xlu0 %5201 }
0x1254   :  { %5061 = vadd.xlane.f32.xlu0 %v5039_v38  ;;  %v12897_v38 = vld [vmem:[#allocation147_spill] sm:$0xff] }
0x1255   :  { %v5329_v25 = vmul.f32 %v12897_v38, %v10692_v43 }
0x1256   :  { %5349 = vadd.xlane.f32.xlu1 %v5327_v16  ;;  %v12898_v16 = vld [vmem:[#allocation158_spill] sm:$0xff] }
0x1257   :  { %v5330_v28 = vmul.f32 %v12898_v16, %v10699_v15  ;;  %v5085_v15 = vmul.f32 %v5058_v19, %v10901_v49 }
0x125b   :  { %5351 = vadd.xlane.f32.xlu2 %v5328_v44  ;;  %v5348_v44 = vpop.xlane.xlu0 %5347 }
0x125c   :  { %5207 = vadd.xlane.f32.xlu0 %v5184_v36  ;;  %v5060_v36 = vpop.xlane.xlu2 %5059  ;;  %v5374_v19 = vmul.f32 %v5348_v44, %v10913_v10 }
0x125d   :  { %v5086_v39 = vmul.f32 %v5060_v36, %v10901_v49 }
0x1264   :  { %v5346_v35 = vpop.xlane.xlu2 %5345 }
0x126f   :  { %5499 = vrot.lane.b32.xlu1 %v12891_v6, %s6507_s27 }
0x1270   :  { %5497 = vrot.lane.b32.xlu0 %v12892_v30, %s6507_s27  ;;  %v3868_v30 = vpop.f32.mrf.mxu3 }
0x1273   :  { %5117 = vrot.lane.b32.xlu2 %v5083_v46, %s6497_s0  ;;  %v12899_v46 = vld [vmem:[#allocation49_spill] sm:$0xff] }
0x1276   :  { %v5116_v14 = vpop.permute.xlu2 %5115 }
0x1277   :  { %5263 = vrot.lane.b32.xlu1 %v5228_v34, %s6497_s0  ;;  %v5229_v34 = vmul.f32 %v5202_v48, %v10910_v52 }
0x1278   :  { %5119 = vrot.lane.b32.xlu0 %v5084_v40, %s6497_s0 }
0x127b   :  { %5261 = vrot.lane.b32.xlu2 %v5227_v47, %s6497_s0  ;;  %v3870_v47 = vpop.f32.mrf.mxu3 }
0x1280   :  { %5405 = vrot.lane.b32.xlu0 %v5371_v57, %s6497_s0  ;;  %v3820_v57 = vmul.f32 %v10775_v20, %v12901_v3  ;;  %v12906_v3 = vld [vmem:[#allocation180_spill] sm:$0xff] }
0x1282   :  { %v3871_v37 = vadd.f32 %v3870_v47, %v3820_v57  ;;  %v4038_v57 = vmul.f32 %v10910_v52, %v12906_v3  ;;  %v12913_v3 = vld [vmem:[#allocation60_spill] sm:$0xff] }
0x1283   :  { %5407 = vrot.lane.b32.xlu2 %v5372_v21, %s6497_s0  ;;  %v12902_v21 = vld [vmem:[#allocation82_spill] sm:$0xff] }
0x1284   :  { %v3819_v51 = vmul.f32 %v10775_v20, %v12902_v21  ;;  %v12907_v21 = vld [vmem:[#allocation130_spill] sm:$0xff] }
0x1289   :  { %v5114_v6 = vpop.permute.xlu1 %5113 }
0x1294   :  { %v5258_v23 = vpop.permute.xlu0 %5257 }
0x1296   :  { %v5402_v43 = vpop.permute.xlu1 %5401 }
0x129c   :  { %v5260_v40 = vpop.permute.xlu0 %5259 }
0x12a1   :  { %5065 = vadd.xlane.f32.xlu1 %v5041_v45  ;;  %v4995_v45 = vpop.f32.mrf.mxu1 }
0x12a2   :  { %v4996_v48 = vadd.f32 %v4995_v45, %v10872_v31  ;;  %v5373_v31 = vmul.f32 %v5346_v35, %v10913_v10  ;;  %v12908_v45 = vld [vmem:[#allocation118_spill] sm:$0xff] }
0x12a9   :  { %5211 = vadd.xlane.f32.xlu1 %v5186_v55  ;;  %v3869_v55 = vadd.f32 %v3868_v30, %v3819_v51  ;;  %v5162_v30 = vadd.f32 %v5116_v14, %v4996_v48 }
0x12aa   :  { %5067 = vadd.xlane.f32.xlu0 %v5042_v60 }
0x12ab   :  { %v5306_v44 = vadd.f32 %v5260_v40, %v5162_v30 }
0x12ac   :  { %5209 = vadd.xlane.f32.xlu2 %v5185_v0  ;;  %v3958_v0 = vmul.f32 %v10901_v49, %v12903_v61 }
0x12ae   :  { %v3974_v36 = vadd.f32 %v3958_v0, %v3871_v37  ;;  %v4119_v37 = vmul.f32 %v10913_v10, %v12908_v45  ;;  %v3873_v45 = vpop.f32.mrf.mxu3 }
0x12b2   :  { %5353 = vadd.xlane.f32.xlu0 %v5329_v25  ;;  %v12904_v25 = vld [vmem:[#allocation122_spill] sm:$0xff] }
0x12b3   :  { %v3957_v16 = vmul.f32 %v10901_v49, %v12904_v25 }
0x12b4   :  { %5355 = vadd.xlane.f32.xlu2 %v5330_v28  ;;  %v4994_v28 = vadd.f32 %v4993_v59, %v10870_v54 }
0x12c1   :  { %v10977_v60 = vpop.xlane.xlu1 %5063 }
0x12c2   :  { %5501 = vrot.lane.b32.xlu1 %v12899_v46, %s6507_s27  ;;  %v5230_v46 = vmul.f32 %v5204_v12, %v10910_v52 }
0x12c6   :  { %5503 = vrot.lane.b32.xlu0 %v12900_v32, %s6507_s27  ;;  %v3973_v32 = vadd.f32 %v3957_v16, %v3869_v55 }
0x12c7   :  { %v5062_v38 = vpop.xlane.xlu0 %5061 }
0x12c8   :  { %v4054_v12 = vadd.f32 %v4038_v57, %v3973_v32  ;;  %v5332_v57 = vmul.f32 %v12913_v3, %v10715_v1  ;;  %v12921_v3 = vld [vmem:[#allocation119_spill] sm:$0xff] }
0x12c9   :  { %v10999_v40 = vpop.xlane.xlu1 %5349 }
0x12ca   :  { %5265 = vrot.lane.b32.xlu1 %v5229_v34, %s6497_s0  ;;  %v5161_v34 = vadd.f32 %v5114_v6, %v4994_v28  ;;  %v4120_v6 = vmul.f32 %v10913_v10, %v12907_v21  ;;  %v4135_v61 = vadd.f32 %v4119_v37, %v4054_v12  ;;  %v4998_v37 = vpop.f32.mrf.mxu2 }
0x12cc   :  { %5121 = vrot.lane.b32.xlu2 %v5085_v15, %s6497_s0  ;;  %v12905_v15 = vld [vmem:[#allocation189_spill] sm:$0xff]  ;;  %v5305_v54 = vadd.f32 %v5258_v23, %v5161_v34 }
0x12cd   :  { %v4039_v47 = vmul.f32 %v10910_v52, %v12905_v15  ;;  %v12911_v15 = vld [vmem:[#allocation163_spill] sm:$0xff] }
0x12ce   :  { %5123 = vrot.lane.b32.xlu0 %v5086_v39, %s6497_s0  ;;  %v5404_v39 = vpop.permute.xlu2 %5403  ;;  %v5449_v35 = vadd.f32 %v5402_v43, %v5305_v54  ;;  %v12910_v43 = vld [vmem:[#allocation165_spill] sm:$0xff]  ;;  %v12914_v54 = vld [vmem:[#allocation56_spill] sm:$0xff] }
0x12cf   :  { %v4055_v59 = vadd.f32 %v4039_v47, %v3974_v36  ;;  %v5450_v51 = vadd.f32 %v5404_v39, %v5306_v44  ;;  %v5208_v55 = vpop.xlane.xlu0 %5207  ;;  %v5187_v34 = vmul.f32 %v12910_v43, %v10708_v41  ;;  %v5043_v47 = vmul.f32 %v12911_v15, %v10708_v41  ;;  %v12915_v39 = vld [vmem:[#allocation169_spill] sm:$0xff] }
0x12d0   :  { %v5465_v23 = vadd.f32 %v5449_v35, %v4135_v61  ;;  %v5331_v21 = vmul.f32 %v12915_v39, %v10708_v41  ;;  %v5087_v61 = vmul.f32 %v5062_v38, %v10901_v49  ;;  %v12919_v38 = vld [vmem:[#allocation96_spill] sm:$0xff] }
0x12d1   :  { %v4136_v14 = vadd.f32 %v4120_v6, %v4055_v59  ;;  %v5188_v59 = vmul.f32 %v12914_v54, %v10715_v1 }
0x12d2   :  { %5411 = vrot.lane.b32.xlu1 %v5374_v19, %s6497_s0  ;;  %v5481_v25 = vmul.f32 0.5, %v5465_v23 }
0x12d3   :  { %v5466_v0 = vadd.f32 %v5450_v51, %v4136_v14 }
0x12d4   :  { %5267 = vrot.lane.b32.xlu2 %v5230_v46, %s6497_s0 }
0x12d5   :  { %v5482_v48 = vmul.f32 0.5, %v5466_v0  ;;  %v12916_v0 = vld [vmem:[#allocation44_spill] sm:$0xff] }
0x12d6   :  { %5409 = vrot.lane.b32.xlu0 %v5373_v31, %s6497_s0  ;;  %v12912_v31 = vld [vmem:[#allocation172_spill] sm:$0xff]  ;;  %v5206_v12 = vpop.xlane.xlu2 %5205 }
0x12d7   :  { %v5044_v44 = vmul.f32 %v12912_v31, %v10715_v1  ;;  %v12917_v1 = vld [vmem:[#allocation25_spill] sm:$0xff] }
0x12de   :  { %v5352_v6 = vpop.xlane.xlu2 %5351 }
0x12e1   :  { %v5500_v19 = vpop.permute.xlu1 %5499 }
0x12e2   :  { %v5546_v16 = vadd.f32 %v5500_v19, %v5482_v48  ;;  %v5498_v28 = vpop.permute.xlu0 %5497  ;;  %v12918_v48 = vld [vmem:[#allocation132_spill] sm:$0xff]  ;;  %v3875_v19 = vpop.f32.mrf.mxu3 }
0x12e3   :  { %v5545_v36 = vadd.f32 %v5498_v28, %v5481_v25  ;;  %v3821_v41 = vmul.f32 %v10775_v20, %v12918_v48  ;;  %v5000_v25 = vpop.f32.mrf.mxu2 }
0x12e4   :  { %v5562_v46 = vmax.f32 %v5546_v16, 0.0  ;;  %v5088_v16 = vmul.f32 %v10977_v60, %v10901_v49  ;;  %v5001_v31 = vadd.f32 %v5000_v25, %v10878_v29 }
0x12e5   :  { %v5561_v30 = vmax.f32 %v5545_v36, 0.0  ;;  %v3822_v36 = vmul.f32 %v10775_v20, %v12919_v38 }
0x12e6   :  { %v5118_v35 = vpop.permute.xlu2 %5117 }
0x12e7   :  { %v5577_v32 = vpack.c.bf16 %v5562_v46, %v5561_v30  ;;  %v3874_v46 = vadd.f32 %v3873_v45, %v3821_v41  ;;  %v5231_v30 = vmul.f32 %v5206_v12, %v10910_v52  ;;  %v12923_v45 = vld [vmem:[#allocation200_spill] sm:$0xff] }
0x12e8   :  { %v4041_v29 = vmul.f32 %v10910_v52, %v12923_v45  ;;  %v12930_v45 = vld [vmem:[#allocation86_spill] sm:$0xff] }
0x12e9   :  { %5755 = vmatmul.msk.bf16.vlgmr.msrb.gmra.mxu1 %vm12909_vm14, %v5577_v32  ;;  %v5264_v14 = vpop.permute.xlu1 %5263  ;;  %v5232_v32 = vmul.f32 %v5208_v55, %v10910_v52  ;;  %v4999_v55 = vadd.f32 %v4998_v37, %v10874_v11  ;;  %v12924_v11 = vld [vmem:[#allocation128_spill] sm:$0xff] }
0x12ea   :  { %v5120_v51 = vpop.permute.xlu0 %5119 }
0x12eb   :  { %v5164_v54 = vadd.f32 %v5120_v51, %v5001_v31  ;;  %v4121_v51 = vmul.f32 %v10913_v10, %v12924_v11  ;;  %v11074_v11 = vld [vmem:[%s11316_s10] ss:$0 sm:$0xff]  ;;  %s6508_s10 = smov [#allocation11]  }
0x12ed   :  { %v5308_v41 = vadd.f32 %v5264_v14, %v5164_v54 }
0x12ee   :  { %v5262_v43 = vpop.permute.xlu2 %5261 }
0x12f2   :  { %v5406_v23 = vpop.permute.xlu0 %5405 }
0x12f6   :  { %v5408_v25 = vpop.permute.xlu2 %5407 }
0x12f7   :  { %v5452_v38 = vadd.f32 %v5408_v25, %v5308_v41 }
0x12fc   :  { %5213 = vadd.xlane.f32.xlu1 %v5187_v34  ;;  %v12920_v34 = vld [vmem:[#allocation191_spill] sm:$0xff] }
0x12fd   :  { %5069 = vadd.xlane.f32.xlu2 %v5043_v47  ;;  %v3959_v15 = vmul.f32 %v10901_v49, %v12920_v34  ;;  %v3876_v47 = vadd.f32 %v3875_v19, %v3822_v36 }
0x1300   :  { %5071 = vadd.xlane.f32.xlu0 %v5044_v44  ;;  %v3975_v44 = vadd.f32 %v3959_v15, %v3874_v46 }
0x1304   :  { %5359 = vadd.xlane.f32.xlu1 %v5332_v57  ;;  %v3960_v57 = vmul.f32 %v10901_v49, %v12921_v3 }
0x1305   :  { %5215 = vadd.xlane.f32.xlu2 %v5188_v59  ;;  %v12922_v59 = vld [vmem:[#allocation144_spill] sm:$0xff] }
0x1306   :  { %v4040_v12 = vmul.f32 %v10910_v52, %v12922_v59  ;;  %v3976_v39 = vadd.f32 %v3960_v57, %v3876_v47  ;;  %v12927_v57 = vld [vmem:[#allocation58_spill] sm:$0xff]  ;;  %v12928_v59 = vld [vmem:[#allocation68_spill] sm:$0xff] }
0x1308   :  { %5357 = vadd.xlane.f32.xlu0 %v5331_v21  ;;  %v5163_v21 = vadd.f32 %v5118_v35, %v4999_v55  ;;  %v4057_v37 = vadd.f32 %v4041_v29, %v3976_v39  ;;  %v5045_v55 = vmul.f32 %v12927_v57, %v10728_v18  ;;  %v12929_v39 = vld [vmem:[#allocation177_spill] sm:$0xff]  ;;  %v5190_v29 = vmul.f32 %v12930_v45, %v10731_v27 }
0x130a   :  { %v5307_v48 = vadd.f32 %v5262_v43, %v5163_v21  ;;  %v5189_v21 = vmul.f32 %v12929_v39, %v10728_v18 }
0x130c   :  { %v5451_v35 = vadd.f32 %v5406_v23, %v5307_v48  ;;  %v12932_v48 = vld [vmem:[#allocation70_spill] sm:$0xff] }
0x130d   :  { %v5334_v41 = vmul.f32 %v12932_v48, %v10731_v27 }
0x1314   :  { %v11024_v28 = vpop.xlane.xlu1 %5065 }
0x131c   :  { %5507 = vrot.lane.b32.xlu0 %v12916_v0, %s6507_s27  ;;  %v4056_v0 = vadd.f32 %v4040_v12, %v3975_v44  ;;  %v11048_v19 = vpop.xlane.xlu1 %5211  ;;  %v5046_v12 = vmul.f32 %v12928_v59, %v10731_v27  ;;  %v12933_v27 = vld [vmem:[#allocation52_spill] sm:$0xff] }
0x131d   :  { %5505 = vrot.lane.b32.xlu2 %v12917_v1, %s6507_s27  ;;  %5125 = vrot.lane.b32.xlu1 %v5087_v61, %s6497_s0  ;;  %v11036_v60 = vpop.xlane.xlu0 %5067  ;;  %v5375_v61 = vmul.f32 %v10999_v40, %v10913_v10  ;;  %v5376_v1 = vmul.f32 %v5352_v6, %v10913_v10  ;;  %v5234_v39 = vmul.f32 %v11048_v19, %v10910_v52 }
0x131e   :  { %v4137_v36 = vadd.f32 %v4121_v51, %v4056_v0  ;;  %v12931_v0 = vld [vmem:[#allocation178_spill] sm:$0xff] }
0x131f   :  { %v5210_v54 = vpop.xlane.xlu2 %5209 }
0x1320   :  { %v5467_v14 = vadd.f32 %v5451_v35, %v4137_v36 }
0x1322   :  { %v5483_v43 = vmul.f32 0.5, %v5467_v14  ;;  %v12934_v14 = vld [vmem:[#allocation59_spill] sm:$0xff] }
0x1324   :  { %5127 = vrot.lane.b32.xlu0 %v5088_v16, %s6497_s0  ;;  %v12925_v16 = vld [vmem:[#allocation89_spill] sm:$0xff] }
0x1325   :  { %5271 = vrot.lane.b32.xlu1 %v5232_v32, %s6497_s0  ;;  %5269 = vrot.lane.b32.xlu2 %v5231_v30, %s6497_s0  ;;  %v4122_v40 = vmul.f32 %v10913_v10, %v12925_v16  ;;  %v11056_v6 = vpop.xlane.xlu0 %5353  ;;  %v3878_v16 = vpop.f32.mrf.mxu3 }
0x1326   :  { %v5377_v19 = vmul.f32 %v11056_v6, %v10913_v10 }
0x1327   :  { %v4138_v46 = vadd.f32 %v4122_v40, %v4057_v37  ;;  %v5003_v40 = vpop.f32.mrf.mxu2 }
0x1329   :  { %v5468_v30 = vadd.f32 %v5452_v38, %v4138_v46  ;;  %v5089_v46 = vmul.f32 %v11024_v28, %v10901_v49  ;;  %v12936_v28 = vld [vmem:[#allocation209_spill] sm:$0xff] }
0x132a   :  { %v3824_v57 = vmul.f32 %v10775_v20, %v12936_v28 }
0x132b   :  { %v5484_v15 = vmul.f32 0.5, %v5468_v30 }
0x132c   :  { %5413 = vrot.lane.b32.xlu0 %v5375_v61, %s6497_s0  ;;  %v5356_v61 = vpop.xlane.xlu2 %5355 }
0x132d   :  { %5415 = vrot.lane.b32.xlu2 %v5376_v1, %s6497_s0  ;;  %v5333_v1 = vmul.f32 %v12931_v0, %v10728_v18  ;;  %v5004_v0 = vadd.f32 %v5003_v40, %v10876_v24  ;;  %v5378_v48 = vmul.f32 %v5356_v61, %v10913_v10 }
0x1334   :  { %v5502_v32 = vpop.permute.xlu1 %5501  ;;  %v5122_v51 = vpop.permute.xlu2 %5121 }
0x1335   :  { %v5547_v34 = vadd.f32 %v5502_v32, %v5483_v43  ;;  %v5233_v32 = vmul.f32 %v5210_v54, %v10910_v52 }
0x1337   :  { %v5563_v23 = vmax.f32 %v5547_v34, 0.0  ;;  %v12935_v34 = vld [vmem:[#allocation190_spill] sm:$0xff] }
0x1338   :  { %v5504_v47 = vpop.permute.xlu0 %5503 }
0x1339   :  { %v5548_v31 = vadd.f32 %v5504_v47, %v5484_v15  ;;  %v3823_v15 = vmul.f32 %v10775_v20, %v12935_v34  ;;  %v3880_v47 = vpop.f32.mrf.mxu3 }
0x133a   :  { %v3881_v59 = vadd.f32 %v3880_v47, %v3824_v57 }
0x133b   :  { %v5564_v44 = vmax.f32 %v5548_v31, 0.0  ;;  %v5005_v31 = vpop.f32.mrf.mxu2 }
0x133c   :  { %v5268_v38 = vpop.permute.xlu2 %5267 }
0x133d   :  { %v5578_v3 = vpack.c.bf16 %v5564_v44, %v5563_v23  ;;  %v5090_v23 = vmul.f32 %v11036_v60, %v10901_v49  ;;  %v5266_v44 = vpop.permute.xlu1 %5265  ;;  %v12938_v60 = vld [vmem:[#allocation202_spill] sm:$0xff] }
0x133e   :  { %v3962_v45 = vmul.f32 %v10901_v49, %v12938_v60 }
0x133f   :  { %5756 = vmatmul.msk.bf16.gmra.mxu1 %vm12926_vm15, %v5578_v3  ;;  %v3879_v3 = vadd.f32 %v3878_v16, %v3823_v15 }
0x1340   :  { %v5124_v25 = vpop.permute.xlu0 %5123 }
0x1345   :  { %v5412_v40 = vpop.permute.xlu1 %5411 }
0x1348   :  { %v5410_v30 = vpop.permute.xlu0 %5409 }
0x134f   :  { %5073 = vadd.xlane.f32.xlu1 %v5045_v55  ;;  %v12937_v55 = vld [vmem:[#allocation101_spill] sm:$0xff] }
0x1350   :  { %v3961_v54 = vmul.f32 %v10901_v49, %v12937_v55 }
0x1356   :  { %5075 = vadd.xlane.f32.xlu0 %v5046_v12  ;;  %5217 = vadd.xlane.f32.xlu2 %v5189_v21  ;;  %v5006_v12 = vadd.f32 %v5005_v31, %v10880_v33  ;;  %v3978_v33 = vadd.f32 %v3962_v45, %v3881_v59  ;;  %v5191_v45 = vmul.f32 %v12826_v56, %v10750_v58 }
0x1357   :  { %5219 = vadd.xlane.f32.xlu1 %v5190_v29  ;;  %v3977_v29 = vadd.f32 %v3961_v54, %v3879_v3 }
0x135e   :  { %5361 = vadd.xlane.f32.xlu0 %v5333_v1  ;;  %5363 = vadd.xlane.f32.xlu2 %v5334_v41  ;;  %v5166_v1 = vadd.f32 %v5124_v25, %v5006_v12  ;;  %v12939_v41 = vld [vmem:[#allocation208_spill] sm:$0xff] }
0x1360   :  { %v5310_v61 = vadd.f32 %v5268_v38, %v5166_v1  ;;  %v5192_v1 = vmul.f32 %v12834_v13, %v10753_v53 }
0x1362   :  { %v5454_v34 = vadd.f32 %v5412_v40, %v5310_v61 }
0x1366   :  { %v5626_v37 = vpop.f32.mrf.mxu1 }
0x1367   :  { %v5627_v35 = vadd.f32 %v11074_v11, %v5626_v37  ;;  %v4042_v37 = vmul.f32 %v10910_v52, %v12939_v41  ;;  %v5335_v41 = vmul.f32 %v12827_v22, %v10750_v58  ;;  %v12946_v22 = vld [vmem:[#allocation17_spill] sm:$0xff] }
0x1369   :  { %5666 = vst [vmem:[#allocation11] sm:$0xff] %v5627_v35  ;;  %v5165_v35 = vadd.f32 %v5122_v51, %v5004_v0 }
0x136b   :  { %v5309_v25 = vadd.f32 %v5266_v44, %v5165_v35 }
0x136e   :  { %v5628_v18 = vpop.f32.mrf.mxu1 }
0x136f   :  { %v5629_v36 = vadd.f32 %v11074_v11, %v5628_v18  ;;  %v4058_v18 = vadd.f32 %v4042_v37, %v3977_v29  ;;  %v5048_v29 = vmul.f32 %v12831_v8, %v10753_v53  ;;  %v5214_v0 = vpop.xlane.xlu1 %5213 }
0x1370   :  { %5509 = vrot.lane.b32.xlu1 %v12933_v27, %s6507_s27  ;;  %v11085_v43 = vpop.xlane.xlu2 %5069  ;;  %v12941_v27 = vld [vmem:[#allocation201_spill] sm:$0xff] }
0x1371   :  { %5667 = vst [vmem:[#allocation11 + $0x8] sm:$0xff] %v5629_v36  ;;  %v12940_v36 = vld [vmem:[#allocation104_spill] sm:$0xff] }
0x1372   :  { %5511 = vrot.lane.b32.xlu0 %v12934_v14, %s6507_s27  ;;  %v4043_v24 = vmul.f32 %v10910_v52, %v12940_v36  ;;  %v4123_v14 = vmul.f32 %v10913_v10, %v12941_v27  ;;  %v5235_v27 = vmul.f32 %v5214_v0, %v10910_v52 }
0x1373   :  { %v11101_v21 = vpop.xlane.xlu0 %5071 }
0x1374   :  { %v4059_v51 = vadd.f32 %v4043_v24, %v3978_v33  ;;  %v4139_v15 = vadd.f32 %v4123_v14, %v4058_v18  ;;  %v5008_v18 = vpop.f32.mrf.mxu2 }
0x1376   :  { %5129 = vrot.lane.b32.xlu2 %v5089_v46, %s6497_s0  ;;  %v5453_v46 = vadd.f32 %v5410_v30, %v5309_v25  ;;  %v12944_v30 = vld [vmem:[#allocation183_spill] sm:$0xff] }
0x1377   :  { %v5047_v60 = vmul.f32 %v12944_v30, %v10750_v58  ;;  %v5360_v37 = vpop.xlane.xlu1 %5359  ;;  %v5091_v58 = vmul.f32 %v11085_v43, %v10901_v49  ;;  %v12947_v25 = vld [vmem:[#allocation155_spill] sm:$0xff] }
0x1378   :  { %5273 = vrot.lane.b32.xlu1 %v5233_v32, %s6497_s0  ;;  %v11112_v16 = vpop.xlane.xlu2 %5215  ;;  %v12942_v32 = vld [vmem:[#allocation203_spill] sm:$0xff]  ;;  %v3825_v61 = vmul.f32 %v10775_v20, %v12947_v25 }
0x1379   :  { %v4124_v6 = vmul.f32 %v10913_v10, %v12942_v32  ;;  %v12948_v32 = vld [vmem:[#allocation107_spill] sm:$0xff] }
0x137a   :  { %5131 = vrot.lane.b32.xlu0 %v5090_v23, %s6497_s0  ;;  %v5469_v23 = vadd.f32 %v5453_v46, %v4139_v15  ;;  %v12949_v15 = vld [vmem:[#allocation103_spill] sm:$0xff] }
0x137b   :  { %v11122_v47 = vpop.xlane.xlu0 %5357  ;;  %v4140_v31 = vadd.f32 %v4124_v6, %v4059_v51  ;;  %v5092_v51 = vmul.f32 %v11101_v21, %v10901_v49  ;;  %v3826_v6 = vmul.f32 %v10775_v20, %v12948_v32  ;;  %v3963_v43 = vmul.f32 %v10901_v49, %v12949_v15 }
0x137c   :  { %v5485_v38 = vmul.f32 0.5, %v5469_v23  ;;  %v5010_v14 = vpop.f32.mrf.mxu2 }
0x137d   :  { %v5470_v3 = vadd.f32 %v5454_v34, %v4140_v31  ;;  %v12950_v31 = vld [vmem:[#allocation102_spill] sm:$0xff]  ;;  %v5011_v21 = vadd.f32 %v5010_v14, %v10882_v42  ;;  %v12952_v42 = vld [vmem:[#allocation117_spill] sm:$0xff] }
0x137e   :  { %5275 = vrot.lane.b32.xlu2 %v5234_v39, %s6497_s0  ;;  %v3964_v23 = vmul.f32 %v10901_v49, %v12950_v31 }
0x137f   :  { %v5486_v57 = vmul.f32 0.5, %v5470_v3 }
0x1380   :  { %5419 = vrot.lane.b32.xlu1 %v5378_v48, %s6497_s0  ;;  %v5506_v44 = vpop.permute.xlu2 %5505  ;;  %v5336_v48 = vmul.f32 %v12835_v62, %v10753_v53  ;;  %v12945_v62 = vld [vmem:[#allocation75_spill] sm:$0xff] }
0x1381   :  { %v5549_v28 = vadd.f32 %v5506_v44, %v5485_v38  ;;  %v5009_v38 = vadd.f32 %v5008_v18, %v10884_v2  ;;  %v5236_v2 = vmul.f32 %v11112_v16, %v10910_v52  ;;  %v12954_v16 = vld [vmem:[#allocation174_spill] sm:$0xff] }
0x1382   :  { %5417 = vrot.lane.b32.xlu0 %v5377_v19, %s6497_s0  ;;  %v3883_v19 = vpop.f32.mrf.mxu3 }
0x1383   :  { %v5565_v59 = vmax.f32 %v5549_v28, 0.0  ;;  %v3884_v34 = vadd.f32 %v3883_v19, %v3825_v61  ;;  %v5380_v28 = vmul.f32 %v5360_v37, %v10913_v10 }
0x1388   :  { %v5270_v46 = vpop.permute.xlu2 %5269 }
0x138a   :  { %v3885_v40 = vpop.f32.mrf.mxu3 }
0x138b   :  { %v3886_v44 = vadd.f32 %v3885_v40, %v3826_v6 }
0x138d   :  { %v3980_v30 = vadd.f32 %v3964_v23, %v3886_v44  ;;  %v12957_v23 = vld [vmem:[#allocation95_spill] sm:$0xff] }
0x138e   :  { %v5508_v55 = vpop.permute.xlu0 %5507 }
0x138f   :  { %v5550_v54 = vadd.f32 %v5508_v55, %v5486_v57  ;;  %v5126_v35 = vpop.permute.xlu1 %5125  ;;  %v3979_v55 = vadd.f32 %v3963_v43, %v3884_v34 }
0x1391   :  { %v5566_v12 = vmax.f32 %v5550_v54, 0.0  ;;  %v5167_v54 = vadd.f32 %v5126_v35, %v5009_v38  ;;  %v12959_v38 = vld [vmem:[#allocation116_spill] sm:$0xff] }
0x1393   :  { %v5579_v39 = vpack.c.bf16 %v5566_v12, %v5565_v59  ;;  %v12951_v12 = vld [vmem:[#allocation170_spill] sm:$0xff] }
0x1395   :  { %5757 = vmatmul.msk.bf16.gmra.mxu1 %vm12943_vm1, %v5579_v39  ;;  %v4044_v39 = vmul.f32 %v10910_v52, %v12951_v12 }
0x1396   :  { %v5128_v8 = vpop.permute.xlu0 %5127 }
0x1397   :  { %v5272_v53 = vpop.permute.xlu1 %5271  ;;  %v5168_v59 = vadd.f32 %v5128_v8, %v5011_v21  ;;  %v4126_v8 = vmul.f32 %v10913_v10, %v12954_v16 }
0x1399   :  { %v5312_v0 = vadd.f32 %v5272_v53, %v5168_v59  ;;  %v12955_v53 = vld [vmem:[#allocation192_spill] sm:$0xff] }
0x139e   :  { %v5414_v24 = vpop.permute.xlu0 %5413 }
0x13a7   :  { %5077 = vadd.xlane.f32.xlu2 %v5047_v60  ;;  %v5379_v60 = vmul.f32 %v11122_v47, %v10913_v10 }
0x13aa   :  { %5221 = vadd.xlane.f32.xlu1 %v5191_v45  ;;  %v4060_v45 = vadd.f32 %v4044_v39, %v3979_v55 }
0x13ac   :  { %5079 = vadd.xlane.f32.xlu0 %v5048_v29  ;;  %v4045_v29 = vmul.f32 %v10910_v52, %v12952_v42  ;;  %v5013_v42 = vpop.f32.mrf.mxu2 }
0x13af   :  { %5223 = vadd.xlane.f32.xlu2 %v5192_v1  ;;  %v5311_v1 = vadd.f32 %v5270_v46, %v5167_v54 }
0x13b2   :  { %5367 = vadd.xlane.f32.xlu1 %v5336_v48  ;;  %v5416_v48 = vpop.permute.xlu2 %5415 }
0x13b3   :  { %v5456_v19 = vadd.f32 %v5416_v48, %v5312_v0  ;;  %v3888_v0 = vpop.f32.mrf.mxu3 }
0x13b4   :  { %5365 = vadd.xlane.f32.xlu0 %v5335_v41  ;;  %v12953_v41 = vld [vmem:[#allocation210_spill] sm:$0xff] }
0x13b5   :  { %v4125_v37 = vmul.f32 %v10913_v10, %v12953_v41 }
0x13b7   :  { %v4141_v18 = vadd.f32 %v4125_v37, %v4060_v45 }
0x13bc   :  { %v5631_v56 = vpop.f32.mrf.mxu1 }
0x13bd   :  { %v5632_v33 = vadd.f32 %v11074_v11, %v5631_v56  ;;  %v4061_v56 = vadd.f32 %v4045_v29, %v3980_v30 }
0x13bf   :  { %5668 = vst [vmem:[#allocation11 + $0x10] sm:$0xff] %v5632_v33  ;;  %v5455_v33 = vadd.f32 %v5414_v24, %v5311_v1  ;;  %v12956_v24 = vld [vmem:[#allocation193_spill] sm:$0xff] }
0x13c2   :  { %v5074_v3 = vpop.xlane.xlu1 %5073 }
0x13c3   :  { %v5093_v47 = vmul.f32 %v5074_v3, %v10901_v49 }
0x13c4   :  { %v5633_v36 = vpop.f32.mrf.mxu1 }
0x13c5   :  { %v5634_v13 = vadd.f32 %v11074_v11, %v5633_v36 }
0x13c7   :  { %5669 = vst [vmem:[#allocation11 + $0x18] sm:$0xff] %v5634_v13  ;;  %5513 = vrot.lane.b32.xlu2 %v12945_v62, %s6507_s27  ;;  %v4142_v13 = vadd.f32 %v4126_v8, %v4061_v56  ;;  %v5471_v62 = vadd.f32 %v5455_v33, %v4141_v18  ;;  %v12960_v56 = vld [vmem:[#allocation129_spill] sm:$0xff] }
0x13c8   :  { %5515 = vrot.lane.b32.xlu0 %v12946_v22, %s6507_s27  ;;  %v3827_v33 = vmul.f32 %v10775_v20, %v12960_v56 }
0x13c9   :  { %v5076_v57 = vpop.xlane.xlu0 %5075  ;;  %v5472_v22 = vadd.f32 %v5456_v19, %v4142_v13  ;;  %v5487_v61 = vmul.f32 0.5, %v5471_v62  ;;  %v5015_v19 = vpop.f32.mrf.mxu2  ;;  %v12962_v13 = vld [vmem:[#allocation134_spill] sm:$0xff] }
0x13ca   :  { %v5220_v35 = vpop.xlane.xlu1 %5219  ;;  %v5094_v6 = vmul.f32 %v5076_v57, %v10901_v49  ;;  %v3966_v62 = vmul.f32 %v10901_v49, %v12962_v13 }
0x13cb   :  { %5133 = vrot.lane.b32.xlu1 %v5091_v58, %s6497_s0  ;;  %v5218_v58 = vpop.xlane.xlu2 %5217  ;;  %v5238_v25 = vmul.f32 %v5220_v35, %v10910_v52  ;;  %v5488_v14 = vmul.f32 0.5, %v5472_v22  ;;  %v12961_v35 = vld [vmem:[#allocation63_spill] sm:$0xff]  ;;  %v12963_v22 = vld [vmem:[#allocation114_spill] sm:$0xff] }
0x13cc   :  { %v5237_v46 = vmul.f32 %v5218_v58, %v10910_v52  ;;  %v3828_v16 = vmul.f32 %v10775_v20, %v12961_v35  ;;  %v3965_v58 = vmul.f32 %v10901_v49, %v12963_v22 }
0x13cf   :  { %5277 = vrot.lane.b32.xlu2 %v5235_v27, %s6497_s0 }
0x13d0   :  { %5135 = vrot.lane.b32.xlu0 %v5092_v51, %s6497_s0 }
0x13d1   :  { %v5362_v36 = vpop.xlane.xlu0 %5361 }
0x13d2   :  { %v5381_v44 = vmul.f32 %v5362_v36, %v10913_v10  ;;  %v3889_v36 = vadd.f32 %v3888_v0, %v3827_v33  ;;  %v5018_v0 = vpop.f32.mrf.mxu2 }
0x13d3   :  { %5423 = vrot.lane.b32.xlu1 %v5380_v28, %s6497_s0  ;;  %v5364_v31 = vpop.xlane.xlu2 %5363 }
0x13d4   :  { %v5382_v3 = vmul.f32 %v5364_v31, %v10913_v10 }
0x13d7   :  { %5421 = vrot.lane.b32.xlu2 %v5379_v60, %s6497_s0 }
0x13d8   :  { %5279 = vrot.lane.b32.xlu0 %v5236_v2, %s6497_s0 }
0x13da   :  { %v5020_v22 = vpop.f32.mrf.mxu2 }
0x13db   :  { %5137 = vrot.lane.b32.xlu1 %v5093_v47, %s6497_s0  ;;  %v5130_v21 = vpop.permute.xlu2 %5129 }
0x13df   :  { %5519 = vrot.lane.b32.xlu2 %v12955_v53, %s6507_s27 }
0x13e0   :  { %5517 = vrot.lane.b32.xlu0 %v12956_v24, %s6507_s27  ;;  %v3890_v24 = vpop.f32.mrf.mxu3 }
0x13e2   :  { %v5510_v40 = vpop.permute.xlu1 %5509 }
0x13e3   :  { %v5551_v27 = vadd.f32 %v5510_v40, %v5487_v61  ;;  %5283 = vrot.lane.b32.xlu1 %v5238_v25, %s6497_s0  ;;  %v5276_v55 = vpop.permute.xlu2 %5275  ;;  %v3891_v61 = vadd.f32 %v3890_v24, %v3828_v16  ;;  %v12964_v40 = vld [vmem:[#allocation125_spill] sm:$0xff] }
0x13e4   :  { %v5512_v51 = vpop.permute.xlu0 %5511  ;;  %v12971_v16 = vld [vmem:[#allocation113_spill] sm:$0xff] }
0x13e5   :  { %v5552_v32 = vadd.f32 %v5512_v51, %v5488_v14  ;;  %v5567_v34 = vmax.f32 %v5551_v27, 0.0  ;;  %v4046_v27 = vmul.f32 %v10910_v52, %v12964_v40  ;;  %v5014_v14 = vadd.f32 %v5013_v42, %v10886_v7 }
0x13e6   :  { %v5016_v51 = vadd.f32 %v5015_v19, %v10890_v63  ;;  %v12972_v19 = vld [vmem:[#allocation185_spill] sm:$0xff] }
0x13e7   :  { %v5568_v15 = vmax.f32 %v5552_v32, 0.0  ;;  %5281 = vrot.lane.b32.xlu2 %v5237_v46, %s6497_s0  ;;  %v3981_v46 = vadd.f32 %v3965_v58, %v3889_v36  ;;  %v3982_v32 = vadd.f32 %v3966_v62, %v3891_v61  ;;  %v5019_v36 = vadd.f32 %v5018_v0, %v10888_v5 }
0x13e8   :  { %5139 = vrot.lane.b32.xlu0 %v5094_v6, %s6497_s0  ;;  %v5169_v6 = vadd.f32 %v5130_v21, %v5014_v14 }
0x13e9   :  { %v5580_v43 = vpack.c.bf16 %v5568_v15, %v5567_v34  ;;  %v4062_v15 = vadd.f32 %v4046_v27, %v3981_v46  ;;  %v12974_v27 = vld [vmem:[#allocation112_spill] sm:$0xff] }
0x13ea   :  { %v5274_v28 = vpop.permute.xlu1 %5273  ;;  %v4048_v14 = vmul.f32 %v10910_v52, %v12974_v27 }
0x13eb   :  { %5521 = vrot.lane.b32.xlu1 %v12957_v23, %s6507_s27  ;;  %5758 = vmatmul.msk.bf16.gmra.mxu1 %vm12958_vm6, %v5580_v43  ;;  %v12965_v43 = vld [vmem:[#allocation93_spill] sm:$0xff]  ;;  %v5313_v23 = vadd.f32 %v5274_v28, %v5169_v6 }
0x13ec   :  { %v5132_v57 = vpop.permute.xlu0 %5131  ;;  %v4047_v31 = vmul.f32 %v10910_v52, %v12965_v43  ;;  %v5021_v43 = vadd.f32 %v5020_v22, %v10892_v17 }
0x13ed   :  { %v5170_v34 = vadd.f32 %v5132_v57, %v5016_v51  ;;  %v12975_v51 = vld [vmem:[#allocation115_spill] sm:$0xff] }
0x13ee   :  { %v3968_v46 = vmul.f32 %v10901_v49, %v12975_v51  ;;  %v12984_v51 = vld [vmem:[#allocation139_spill] sm:$0xff] }
0x13ef   :  { %5427 = vrot.lane.b32.xlu2 %v5382_v3, %s6497_s0  ;;  %v12966_v3 = vld [vmem:[#allocation22_spill] sm:$0xff]  ;;  %v5314_v63 = vadd.f32 %v5276_v55, %v5170_v34 }
0x13f0   :  { %5425 = vrot.lane.b32.xlu0 %v5381_v44, %s6497_s0 }
0x13f2   :  { %v5420_v12 = vpop.permute.xlu1 %5419 }
0x13f3   :  { %v5458_v21 = vadd.f32 %v5420_v12, %v5314_v63 }
0x13f4   :  { %v5418_v39 = vpop.permute.xlu0 %5417 }
0x13f8   :  { %5523 = vrot.lane.b32.xlu0 %v12959_v38, %s6507_s27  ;;  %v12967_v38 = vld [vmem:[#allocation188_spill] sm:$0xff] }
0x13f9   :  { %v4127_v7 = vmul.f32 %v10913_v10, %v12967_v38 }
0x13fb   :  { %v4143_v57 = vadd.f32 %v4127_v7, %v4062_v15 }
0x1412   :  { %v5636_v54 = vpop.f32.mrf.mxu1 }
0x1413   :  { %v5637_v59 = vadd.f32 %v11074_v11, %v5636_v54  ;;  %v4063_v54 = vadd.f32 %v4047_v31, %v3982_v32  ;;  %v12976_v32 = vld [vmem:[#allocation94_spill] sm:$0xff] }
0x1414   :  { %v4049_v5 = vmul.f32 %v10910_v52, %v12976_v32  ;;  %v12985_v32 = vld [vmem:[#allocation120_spill] sm:$0xff] }
0x1415   :  { %5670 = vst [vmem:[#allocation11 + $0x20] sm:$0xff] %v5637_v59  ;;  %v5457_v59 = vadd.f32 %v5418_v39, %v5313_v23  ;;  %v12970_v39 = vld [vmem:[#allocation110_spill] sm:$0xff]  ;;  %v12977_v23 = vld [vmem:[#allocation141_spill] sm:$0xff] }
0x1416   :  { %v3829_v33 = vmul.f32 %v10775_v20, %v12970_v39  ;;  %v12980_v39 = vld [vmem:[#allocation152_spill] sm:$0xff] }
0x1417   :  { %v5473_v28 = vadd.f32 %v5457_v59, %v4143_v57  ;;  %v12978_v59 = vld [vmem:[#allocation98_spill] sm:$0xff] }
0x141a   :  { %v5638_v30 = vpop.f32.mrf.mxu1  ;;  %v5078_v60 = vpop.xlane.xlu2 %5077 }
0x141b   :  { %v5639_v2 = vadd.f32 %v11074_v11, %v5638_v30  ;;  %v5095_v45 = vmul.f32 %v5078_v60, %v10901_v49  ;;  %v12968_v30 = vld [vmem:[#allocation106_spill] sm:$0xff] }
0x141c   :  { %v4128_v60 = vmul.f32 %v10913_v10, %v12968_v30  ;;  %v4130_v30 = vmul.f32 %v10913_v10, %v12978_v59 }
0x141d   :  { %5671 = vst [vmem:[#allocation11 + $0x28] sm:$0xff] %v5639_v2  ;;  %v5222_v29 = vpop.xlane.xlu1 %5221  ;;  %5141 = vrot.lane.b32.xlu2 %v5095_v45, %s6497_s0  ;;  %v12969_v2 = vld [vmem:[#allocation195_spill] sm:$0xff] }
0x141e   :  { %v5239_v1 = vmul.f32 %v5222_v29, %v10910_v52  ;;  %v4144_v45 = vadd.f32 %v4128_v60, %v4063_v54  ;;  %v3893_v29 = vpop.f32.mrf.mxu3 }
0x141f   :  { %v5080_v48 = vpop.xlane.xlu0 %5079  ;;  %v3894_v62 = vadd.f32 %v3893_v29, %v3829_v33  ;;  %v3832_v33 = vmul.f32 %v10775_v20, %v12980_v39 }
0x1420   :  { %v5096_v41 = vmul.f32 %v5080_v48, %v10901_v49  ;;  %5285 = vrot.lane.b32.xlu0 %v5239_v1, %s6497_s0  ;;  %v5474_v42 = vadd.f32 %v5458_v21, %v4144_v45  ;;  %v5489_v1 = vmul.f32 0.5, %v5473_v28  ;;  %v5023_v21 = vpop.f32.mrf.mxu2 }
0x1422   :  { %5143 = vrot.lane.b32.xlu1 %v5096_v41, %s6497_s0  ;;  %v5224_v37 = vpop.xlane.xlu2 %5223 }
0x1423   :  { %v5240_v47 = vmul.f32 %v5224_v37, %v10910_v52  ;;  %v5490_v37 = vmul.f32 0.5, %v5474_v42 }
0x1425   :  { %v5368_v8 = vpop.xlane.xlu1 %5367  ;;  %5287 = vrot.lane.b32.xlu2 %v5240_v47, %s6497_s0 }
0x1426   :  { %v5384_v18 = vmul.f32 %v5368_v8, %v10913_v10  ;;  %v3967_v8 = vmul.f32 %v10901_v49, %v12971_v16 }
0x1427   :  { %v5366_v53 = vpop.xlane.xlu0 %5365 }
0x1428   :  { %v5383_v25 = vmul.f32 %v5366_v53, %v10913_v10  ;;  %5431 = vrot.lane.b32.xlu0 %v5384_v18, %s6497_s0  ;;  %v3830_v18 = vmul.f32 %v10775_v20, %v12972_v19  ;;  %v3895_v53 = vpop.f32.mrf.mxu3  ;;  %v3983_v61 = vadd.f32 %v3967_v8, %v3894_v62  ;;  %v12981_v8 = vld [vmem:[#allocation137_spill] sm:$0xff] }
0x1429   :  { %v3969_v19 = vmul.f32 %v10901_v49, %v12981_v8  ;;  %v12991_v8 = vld [vmem:[#allocation43_spill] sm:$0xff] }
0x142a   :  { %5429 = vrot.lane.b32.xlu1 %v5383_v25, %s6497_s0  ;;  %v5514_v44 = vpop.permute.xlu2 %5513  ;;  %v3896_v40 = vadd.f32 %v3895_v53, %v3830_v18  ;;  %v4064_v34 = vadd.f32 %v4048_v14, %v3983_v61  ;;  %v12982_v18 = vld [vmem:[#allocation61_spill] sm:$0xff]  ;;  %s5686_s0 = sshll.u32 %s6508_s10, 4  ;;  %s5687_s0 = int_to_ptr.vmem [resolvable:$true] %s5686_s0 }
0x142b   :  { %v5553_v41 = vadd.f32 %v5514_v44, %v5489_v1 }
0x142c   :  { %v3984_v15 = vadd.f32 %v3968_v46, %v3896_v40  ;;  %v5024_v40 = vadd.f32 %v5023_v21, %v10896_v4  ;;  %v4050_v46 = vmul.f32 %v10910_v52, %v12984_v51 }
0x142d   :  { %5525 = vrot.lane.b32.xlu2 %v12966_v3, %s6507_s27  ;;  %v5569_v47 = vmax.f32 %v5553_v41, 0.0  ;;  %v4129_v3 = vmul.f32 %v10913_v10, %v12977_v23 }
0x142e   :  { %v4065_v44 = vadd.f32 %v4049_v5, %v3984_v15  ;;  %v4051_v5 = vmul.f32 %v10910_v52, %v12985_v32 }
0x142f   :  { %v4145_v63 = vadd.f32 %v4129_v3, %v4064_v34  ;;  %v12987_v3 = vld [vmem:[#allocation154_spill] sm:$0xff] }
0x1430   :  { %v3898_v42 = vpop.f32.mrf.mxu3 }
0x1432   :  { %5527 = vrot.lane.b32.xlu1 %v12969_v2, %s6507_s27  ;;  %v5278_v48 = vpop.permute.xlu2 %5277  ;;  %v4146_v2 = vadd.f32 %v4130_v30, %v4065_v44  ;;  %v4132_v44 = vmul.f32 %v10913_v10, %v12987_v3 }
0x1438   :  { %v3900_v62 = vpop.f32.mrf.mxu3 }
0x1439   :  { %v3901_v22 = vadd.f32 %v3900_v62, %v3832_v33  ;;  %v12989_v33 = vld [vmem:[#allocation204_spill] sm:$0xff] }
0x143a   :  { %v5516_v56 = vpop.permute.xlu0 %5515  ;;  %v5422_v24 = vpop.permute.xlu2 %5421 }
0x143b   :  { %v5554_v55 = vadd.f32 %v5516_v56, %v5490_v37  ;;  %v12979_v56 = vld [vmem:[#allocation135_spill] sm:$0xff] }
0x143d   :  { %v5570_v12 = vmax.f32 %v5554_v55, 0.0  ;;  %v5134_v35 = vpop.permute.xlu1 %5133  ;;  %v3831_v55 = vmul.f32 %v10775_v20, %v12979_v56 }
0x143e   :  { %v5171_v58 = vadd.f32 %v5134_v35, %v5019_v36  ;;  %v5025_v35 = vpop.f32.mrf.mxu2  ;;  %v3970_v36 = vmul.f32 %v10901_v49, %v12982_v18 }
0x143f   :  { %v5581_v13 = vpack.c.bf16 %v5570_v12, %v5569_v47  ;;  %v3899_v53 = vadd.f32 %v3898_v42, %v3831_v55 }
0x1440   :  { %v5315_v6 = vadd.f32 %v5278_v48, %v5171_v58  ;;  %v5026_v58 = vadd.f32 %v5025_v35, %v10894_v9  ;;  %v3986_v61 = vadd.f32 %v3970_v36, %v3901_v22  ;;  %v3903_v55 = vpop.f32.mrf.mxu3 }
0x1441   :  { %5759 = vmatmul.msk.bf16.gmra.mxu1 %vm12973_vm9, %v5581_v13 }
0x1442   :  { %v5136_v25 = vpop.permute.xlu0 %5135  ;;  %v5459_v38 = vadd.f32 %v5422_v24, %v5315_v6  ;;  %v5520_v57 = vpop.permute.xlu2 %5519 }
0x1443   :  { %v5172_v7 = vadd.f32 %v5136_v25, %v5021_v43  ;;  %v3985_v25 = vadd.f32 %v3969_v19, %v3899_v53  ;;  %v4067_v43 = vadd.f32 %v4051_v5, %v3986_v61  ;;  %v3972_v19 = vmul.f32 %v10901_v49, %v12991_v8 }
0x1444   :  { %v5475_v28 = vadd.f32 %v5459_v38, %v4145_v63 }
0x1445   :  { %v5424_v31 = vpop.permute.xlu1 %5423  ;;  %v4066_v15 = vadd.f32 %v4050_v46, %v3985_v25  ;;  %v12993_v25 = vld [vmem:[#allocation51_spill] sm:$0xff] }
0x1446   :  { %v5491_v0 = vmul.f32 0.5, %v5475_v28  ;;  %v5028_v56 = vpop.f32.mrf.mxu2  ;;  %v4052_v61 = vmul.f32 %v10910_v52, %v12993_v25 }
0x1447   :  { %v5029_v46 = vadd.f32 %v5028_v56, %v10898_v26 }
0x1448   :  { %v3905_v18 = vpop.f32.mrf.mxu3 }
0x144a   :  { %v5280_v54 = vpop.permute.xlu0 %5279  ;;  %v5282_v16 = vpop.permute.xlu2 %5281 }
0x144b   :  { %v5316_v60 = vadd.f32 %v5280_v54, %v5172_v7  ;;  %v4148_v54 = vadd.f32 %v4132_v44, %v4067_v43  ;;  %v12995_v43 = vld [vmem:[#allocation21_spill] sm:$0xff] }
0x144d   :  { %v5460_v45 = vadd.f32 %v5424_v31, %v5316_v60  ;;  %v5138_v1 = vpop.permute.xlu1 %5137  ;;  %v12986_v31 = vld [vmem:[#allocation136_spill] sm:$0xff] }
0x144e   :  { %v5173_v6 = vadd.f32 %v5138_v1, %v5024_v40  ;;  %v4131_v23 = vmul.f32 %v10913_v10, %v12986_v31 }
0x144f   :  { %v5476_v17 = vadd.f32 %v5460_v45, %v4146_v2 }
0x1450   :  { %v5317_v38 = vadd.f32 %v5282_v16, %v5173_v6  ;;  %v4147_v63 = vadd.f32 %v4131_v23, %v4066_v15  ;;  %v5030_v16 = vpop.f32.mrf.mxu2 }
0x1451   :  { %v5492_v29 = vmul.f32 0.5, %v5476_v17  ;;  %v5031_v53 = vadd.f32 %v5030_v16, %v10904_v50 }
0x1452   :  { %v5518_v48 = vpop.permute.xlu0 %5517  ;;  %v5428_v9 = vpop.permute.xlu2 %5427 }
0x1453   :  { %v5555_v41 = vadd.f32 %v5518_v48, %v5491_v0  ;;  %v5556_v37 = vadd.f32 %v5520_v57, %v5492_v29 }
0x1455   :  { %v5571_v47 = vmax.f32 %v5555_v41, 0.0  ;;  %v5572_v12 = vmax.f32 %v5556_v37, 0.0  ;;  %v5284_v14 = vpop.permute.xlu1 %5283 }
0x1457   :  { %v5582_v13 = vpack.c.bf16 %v5572_v12, %v5571_v47  ;;  %v3833_v47 = vmul.f32 %v10775_v20, %v12989_v33  ;;  %v12990_v12 = vld [vmem:[#allocation32_spill] sm:$0xff] }
0x1458   :  { %v3834_v35 = vmul.f32 %v10775_v20, %v12990_v12 }
0x1459   :  { %5760 = vmatmul.msk.bf16.gmra.mxu1 %vm12983_vm11, %v5582_v13  ;;  %v3904_v13 = vadd.f32 %v3903_v55, %v3833_v47 }
0x145a   :  { %v5140_v24 = vpop.permute.xlu0 %5139  ;;  %v3906_v62 = vadd.f32 %v3905_v18, %v3834_v35 }
0x145b   :  { %v5174_v27 = vadd.f32 %v5140_v24, %v5026_v58  ;;  %v12992_v58 = vld [vmem:[#allocation206_spill] sm:$0xff] }
0x145c   :  { %v3971_v24 = vmul.f32 %v10901_v49, %v12992_v58  ;;  %v3988_v40 = vadd.f32 %v3972_v19, %v3906_v62  ;;  %v4133_v49 = vmul.f32 %v10913_v10, %v12995_v43 }
0x145d   :  { %v5318_v34 = vadd.f32 %v5284_v14, %v5174_v27  ;;  %v5522_v57 = vpop.permute.xlu1 %5521  ;;  %v12994_v14 = vld [vmem:[#allocation36_spill] sm:$0xff] }
0x145e   :  { %v3987_v20 = vadd.f32 %v3971_v24, %v3904_v13  ;;  %v4053_v51 = vmul.f32 %v10910_v52, %v12994_v14 }
0x145f   :  { %v5462_v4 = vadd.f32 %v5428_v9, %v5318_v34  ;;  %v12996_v9 = vld [vmem:[#allocation83_spill] sm:$0xff] }
0x1460   :  { %v4068_v5 = vadd.f32 %v4052_v61, %v3987_v20  ;;  %v4069_v6 = vadd.f32 %v4053_v51, %v3988_v40  ;;  %v4134_v31 = vmul.f32 %v10913_v10, %v12996_v9 }
0x1461   :  { %v5478_v60 = vadd.f32 %v5462_v4, %v4148_v54 }
0x1462   :  { %v5426_v7 = vpop.permute.xlu0 %5425  ;;  %v4150_v4 = vadd.f32 %v4134_v31, %v4069_v6 }
0x1463   :  { %v5461_v59 = vadd.f32 %v5426_v7, %v5317_v38  ;;  %v5494_v42 = vmul.f32 0.5, %v5478_v60  ;;  %v4149_v38 = vadd.f32 %v4133_v49, %v4068_v5 }
0x1465   :  { %v5477_v30 = vadd.f32 %v5461_v59, %v4147_v63 }
0x1467   :  { %v5493_v21 = vmul.f32 0.5, %v5477_v30 }
0x1468   :  { %v5641_v2 = vpop.f32.mrf.mxu1 }
0x1469   :  { %v5557_v45 = vadd.f32 %v5522_v57, %v5493_v21  ;;  %v5642_v28 = vadd.f32 %v11074_v11, %v5641_v2 }
0x146a   :  { %v5524_v17 = vpop.permute.xlu0 %5523 }
0x146b   :  { %5672 = vst [vmem:[#allocation11 + $0x30] sm:$0xff] %v5642_v28  ;;  %v5558_v29 = vadd.f32 %v5524_v17, %v5494_v42  ;;  %v5573_v0 = vmax.f32 %v5557_v45, 0.0 }
0x146d   :  { %v5574_v1 = vmax.f32 %v5558_v29, 0.0 }
0x146f   :  { %v5583_v48 = vpack.c.bf16 %v5574_v1, %v5573_v0 }
0x1470   :  { %v5643_v41 = vpop.f32.mrf.mxu1 }
0x1471   :  { %v5644_v37 = vadd.f32 %v11074_v11, %v5643_v41  ;;  %5761 = vmatmul.msk.bf16.gmra.mxu1 %vm12988_vm13, %v5583_v48 }
0x1473   :  { %5673 = vst [vmem:[#allocation11 + $0x38] sm:$0xff] %v5644_v37 }
0x1477   :  { %v5142_v39 = vpop.permute.xlu2 %5141 }
0x1478   :  { %v5175_v34 = vadd.f32 %v5142_v39, %v5029_v46 }
0x147f   :  { %v5288_v32 = vpop.permute.xlu2 %5287 }
0x1487   :  { %v5526_v63 = vpop.permute.xlu2 %5525 }
0x1492   :  { %v5286_v36 = vpop.permute.xlu0 %5285 }
0x1493   :  { %v5319_v23 = vadd.f32 %v5286_v36, %v5175_v34 }
0x1494   :  { %v5144_v22 = vpop.permute.xlu1 %5143 }
0x1495   :  { %v5176_v27 = vadd.f32 %v5144_v22, %v5031_v53 }
0x1497   :  { %v5320_v50 = vadd.f32 %v5288_v32, %v5176_v27 }
0x149a   :  { %v5432_v15 = vpop.permute.xlu0 %5431 }
0x149b   :  { %v5464_v3 = vadd.f32 %v5432_v15, %v5320_v50 }
0x149c   :  { %v5430_v44 = vpop.permute.xlu1 %5429 }
0x149d   :  { %v5463_v52 = vadd.f32 %v5430_v44, %v5319_v23  ;;  %v5480_v7 = vadd.f32 %v5464_v3, %v4150_v4 }
0x149f   :  { %v5479_v26 = vadd.f32 %v5463_v52, %v4149_v38  ;;  %v5496_v30 = vmul.f32 0.5, %v5480_v7 }
0x14a1   :  { %v5495_v54 = vmul.f32 0.5, %v5479_v26 }
0x14a3   :  { %v5559_v59 = vadd.f32 %v5526_v63, %v5495_v54 }
0x14a4   :  { %v5528_v60 = vpop.permute.xlu1 %5527 }
0x14a5   :  { %v5560_v21 = vadd.f32 %v5528_v60, %v5496_v30  ;;  %v5575_v57 = vmax.f32 %v5559_v59, 0.0 }
0x14a7   :  { %v5576_v2 = vmax.f32 %v5560_v21, 0.0 }
0x14a9   :  { %v5584_v45 = vpack.c.bf16 %v5576_v2, %v5575_v57 }
0x14ab   :  { %5762 = vmatmul.msk.bf16.gmra.mxu1 %vm12997_vm7, %v5584_v45 }
0x14be   :  { %v5646_v10 = vpop.f32.mrf.mxu1 }
0x14bf   :  { %v5647_v28 = vadd.f32 %v11074_v11, %v5646_v10 }
0x14c1   :  { %5674 = vst [vmem:[#allocation11 + $0x40] sm:$0xff] %v5647_v28 }
0x14c6   :  { %v5648_v42 = vpop.f32.mrf.mxu1 }
0x14c7   :  { %v5649_v17 = vadd.f32 %v11074_v11, %v5648_v42 }
0x14c9   :  { %5675 = vst [vmem:[#allocation11 + $0x48] sm:$0xff] %v5649_v17 }
0x14d6   :  { %v5651_v29 = vpop.f32.mrf.mxu1 }
0x14d7   :  { %v5652_v0 = vadd.f32 %v11074_v11, %v5651_v29 }
0x14d9   :  { %5676 = vst [vmem:[#allocation11 + $0x50] sm:$0xff] %v5652_v0 }
0x14de   :  { %v5653_v1 = vpop.f32.mrf.mxu1 }
0x14df   :  { %v5654_v48 = vadd.f32 %v11074_v11, %v5653_v1 }
0x14e1   :  { %5677 = vst [vmem:[#allocation11 + $0x58] sm:$0xff] %v5654_v48 }
0x14ee   :  { %v5656_v41 = vpop.f32.mrf.mxu1 }
0x14ef   :  { %v5657_v37 = vadd.f32 %v11074_v11, %v5656_v41 }
0x14f1   :  { %5678 = vst [vmem:[#allocation11 + $0x60] sm:$0xff] %v5657_v37 }
0x14f6   :  { %v5658_v56 = vpop.f32.mrf.mxu1 }
0x14f7   :  { %v5659_v55 = vadd.f32 %v11074_v11, %v5658_v56 }
0x14f9   :  { %5679 = vst [vmem:[#allocation11 + $0x68] sm:$0xff] %v5659_v55 }
0x1528   :  { %v5661_v39 = vpop.f32.mrf.mxu1 }
0x1529   :  { %v5662_v33 = vadd.f32 %v11074_v11, %v5661_v39 }
0x152b   :  { %5680 = vst [vmem:[#allocation11 + $0x70] sm:$0xff] %v5662_v33 }
0x1530   :  { %v5663_v47 = vpop.f32.mrf.mxu1 }
0x1531   :  { %v5664_v12 = vadd.f32 %v11074_v11, %v5663_v47 }
0x1533   :  { %5681 = vst [vmem:[#allocation11 + $0x78] sm:$0xff] %v5664_v12 }
0x1534   :  { %5694 = dma.vmem_to_hbm [thread:$0]  %s5687_s0, 2048, %s5689_s30, [#allocation4], %s6509_s12, %s6509_s12, %s6506_s26  }
0x1535   :  { %6484 = dma.done.wait [#allocation4], 2048  }
0x1536   :  { %6485 = vsyncadd [#allocation4], 4294965248 }
0x1537   :  { %5699 = vsyncpa [#allocation3], 1 }
0x1538   :  { %5700 = vsyncpa [#allocation6], 1 }
0x1539   :  { %5701 = vsyncpa [#allocation9], 1 }
0x153a   :  { %5702 = vsyncpa [#allocation4], 1 }

</bundles_post_ra>
